<compile_context>
chip_gen: v7x
topology: tpu7x:2x2x1
jax: 0.10.0
libtpu: 0.0.40
codegen_flags: <defaults>
</compile_context>

<pallas_src>
import functools

import jax
import jax.numpy as jnp
from jax import lax
from jax.experimental import pallas as pl
from jax.experimental.pallas import tpu as pltpu


# ---------------------------------------------------------------------------
# Fused whole-network kernel (per image)
# ---------------------------------------------------------------------------
def _cnn_fused_kernel(x_ref, w1_ref, s1_ref, b1_ref, w2_ref, s2_ref, b2_ref,
                      w3_ref, s3_ref, b3_ref, wlin_ref, blin_ref,
                      o_ref, pad_ref, patch_ref, *, H, W, Cin, F):
    HW = H * W

    # Zero the padded activation scratch (borders stay zero -> SAME padding;
    # the interior is overwritten before every conv layer).
    pad_ref[...] = jnp.zeros_like(pad_ref)

    def im2col(cin):
        # Scatter the 9 shifted (H, W, cin) windows of the padded activation into
        # lane-contiguous columns of patch_ref -> one (H*W, 9*cin) im2col matrix.
        for t in range(9):
            ky, kx = t // 3, t % 3
            win = pad_ref[pl.ds(ky, H), pl.ds(kx, W), pl.ds(0, cin)]   # (H, W, cin)
            patch_ref[:, pl.ds(t * cin, cin)] = win.reshape(HW, cin)
        return patch_ref[:, pl.ds(0, 9 * cin)]                          # (HW, 9*cin)

    # ---- conv1 + folded BN1 + ReLU (dropout = identity in inference) ----
    pad_ref[pl.ds(1, H), pl.ds(1, W), pl.ds(0, Cin)] = x_ref[0]
    a = jnp.dot(im2col(Cin), w1_ref[...], preferred_element_type=jnp.float32)
    a = jnp.maximum(a * s1_ref[...] + b1_ref[...], 0.0)                 # (HW, F)

    # ---- conv2 + folded BN2 + ReLU ----
    pad_ref[pl.ds(1, H), pl.ds(1, W), pl.ds(0, F)] = a.reshape(H, W, F)
    a = jnp.dot(im2col(F), w2_ref[...], preferred_element_type=jnp.float32)
    a = jnp.maximum(a * s2_ref[...] + b2_ref[...], 0.0)                 # (HW, F)

    # ---- conv3 (Cout=1) + folded BN3 + ReLU: VPU multiply + lane reduction ----
    pad_ref[pl.ds(1, H), pl.ds(1, W), pl.ds(0, F)] = a.reshape(H, W, F)
    p = im2col(F)                                                        # (HW, 9*F)
    a3 = jnp.sum(p * w3_ref[...], axis=-1, keepdims=True)               # (HW, 1)
    a3 = jnp.maximum(a3 * s3_ref[...] + b3_ref[...], 0.0)

    # ---- flatten + Linear + sigmoid (VPU/XLU reduction, no N=1 MXU matmul) ----
    # NOTE: NHWC flatten matches torch.flatten(NCHW) only because conv3 has Cout == 1.
    y = jnp.sum(a3 * wlin_ref[...], axis=0, keepdims=True) + blin_ref[...]   # (1, 1)
    o_ref[0] = (1.0 / (1.0 + jnp.exp(-y))).astype(o_ref.dtype)


def cnn_forward(x_nchw, params):
    x = jnp.transpose(x_nchw, (0, 2, 3, 1))          # NCHW -> NHWC (channels on lanes)
    N, H, W, Cin = x.shape
    (w1, s1, b1), (w2, s2, b2), (w3, s3, b3) = params["convs"]
    F = w1.shape[-1]
    Cmax = max(Cin, F)
    HW = H * W

    # HWIO (3,3,cin,cout) -> im2col weight (9*cin, cout); row = (ky*3+kx)*cin + c.
    w1m = w1.reshape(9 * Cin, F)
    w2m = w2.reshape(9 * F, F)
    w3r = w3.reshape(9 * F, 1).T                      # (1, 9*F) for the VPU path
    s1r, b1r = s1.reshape(1, F), b1.reshape(1, F)
    s2r, b2r = s2.reshape(1, F), b2.reshape(1, F)
    s3r, b3r = s3.reshape(1, 1), b3.reshape(1, 1)
    wlin, blin = params["w_lin"], params["b_lin"]     # (HW, 1), (1, 1)

    def full(shape):
        return pl.BlockSpec(shape, lambda n, _s=shape: (0,) * len(_s))

    kernel = functools.partial(_cnn_fused_kernel, H=H, W=W, Cin=Cin, F=F)
    out = pl.pallas_call(
        kernel,
        out_shape=jax.ShapeDtypeStruct((N, 1, 1), x.dtype),
        grid=(N,),
        in_specs=[
            pl.BlockSpec((1, H, W, Cin), lambda n: (n, 0, 0, 0)),
            full((9 * Cin, F)), full((1, F)), full((1, F)),
            full((9 * F, F)), full((1, F)), full((1, F)),
            full((1, 9 * F)), full((1, 1)), full((1, 1)),
            full((HW, 1)), full((1, 1)),
        ],
        out_specs=pl.BlockSpec((1, 1, 1), lambda n: (n, 0, 0)),
        scratch_shapes=[
            pltpu.VMEM((H + 2, W + 2, Cmax), jnp.float32),   # padded activation
            pltpu.VMEM((HW, 9 * Cmax), jnp.float32),         # im2col patch matrix
        ],
        compiler_params=pltpu.CompilerParams(
            dimension_semantics=("parallel",)),
    )(x, w1m, s1r, b1r, w2m, s2r, b2r, w3r, s3r, b3r, wlin, blin)
    return out.reshape(N, 1)


# ---------------------------------------------------------------------------
# Parameters (deterministic synthetic init; BN folded into scale/shift)
# ---------------------------------------------------------------------------
def init_params(key, image_size, n_filters, n_channels):
    eps = 1e-5
    dims = [(n_channels, n_filters), (n_filters, n_filters), (n_filters, 1)]
    params = {"convs": []}
    for cin, cout in dims:
        key, kw, kb, kg, kbe = jax.random.split(key, 5)
        w = jax.random.normal(kw, (3, 3, cin, cout), jnp.float32) * 0.1   # HWIO
        b = jax.random.normal(kb, (cout,), jnp.float32) * 0.1
        gamma = 1.0 + 0.1 * jax.random.normal(kg, (cout,), jnp.float32)
        beta = 0.1 * jax.random.normal(kbe, (cout,), jnp.float32)
        run_mean = jnp.zeros((cout,), jnp.float32)                        # BN running stats
        run_var = jnp.ones((cout,), jnp.float32)
        scale = gamma / jnp.sqrt(run_var + eps)
        shift = beta + (b - run_mean) * scale
        params["convs"].append((w, scale, shift))
    feat = image_size[0] * image_size[1]
    key, kw, kb = jax.random.split(key, 3)
    params["w_lin"] = jax.random.normal(kw, (feat, 1), jnp.float32) * 0.05
    params["b_lin"] = jax.random.normal(kb, (1, 1), jnp.float32) * 0.05
    return params


# ---------------------------------------------------------------------------
# Pure-JAX reference
# ---------------------------------------------------------------------------
def cnn_reference(x_nchw, params):
    x = jnp.transpose(x_nchw, (0, 2, 3, 1))
    for w, scale, shift in params["convs"]:
        x = lax.conv_general_dilated(
            x, w, window_strides=(1, 1), padding="SAME",
            dimension_numbers=("NHWC", "HWIO", "NHWC"),
            precision=lax.Precision.HIGHEST)
        x = jnp.maximum(x * scale + shift, 0.0)
    x = x.reshape(x.shape[0], -1)
    y = x @ params["w_lin"] + params["b_lin"]
    return 1.0 / (1.0 + jnp.exp(-y))


if __name__ == "__main__":
    image_size = (16, 16)   # Linear in_features = 16*16 = 256
    n_filters = 8
    n_channels = 4
    batch = 2

    key = jax.random.PRNGKey(0)
    kx, kp = jax.random.split(key)
    x = jax.random.normal(kx, (batch, n_channels) + image_size, jnp.float32)
    params = init_params(kp, image_size, n_filters, n_channels)

    out = jax.block_until_ready(cnn_forward(x, params))
    ref = jax.block_until_ready(cnn_reference(x, params))

    assert out.shape == (batch, 1), out.shape
    assert bool(jnp.all(jnp.isfinite(out)))
    assert jnp.allclose(out, ref, rtol=1e-3, atol=1e-3), (out, ref)
    print("KERNEL_OK")
</pallas_src>

<mosaic_0001>
module attributes {stable_mosaic.version = 11 : i64} {
  func.func @_cnn_fused_kernel(%arg0: i32, %arg1: memref<1x16x16x4xf32, #tpu.memory_space<vmem>>, %arg2: memref<36x8xf32, #tpu.memory_space<vmem>>, %arg3: memref<1x8xf32, #tpu.memory_space<vmem>>, %arg4: memref<1x8xf32, #tpu.memory_space<vmem>>, %arg5: memref<72x8xf32, #tpu.memory_space<vmem>>, %arg6: memref<1x8xf32, #tpu.memory_space<vmem>>, %arg7: memref<1x8xf32, #tpu.memory_space<vmem>>, %arg8: memref<1x72xf32, #tpu.memory_space<vmem>>, %arg9: memref<1x1xf32, #tpu.memory_space<vmem>>, %arg10: memref<1x1xf32, #tpu.memory_space<vmem>>, %arg11: memref<256x1xf32, #tpu.memory_space<vmem>>, %arg12: memref<1x1xf32, #tpu.memory_space<vmem>>, %arg13: memref<1x1x1xf32, #tpu.memory_space<vmem>>, %arg14: memref<18x18x8xf32, #tpu.memory_space<vmem>>, %arg15: memref<256x72xf32, #tpu.memory_space<vmem>>) attributes {dimension_semantics = [#tpu.dimension_semantics<parallel>], iteration_bounds = array<i64: 2>, scalar_prefetch = 0 : i64, scratch_operands = 2 : i64, tpu.core_type = #tpu.core_type<tc>, window_params = [{transform_indices = @transform_0, window_bounds = array<i64: 1, 16, 16, 4>}, {pipeline_mode = #tpu.pipeline_mode<synchronous>, transform_indices = @transform_1, window_bounds = array<i64: 36, 8>}, {pipeline_mode = #tpu.pipeline_mode<synchronous>, transform_indices = @transform_2, window_bounds = array<i64: 1, 8>}, {pipeline_mode = #tpu.pipeline_mode<synchronous>, transform_indices = @transform_3, window_bounds = array<i64: 1, 8>}, {pipeline_mode = #tpu.pipeline_mode<synchronous>, transform_indices = @transform_4, window_bounds = array<i64: 72, 8>}, {pipeline_mode = #tpu.pipeline_mode<synchronous>, transform_indices = @transform_5, window_bounds = array<i64: 1, 8>}, {pipeline_mode = #tpu.pipeline_mode<synchronous>, transform_indices = @transform_6, window_bounds = array<i64: 1, 8>}, {pipeline_mode = #tpu.pipeline_mode<synchronous>, transform_indices = @transform_7, window_bounds = array<i64: 1, 72>}, {pipeline_mode = #tpu.pipeline_mode<synchronous>, transform_indices = @transform_8, window_bounds = array<i64: 1, 1>}, {pipeline_mode = #tpu.pipeline_mode<synchronous>, transform_indices = @transform_9, window_bounds = array<i64: 1, 1>}, {pipeline_mode = #tpu.pipeline_mode<synchronous>, transform_indices = @transform_10, window_bounds = array<i64: 256, 1>}, {pipeline_mode = #tpu.pipeline_mode<synchronous>, transform_indices = @transform_11, window_bounds = array<i64: 1, 1>}, {transform_indices = @transform_12, window_bounds = array<i64: 1, 1, 1>}]} {
    %cst = arith.constant 0.000000e+00 : f32
    %0 = vector.broadcast %cst : f32 to vector<18x18x8xf32>
    %c0 = arith.constant 0 : index
    %c0_0 = arith.constant 0 : index
    %c0_1 = arith.constant 0 : index
    %1 = vector.load %arg14[%c0, %c0_0, %c0_1] : memref<18x18x8xf32, #tpu.memory_space<vmem>>, vector<18x18x8xf32>
    tpu.vector_store %arg14[%c0, %c0_0, %c0_1], %0 {strides = array<i32>} : memref<18x18x8xf32, #tpu.memory_space<vmem>>, vector<18x18x8xf32>,
    %c0_2 = arith.constant 0 : index
    %c0_3 = arith.constant 0 : index
    %c0_4 = arith.constant 0 : index
    %c0_5 = arith.constant 0 : index
    %2 = vector.load %arg1[%c0_2, %c0_3, %c0_4, %c0_5] : memref<1x16x16x4xf32, #tpu.memory_space<vmem>>, vector<1x16x16x4xf32>
    %3 = vector.shape_cast %2 : vector<1x16x16x4xf32> to vector<16x16x4xf32>
    %c1 = arith.constant 1 : index
    %c1_6 = arith.constant 1 : index
    %c0_7 = arith.constant 0 : index
    %4 = vector.load %arg14[%c1, %c1_6, %c0_7] : memref<18x18x8xf32, #tpu.memory_space<vmem>>, vector<16x16x4xf32>
    tpu.vector_store %arg14[%c1, %c1_6, %c0_7], %3 {strides = array<i32>} : memref<18x18x8xf32, #tpu.memory_space<vmem>>, vector<16x16x4xf32>,
    %c0_8 = arith.constant 0 : index
    %c0_9 = arith.constant 0 : index
    %c0_10 = arith.constant 0 : index
    %5 = vector.load %arg14[%c0_8, %c0_9, %c0_10] : memref<18x18x8xf32, #tpu.memory_space<vmem>>, vector<16x16x4xf32>
    %6 = vector.shape_cast %5 : vector<16x16x4xf32> to vector<256x4xf32>
    %c0_11 = arith.constant 0 : index
    %c0_12 = arith.constant 0 : index
    %7 = vector.load %arg15[%c0_11, %c0_12] : memref<256x72xf32, #tpu.memory_space<vmem>>, vector<256x4xf32>
    tpu.vector_store %arg15[%c0_11, %c0_12], %6 {strides = array<i32>} : memref<256x72xf32, #tpu.memory_space<vmem>>, vector<256x4xf32>,
    %c0_13 = arith.constant 0 : index
    %c1_14 = arith.constant 1 : index
    %c0_15 = arith.constant 0 : index
    %8 = vector.load %arg14[%c0_13, %c1_14, %c0_15] : memref<18x18x8xf32, #tpu.memory_space<vmem>>, vector<16x16x4xf32>
    %9 = vector.shape_cast %8 : vector<16x16x4xf32> to vector<256x4xf32>
    %c0_16 = arith.constant 0 : index
    %c4 = arith.constant 4 : index
    %10 = vector.load %arg15[%c0_16, %c4] : memref<256x72xf32, #tpu.memory_space<vmem>>, vector<256x4xf32>
    tpu.vector_store %arg15[%c0_16, %c4], %9 {strides = array<i32>} : memref<256x72xf32, #tpu.memory_space<vmem>>, vector<256x4xf32>,
    %c0_17 = arith.constant 0 : index
    %c2 = arith.constant 2 : index
    %c0_18 = arith.constant 0 : index
    %11 = vector.load %arg14[%c0_17, %c2, %c0_18] : memref<18x18x8xf32, #tpu.memory_space<vmem>>, vector<16x16x4xf32>
    %12 = vector.shape_cast %11 : vector<16x16x4xf32> to vector<256x4xf32>
    %c0_19 = arith.constant 0 : index
    %c8 = arith.constant 8 : index
    %13 = vector.load %arg15[%c0_19, %c8] : memref<256x72xf32, #tpu.memory_space<vmem>>, vector<256x4xf32>
    tpu.vector_store %arg15[%c0_19, %c8], %12 {strides = array<i32>} : memref<256x72xf32, #tpu.memory_space<vmem>>, vector<256x4xf32>,
    %c1_20 = arith.constant 1 : index
    %c0_21 = arith.constant 0 : index
    %c0_22 = arith.constant 0 : index
    %14 = vector.load %arg14[%c1_20, %c0_21, %c0_22] : memref<18x18x8xf32, #tpu.memory_space<vmem>>, vector<16x16x4xf32>
    %15 = vector.shape_cast %14 : vector<16x16x4xf32> to vector<256x4xf32>
    %c0_23 = arith.constant 0 : index
    %c12 = arith.constant 12 : index
    %16 = vector.load %arg15[%c0_23, %c12] : memref<256x72xf32, #tpu.memory_space<vmem>>, vector<256x4xf32>
    tpu.vector_store %arg15[%c0_23, %c12], %15 {strides = array<i32>} : memref<256x72xf32, #tpu.memory_space<vmem>>, vector<256x4xf32>,
    %c1_24 = arith.constant 1 : index
    %c1_25 = arith.constant 1 : index
    %c0_26 = arith.constant 0 : index
    %17 = vector.load %arg14[%c1_24, %c1_25, %c0_26] : memref<18x18x8xf32, #tpu.memory_space<vmem>>, vector<16x16x4xf32>
    %18 = vector.shape_cast %17 : vector<16x16x4xf32> to vector<256x4xf32>
    %c0_27 = arith.constant 0 : index
    %c16 = arith.constant 16 : index
    %19 = vector.load %arg15[%c0_27, %c16] : memref<256x72xf32, #tpu.memory_space<vmem>>, vector<256x4xf32>
    tpu.vector_store %arg15[%c0_27, %c16], %18 {strides = array<i32>} : memref<256x72xf32, #tpu.memory_space<vmem>>, vector<256x4xf32>,
    %c1_28 = arith.constant 1 : index
    %c2_29 = arith.constant 2 : index
    %c0_30 = arith.constant 0 : index
    %20 = vector.load %arg14[%c1_28, %c2_29, %c0_30] : memref<18x18x8xf32, #tpu.memory_space<vmem>>, vector<16x16x4xf32>
    %21 = vector.shape_cast %20 : vector<16x16x4xf32> to vector<256x4xf32>
    %c0_31 = arith.constant 0 : index
    %c20 = arith.constant 20 : index
    %22 = vector.load %arg15[%c0_31, %c20] : memref<256x72xf32, #tpu.memory_space<vmem>>, vector<256x4xf32>
    tpu.vector_store %arg15[%c0_31, %c20], %21 {strides = array<i32>} : memref<256x72xf32, #tpu.memory_space<vmem>>, vector<256x4xf32>,
    %c2_32 = arith.constant 2 : index
    %c0_33 = arith.constant 0 : index
    %c0_34 = arith.constant 0 : index
    %23 = vector.load %arg14[%c2_32, %c0_33, %c0_34] : memref<18x18x8xf32, #tpu.memory_space<vmem>>, vector<16x16x4xf32>
    %24 = vector.shape_cast %23 : vector<16x16x4xf32> to vector<256x4xf32>
    %c0_35 = arith.constant 0 : index
    %c24 = arith.constant 24 : index
    %25 = vector.load %arg15[%c0_35, %c24] : memref<256x72xf32, #tpu.memory_space<vmem>>, vector<256x4xf32>
    tpu.vector_store %arg15[%c0_35, %c24], %24 {strides = array<i32>} : memref<256x72xf32, #tpu.memory_space<vmem>>, vector<256x4xf32>,
    %c2_36 = arith.constant 2 : index
    %c1_37 = arith.constant 1 : index
    %c0_38 = arith.constant 0 : index
    %26 = vector.load %arg14[%c2_36, %c1_37, %c0_38] : memref<18x18x8xf32, #tpu.memory_space<vmem>>, vector<16x16x4xf32>
    %27 = vector.shape_cast %26 : vector<16x16x4xf32> to vector<256x4xf32>
    %c0_39 = arith.constant 0 : index
    %c28 = arith.constant 28 : index
    %28 = vector.load %arg15[%c0_39, %c28] : memref<256x72xf32, #tpu.memory_space<vmem>>, vector<256x4xf32>
    tpu.vector_store %arg15[%c0_39, %c28], %27 {strides = array<i32>} : memref<256x72xf32, #tpu.memory_space<vmem>>, vector<256x4xf32>,
    %c2_40 = arith.constant 2 : index
    %c2_41 = arith.constant 2 : index
    %c0_42 = arith.constant 0 : index
    %29 = vector.load %arg14[%c2_40, %c2_41, %c0_42] : memref<18x18x8xf32, #tpu.memory_space<vmem>>, vector<16x16x4xf32>
    %30 = vector.shape_cast %29 : vector<16x16x4xf32> to vector<256x4xf32>
    %c0_43 = arith.constant 0 : index
    %c32 = arith.constant 32 : index
    %31 = vector.load %arg15[%c0_43, %c32] : memref<256x72xf32, #tpu.memory_space<vmem>>, vector<256x4xf32>
    tpu.vector_store %arg15[%c0_43, %c32], %30 {strides = array<i32>} : memref<256x72xf32, #tpu.memory_space<vmem>>, vector<256x4xf32>,
    %c0_44 = arith.constant 0 : index
    %c0_45 = arith.constant 0 : index
    %32 = vector.load %arg15[%c0_44, %c0_45] : memref<256x72xf32, #tpu.memory_space<vmem>>, vector<256x36xf32>
    %c0_46 = arith.constant 0 : index
    %c0_47 = arith.constant 0 : index
    %33 = vector.load %arg2[%c0_46, %c0_47] : memref<36x8xf32, #tpu.memory_space<vmem>>, vector<36x8xf32>
    %cst_48 = arith.constant dense<0.000000e+00> : vector<256x8xf32>
    %34 = tpu.matmul %32, %33, %cst_48 {dimension_numbers = #tpu.dot_dimension_numbers<[1], [0], [0], [1], [0, 0, 1, 1], [], []>} : vector<256x36xf32>, vector<36x8xf32>, vector<256x8xf32> -> vector<256x8xf32>
    %c0_49 = arith.constant 0 : index
    %c0_50 = arith.constant 0 : index
    %35 = vector.load %arg3[%c0_49, %c0_50] : memref<1x8xf32, #tpu.memory_space<vmem>>, vector<1x8xf32>
    %36 = vector.broadcast %35 : vector<1x8xf32> to vector<256x8xf32>
    %37 = arith.mulf %34, %36 : vector<256x8xf32>
    %c0_51 = arith.constant 0 : index
    %c0_52 = arith.constant 0 : index
    %38 = vector.load %arg4[%c0_51, %c0_52] : memref<1x8xf32, #tpu.memory_space<vmem>>, vector<1x8xf32>
    %39 = vector.broadcast %38 : vector<1x8xf32> to vector<256x8xf32>
    %40 = arith.addf %37, %39 : vector<256x8xf32>
    %cst_53 = arith.constant 0.000000e+00 : f32
    %41 = vector.broadcast %cst_53 : f32 to vector<256x8xf32>
    %42 = arith.maximumf %40, %41 : vector<256x8xf32>
    %43 = vector.shape_cast %42 : vector<256x8xf32> to vector<16x16x8xf32>
    %c1_54 = arith.constant 1 : index
    %c1_55 = arith.constant 1 : index
    %c0_56 = arith.constant 0 : index
    %44 = vector.load %arg14[%c1_54, %c1_55, %c0_56] : memref<18x18x8xf32, #tpu.memory_space<vmem>>, vector<16x16x8xf32>
    tpu.vector_store %arg14[%c1_54, %c1_55, %c0_56], %43 {strides = array<i32>} : memref<18x18x8xf32, #tpu.memory_space<vmem>>, vector<16x16x8xf32>,
    %c0_57 = arith.constant 0 : index
    %c0_58 = arith.constant 0 : index
    %c0_59 = arith.constant 0 : index
    %45 = vector.load %arg14[%c0_57, %c0_58, %c0_59] : memref<18x18x8xf32, #tpu.memory_space<vmem>>, vector<16x16x8xf32>
    %46 = vector.shape_cast %45 : vector<16x16x8xf32> to vector<256x8xf32>
    %c0_60 = arith.constant 0 : index
    %c0_61 = arith.constant 0 : index
    %47 = vector.load %arg15[%c0_60, %c0_61] : memref<256x72xf32, #tpu.memory_space<vmem>>, vector<256x8xf32>
    tpu.vector_store %arg15[%c0_60, %c0_61], %46 {strides = array<i32>} : memref<256x72xf32, #tpu.memory_space<vmem>>, vector<256x8xf32>,
    %c0_62 = arith.constant 0 : index
    %c1_63 = arith.constant 1 : index
    %c0_64 = arith.constant 0 : index
    %48 = vector.load %arg14[%c0_62, %c1_63, %c0_64] : memref<18x18x8xf32, #tpu.memory_space<vmem>>, vector<16x16x8xf32>
    %49 = vector.shape_cast %48 : vector<16x16x8xf32> to vector<256x8xf32>
    %c0_65 = arith.constant 0 : index
    %c8_66 = arith.constant 8 : index
    %50 = vector.load %arg15[%c0_65, %c8_66] : memref<256x72xf32, #tpu.memory_space<vmem>>, vector<256x8xf32>
    tpu.vector_store %arg15[%c0_65, %c8_66], %49 {strides = array<i32>} : memref<256x72xf32, #tpu.memory_space<vmem>>, vector<256x8xf32>,
    %c0_67 = arith.constant 0 : index
    %c2_68 = arith.constant 2 : index
    %c0_69 = arith.constant 0 : index
    %51 = vector.load %arg14[%c0_67, %c2_68, %c0_69] : memref<18x18x8xf32, #tpu.memory_space<vmem>>, vector<16x16x8xf32>
    %52 = vector.shape_cast %51 : vector<16x16x8xf32> to vector<256x8xf32>
    %c0_70 = arith.constant 0 : index
    %c16_71 = arith.constant 16 : index
    %53 = vector.load %arg15[%c0_70, %c16_71] : memref<256x72xf32, #tpu.memory_space<vmem>>, vector<256x8xf32>
    tpu.vector_store %arg15[%c0_70, %c16_71], %52 {strides = array<i32>} : memref<256x72xf32, #tpu.memory_space<vmem>>, vector<256x8xf32>,
    %c1_72 = arith.constant 1 : index
    %c0_73 = arith.constant 0 : index
    %c0_74 = arith.constant 0 : index
    %54 = vector.load %arg14[%c1_72, %c0_73, %c0_74] : memref<18x18x8xf32, #tpu.memory_space<vmem>>, vector<16x16x8xf32>
    %55 = vector.shape_cast %54 : vector<16x16x8xf32> to vector<256x8xf32>
    %c0_75 = arith.constant 0 : index
    %c24_76 = arith.constant 24 : index
    %56 = vector.load %arg15[%c0_75, %c24_76] : memref<256x72xf32, #tpu.memory_space<vmem>>, vector<256x8xf32>
    tpu.vector_store %arg15[%c0_75, %c24_76], %55 {strides = array<i32>} : memref<256x72xf32, #tpu.memory_space<vmem>>, vector<256x8xf32>,
    %c1_77 = arith.constant 1 : index
    %c1_78 = arith.constant 1 : index
    %c0_79 = arith.constant 0 : index
    %57 = vector.load %arg14[%c1_77, %c1_78, %c0_79] : memref<18x18x8xf32, #tpu.memory_space<vmem>>, vector<16x16x8xf32>
    %58 = vector.shape_cast %57 : vector<16x16x8xf32> to vector<256x8xf32>
    %c0_80 = arith.constant 0 : index
    %c32_81 = arith.constant 32 : index
    %59 = vector.load %arg15[%c0_80, %c32_81] : memref<256x72xf32, #tpu.memory_space<vmem>>, vector<256x8xf32>
    tpu.vector_store %arg15[%c0_80, %c32_81], %58 {strides = array<i32>} : memref<256x72xf32, #tpu.memory_space<vmem>>, vector<256x8xf32>,
    %c1_82 = arith.constant 1 : index
    %c2_83 = arith.constant 2 : index
    %c0_84 = arith.constant 0 : index
    %60 = vector.load %arg14[%c1_82, %c2_83, %c0_84] : memref<18x18x8xf32, #tpu.memory_space<vmem>>, vector<16x16x8xf32>
    %61 = vector.shape_cast %60 : vector<16x16x8xf32> to vector<256x8xf32>
    %c0_85 = arith.constant 0 : index
    %c40 = arith.constant 40 : index
    %62 = vector.load %arg15[%c0_85, %c40] : memref<256x72xf32, #tpu.memory_space<vmem>>, vector<256x8xf32>
    tpu.vector_store %arg15[%c0_85, %c40], %61 {strides = array<i32>} : memref<256x72xf32, #tpu.memory_space<vmem>>, vector<256x8xf32>,
    %c2_86 = arith.constant 2 : index
    %c0_87 = arith.constant 0 : index
    %c0_88 = arith.constant 0 : index
    %63 = vector.load %arg14[%c2_86, %c0_87, %c0_88] : memref<18x18x8xf32, #tpu.memory_space<vmem>>, vector<16x16x8xf32>
    %64 = vector.shape_cast %63 : vector<16x16x8xf32> to vector<256x8xf32>
    %c0_89 = arith.constant 0 : index
    %c48 = arith.constant 48 : index
    %65 = vector.load %arg15[%c0_89, %c48] : memref<256x72xf32, #tpu.memory_space<vmem>>, vector<256x8xf32>
    tpu.vector_store %arg15[%c0_89, %c48], %64 {strides = array<i32>} : memref<256x72xf32, #tpu.memory_space<vmem>>, vector<256x8xf32>,
    %c2_90 = arith.constant 2 : index
    %c1_91 = arith.constant 1 : index
    %c0_92 = arith.constant 0 : index
    %66 = vector.load %arg14[%c2_90, %c1_91, %c0_92] : memref<18x18x8xf32, #tpu.memory_space<vmem>>, vector<16x16x8xf32>
    %67 = vector.shape_cast %66 : vector<16x16x8xf32> to vector<256x8xf32>
    %c0_93 = arith.constant 0 : index
    %c56 = arith.constant 56 : index
    %68 = vector.load %arg15[%c0_93, %c56] : memref<256x72xf32, #tpu.memory_space<vmem>>, vector<256x8xf32>
    tpu.vector_store %arg15[%c0_93, %c56], %67 {strides = array<i32>} : memref<256x72xf32, #tpu.memory_space<vmem>>, vector<256x8xf32>,
    %c2_94 = arith.constant 2 : index
    %c2_95 = arith.constant 2 : index
    %c0_96 = arith.constant 0 : index
    %69 = vector.load %arg14[%c2_94, %c2_95, %c0_96] : memref<18x18x8xf32, #tpu.memory_space<vmem>>, vector<16x16x8xf32>
    %70 = vector.shape_cast %69 : vector<16x16x8xf32> to vector<256x8xf32>
    %c0_97 = arith.constant 0 : index
    %c64 = arith.constant 64 : index
    %71 = vector.load %arg15[%c0_97, %c64] : memref<256x72xf32, #tpu.memory_space<vmem>>, vector<256x8xf32>
    tpu.vector_store %arg15[%c0_97, %c64], %70 {strides = array<i32>} : memref<256x72xf32, #tpu.memory_space<vmem>>, vector<256x8xf32>,
    %c0_98 = arith.constant 0 : index
    %c0_99 = arith.constant 0 : index
    %72 = vector.load %arg15[%c0_98, %c0_99] : memref<256x72xf32, #tpu.memory_space<vmem>>, vector<256x72xf32>
    %c0_100 = arith.constant 0 : index
    %c0_101 = arith.constant 0 : index
    %73 = vector.load %arg5[%c0_100, %c0_101] : memref<72x8xf32, #tpu.memory_space<vmem>>, vector<72x8xf32>
    %cst_102 = arith.constant dense<0.000000e+00> : vector<256x8xf32>
    %74 = tpu.matmul %72, %73, %cst_102 {dimension_numbers = #tpu.dot_dimension_numbers<[1], [0], [0], [1], [0, 0, 1, 1], [], []>} : vector<256x72xf32>, vector<72x8xf32>, vector<256x8xf32> -> vector<256x8xf32>
    %c0_103 = arith.constant 0 : index
    %c0_104 = arith.constant 0 : index
    %75 = vector.load %arg6[%c0_103, %c0_104] : memref<1x8xf32, #tpu.memory_space<vmem>>, vector<1x8xf32>
    %76 = vector.broadcast %75 : vector<1x8xf32> to vector<256x8xf32>
    %77 = arith.mulf %74, %76 : vector<256x8xf32>
    %c0_105 = arith.constant 0 : index
    %c0_106 = arith.constant 0 : index
    %78 = vector.load %arg7[%c0_105, %c0_106] : memref<1x8xf32, #tpu.memory_space<vmem>>, vector<1x8xf32>
    %79 = vector.broadcast %78 : vector<1x8xf32> to vector<256x8xf32>
    %80 = arith.addf %77, %79 : vector<256x8xf32>
    %cst_107 = arith.constant 0.000000e+00 : f32
    %81 = vector.broadcast %cst_107 : f32 to vector<256x8xf32>
    %82 = arith.maximumf %80, %81 : vector<256x8xf32>
    %83 = vector.shape_cast %82 : vector<256x8xf32> to vector<16x16x8xf32>
    %c1_108 = arith.constant 1 : index
    %c1_109 = arith.constant 1 : index
    %c0_110 = arith.constant 0 : index
    %84 = vector.load %arg14[%c1_108, %c1_109, %c0_110] : memref<18x18x8xf32, #tpu.memory_space<vmem>>, vector<16x16x8xf32>
    tpu.vector_store %arg14[%c1_108, %c1_109, %c0_110], %83 {strides = array<i32>} : memref<18x18x8xf32, #tpu.memory_space<vmem>>, vector<16x16x8xf32>,
    %c0_111 = arith.constant 0 : index
    %c0_112 = arith.constant 0 : index
    %c0_113 = arith.constant 0 : index
    %85 = vector.load %arg14[%c0_111, %c0_112, %c0_113] : memref<18x18x8xf32, #tpu.memory_space<vmem>>, vector<16x16x8xf32>
    %86 = vector.shape_cast %85 : vector<16x16x8xf32> to vector<256x8xf32>
    %c0_114 = arith.constant 0 : index
    %c0_115 = arith.constant 0 : index
    %87 = vector.load %arg15[%c0_114, %c0_115] : memref<256x72xf32, #tpu.memory_space<vmem>>, vector<256x8xf32>
    tpu.vector_store %arg15[%c0_114, %c0_115], %86 {strides = array<i32>} : memref<256x72xf32, #tpu.memory_space<vmem>>, vector<256x8xf32>,
    %c0_116 = arith.constant 0 : index
    %c1_117 = arith.constant 1 : index
    %c0_118 = arith.constant 0 : index
    %88 = vector.load %arg14[%c0_116, %c1_117, %c0_118] : memref<18x18x8xf32, #tpu.memory_space<vmem>>, vector<16x16x8xf32>
    %89 = vector.shape_cast %88 : vector<16x16x8xf32> to vector<256x8xf32>
    %c0_119 = arith.constant 0 : index
    %c8_120 = arith.constant 8 : index
    %90 = vector.load %arg15[%c0_119, %c8_120] : memref<256x72xf32, #tpu.memory_space<vmem>>, vector<256x8xf32>
    tpu.vector_store %arg15[%c0_119, %c8_120], %89 {strides = array<i32>} : memref<256x72xf32, #tpu.memory_space<vmem>>, vector<256x8xf32>,
    %c0_121 = arith.constant 0 : index
    %c2_122 = arith.constant 2 : index
    %c0_123 = arith.constant 0 : index
    %91 = vector.load %arg14[%c0_121, %c2_122, %c0_123] : memref<18x18x8xf32, #tpu.memory_space<vmem>>, vector<16x16x8xf32>
    %92 = vector.shape_cast %91 : vector<16x16x8xf32> to vector<256x8xf32>
    %c0_124 = arith.constant 0 : index
    %c16_125 = arith.constant 16 : index
    %93 = vector.load %arg15[%c0_124, %c16_125] : memref<256x72xf32, #tpu.memory_space<vmem>>, vector<256x8xf32>
    tpu.vector_store %arg15[%c0_124, %c16_125], %92 {strides = array<i32>} : memref<256x72xf32, #tpu.memory_space<vmem>>, vector<256x8xf32>,
    %c1_126 = arith.constant 1 : index
    %c0_127 = arith.constant 0 : index
    %c0_128 = arith.constant 0 : index
    %94 = vector.load %arg14[%c1_126, %c0_127, %c0_128] : memref<18x18x8xf32, #tpu.memory_space<vmem>>, vector<16x16x8xf32>
    %95 = vector.shape_cast %94 : vector<16x16x8xf32> to vector<256x8xf32>
    %c0_129 = arith.constant 0 : index
    %c24_130 = arith.constant 24 : index
    %96 = vector.load %arg15[%c0_129, %c24_130] : memref<256x72xf32, #tpu.memory_space<vmem>>, vector<256x8xf32>
    tpu.vector_store %arg15[%c0_129, %c24_130], %95 {strides = array<i32>} : memref<256x72xf32, #tpu.memory_space<vmem>>, vector<256x8xf32>,
    %c1_131 = arith.constant 1 : index
    %c1_132 = arith.constant 1 : index
    %c0_133 = arith.constant 0 : index
    %97 = vector.load %arg14[%c1_131, %c1_132, %c0_133] : memref<18x18x8xf32, #tpu.memory_space<vmem>>, vector<16x16x8xf32>
    %98 = vector.shape_cast %97 : vector<16x16x8xf32> to vector<256x8xf32>
    %c0_134 = arith.constant 0 : index
    %c32_135 = arith.constant 32 : index
    %99 = vector.load %arg15[%c0_134, %c32_135] : memref<256x72xf32, #tpu.memory_space<vmem>>, vector<256x8xf32>
    tpu.vector_store %arg15[%c0_134, %c32_135], %98 {strides = array<i32>} : memref<256x72xf32, #tpu.memory_space<vmem>>, vector<256x8xf32>,
    %c1_136 = arith.constant 1 : index
    %c2_137 = arith.constant 2 : index
    %c0_138 = arith.constant 0 : index
    %100 = vector.load %arg14[%c1_136, %c2_137, %c0_138] : memref<18x18x8xf32, #tpu.memory_space<vmem>>, vector<16x16x8xf32>
    %101 = vector.shape_cast %100 : vector<16x16x8xf32> to vector<256x8xf32>
    %c0_139 = arith.constant 0 : index
    %c40_140 = arith.constant 40 : index
    %102 = vector.load %arg15[%c0_139, %c40_140] : memref<256x72xf32, #tpu.memory_space<vmem>>, vector<256x8xf32>
    tpu.vector_store %arg15[%c0_139, %c40_140], %101 {strides = array<i32>} : memref<256x72xf32, #tpu.memory_space<vmem>>, vector<256x8xf32>,
    %c2_141 = arith.constant 2 : index
    %c0_142 = arith.constant 0 : index
    %c0_143 = arith.constant 0 : index
    %103 = vector.load %arg14[%c2_141, %c0_142, %c0_143] : memref<18x18x8xf32, #tpu.memory_space<vmem>>, vector<16x16x8xf32>
    %104 = vector.shape_cast %103 : vector<16x16x8xf32> to vector<256x8xf32>
    %c0_144 = arith.constant 0 : index
    %c48_145 = arith.constant 48 : index
    %105 = vector.load %arg15[%c0_144, %c48_145] : memref<256x72xf32, #tpu.memory_space<vmem>>, vector<256x8xf32>
    tpu.vector_store %arg15[%c0_144, %c48_145], %104 {strides = array<i32>} : memref<256x72xf32, #tpu.memory_space<vmem>>, vector<256x8xf32>,
    %c2_146 = arith.constant 2 : index
    %c1_147 = arith.constant 1 : index
    %c0_148 = arith.constant 0 : index
    %106 = vector.load %arg14[%c2_146, %c1_147, %c0_148] : memref<18x18x8xf32, #tpu.memory_space<vmem>>, vector<16x16x8xf32>
    %107 = vector.shape_cast %106 : vector<16x16x8xf32> to vector<256x8xf32>
    %c0_149 = arith.constant 0 : index
    %c56_150 = arith.constant 56 : index
    %108 = vector.load %arg15[%c0_149, %c56_150] : memref<256x72xf32, #tpu.memory_space<vmem>>, vector<256x8xf32>
    tpu.vector_store %arg15[%c0_149, %c56_150], %107 {strides = array<i32>} : memref<256x72xf32, #tpu.memory_space<vmem>>, vector<256x8xf32>,
    %c2_151 = arith.constant 2 : index
    %c2_152 = arith.constant 2 : index
    %c0_153 = arith.constant 0 : index
    %109 = vector.load %arg14[%c2_151, %c2_152, %c0_153] : memref<18x18x8xf32, #tpu.memory_space<vmem>>, vector<16x16x8xf32>
    %110 = vector.shape_cast %109 : vector<16x16x8xf32> to vector<256x8xf32>
    %c0_154 = arith.constant 0 : index
    %c64_155 = arith.constant 64 : index
    %111 = vector.load %arg15[%c0_154, %c64_155] : memref<256x72xf32, #tpu.memory_space<vmem>>, vector<256x8xf32>
    tpu.vector_store %arg15[%c0_154, %c64_155], %110 {strides = array<i32>} : memref<256x72xf32, #tpu.memory_space<vmem>>, vector<256x8xf32>,
    %c0_156 = arith.constant 0 : index
    %c0_157 = arith.constant 0 : index
    %112 = vector.load %arg15[%c0_156, %c0_157] : memref<256x72xf32, #tpu.memory_space<vmem>>, vector<256x72xf32>
    %c0_158 = arith.constant 0 : index
    %c0_159 = arith.constant 0 : index
    %113 = vector.load %arg8[%c0_158, %c0_159] : memref<1x72xf32, #tpu.memory_space<vmem>>, vector<1x72xf32>
    %114 = vector.broadcast %113 : vector<1x72xf32> to vector<256x72xf32>
    %115 = arith.mulf %112, %114 : vector<256x72xf32>
    %cst_160 = arith.constant dense<0.000000e+00> : vector<256xf32>
    %116 = vector.multi_reduction <add>, %115, %cst_160 [1] : vector<256x72xf32> to vector<256xf32>
    %117 = vector.shape_cast %116 : vector<256xf32> to vector<256x1xf32>
    %c0_161 = arith.constant 0 : index
    %c0_162 = arith.constant 0 : index
    %118 = vector.load %arg9[%c0_161, %c0_162] : memref<1x1xf32, #tpu.memory_space<vmem>>, vector<1x1xf32>
    %119 = vector.broadcast %118 : vector<1x1xf32> to vector<256x1xf32>
    %120 = arith.mulf %117, %119 : vector<256x1xf32>
    %c0_163 = arith.constant 0 : index
    %c0_164 = arith.constant 0 : index
    %121 = vector.load %arg10[%c0_163, %c0_164] : memref<1x1xf32, #tpu.memory_space<vmem>>, vector<1x1xf32>
    %122 = vector.broadcast %121 : vector<1x1xf32> to vector<256x1xf32>
    %123 = arith.addf %120, %122 : vector<256x1xf32>
    %cst_165 = arith.constant 0.000000e+00 : f32
    %124 = vector.broadcast %cst_165 : f32 to vector<256x1xf32>
    %125 = arith.maximumf %123, %124 : vector<256x1xf32>
    %c0_166 = arith.constant 0 : index
    %c0_167 = arith.constant 0 : index
    %126 = vector.load %arg11[%c0_166, %c0_167] : memref<256x1xf32, #tpu.memory_space<vmem>>, vector<256x1xf32>
    %127 = arith.mulf %125, %126 : vector<256x1xf32>
    %cst_168 = arith.constant dense<0.000000e+00> : vector<1xf32>
    %128 = vector.multi_reduction <add>, %127, %cst_168 [0] : vector<256x1xf32> to vector<1xf32>
    %129 = vector.shape_cast %128 : vector<1xf32> to vector<1x1xf32>
    %c0_169 = arith.constant 0 : index
    %c0_170 = arith.constant 0 : index
    %130 = vector.load %arg12[%c0_169, %c0_170] : memref<1x1xf32, #tpu.memory_space<vmem>>, vector<1x1xf32>
    %131 = arith.addf %129, %130 : vector<1x1xf32>
    %cst_171 = arith.constant 0.000000e+00 : f32
    %132 = vector.broadcast %cst_171 : f32 to vector<1x1xf32>
    %133 = arith.subf %132, %131 : vector<1x1xf32>
    %134 = math.exp %133 : vector<1x1xf32>
    %cst_172 = arith.constant 1.000000e+00 : f32
    %135 = vector.broadcast %cst_172 : f32 to vector<1x1xf32>
    %136 = arith.addf %135, %134 : vector<1x1xf32>
    %cst_173 = arith.constant 1.000000e+00 : f32
    %137 = vector.broadcast %cst_173 : f32 to vector<1x1xf32>
    %138 = arith.divf %137, %136 : vector<1x1xf32>
    %c0_174 = arith.constant 0 : index
    %c0_175 = arith.constant 0 : index
    %c0_176 = arith.constant 0 : index
    %139 = vector.load %arg13[%c0_174, %c0_175, %c0_176] : memref<1x1x1xf32, #tpu.memory_space<vmem>>, vector<1x1x1xf32>
    %140 = vector.shape_cast %139 : vector<1x1x1xf32> to vector<1x1xf32>
    %141 = vector.shape_cast %138 : vector<1x1xf32> to vector<1x1x1xf32>
    tpu.vector_store %arg13[%c0_174, %c0_175, %c0_176], %141 {strides = array<i32>} : memref<1x1x1xf32, #tpu.memory_space<vmem>>, vector<1x1x1xf32>,
    return
  }
  func.func @transform_0(%arg0: i32) -> (i32, i32, i32, i32) {
    %c0_i32 = arith.constant 0 : i32
    %c0_i32_0 = arith.constant 0 : i32
    %c0_i32_1 = arith.constant 0 : i32
    %c0_i32_2 = arith.constant 0 : i32
    return %arg0, %c0_i32, %c0_i32_0, %c0_i32_1 : i32, i32, i32, i32
  }
  func.func @transform_1(%arg0: i32) -> (i32, i32) {
    %c0_i32 = arith.constant 0 : i32
    %c0_i32_0 = arith.constant 0 : i32
    %c0_i32_1 = arith.constant 0 : i32
    return %c0_i32, %c0_i32_0 : i32, i32
  }
  func.func @transform_2(%arg0: i32) -> (i32, i32) {
    %c0_i32 = arith.constant 0 : i32
    %c0_i32_0 = arith.constant 0 : i32
    %c0_i32_1 = arith.constant 0 : i32
    return %c0_i32, %c0_i32_0 : i32, i32
  }
  func.func @transform_3(%arg0: i32) -> (i32, i32) {
    %c0_i32 = arith.constant 0 : i32
    %c0_i32_0 = arith.constant 0 : i32
    %c0_i32_1 = arith.constant 0 : i32
    return %c0_i32, %c0_i32_0 : i32, i32
  }
  func.func @transform_4(%arg0: i32) -> (i32, i32) {
    %c0_i32 = arith.constant 0 : i32
    %c0_i32_0 = arith.constant 0 : i32
    %c0_i32_1 = arith.constant 0 : i32
    return %c0_i32, %c0_i32_0 : i32, i32
  }
  func.func @transform_5(%arg0: i32) -> (i32, i32) {
    %c0_i32 = arith.constant 0 : i32
    %c0_i32_0 = arith.constant 0 : i32
    %c0_i32_1 = arith.constant 0 : i32
    return %c0_i32, %c0_i32_0 : i32, i32
  }
  func.func @transform_6(%arg0: i32) -> (i32, i32) {
    %c0_i32 = arith.constant 0 : i32
    %c0_i32_0 = arith.constant 0 : i32
    %c0_i32_1 = arith.constant 0 : i32
    return %c0_i32, %c0_i32_0 : i32, i32
  }
  func.func @transform_7(%arg0: i32) -> (i32, i32) {
    %c0_i32 = arith.constant 0 : i32
    %c0_i32_0 = arith.constant 0 : i32
    %c0_i32_1 = arith.constant 0 : i32
    return %c0_i32, %c0_i32_0 : i32, i32
  }
  func.func @transform_8(%arg0: i32) -> (i32, i32) {
    %c0_i32 = arith.constant 0 : i32
    %c0_i32_0 = arith.constant 0 : i32
    %c0_i32_1 = arith.constant 0 : i32
    return %c0_i32, %c0_i32_0 : i32, i32
  }
  func.func @transform_9(%arg0: i32) -> (i32, i32) {
    %c0_i32 = arith.constant 0 : i32
    %c0_i32_0 = arith.constant 0 : i32
    %c0_i32_1 = arith.constant 0 : i32
    return %c0_i32, %c0_i32_0 : i32, i32
  }
  func.func @transform_10(%arg0: i32) -> (i32, i32) {
    %c0_i32 = arith.constant 0 : i32
    %c0_i32_0 = arith.constant 0 : i32
    %c0_i32_1 = arith.constant 0 : i32
    return %c0_i32, %c0_i32_0 : i32, i32
  }
  func.func @transform_11(%arg0: i32) -> (i32, i32) {
    %c0_i32 = arith.constant 0 : i32
    %c0_i32_0 = arith.constant 0 : i32
    %c0_i32_1 = arith.constant 0 : i32
    return %c0_i32, %c0_i32_0 : i32, i32
  }
  func.func @transform_12(%arg0: i32) -> (i32, i32, i32) {
    %c0_i32 = arith.constant 0 : i32
    %c0_i32_0 = arith.constant 0 : i32
    %c0_i32_1 = arith.constant 0 : i32
    return %arg0, %c0_i32, %c0_i32_0 : i32, i32, i32
  }
}

</mosaic_0001>

<bundles_post_ra>
// kernel: tpu_custom_call.1
= control target key start
LH: loop header
LB: loop body
LE: loop exit
PB: predicated region body
PF: predicated region fallthrough
CT: control target
= control target key end

     0   :  { %s7271_s27 = smov 0   ;;  %s10847_s0 = inlined_call_operand.vmem [shape: f32[2,16,16,4], index: 0, kind: input, shape index: {}]   ;;  %s10848_s1 = inlined_call_operand.vmem [shape: f32[36,8], index: 1, kind: input, shape index: {}]   ;;  %s10849_s2 = inlined_call_operand.vmem [shape: f32[1,8], index: 2, kind: input, shape index: {}]   ;;  %s10850_s3 = inlined_call_operand.vmem [shape: f32[1,8], index: 3, kind: input, shape index: {}]   ;;  %s10851_s4 = inlined_call_operand.vmem [shape: f32[72,8], index: 4, kind: input, shape index: {}]   ;;  %s10852_s5 = inlined_call_operand.vmem [shape: f32[1,8], index: 5, kind: input, shape index: {}]   ;;  %s10853_s6 = inlined_call_operand.vmem [shape: f32[1,8], index: 6, kind: input, shape index: {}]   ;;  %s10854_s7 = inlined_call_operand.vmem [shape: f32[1,72], index: 7, kind: input, shape index: {}]   ;;  %s10855_s8 = inlined_call_operand.<no memory space> [shape: f32[1,1], index: 8, kind: input, shape index: {}]   ;;  %s10856_s10 = inlined_call_operand.vmem [shape: f32[256,1], index: 10, kind: input, shape index: {}]   ;;  %s10857_s12 = inlined_call_operand.vmem [shape: f32[2,1,1], index: 12, kind: output, shape index: {}]   ;;  %s10858_s9 = inlined_call_operand.<no memory space> [shape: f32[1,1], index: 9, kind: input, shape index: {}]   ;;  %s10859_s11 = inlined_call_operand.<no memory space> [shape: f32[1,1], index: 11, kind: input, shape index: {}]  }
   0x1   :  { %v17_v0 = vstv %s10855_s8  ;;  %v19_v1 = vstv %s10858_s9  ;;  %v21_v2 = vstv %s10859_s11 }
   0x2   :  { %18 = vst [vmem:[#allocation4] sm:$0x1] %v17_v0  ;;  %20 = vst [vmem:[#allocation5] sm:$0x1] %v19_v1 }
   0x3   :  { %22 = vst [vmem:[#allocation6] sm:$0x1] %v21_v2 }
   0x4 LB: > { %s6833_s8 = sadd.s32 4294967295, %s7182_s27   ;;  %p6837_p0 = scmp.ge.s32.totalorder %s7182_s27, 1  ;;  %s7182_s27 = sphi %s7271_s27, %s28_s27  }
   0x5   : > { %p368_p1 = scmp.lt.s32.totalorder %s7182_s27, 3 }
   0x7   : > { %p369_p2 = pnand %p6837_p0, %p368_p1 }
   0x9   : > { %372 = sbr.rel (%p369_p2) target bundleno = 2472 (0x9a8), region = 68 }
  0x10   : > { %vm416_vm0 = vcmask 64512   ;;  %p7281_p3 = scmp.lt.s32.totalorder %s6833_s8, 1  ;;  %vm419_vm1 = vcmask 58368   ;;  %v7184_v3 = vmov 0.0   ;;  %vm505_vm2 = vcmask 31744   ;;  %s7185_s13 = smov 4  }
  0x11   : > { %417 = vst.msk [vmem:[#allocation2] sm:$0xff] %vm416_vm0, %v7184_v3  ;;  %418 = vst.msk [vmem:[#allocation2 + $0x8] sm:$0xff] %vm416_vm0, %v7184_v3  ;;  %s7186_s14 = smov 8   ;;  %vm762_vm3 = vcmask 64544   ;;  %s7187_s15 = smov 12   ;;  %vm955_vm4 = vcmask 97344  }
  0x12   : > { %421 = vst.msk [vmem:[#allocation2 + $0x18] sm:$0xff] %vm416_vm0, %v7184_v3  ;;  %422 = vst.msk [vmem:[#allocation2 + $0x20] sm:$0xff] %vm416_vm0, %v7184_v3  ;;  %s11132_s8 = smov (!%p7281_p3, %s6833_s8), 1  ;;  %s7188_s16 = smov 16   ;;  %vm1148_vm5 = vcmask 130144   ;;  %vm1341_vm6 = vcmask 162944  }
  0x13   : > { %424 = vst.msk [vmem:[#allocation2 + $0x30] sm:$0xff] %vm416_vm0, %v7184_v3  ;;  %425 = vst.msk [vmem:[#allocation2 + $0x38] sm:$0xff] %vm416_vm0, %v7184_v3  ;;  %s6914_s11 = sshll.u32 %s11132_s8, 8  ;;  %s7189_s17 = smov 20   ;;  %vm1534_vm7 = vcmask 195744   ;;  %vm1728_vm8 = vcmask 228544  }
  0x14   : > { %427 = vst.msk [vmem:[#allocation2 + $0x48] sm:$0xff] %vm416_vm0, %v7184_v3  ;;  %428 = vst.msk [vmem:[#allocation2 + $0x50] sm:$0xff] %vm416_vm0, %v7184_v3  ;;  %s7349_s30 = scalar_lea.vmem %s10847_s0, %s6914_s11  ;;  %s7190_s18 = smov 24   ;;  %vm2281_vm9 = vcmask 1043456   ;;  %vm1921_vm10 = vcmask 261344   ;;  %vm2114_vm11 = vcmask 294144  }
  0x15   : > { %430 = vst.msk [vmem:[#allocation2 + $0x60] sm:$0xff] %vm416_vm0, %v7184_v3  ;;  %431 = vst.msk [vmem:[#allocation2 + $0x68] sm:$0xff] %vm416_vm0, %v7184_v3  ;;  %v472_v4 = vld [vmem:[%s7349_s30] sm:$0xff]  ;;  %v473_v5 = vld [vmem:[%s7349_s30 + $0x8] sm:$0xff]  ;;  %s7191_s19 = smov 28   ;;  %s7192_s29 = smov 32  }
  0x16   : > { %433 = vst.msk [vmem:[#allocation2 + $0x78] sm:$0xff] %vm416_vm0, %v7184_v3  ;;  %434 = vst.msk [vmem:[#allocation2 + $0x80] sm:$0xff] %vm416_vm0, %v7184_v3  ;;  %v474_v6 = vld [vmem:[%s7349_s30 + $0x10] sm:$0xff]  ;;  %v475_v7 = vld [vmem:[%s7349_s30 + $0x18] sm:$0xff]  ;;  %vm2184_vm12 = vcmask 293888   ;;  %vm2876_vm13 = vcmask 130112   ;;  %s415_s24 = scalar_lea.vmem %s10857_s12, %s11132_s8 }
  0x17   : > { %436 = vst.msk [vmem:[#allocation2 + $0x90] sm:$0xff] %vm416_vm0, %v7184_v3  ;;  %437 = vst.msk [vmem:[#allocation2 + $0x98] sm:$0xff] %vm416_vm0, %v7184_v3  ;;  %v476_v8 = vld [vmem:[%s7349_s30 + $0x20] sm:$0xff]  ;;  %v477_v9 = vld [vmem:[%s7349_s30 + $0x28] sm:$0xff]  ;;  %vm3069_vm14 = vcmask 195712   ;;  %vm3262_vm15 = vcmask 261312  }
  0x18   : > { %439 = vst.msk [vmem:[#allocation2 + $0xa8] sm:$0xff] %vm416_vm0, %v7184_v3  ;;  %440 = vst.msk [vmem:[#allocation2 + $0xb0] sm:$0xff] %vm416_vm0, %v7184_v3  ;;  %v602_v10 = vld [vmem:[#allocation2 + $0x1] sm:$0xff]  ;;  %v478_v12 = vld [vmem:[%s7349_s30 + $0x30] sm:$0xff]  ;;  %s7194_s20 = smov 48   ;;  %s7195_s25 = smov 56  }
  0x19   : > { %442 = vst.msk [vmem:[#allocation2 + $0xc0] sm:$0xff] %vm416_vm0, %v7184_v3  ;;  %443 = vst.msk [vmem:[#allocation2 + $0xc8] sm:$0xff] %vm416_vm0, %v7184_v3  ;;  %666 = vrot.lane.b32.xlu0 %v602_v10, %s7185_s13  ;;  %v479_v13 = vld [vmem:[%s7349_s30 + $0x38] sm:$0xff]  ;;  %v480_v14 = vld [vmem:[%s7349_s30 + $0x40] sm:$0xff]  ;;  %s7196_s11 = smov 64  }
  0x1a   : > { %445 = vst.msk [vmem:[#allocation2 + $0xd8] sm:$0xff] %vm416_vm0, %v7184_v3  ;;  %446 = vst.msk [vmem:[#allocation2 + $0xe0] sm:$0xff] %vm416_vm0, %v7184_v3  ;;  %v481_v15 = vld [vmem:[%s7349_s30 + $0x48] sm:$0xff]  ;;  %v482_v16 = vld [vmem:[%s7349_s30 + $0x50] sm:$0xff] }
  0x1b   : > { %448 = vst.msk [vmem:[#allocation2 + $0xf0] sm:$0xff] %vm416_vm0, %v7184_v3  ;;  %449 = vst.msk [vmem:[#allocation2 + $0xf8] sm:$0xff] %vm416_vm0, %v7184_v3  ;;  %v483_v17 = vld [vmem:[%s7349_s30 + $0x58] sm:$0xff]  ;;  %v484_v18 = vld [vmem:[%s7349_s30 + $0x60] sm:$0xff] }
  0x1c   : > { %451 = vst.msk [vmem:[#allocation2 + $0x108] sm:$0xff] %vm416_vm0, %v7184_v3  ;;  %452 = vst.msk [vmem:[#allocation2 + $0x110] sm:$0xff] %vm416_vm0, %v7184_v3  ;;  %v485_v19 = vld [vmem:[%s7349_s30 + $0x68] sm:$0xff]  ;;  %v486_v20 = vld [vmem:[%s7349_s30 + $0x70] sm:$0xff] }
  0x1d   : > { %454 = vst.msk [vmem:[#allocation2 + $0x120] sm:$0xff] %vm416_vm0, %v7184_v3  ;;  %455 = vst.msk [vmem:[#allocation2 + $0x128] sm:$0xff] %vm416_vm0, %v7184_v3  ;;  %v487_v21 = vld [vmem:[%s7349_s30 + $0x78] sm:$0xff]  ;;  %v488_v22 = vld [vmem:[%s7349_s30 + $0x80] sm:$0xff] }
  0x1e   : > { %457 = vst.msk [vmem:[#allocation2 + $0x138] sm:$0xff] %vm416_vm0, %v7184_v3  ;;  %458 = vst.msk [vmem:[#allocation2 + $0x140] sm:$0xff] %vm416_vm0, %v7184_v3  ;;  %v489_v23 = vld [vmem:[%s7349_s30 + $0x88] sm:$0xff]  ;;  %v490_v24 = vld [vmem:[%s7349_s30 + $0x90] sm:$0xff] }
  0x1f   : > { %460 = vst.msk [vmem:[#allocation2 + $0x150] sm:$0xff] %vm416_vm0, %v7184_v3  ;;  %461 = vst.msk [vmem:[#allocation2 + $0x158] sm:$0xff] %vm416_vm0, %v7184_v3  ;;  %v491_v25 = vld [vmem:[%s7349_s30 + $0x98] sm:$0xff]  ;;  %v492_v26 = vld [vmem:[%s7349_s30 + $0xa0] sm:$0xff] }
  0x20   : > { %463 = vst.msk [vmem:[#allocation2 + $0x168] sm:$0xff] %vm416_vm0, %v7184_v3  ;;  %464 = vst.msk [vmem:[#allocation2 + $0x170] sm:$0xff] %vm416_vm0, %v7184_v3  ;;  %v493_v27 = vld [vmem:[%s7349_s30 + $0xa8] sm:$0xff]  ;;  %v494_v31 = vld [vmem:[%s7349_s30 + $0xb0] sm:$0xff] }
  0x21   : > { %466 = vst.msk [vmem:[#allocation2 + $0x180] sm:$0xff] %vm416_vm0, %v7184_v3  ;;  %467 = vst.msk [vmem:[#allocation2 + $0x188] sm:$0xff] %vm416_vm0, %v7184_v3  ;;  %v495_v32 = vld [vmem:[%s7349_s30 + $0xb8] sm:$0xff]  ;;  %v496_v36 = vld [vmem:[%s7349_s30 + $0xc0] sm:$0xff] }
  0x22   : > { %469 = vst.msk [vmem:[#allocation2 + $0x198] sm:$0xff] %vm416_vm0, %v7184_v3  ;;  %470 = vst.msk [vmem:[#allocation2 + $0x1a0] sm:$0xff] %vm416_vm0, %v7184_v3  ;;  %v497_v37 = vld [vmem:[%s7349_s30 + $0xc8] sm:$0xff]  ;;  %v498_v38 = vld [vmem:[%s7349_s30 + $0xd0] sm:$0xff] }
  0x23   : > { %420 = vst.msk [vmem:[#allocation2 + $0x10] sm:$0x3] %vm419_vm1, %v7184_v3  ;;  %423 = vst.msk [vmem:[#allocation2 + $0x28] sm:$0x3] %vm419_vm1, %v7184_v3  ;;  %v499_v39 = vld [vmem:[%s7349_s30 + $0xd8] sm:$0xff]  ;;  %v500_v40 = vld [vmem:[%s7349_s30 + $0xe0] sm:$0xff] }
  0x24   : > { %426 = vst.msk [vmem:[#allocation2 + $0x40] sm:$0x3] %vm419_vm1, %v7184_v3  ;;  %429 = vst.msk [vmem:[#allocation2 + $0x58] sm:$0x3] %vm419_vm1, %v7184_v3  ;;  %v501_v41 = vld [vmem:[%s7349_s30 + $0xe8] sm:$0xff]  ;;  %v538_v48 = vld [vmem:[#allocation2] sm:$0xff] }
  0x25   : > { %432 = vst.msk [vmem:[#allocation2 + $0x70] sm:$0x3] %vm419_vm1, %v7184_v3  ;;  %435 = vst.msk [vmem:[#allocation2 + $0x88] sm:$0x3] %vm419_vm1, %v7184_v3  ;;  %v539_v51 = vld [vmem:[#allocation2 + $0x8] sm:$0xff] }
  0x26   : > { %438 = vst.msk [vmem:[#allocation2 + $0xa0] sm:$0x3] %vm419_vm1, %v7184_v3  ;;  %441 = vst.msk [vmem:[#allocation2 + $0xb8] sm:$0x3] %vm419_vm1, %v7184_v3 }
  0x27   : > { %444 = vst.msk [vmem:[#allocation2 + $0xd0] sm:$0x3] %vm419_vm1, %v7184_v3  ;;  %447 = vst.msk [vmem:[#allocation2 + $0xe8] sm:$0x3] %vm419_vm1, %v7184_v3 }
  0x28   : > { %450 = vst.msk [vmem:[#allocation2 + $0x100] sm:$0x3] %vm419_vm1, %v7184_v3  ;;  %453 = vst.msk [vmem:[#allocation2 + $0x118] sm:$0x3] %vm419_vm1, %v7184_v3 }
  0x29   : > { %456 = vst.msk [vmem:[#allocation2 + $0x130] sm:$0x3] %vm419_vm1, %v7184_v3  ;;  %459 = vst.msk [vmem:[#allocation2 + $0x148] sm:$0x3] %vm419_vm1, %v7184_v3 }
  0x2a   : > { %462 = vst.msk [vmem:[#allocation2 + $0x160] sm:$0x3] %vm419_vm1, %v7184_v3  ;;  %465 = vst.msk [vmem:[#allocation2 + $0x178] sm:$0x3] %vm419_vm1, %v7184_v3  ;;  %v603_v11 = vld [vmem:[#allocation2 + $0x9] sm:$0xff] }
  0x2b   : > { %468 = vst.msk [vmem:[#allocation2 + $0x190] sm:$0x3] %vm419_vm1, %v7184_v3  ;;  %471 = vst.msk [vmem:[#allocation2 + $0x1a8] sm:$0x3] %vm419_vm1, %v7184_v3  ;;  %668 = vrot.lane.b32.xlu0 %v603_v11, %s7185_s13  ;;  %vm3455_vm1 = vcmask 326912  }
  0x2c   : > { %506 = vst.msk [vmem:[#allocation2 + $0x19] sm:$0xff] %vm505_vm2, %v472_v4  ;;  %507 = vst.msk [vmem:[#allocation2 + $0x21] sm:$0xff] %vm505_vm2, %v473_v5 }
  0x2d   : > { %508 = vst.msk [vmem:[#allocation2 + $0x31] sm:$0xff] %vm505_vm2, %v474_v6  ;;  %509 = vst.msk [vmem:[#allocation2 + $0x39] sm:$0xff] %vm505_vm2, %v475_v7 }
  0x2e   : > { %510 = vst.msk [vmem:[#allocation2 + $0x49] sm:$0xff] %vm505_vm2, %v476_v8  ;;  %511 = vst.msk [vmem:[#allocation2 + $0x51] sm:$0xff] %vm505_vm2, %v477_v9 }
  0x2f   : > { %512 = vst.msk [vmem:[#allocation2 + $0x61] sm:$0xff] %vm505_vm2, %v478_v12  ;;  %513 = vst.msk [vmem:[#allocation2 + $0x69] sm:$0xff] %vm505_vm2, %v479_v13 }
  0x30   : > { %514 = vst.msk [vmem:[#allocation2 + $0x79] sm:$0xff] %vm505_vm2, %v480_v14  ;;  %515 = vst.msk [vmem:[#allocation2 + $0x81] sm:$0xff] %vm505_vm2, %v481_v15 }
  0x31   : > { %516 = vst.msk [vmem:[#allocation2 + $0x91] sm:$0xff] %vm505_vm2, %v482_v16  ;;  %517 = vst.msk [vmem:[#allocation2 + $0x99] sm:$0xff] %vm505_vm2, %v483_v17 }
  0x32   : > { %518 = vst.msk [vmem:[#allocation2 + $0xa9] sm:$0xff] %vm505_vm2, %v484_v18  ;;  %519 = vst.msk [vmem:[#allocation2 + $0xb1] sm:$0xff] %vm505_vm2, %v485_v19 }
  0x33   : > { %520 = vst.msk [vmem:[#allocation2 + $0xc1] sm:$0xff] %vm505_vm2, %v486_v20  ;;  %521 = vst.msk [vmem:[#allocation2 + $0xc9] sm:$0xff] %vm505_vm2, %v487_v21  ;;  %v7394_v28 = vld [vmem:[#allocation2 + $0x19] sm:$0xff]  ;;  %v7403_v30 = vld [vmem:[#allocation2 + $0x21] sm:$0xff] }
  0x34   : > { %522 = vst.msk [vmem:[#allocation2 + $0xd9] sm:$0xff] %vm505_vm2, %v488_v22  ;;  %523 = vst.msk [vmem:[#allocation2 + $0xe1] sm:$0xff] %vm505_vm2, %v489_v23  ;;  %v7396_v29 = vld [vmem:[#allocation2 + $0x31] sm:$0xff]  ;;  %670 = vrot.lane.b32.xlu1 %v7394_v28, %s7185_s13  ;;  %v7415_v34 = vld [vmem:[#allocation2 + $0x39] sm:$0xff] }
  0x35   : > { %524 = vst.msk [vmem:[#allocation2 + $0xf1] sm:$0xff] %vm505_vm2, %v490_v24  ;;  %525 = vst.msk [vmem:[#allocation2 + $0xf9] sm:$0xff] %vm505_vm2, %v491_v25  ;;  %674 = vrot.lane.b32.xlu0 %v7396_v29, %s7185_s13  ;;  %v7411_v33 = vld [vmem:[#allocation2 + $0x49] sm:$0xff]  ;;  %v7432_v42 = vld [vmem:[#allocation2 + $0x51] sm:$0xff] }
  0x36   : > { %526 = vst.msk [vmem:[#allocation2 + $0x109] sm:$0xff] %vm505_vm2, %v492_v26  ;;  %527 = vst.msk [vmem:[#allocation2 + $0x111] sm:$0xff] %vm505_vm2, %v493_v27  ;;  %v7419_v35 = vld [vmem:[#allocation2 + $0x61] sm:$0xff]  ;;  %v7443_v44 = vld [vmem:[#allocation2 + $0x69] sm:$0xff] }
  0x37   : > { %528 = vst.msk [vmem:[#allocation2 + $0x121] sm:$0xff] %vm505_vm2, %v494_v31  ;;  %529 = vst.msk [vmem:[#allocation2 + $0x129] sm:$0xff] %vm505_vm2, %v495_v32  ;;  %v7439_v43 = vld [vmem:[#allocation2 + $0x79] sm:$0xff]  ;;  %v7451_v46 = vld [vmem:[#allocation2 + $0x81] sm:$0xff] }
  0x38   : > { %672 = vrot.lane.b32.xlu1 %v7403_v30, %s7185_s13  ;;  %530 = vst.msk [vmem:[#allocation2 + $0x139] sm:$0xff] %vm505_vm2, %v496_v36  ;;  %531 = vst.msk [vmem:[#allocation2 + $0x141] sm:$0xff] %vm505_vm2, %v497_v37  ;;  %v7447_v45 = vld [vmem:[#allocation2 + $0x91] sm:$0xff]  ;;  %v7461_v50 = vld [vmem:[#allocation2 + $0x99] sm:$0xff] }
  0x39   : > { %678 = vrot.lane.b32.xlu0 %v7411_v33, %s7185_s13  ;;  %532 = vst.msk [vmem:[#allocation2 + $0x151] sm:$0xff] %vm505_vm2, %v498_v38  ;;  %533 = vst.msk [vmem:[#allocation2 + $0x159] sm:$0xff] %vm505_vm2, %v499_v39  ;;  %v7455_v47 = vld [vmem:[#allocation2 + $0xa9] sm:$0xff]  ;;  %v7459_v49 = vld [vmem:[#allocation2 + $0x18] sm:$0xff] }
  0x3a   : > { %534 = vst.msk [vmem:[#allocation2 + $0x169] sm:$0xff] %vm505_vm2, %v500_v40  ;;  %535 = vst.msk [vmem:[#allocation2 + $0x171] sm:$0xff] %vm505_vm2, %v501_v41  ;;  %v7469_v52 = vld [vmem:[#allocation2 + $0x20] sm:$0xff]  ;;  %v7475_v54 = vld [vmem:[#allocation2 + $0x30] sm:$0xff] }
  0x3b   : > { %570 = vst.msk [vmem:[#allocation3] sm:$0xff] %vm505_vm2, %v538_v48  ;;  %572 = vst.msk [vmem:[#allocation3 + $0x10] sm:$0xff] %vm505_vm2, %v7459_v49  ;;  %v7471_v53 = vld [vmem:[#allocation2 + $0xc1] sm:$0xff]  ;;  %v7477_v55 = vld [vmem:[#allocation2 + $0x38] sm:$0xff] }
  0x3c   : > { %676 = vrot.lane.b32.xlu1 %v7415_v34, %s7185_s13  ;;  %571 = vst.msk [vmem:[#allocation3 + $0x8] sm:$0xff] %vm505_vm2, %v539_v51  ;;  %573 = vst.msk [vmem:[#allocation3 + $0x18] sm:$0xff] %vm505_vm2, %v7469_v52  ;;  %v7481_v56 = vld [vmem:[#allocation2 + $0xb1] sm:$0xff]  ;;  %v7487_v57 = vld [vmem:[#allocation2 + $0x48] sm:$0xff] }
  0x3d   : > { %682 = vrot.lane.b32.xlu0 %v7419_v35, %s7185_s13  ;;  %574 = vst.msk [vmem:[#allocation3 + $0x20] sm:$0xff] %vm505_vm2, %v7475_v54  ;;  %575 = vst.msk [vmem:[#allocation3 + $0x28] sm:$0xff] %vm505_vm2, %v7477_v55  ;;  %v7489_v58 = vld [vmem:[#allocation2 + $0x50] sm:$0xff]  ;;  %v7491_v59 = vld [vmem:[#allocation2 + $0xd9] sm:$0xff] }
  0x3e   : > { %576 = vst.msk [vmem:[#allocation3 + $0x30] sm:$0xff] %vm505_vm2, %v7487_v57  ;;  %577 = vst.msk [vmem:[#allocation3 + $0x38] sm:$0xff] %vm505_vm2, %v7489_v58  ;;  %v7497_v60 = vld [vmem:[#allocation2 + $0x60] sm:$0xff]  ;;  %v7499_v61 = vld [vmem:[#allocation2 + $0x68] sm:$0xff] }
  0x3f   : > { %v7501_v62 = vld [vmem:[#allocation2 + $0x78] sm:$0xff]  ;;  %578 = vst.msk [vmem:[#allocation3 + $0x40] sm:$0xff] %vm505_vm2, %v7497_v60  ;;  %579 = vst.msk [vmem:[#allocation3 + $0x48] sm:$0xff] %vm505_vm2, %v7499_v61  ;;  %v7511_v63 = vld [vmem:[#allocation2 + $0x80] sm:$0xff] }
  0x40   : > { %680 = vrot.lane.b32.xlu1 %v7432_v42, %s7185_s13  ;;  %580 = vst.msk [vmem:[#allocation3 + $0x50] sm:$0xff] %vm505_vm2, %v7501_v62  ;;  %v7513_v0 = vld [vmem:[#allocation2 + $0x90] sm:$0xff]  ;;  %v7515_v1 = vld [vmem:[#allocation2 + $0x98] sm:$0xff]  ;;  %581 = vst.msk [vmem:[#allocation3 + $0x58] sm:$0xff] %vm505_vm2, %v7511_v63 }
  0x41   : > { %686 = vrot.lane.b32.xlu0 %v7439_v43, %s7185_s13  ;;  %v7517_v2 = vld [vmem:[#allocation2 + $0xc9] sm:$0xff]  ;;  %582 = vst.msk [vmem:[#allocation3 + $0x60] sm:$0xff] %vm505_vm2, %v7513_v0  ;;  %583 = vst.msk [vmem:[#allocation3 + $0x68] sm:$0xff] %vm505_vm2, %v7515_v1  ;;  %v7529_v5 = vld [vmem:[#allocation2 + $0xc0] sm:$0xff] }
  0x42   : > { %v7525_v3 = vld [vmem:[#allocation2 + $0xa8] sm:$0xff]  ;;  %v7527_v4 = vld [vmem:[#allocation2 + $0xb0] sm:$0xff]  ;;  %586 = vst.msk [vmem:[#allocation3 + $0x80] sm:$0xff] %vm505_vm2, %v7529_v5  ;;  %v7541_v7 = vld [vmem:[#allocation2 + $0xd8] sm:$0xff] }
  0x43   : > { %584 = vst.msk [vmem:[#allocation3 + $0x70] sm:$0xff] %vm505_vm2, %v7525_v3  ;;  %585 = vst.msk [vmem:[#allocation3 + $0x78] sm:$0xff] %vm505_vm2, %v7527_v4  ;;  %v7539_v6 = vld [vmem:[#allocation2 + $0xc8] sm:$0xff]  ;;  %v7543_v8 = vld [vmem:[#allocation2 + $0xe0] sm:$0xff] }
  0x44   : > { %684 = vrot.lane.b32.xlu1 %v7443_v44, %s7185_s13  ;;  %587 = vst.msk [vmem:[#allocation3 + $0x88] sm:$0xff] %vm505_vm2, %v7539_v6  ;;  %588 = vst.msk [vmem:[#allocation3 + $0x90] sm:$0xff] %vm505_vm2, %v7541_v7  ;;  %v7551_v9 = vld [vmem:[#allocation2 + $0xf0] sm:$0xff]  ;;  %v7553_v10 = vld [vmem:[#allocation2 + $0xf8] sm:$0xff] }
  0x45   : > { %690 = vrot.lane.b32.xlu0 %v7447_v45, %s7185_s13  ;;  %589 = vst.msk [vmem:[#allocation3 + $0x98] sm:$0xff] %vm505_vm2, %v7543_v8  ;;  %v7555_v11 = vld [vmem:[#allocation2 + $0x108] sm:$0xff]  ;;  %590 = vst.msk [vmem:[#allocation3 + $0xa0] sm:$0xff] %vm505_vm2, %v7551_v9  ;;  %v7565_v12 = vld [vmem:[#allocation2 + $0x110] sm:$0xff] }
  0x46   : > { %591 = vst.msk [vmem:[#allocation3 + $0xa8] sm:$0xff] %vm505_vm2, %v7553_v10  ;;  %592 = vst.msk [vmem:[#allocation3 + $0xb0] sm:$0xff] %vm505_vm2, %v7555_v11  ;;  %v7567_v13 = vld [vmem:[#allocation2 + $0xf1] sm:$0xff]  ;;  %v7573_v14 = vld [vmem:[#allocation2 + $0x120] sm:$0xff] }
  0x47   : > { %593 = vst.msk [vmem:[#allocation3 + $0xb8] sm:$0xff] %vm505_vm2, %v7565_v12  ;;  %v7575_v15 = vld [vmem:[#allocation2 + $0x128] sm:$0xff]  ;;  %594 = vst.msk [vmem:[#allocation3 + $0xc0] sm:$0xff] %vm505_vm2, %v7573_v14  ;;  %v7589_v18 = vld [vmem:[#allocation2 + $0x138] sm:$0xff] }
  0x48   : > { %688 = vrot.lane.b32.xlu1 %v7451_v46, %s7185_s13  ;;  %v7577_v16 = vld [vmem:[#allocation2 + $0xe1] sm:$0xff]  ;;  %595 = vst.msk [vmem:[#allocation3 + $0xc8] sm:$0xff] %vm505_vm2, %v7575_v15  ;;  %v7585_v17 = vld [vmem:[#allocation2 + $0x109] sm:$0xff]  ;;  %v7593_v20 = vld [vmem:[#allocation2 + $0xf9] sm:$0xff] }
  0x49   : > { %694 = vrot.lane.b32.xlu0 %v7455_v47, %s7185_s13  ;;  %v7591_v19 = vld [vmem:[#allocation2 + $0x140] sm:$0xff]  ;;  %596 = vst.msk [vmem:[#allocation3 + $0xd0] sm:$0xff] %vm505_vm2, %v7589_v18  ;;  %v7605_v22 = vld [vmem:[#allocation2 + $0x150] sm:$0xff]  ;;  %v7607_v23 = vld [vmem:[#allocation2 + $0x158] sm:$0xff] }
  0x4a   : > { %597 = vst.msk [vmem:[#allocation3 + $0xd8] sm:$0xff] %vm505_vm2, %v7591_v19  ;;  %v7601_v21 = vld [vmem:[#allocation2 + $0x121] sm:$0xff]  ;;  %v7609_v24 = vld [vmem:[#allocation2 + $0x111] sm:$0xff]  ;;  %598 = vst.msk [vmem:[#allocation3 + $0xe0] sm:$0xff] %vm505_vm2, %v7605_v22 }
  0x4b   : > { %599 = vst.msk [vmem:[#allocation3 + $0xe8] sm:$0xff] %vm505_vm2, %v7607_v23  ;;  %v7617_v25 = vld [vmem:[#allocation2 + $0x139] sm:$0xff]  ;;  %v7621_v26 = vld [vmem:[#allocation2 + $0x168] sm:$0xff]  ;;  %v7623_v27 = vld [vmem:[#allocation2 + $0x170] sm:$0xff] }
  0x4c   : > { %692 = vrot.lane.b32.xlu1 %v7461_v50, %s7185_s13  ;;  %v7625_v31 = vld [vmem:[#allocation2 + $0x129] sm:$0xff]  ;;  %600 = vst.msk [vmem:[#allocation3 + $0xf0] sm:$0xff] %vm505_vm2, %v7621_v26  ;;  %601 = vst.msk [vmem:[#allocation3 + $0xf8] sm:$0xff] %vm505_vm2, %v7623_v27  ;;  %v7633_v32 = vld [vmem:[#allocation2 + $0x151] sm:$0xff] }
  0x4d   : > { %698 = vrot.lane.b32.xlu0 %v7471_v53, %s7185_s13  ;;  %v7637_v36 = vld [vmem:[#allocation2 + $0x141] sm:$0xff]  ;;  %v502_v37 = vld [vmem:[%s7349_s30 + $0xf0] sm:$0xff]  ;;  %v503_v39 = vld [vmem:[%s7349_s30 + $0xf8] sm:$0xff] }
  0x4e   : > { %10951 = vst [vmem:[#allocation7_spill] sm:$0xff] %v7637_v36  ;;  %v7642_v38 = vld [vmem:[#allocation2 + $0x169] sm:$0xff]  ;;  %536 = vst.msk [vmem:[#allocation2 + $0x181] sm:$0xff] %vm505_vm2, %v502_v37  ;;  %v7649_v40 = vld [vmem:[#allocation2 + $0x159] sm:$0xff] }
  0x4f   : > { %10952 = vst [vmem:[#allocation8_spill] sm:$0xff] %v7642_v38  ;;  %537 = vst.msk [vmem:[#allocation2 + $0x189] sm:$0xff] %vm505_vm2, %v503_v39  ;;  %v795_v41 = vld [vmem:[#allocation2 + $0x2] sm:$0xff]  ;;  %v7655_v48 = vld [vmem:[#allocation2 + $0x171] sm:$0xff]  ;;  %vm3648_vm2 = vcmask 392512  }
  0x50   : > { %696 = vrot.lane.b32.xlu1 %v7481_v56, %s7185_s13  ;;  %10953 = vst [vmem:[#allocation9_spill] sm:$0xff] %v7649_v40  ;;  %10954 = vst [vmem:[#allocation10_spill] sm:$0xff] %v7655_v48  ;;  %v7658_v51 = vld [vmem:[#allocation2 + $0x1a] sm:$0xff]  ;;  %v796_v37 = vld [vmem:[#allocation2 + $0xa] sm:$0xff] }
  0x51   : > { %702 = vrot.lane.b32.xlu0 %v7491_v59, %s7185_s13  ;;  %10955 = vst [vmem:[#allocation11_spill] sm:$0xff] %v7658_v51  ;;  %v7664_v39 = vld [vmem:[#allocation2 + $0x32] sm:$0xff] }
  0x52   : > { %10956 = vst [vmem:[#allocation12_spill] sm:$0xff] %v7664_v39 }
  0x54   : > { %700 = vrot.lane.b32.xlu1 %v7517_v2, %s7185_s13 }
  0x55   : > { %706 = vrot.lane.b32.xlu0 %v7567_v13, %s7185_s13 }
  0x58   : > { %704 = vrot.lane.b32.xlu1 %v7577_v16, %s7185_s13 }
  0x59   : > { %710 = vrot.lane.b32.xlu0 %v7585_v17, %s7185_s13 }
  0x5c   : > { %708 = vrot.lane.b32.xlu1 %v7593_v20, %s7185_s13 }
  0x5d   : > { %714 = vrot.lane.b32.xlu0 %v7601_v21, %s7185_s13 }
  0x60   : > { %712 = vrot.lane.b32.xlu1 %v7609_v24, %s7185_s13 }
  0x61   : > { %718 = vrot.lane.b32.xlu0 %v7617_v25, %s7185_s13 }
  0x64   : > { %716 = vrot.lane.b32.xlu1 %v7625_v31, %s7185_s13 }
  0x65   : > { %722 = vrot.lane.b32.xlu0 %v7633_v32, %s7185_s13 }
  0x68   : > { %720 = vrot.lane.b32.xlu1 %v7637_v36, %s7185_s13 }
  0x69   : > { %726 = vrot.lane.b32.xlu0 %v7642_v38, %s7185_s13  ;;  %v7667_v38 = vld [vmem:[#allocation2 + $0x22] sm:$0xff] }
  0x6a   : > { %10957 = vst [vmem:[#allocation13_spill] sm:$0xff] %v7667_v38 }
  0x6c   : > { %724 = vrot.lane.b32.xlu1 %v7649_v40, %s7185_s13  ;;  %v7671_v40 = vld [vmem:[#allocation2 + $0x4a] sm:$0xff] }
  0x6d   : > { %859 = vrot.lane.b32.xlu0 %v795_v41, %s7186_s14  ;;  %10958 = vst [vmem:[#allocation14_spill] sm:$0xff] %v7671_v40  ;;  %v7675_v41 = vld [vmem:[#allocation2 + $0x3a] sm:$0xff] }
  0x6e   : > { %10959 = vst [vmem:[#allocation15_spill] sm:$0xff] %v7675_v41 }
  0x70   : > { %728 = vrot.lane.b32.xlu1 %v7655_v48, %s7185_s13  ;;  %v7755_v48 = vld [vmem:[#allocation2 + $0x12a] sm:$0xff] }
  0x71   : > { %863 = vrot.lane.b32.xlu0 %v7658_v51, %s7186_s14  ;;  %v7679_v51 = vld [vmem:[#allocation2 + $0x62] sm:$0xff]  ;;  %10979 = vst [vmem:[#allocation35_spill] sm:$0xff] %v7755_v48 }
  0x72   : > { %10960 = vst [vmem:[#allocation16_spill] sm:$0xff] %v7679_v51 }
  0x74   : > { %861 = vrot.lane.b32.xlu1 %v796_v37, %s7186_s14  ;;  %v7683_v37 = vld [vmem:[#allocation2 + $0x52] sm:$0xff] }
  0x75   : > { %867 = vrot.lane.b32.xlu0 %v7664_v39, %s7186_s14  ;;  %10961 = vst [vmem:[#allocation17_spill] sm:$0xff] %v7683_v37  ;;  %v7687_v39 = vld [vmem:[#allocation2 + $0x7a] sm:$0xff] }
  0x76   : > { %10962 = vst [vmem:[#allocation18_spill] sm:$0xff] %v7687_v39 }
  0x78   : > { %865 = vrot.lane.b32.xlu1 %v7667_v38, %s7186_s14  ;;  %v7691_v38 = vld [vmem:[#allocation2 + $0x6a] sm:$0xff] }
  0x79   : > { %871 = vrot.lane.b32.xlu0 %v7671_v40, %s7186_s14  ;;  %10963 = vst [vmem:[#allocation19_spill] sm:$0xff] %v7691_v38  ;;  %v7695_v40 = vld [vmem:[#allocation2 + $0x92] sm:$0xff] }
  0x7a   : > { %10964 = vst [vmem:[#allocation20_spill] sm:$0xff] %v7695_v40 }
  0x7c   : > { %869 = vrot.lane.b32.xlu1 %v7675_v41, %s7186_s14  ;;  %v7699_v41 = vld [vmem:[#allocation2 + $0x82] sm:$0xff] }
  0x7d   : > { %875 = vrot.lane.b32.xlu0 %v7679_v51, %s7186_s14  ;;  %10965 = vst [vmem:[#allocation21_spill] sm:$0xff] %v7699_v41  ;;  %v7703_v51 = vld [vmem:[#allocation2 + $0xaa] sm:$0xff] }
  0x7e   : > { %10966 = vst [vmem:[#allocation22_spill] sm:$0xff] %v7703_v51 }
  0x80   : > { %873 = vrot.lane.b32.xlu1 %v7683_v37, %s7186_s14  ;;  %v7707_v37 = vld [vmem:[#allocation2 + $0x9a] sm:$0xff] }
  0x81   : > { %879 = vrot.lane.b32.xlu0 %v7687_v39, %s7186_s14  ;;  %10967 = vst [vmem:[#allocation23_spill] sm:$0xff] %v7707_v37  ;;  %v7711_v39 = vld [vmem:[#allocation2 + $0xc2] sm:$0xff] }
  0x82   : > { %10968 = vst [vmem:[#allocation24_spill] sm:$0xff] %v7711_v39 }
  0x84   : > { %877 = vrot.lane.b32.xlu1 %v7691_v38, %s7186_s14  ;;  %v7715_v38 = vld [vmem:[#allocation2 + $0xb2] sm:$0xff] }
  0x85   : > { %883 = vrot.lane.b32.xlu0 %v7695_v40, %s7186_s14  ;;  %10969 = vst [vmem:[#allocation25_spill] sm:$0xff] %v7715_v38  ;;  %v7719_v40 = vld [vmem:[#allocation2 + $0xda] sm:$0xff] }
  0x86   : > { %10970 = vst [vmem:[#allocation26_spill] sm:$0xff] %v7719_v40 }
  0x88   : > { %881 = vrot.lane.b32.xlu1 %v7699_v41, %s7186_s14  ;;  %v7723_v41 = vld [vmem:[#allocation2 + $0xca] sm:$0xff] }
  0x89   : > { %887 = vrot.lane.b32.xlu0 %v7703_v51, %s7186_s14  ;;  %10971 = vst [vmem:[#allocation27_spill] sm:$0xff] %v7723_v41  ;;  %v7727_v51 = vld [vmem:[#allocation2 + $0xf2] sm:$0xff] }
  0x8a   : > { %10972 = vst [vmem:[#allocation28_spill] sm:$0xff] %v7727_v51 }
  0x8c   : > { %885 = vrot.lane.b32.xlu1 %v7707_v37, %s7186_s14  ;;  %v7731_v37 = vld [vmem:[#allocation2 + $0xe2] sm:$0xff] }
  0x8d   : > { %891 = vrot.lane.b32.xlu0 %v7711_v39, %s7186_s14  ;;  %10973 = vst [vmem:[#allocation29_spill] sm:$0xff] %v7731_v37  ;;  %v7735_v39 = vld [vmem:[#allocation2 + $0x10a] sm:$0xff] }
  0x8e   : > { %10974 = vst [vmem:[#allocation30_spill] sm:$0xff] %v7735_v39 }
  0x90   : > { %889 = vrot.lane.b32.xlu1 %v7715_v38, %s7186_s14  ;;  %v7739_v38 = vld [vmem:[#allocation2 + $0xfa] sm:$0xff] }
  0x91   : > { %895 = vrot.lane.b32.xlu0 %v7719_v40, %s7186_s14  ;;  %10975 = vst [vmem:[#allocation31_spill] sm:$0xff] %v7739_v38  ;;  %v7743_v40 = vld [vmem:[#allocation2 + $0x122] sm:$0xff] }
  0x92   : > { %10976 = vst [vmem:[#allocation32_spill] sm:$0xff] %v7743_v40 }
  0x94   : > { %893 = vrot.lane.b32.xlu1 %v7723_v41, %s7186_s14  ;;  %v7747_v41 = vld [vmem:[#allocation2 + $0x112] sm:$0xff] }
  0x95   : > { %899 = vrot.lane.b32.xlu0 %v7727_v51, %s7186_s14  ;;  %10977 = vst [vmem:[#allocation33_spill] sm:$0xff] %v7747_v41  ;;  %v7751_v51 = vld [vmem:[#allocation2 + $0x13a] sm:$0xff] }
  0x96   : > { %10978 = vst [vmem:[#allocation34_spill] sm:$0xff] %v7751_v51 }
  0x98   : > { %897 = vrot.lane.b32.xlu1 %v7731_v37, %s7186_s14  ;;  %v667_v37 = vpop.permute.xlu0 %666 }
  0x99   : > { %903 = vrot.lane.b32.xlu0 %v7735_v39, %s7186_s14  ;;  %763 = vst.msk [vmem:[#allocation3] sm:$0xff] %vm762_vm3, %v667_v37  ;;  %v7764_v39 = vld [vmem:[#allocation2 + $0x142] sm:$0xff]  ;;  %v7770_v37 = vld [vmem:[#allocation2 + $0x16a] sm:$0xff] }
  0x9a   : > { %10980 = vst [vmem:[#allocation36_spill] sm:$0xff] %v7764_v39 }
  0x9c   : > { %901 = vrot.lane.b32.xlu1 %v7739_v38, %s7186_s14  ;;  %v7760_v38 = vld [vmem:[#allocation2 + $0x152] sm:$0xff] }
  0x9d   : > { %907 = vrot.lane.b32.xlu0 %v7743_v40, %s7186_s14  ;;  %v669_v40 = vpop.permute.xlu0 %668 }
  0x9e   : > { %764 = vst.msk [vmem:[#allocation3 + $0x8] sm:$0xff] %vm762_vm3, %v669_v40  ;;  %v7782_v40 = vld [vmem:[#allocation2 + $0x172] sm:$0xff] }
  0xa0   : > { %905 = vrot.lane.b32.xlu1 %v7747_v41, %s7186_s14  ;;  %v7774_v41 = vld [vmem:[#allocation2 + $0x15a] sm:$0xff] }
  0xa1   : > { %911 = vrot.lane.b32.xlu0 %v7751_v51, %s7186_s14 }
  0xa4   : > { %909 = vrot.lane.b32.xlu1 %v7755_v48, %s7186_s14 }
  0xa5   : > { %915 = vrot.lane.b32.xlu0 %v7760_v38, %s7186_s14 }
  0xa6   : > { %v671_v36 = vpop.permute.xlu1 %670 }
  0xa7   : > { %765 = vst.msk [vmem:[#allocation3 + $0x10] sm:$0xff] %vm762_vm3, %v671_v36  ;;  %v675_v51 = vpop.permute.xlu0 %674 }
  0xa8   : > { %913 = vrot.lane.b32.xlu1 %v7764_v39, %s7186_s14  ;;  %767 = vst.msk [vmem:[#allocation3 + $0x20] sm:$0xff] %vm762_vm3, %v675_v51 }
  0xa9   : > { %919 = vrot.lane.b32.xlu0 %v7770_v37, %s7186_s14 }
  0xaa   : > { %v673_v48 = vpop.permute.xlu1 %672 }
  0xab   : > { %766 = vst.msk [vmem:[#allocation3 + $0x18] sm:$0xff] %vm762_vm3, %v673_v48  ;;  %v679_v36 = vpop.permute.xlu0 %678 }
  0xac   : > { %917 = vrot.lane.b32.xlu1 %v7774_v41, %s7186_s14  ;;  %769 = vst.msk [vmem:[#allocation3 + $0x30] sm:$0xff] %vm762_vm3, %v679_v36 }
  0xad   : > { %1052 = vrot.lane.b32.xlu0 %v7459_v49, %s7187_s15 }
  0xae   : > { %v677_v39 = vpop.permute.xlu1 %676 }
  0xaf   : > { %768 = vst.msk [vmem:[#allocation3 + $0x28] sm:$0xff] %vm762_vm3, %v677_v39  ;;  %v683_v51 = vpop.permute.xlu0 %682 }
  0xb0   : > { %921 = vrot.lane.b32.xlu1 %v7782_v40, %s7186_s14  ;;  %771 = vst.msk [vmem:[#allocation3 + $0x40] sm:$0xff] %vm762_vm3, %v683_v51 }
  0xb1   : > { %1056 = vrot.lane.b32.xlu0 %v7475_v54, %s7187_s15 }
  0xb2   : > { %v681_v48 = vpop.permute.xlu1 %680 }
  0xb3   : > { %770 = vst.msk [vmem:[#allocation3 + $0x38] sm:$0xff] %vm762_vm3, %v681_v48  ;;  %v687_v36 = vpop.permute.xlu0 %686 }
  0xb4   : > { %1054 = vrot.lane.b32.xlu1 %v7469_v52, %s7187_s15  ;;  %773 = vst.msk [vmem:[#allocation3 + $0x50] sm:$0xff] %vm762_vm3, %v687_v36 }
  0xb5   : > { %1060 = vrot.lane.b32.xlu0 %v7487_v57, %s7187_s15 }
  0xb6   : > { %v685_v49 = vpop.permute.xlu1 %684 }
  0xb7   : > { %772 = vst.msk [vmem:[#allocation3 + $0x48] sm:$0xff] %vm762_vm3, %v685_v49  ;;  %v691_v39 = vpop.permute.xlu0 %690 }
  0xb8   : > { %1058 = vrot.lane.b32.xlu1 %v7477_v55, %s7187_s15  ;;  %775 = vst.msk [vmem:[#allocation3 + $0x60] sm:$0xff] %vm762_vm3, %v691_v39 }
  0xb9   : > { %1064 = vrot.lane.b32.xlu0 %v7497_v60, %s7187_s15 }
  0xba   : > { %v689_v51 = vpop.permute.xlu1 %688 }
  0xbb   : > { %774 = vst.msk [vmem:[#allocation3 + $0x58] sm:$0xff] %vm762_vm3, %v689_v51  ;;  %v695_v52 = vpop.permute.xlu0 %694 }
  0xbc   : > { %1062 = vrot.lane.b32.xlu1 %v7489_v58, %s7187_s15  ;;  %777 = vst.msk [vmem:[#allocation3 + $0x70] sm:$0xff] %vm762_vm3, %v695_v52 }
  0xbd   : > { %1068 = vrot.lane.b32.xlu0 %v7501_v62, %s7187_s15 }
  0xbe   : > { %v693_v48 = vpop.permute.xlu1 %692 }
  0xbf   : > { %776 = vst.msk [vmem:[#allocation3 + $0x68] sm:$0xff] %vm762_vm3, %v693_v48  ;;  %v699_v36 = vpop.permute.xlu0 %698 }
  0xc0   : > { %1066 = vrot.lane.b32.xlu1 %v7499_v61, %s7187_s15  ;;  %779 = vst.msk [vmem:[#allocation3 + $0x80] sm:$0xff] %vm762_vm3, %v699_v36 }
  0xc1   : > { %1072 = vrot.lane.b32.xlu0 %v7513_v0, %s7187_s15 }
  0xc2   : > { %v697_v49 = vpop.permute.xlu1 %696 }
  0xc3   : > { %778 = vst.msk [vmem:[#allocation3 + $0x78] sm:$0xff] %vm762_vm3, %v697_v49  ;;  %v703_v39 = vpop.permute.xlu0 %702 }
  0xc4   : > { %1070 = vrot.lane.b32.xlu1 %v7511_v63, %s7187_s15  ;;  %781 = vst.msk [vmem:[#allocation3 + $0x90] sm:$0xff] %vm762_vm3, %v703_v39 }
  0xc5   : > { %1076 = vrot.lane.b32.xlu0 %v7525_v3, %s7187_s15 }
  0xc6   : > { %v701_v51 = vpop.permute.xlu1 %700 }
  0xc7   : > { %780 = vst.msk [vmem:[#allocation3 + $0x88] sm:$0xff] %vm762_vm3, %v701_v51  ;;  %v707_v52 = vpop.permute.xlu0 %706 }
  0xc8   : > { %1074 = vrot.lane.b32.xlu1 %v7515_v1, %s7187_s15  ;;  %783 = vst.msk [vmem:[#allocation3 + $0xa0] sm:$0xff] %vm762_vm3, %v707_v52 }
  0xc9   : > { %1080 = vrot.lane.b32.xlu0 %v7529_v5, %s7187_s15 }
  0xca   : > { %v705_v48 = vpop.permute.xlu1 %704 }
  0xcb   : > { %782 = vst.msk [vmem:[#allocation3 + $0x98] sm:$0xff] %vm762_vm3, %v705_v48  ;;  %v711_v36 = vpop.permute.xlu0 %710 }
  0xcc   : > { %1078 = vrot.lane.b32.xlu1 %v7527_v4, %s7187_s15  ;;  %785 = vst.msk [vmem:[#allocation3 + $0xb0] sm:$0xff] %vm762_vm3, %v711_v36 }
  0xcd   : > { %1084 = vrot.lane.b32.xlu0 %v7541_v7, %s7187_s15 }
  0xce   : > { %v709_v49 = vpop.permute.xlu1 %708 }
  0xcf   : > { %784 = vst.msk [vmem:[#allocation3 + $0xa8] sm:$0xff] %vm762_vm3, %v709_v49  ;;  %v715_v39 = vpop.permute.xlu0 %714 }
  0xd0   : > { %1082 = vrot.lane.b32.xlu1 %v7539_v6, %s7187_s15  ;;  %787 = vst.msk [vmem:[#allocation3 + $0xc0] sm:$0xff] %vm762_vm3, %v715_v39 }
  0xd1   : > { %1088 = vrot.lane.b32.xlu0 %v7551_v9, %s7187_s15 }
  0xd2   : > { %v713_v51 = vpop.permute.xlu1 %712 }
  0xd3   : > { %786 = vst.msk [vmem:[#allocation3 + $0xb8] sm:$0xff] %vm762_vm3, %v713_v51  ;;  %v719_v52 = vpop.permute.xlu0 %718 }
  0xd4   : > { %1086 = vrot.lane.b32.xlu1 %v7543_v8, %s7187_s15  ;;  %789 = vst.msk [vmem:[#allocation3 + $0xd0] sm:$0xff] %vm762_vm3, %v719_v52 }
  0xd5   : > { %1092 = vrot.lane.b32.xlu0 %v7555_v11, %s7187_s15 }
  0xd6   : > { %v717_v48 = vpop.permute.xlu1 %716 }
  0xd7   : > { %788 = vst.msk [vmem:[#allocation3 + $0xc8] sm:$0xff] %vm762_vm3, %v717_v48  ;;  %v723_v36 = vpop.permute.xlu0 %722 }
  0xd8   : > { %1090 = vrot.lane.b32.xlu1 %v7553_v10, %s7187_s15  ;;  %791 = vst.msk [vmem:[#allocation3 + $0xe0] sm:$0xff] %vm762_vm3, %v723_v36 }
  0xd9   : > { %1096 = vrot.lane.b32.xlu0 %v7573_v14, %s7187_s15 }
  0xda   : > { %v721_v49 = vpop.permute.xlu1 %720 }
  0xdb   : > { %790 = vst.msk [vmem:[#allocation3 + $0xd8] sm:$0xff] %vm762_vm3, %v721_v49  ;;  %v727_v39 = vpop.permute.xlu0 %726 }
  0xdc   : > { %1094 = vrot.lane.b32.xlu1 %v7565_v12, %s7187_s15  ;;  %793 = vst.msk [vmem:[#allocation3 + $0xf0] sm:$0xff] %vm762_vm3, %v727_v39  ;;  %v7872_v39 = vld [vmem:[#allocation2 + $0x180] sm:$0xff] }
  0xdd   : > { %1100 = vrot.lane.b32.xlu0 %v7589_v18, %s7187_s15 }
  0xde   : > { %v725_v51 = vpop.permute.xlu1 %724 }
  0xdf   : > { %792 = vst.msk [vmem:[#allocation3 + $0xe8] sm:$0xff] %vm762_vm3, %v725_v51  ;;  %v860_v52 = vpop.permute.xlu0 %859 }
  0xe0   : > { %1098 = vrot.lane.b32.xlu1 %v7575_v15, %s7187_s15  ;;  %956 = vst.msk [vmem:[#allocation3] sm:$0xff] %vm955_vm4, %v860_v52 }
  0xe1   : > { %1104 = vrot.lane.b32.xlu0 %v7605_v22, %s7187_s15 }
  0xe2   : > { %v729_v48 = vpop.permute.xlu1 %728 }
  0xe3   : > { %794 = vst.msk [vmem:[#allocation3 + $0xf8] sm:$0xff] %vm762_vm3, %v729_v48  ;;  %v864_v36 = vpop.permute.xlu0 %863  ;;  %vm3841_vm3 = vcmask 458112  }
  0xe4   : > { %1102 = vrot.lane.b32.xlu1 %v7591_v19, %s7187_s15  ;;  %958 = vst.msk [vmem:[#allocation3 + $0x10] sm:$0xff] %vm955_vm4, %v864_v36  ;;  %v7882_v36 = vld [vmem:[#allocation2 + $0x188] sm:$0xff] }
  0xe5   : > { %1108 = vrot.lane.b32.xlu0 %v7621_v26, %s7187_s15 }
  0xe6   : > { %v862_v49 = vpop.permute.xlu1 %861 }
  0xe7   : > { %957 = vst.msk [vmem:[#allocation3 + $0x8] sm:$0xff] %vm955_vm4, %v862_v49  ;;  %v868_v51 = vpop.permute.xlu0 %867 }
  0xe8   : > { %1106 = vrot.lane.b32.xlu1 %v7607_v23, %s7187_s15  ;;  %960 = vst.msk [vmem:[#allocation3 + $0x20] sm:$0xff] %vm955_vm4, %v868_v51 }
  0xe9   : > { %1112 = vrot.lane.b32.xlu0 %v7872_v39, %s7187_s15 }
  0xea   : > { %v866_v52 = vpop.permute.xlu1 %865 }
  0xeb   : > { %959 = vst.msk [vmem:[#allocation3 + $0x18] sm:$0xff] %vm955_vm4, %v866_v52  ;;  %v872_v48 = vpop.permute.xlu0 %871 }
  0xec   : > { %1110 = vrot.lane.b32.xlu1 %v7623_v27, %s7187_s15  ;;  %962 = vst.msk [vmem:[#allocation3 + $0x30] sm:$0xff] %vm955_vm4, %v872_v48 }
  0xed   : > { %1245 = vrot.lane.b32.xlu0 %v7394_v28, %s7188_s16 }
  0xee   : > { %v870_v49 = vpop.permute.xlu1 %869 }
  0xef   : > { %961 = vst.msk [vmem:[#allocation3 + $0x28] sm:$0xff] %vm955_vm4, %v870_v49  ;;  %v876_v51 = vpop.permute.xlu0 %875 }
  0xf0   : > { %1114 = vrot.lane.b32.xlu1 %v7882_v36, %s7187_s15  ;;  %964 = vst.msk [vmem:[#allocation3 + $0x40] sm:$0xff] %vm955_vm4, %v876_v51 }
  0xf1   : > { %1249 = vrot.lane.b32.xlu0 %v7396_v29, %s7188_s16 }
  0xf2   : > { %v874_v52 = vpop.permute.xlu1 %873 }
  0xf3   : > { %963 = vst.msk [vmem:[#allocation3 + $0x38] sm:$0xff] %vm955_vm4, %v874_v52  ;;  %v880_v48 = vpop.permute.xlu0 %879  ;;  %v10982_v52 = vld [vmem:[#allocation8_spill] sm:$0xff] }
  0xf4   : > { %1247 = vrot.lane.b32.xlu1 %v7403_v30, %s7188_s16  ;;  %966 = vst.msk [vmem:[#allocation3 + $0x50] sm:$0xff] %vm955_vm4, %v880_v48  ;;  %v10983_v48 = vld [vmem:[#allocation9_spill] sm:$0xff] }
  0xf5   : > { %1253 = vrot.lane.b32.xlu0 %v7411_v33, %s7188_s16 }
  0xf6   : > { %v878_v28 = vpop.permute.xlu1 %877 }
  0xf7   : > { %965 = vst.msk [vmem:[#allocation3 + $0x48] sm:$0xff] %vm955_vm4, %v878_v28  ;;  %v884_v49 = vpop.permute.xlu0 %883 }
  0xf8   : > { %1251 = vrot.lane.b32.xlu1 %v7415_v34, %s7188_s16  ;;  %968 = vst.msk [vmem:[#allocation3 + $0x60] sm:$0xff] %vm955_vm4, %v884_v49  ;;  %v10984_v49 = vld [vmem:[#allocation10_spill] sm:$0xff] }
  0xf9   : > { %1257 = vrot.lane.b32.xlu0 %v7419_v35, %s7188_s16 }
  0xfa   : > { %v882_v29 = vpop.permute.xlu1 %881 }
  0xfb   : > { %967 = vst.msk [vmem:[#allocation3 + $0x58] sm:$0xff] %vm955_vm4, %v882_v29  ;;  %v888_v30 = vpop.permute.xlu0 %887 }
  0xfc   : > { %1255 = vrot.lane.b32.xlu1 %v7432_v42, %s7188_s16  ;;  %970 = vst.msk [vmem:[#allocation3 + $0x70] sm:$0xff] %vm955_vm4, %v888_v30  ;;  %v7982_v30 = vld [vmem:[#allocation2 + $0x189] sm:$0xff] }
  0xfd   : > { %1261 = vrot.lane.b32.xlu0 %v7439_v43, %s7188_s16 }
  0xfe   : > { %v886_v33 = vpop.permute.xlu1 %885 }
  0xff   : > { %969 = vst.msk [vmem:[#allocation3 + $0x68] sm:$0xff] %vm955_vm4, %v886_v33  ;;  %v892_v34 = vpop.permute.xlu0 %891 }
 0x100   : > { %1259 = vrot.lane.b32.xlu1 %v7443_v44, %s7188_s16  ;;  %972 = vst.msk [vmem:[#allocation3 + $0x80] sm:$0xff] %vm955_vm4, %v892_v34  ;;  %v10985_v34 = vld [vmem:[#allocation11_spill] sm:$0xff] }
 0x101   : > { %1265 = vrot.lane.b32.xlu0 %v7447_v45, %s7188_s16 }
 0x102   : > { %v890_v35 = vpop.permute.xlu1 %889 }
 0x103   : > { %971 = vst.msk [vmem:[#allocation3 + $0x78] sm:$0xff] %vm955_vm4, %v890_v35  ;;  %v896_v42 = vpop.permute.xlu0 %895 }
 0x104   : > { %1263 = vrot.lane.b32.xlu1 %v7451_v46, %s7188_s16  ;;  %974 = vst.msk [vmem:[#allocation3 + $0x90] sm:$0xff] %vm955_vm4, %v896_v42 }
 0x105   : > { %1269 = vrot.lane.b32.xlu0 %v7455_v47, %s7188_s16 }
 0x106   : > { %v894_v43 = vpop.permute.xlu1 %893 }
 0x107   : > { %973 = vst.msk [vmem:[#allocation3 + $0x88] sm:$0xff] %vm955_vm4, %v894_v43  ;;  %v900_v44 = vpop.permute.xlu0 %899  ;;  %v10986_v43 = vld [vmem:[#allocation12_spill] sm:$0xff] }
 0x108   : > { %1267 = vrot.lane.b32.xlu1 %v7461_v50, %s7188_s16  ;;  %976 = vst.msk [vmem:[#allocation3 + $0xa0] sm:$0xff] %vm955_vm4, %v900_v44  ;;  %v10987_v44 = vld [vmem:[#allocation13_spill] sm:$0xff] }
 0x109   : > { %1273 = vrot.lane.b32.xlu0 %v7471_v53, %s7188_s16 }
 0x10a   : > { %v898_v45 = vpop.permute.xlu1 %897 }
 0x10b   : > { %975 = vst.msk [vmem:[#allocation3 + $0x98] sm:$0xff] %vm955_vm4, %v898_v45  ;;  %v904_v46 = vpop.permute.xlu0 %903 }
 0x10c   : > { %1271 = vrot.lane.b32.xlu1 %v7481_v56, %s7188_s16  ;;  %978 = vst.msk [vmem:[#allocation3 + $0xb0] sm:$0xff] %vm955_vm4, %v904_v46 }
 0x10d   : > { %1277 = vrot.lane.b32.xlu0 %v7491_v59, %s7188_s16 }
 0x10e   : > { %v902_v47 = vpop.permute.xlu1 %901 }
 0x10f   : > { %977 = vst.msk [vmem:[#allocation3 + $0xa8] sm:$0xff] %vm955_vm4, %v902_v47  ;;  %v908_v50 = vpop.permute.xlu0 %907  ;;  %v10988_v47 = vld [vmem:[#allocation14_spill] sm:$0xff] }
 0x110   : > { %1275 = vrot.lane.b32.xlu1 %v7517_v2, %s7188_s16  ;;  %980 = vst.msk [vmem:[#allocation3 + $0xc0] sm:$0xff] %vm955_vm4, %v908_v50  ;;  %v10989_v50 = vld [vmem:[#allocation15_spill] sm:$0xff] }
 0x111   : > { %1281 = vrot.lane.b32.xlu0 %v7567_v13, %s7188_s16 }
 0x112   : > { %v906_v53 = vpop.permute.xlu1 %905 }
 0x113   : > { %979 = vst.msk [vmem:[#allocation3 + $0xb8] sm:$0xff] %vm955_vm4, %v906_v53  ;;  %v912_v56 = vpop.permute.xlu0 %911 }
 0x114   : > { %1279 = vrot.lane.b32.xlu1 %v7577_v16, %s7188_s16  ;;  %982 = vst.msk [vmem:[#allocation3 + $0xd0] sm:$0xff] %vm955_vm4, %v912_v56 }
 0x115   : > { %1285 = vrot.lane.b32.xlu0 %v7585_v17, %s7188_s16 }
 0x116   : > { %v910_v59 = vpop.permute.xlu1 %909 }
 0x117   : > { %981 = vst.msk [vmem:[#allocation3 + $0xc8] sm:$0xff] %vm955_vm4, %v910_v59  ;;  %v916_v2 = vpop.permute.xlu0 %915  ;;  %v10990_v59 = vld [vmem:[#allocation16_spill] sm:$0xff] }
 0x118   : > { %1283 = vrot.lane.b32.xlu1 %v7593_v20, %s7188_s16  ;;  %984 = vst.msk [vmem:[#allocation3 + $0xe0] sm:$0xff] %vm955_vm4, %v916_v2  ;;  %v10991_v2 = vld [vmem:[#allocation17_spill] sm:$0xff] }
 0x119   : > { %1289 = vrot.lane.b32.xlu0 %v7601_v21, %s7188_s16 }
 0x11a   : > { %v914_v13 = vpop.permute.xlu1 %913 }
 0x11b   : > { %983 = vst.msk [vmem:[#allocation3 + $0xd8] sm:$0xff] %vm955_vm4, %v914_v13  ;;  %v920_v16 = vpop.permute.xlu0 %919 }
 0x11c   : > { %1287 = vrot.lane.b32.xlu1 %v7609_v24, %s7188_s16  ;;  %986 = vst.msk [vmem:[#allocation3 + $0xf0] sm:$0xff] %vm955_vm4, %v920_v16  ;;  %v10981_v24 = vld [vmem:[#allocation7_spill] sm:$0xff] }
 0x11d   : > { %1293 = vrot.lane.b32.xlu0 %v7617_v25, %s7188_s16 }
 0x11e   : > { %v918_v17 = vpop.permute.xlu1 %917 }
 0x11f   : > { %985 = vst.msk [vmem:[#allocation3 + $0xe8] sm:$0xff] %vm955_vm4, %v918_v17  ;;  %v1053_v20 = vpop.permute.xlu0 %1052  ;;  %v10992_v17 = vld [vmem:[#allocation18_spill] sm:$0xff] }
 0x120   : > { %1291 = vrot.lane.b32.xlu1 %v7625_v31, %s7188_s16  ;;  %1149 = vst.msk [vmem:[#allocation3] sm:$0xff] %vm1148_vm5, %v1053_v20  ;;  %v7972_v31 = vld [vmem:[#allocation2 + $0x181] sm:$0xff]  ;;  %v10993_v20 = vld [vmem:[#allocation19_spill] sm:$0xff] }
 0x121   : > { %1297 = vrot.lane.b32.xlu0 %v7633_v32, %s7188_s16 }
 0x122   : > { %v922_v21 = vpop.permute.xlu1 %921 }
 0x123   : > { %987 = vst.msk [vmem:[#allocation3 + $0xf8] sm:$0xff] %vm955_vm4, %v922_v21  ;;  %v1057_v51 = vpop.permute.xlu0 %1056  ;;  %vm4034_vm4 = vcmask 523712  }
 0x124   : > { %1295 = vrot.lane.b32.xlu1 %v10981_v24, %s7188_s16  ;;  %1151 = vst.msk [vmem:[#allocation3 + $0x10] sm:$0xff] %vm1148_vm5, %v1057_v51  ;;  %v10994_v51 = vld [vmem:[#allocation20_spill] sm:$0xff] }
 0x125   : > { %1301 = vrot.lane.b32.xlu0 %v10982_v52, %s7188_s16 }
 0x126   : > { %v1055_v25 = vpop.permute.xlu1 %1054 }
 0x127   : > { %1150 = vst.msk [vmem:[#allocation3 + $0x8] sm:$0xff] %vm1148_vm5, %v1055_v25  ;;  %v1061_v32 = vpop.permute.xlu0 %1060  ;;  %v10995_v25 = vld [vmem:[#allocation21_spill] sm:$0xff] }
 0x128   : > { %1299 = vrot.lane.b32.xlu1 %v10983_v48, %s7188_s16  ;;  %1153 = vst.msk [vmem:[#allocation3 + $0x20] sm:$0xff] %vm1148_vm5, %v1061_v32  ;;  %v10996_v32 = vld [vmem:[#allocation22_spill] sm:$0xff] }
 0x129   : > { %1305 = vrot.lane.b32.xlu0 %v7972_v31, %s7188_s16 }
 0x12a   : > { %v1059_v28 = vpop.permute.xlu1 %1058 }
 0x12b   : > { %1152 = vst.msk [vmem:[#allocation3 + $0x18] sm:$0xff] %vm1148_vm5, %v1059_v28  ;;  %v1065_v29 = vpop.permute.xlu0 %1064  ;;  %v10997_v28 = vld [vmem:[#allocation23_spill] sm:$0xff] }
 0x12c   : > { %1303 = vrot.lane.b32.xlu1 %v10984_v49, %s7188_s16  ;;  %1155 = vst.msk [vmem:[#allocation3 + $0x30] sm:$0xff] %vm1148_vm5, %v1065_v29 }
 0x12d   : > { %1438 = vrot.lane.b32.xlu0 %v10985_v34, %s7189_s17  ;;  %v10999_v34 = vld [vmem:[#allocation25_spill] sm:$0xff] }
 0x12e   : > { %v1063_v33 = vpop.permute.xlu1 %1062 }
 0x12f   : > { %1154 = vst.msk [vmem:[#allocation3 + $0x28] sm:$0xff] %vm1148_vm5, %v1063_v33  ;;  %v1069_v35 = vpop.permute.xlu0 %1068  ;;  %v10998_v33 = vld [vmem:[#allocation24_spill] sm:$0xff] }
 0x130   : > { %1307 = vrot.lane.b32.xlu1 %v7982_v30, %s7188_s16  ;;  %1157 = vst.msk [vmem:[#allocation3 + $0x40] sm:$0xff] %vm1148_vm5, %v1069_v35 }
 0x131   : > { %1442 = vrot.lane.b32.xlu0 %v10986_v43, %s7189_s17  ;;  %v11000_v43 = vld [vmem:[#allocation26_spill] sm:$0xff] }
 0x132   : > { %v1067_v42 = vpop.permute.xlu1 %1066 }
 0x133   : > { %1156 = vst.msk [vmem:[#allocation3 + $0x38] sm:$0xff] %vm1148_vm5, %v1067_v42  ;;  %v1073_v45 = vpop.permute.xlu0 %1072 }
 0x134   : > { %1440 = vrot.lane.b32.xlu1 %v10987_v44, %s7189_s17  ;;  %1159 = vst.msk [vmem:[#allocation3 + $0x50] sm:$0xff] %vm1148_vm5, %v1073_v45  ;;  %v11001_v44 = vld [vmem:[#allocation27_spill] sm:$0xff] }
 0x135   : > { %1446 = vrot.lane.b32.xlu0 %v10988_v47, %s7189_s17  ;;  %v11002_v47 = vld [vmem:[#allocation28_spill] sm:$0xff] }
 0x136   : > { %v1071_v46 = vpop.permute.xlu1 %1070 }
 0x137   : > { %1158 = vst.msk [vmem:[#allocation3 + $0x48] sm:$0xff] %vm1148_vm5, %v1071_v46  ;;  %v1077_v53 = vpop.permute.xlu0 %1076 }
 0x138   : > { %1444 = vrot.lane.b32.xlu1 %v10989_v50, %s7189_s17  ;;  %1161 = vst.msk [vmem:[#allocation3 + $0x60] sm:$0xff] %vm1148_vm5, %v1077_v53  ;;  %v11003_v50 = vld [vmem:[#allocation29_spill] sm:$0xff] }
 0x139   : > { %1450 = vrot.lane.b32.xlu0 %v10990_v59, %s7189_s17  ;;  %v11004_v59 = vld [vmem:[#allocation30_spill] sm:$0xff] }
 0x13a   : > { %v1075_v56 = vpop.permute.xlu1 %1074 }
 0x13b   : > { %1160 = vst.msk [vmem:[#allocation3 + $0x58] sm:$0xff] %vm1148_vm5, %v1075_v56  ;;  %v1081_v13 = vpop.permute.xlu0 %1080 }
 0x13c   : > { %1448 = vrot.lane.b32.xlu1 %v10991_v2, %s7189_s17  ;;  %1163 = vst.msk [vmem:[#allocation3 + $0x70] sm:$0xff] %vm1148_vm5, %v1081_v13  ;;  %v11005_v2 = vld [vmem:[#allocation31_spill] sm:$0xff] }
 0x13d   : > { %1454 = vrot.lane.b32.xlu0 %v10992_v17, %s7189_s17  ;;  %v11006_v17 = vld [vmem:[#allocation32_spill] sm:$0xff] }
 0x13e   : > { %v1079_v16 = vpop.permute.xlu1 %1078 }
 0x13f   : > { %1162 = vst.msk [vmem:[#allocation3 + $0x68] sm:$0xff] %vm1148_vm5, %v1079_v16  ;;  %v1085_v21 = vpop.permute.xlu0 %1084 }
 0x140   : > { %1452 = vrot.lane.b32.xlu1 %v10993_v20, %s7189_s17  ;;  %1165 = vst.msk [vmem:[#allocation3 + $0x80] sm:$0xff] %vm1148_vm5, %v1085_v21  ;;  %v11007_v20 = vld [vmem:[#allocation33_spill] sm:$0xff] }
 0x141   : > { %1458 = vrot.lane.b32.xlu0 %v10994_v51, %s7189_s17  ;;  %v11008_v51 = vld [vmem:[#allocation34_spill] sm:$0xff] }
 0x142   : > { %v1083_v24 = vpop.permute.xlu1 %1082 }
 0x143   : > { %1164 = vst.msk [vmem:[#allocation3 + $0x78] sm:$0xff] %vm1148_vm5, %v1083_v24  ;;  %v1089_v52 = vpop.permute.xlu0 %1088 }
 0x144   : > { %1456 = vrot.lane.b32.xlu1 %v10995_v25, %s7189_s17  ;;  %1167 = vst.msk [vmem:[#allocation3 + $0x90] sm:$0xff] %vm1148_vm5, %v1089_v52  ;;  %v11009_v25 = vld [vmem:[#allocation35_spill] sm:$0xff] }
 0x145   : > { %1462 = vrot.lane.b32.xlu0 %v10996_v32, %s7189_s17  ;;  %v11010_v32 = vld [vmem:[#allocation36_spill] sm:$0xff] }
 0x146   : > { %v1087_v48 = vpop.permute.xlu1 %1086 }
 0x147   : > { %1166 = vst.msk [vmem:[#allocation3 + $0x88] sm:$0xff] %vm1148_vm5, %v1087_v48  ;;  %v1093_v49 = vpop.permute.xlu0 %1092 }
 0x148   : > { %1460 = vrot.lane.b32.xlu1 %v10997_v28, %s7189_s17  ;;  %1169 = vst.msk [vmem:[#allocation3 + $0xa0] sm:$0xff] %vm1148_vm5, %v1093_v49 }
 0x149   : > { %1466 = vrot.lane.b32.xlu0 %v10998_v33, %s7189_s17 }
 0x14a   : > { %v1091_v29 = vpop.permute.xlu1 %1090 }
 0x14b   : > { %1168 = vst.msk [vmem:[#allocation3 + $0x98] sm:$0xff] %vm1148_vm5, %v1091_v29  ;;  %v1097_v35 = vpop.permute.xlu0 %1096  ;;  %v8072_v29 = vld [vmem:[#allocation2 + $0x182] sm:$0xff] }
 0x14c   : > { %1464 = vrot.lane.b32.xlu1 %v10999_v34, %s7189_s17  ;;  %1171 = vst.msk [vmem:[#allocation3 + $0xb0] sm:$0xff] %vm1148_vm5, %v1097_v35  ;;  %v8082_v34 = vld [vmem:[#allocation2 + $0x18a] sm:$0xff] }
 0x14d   : > { %1470 = vrot.lane.b32.xlu0 %v11000_v43, %s7189_s17 }
 0x14e   : > { %v1095_v42 = vpop.permute.xlu1 %1094 }
 0x14f   : > { %1170 = vst.msk [vmem:[#allocation3 + $0xa8] sm:$0xff] %vm1148_vm5, %v1095_v42  ;;  %v1101_v45 = vpop.permute.xlu0 %1100 }
 0x150   : > { %1468 = vrot.lane.b32.xlu1 %v11001_v44, %s7189_s17  ;;  %1173 = vst.msk [vmem:[#allocation3 + $0xc0] sm:$0xff] %vm1148_vm5, %v1101_v45 }
 0x151   : > { %1474 = vrot.lane.b32.xlu0 %v11002_v47, %s7189_s17 }
 0x152   : > { %v1099_v46 = vpop.permute.xlu1 %1098 }
 0x153   : > { %1172 = vst.msk [vmem:[#allocation3 + $0xb8] sm:$0xff] %vm1148_vm5, %v1099_v46  ;;  %v1105_v53 = vpop.permute.xlu0 %1104 }
 0x154   : > { %1472 = vrot.lane.b32.xlu1 %v11003_v50, %s7189_s17  ;;  %1175 = vst.msk [vmem:[#allocation3 + $0xd0] sm:$0xff] %vm1148_vm5, %v1105_v53  ;;  %v1762_v50 = vld [vmem:[#allocation2 + $0x39] sm:$0xff] }
 0x155   : > { %1478 = vrot.lane.b32.xlu0 %v11004_v59, %s7189_s17  ;;  %v1764_v59 = vld [vmem:[#allocation2 + $0x51] sm:$0xff] }
 0x156   : > { %v1103_v56 = vpop.permute.xlu1 %1102 }
 0x157   : > { %1174 = vst.msk [vmem:[#allocation3 + $0xc8] sm:$0xff] %vm1148_vm5, %v1103_v56  ;;  %v1109_v13 = vpop.permute.xlu0 %1108 }
 0x158   : > { %1476 = vrot.lane.b32.xlu1 %v11005_v2, %s7189_s17  ;;  %1177 = vst.msk [vmem:[#allocation3 + $0xe0] sm:$0xff] %vm1148_vm5, %v1109_v13  ;;  %v1767_v13 = vld [vmem:[#allocation2 + $0x79] sm:$0xff] }
 0x159   : > { %1482 = vrot.lane.b32.xlu0 %v11006_v17, %s7189_s17  ;;  %v1766_v17 = vld [vmem:[#allocation2 + $0x69] sm:$0xff] }
 0x15a   : > { %v1107_v16 = vpop.permute.xlu1 %1106 }
 0x15b   : > { %1176 = vst.msk [vmem:[#allocation3 + $0xd8] sm:$0xff] %vm1148_vm5, %v1107_v16  ;;  %v1113_v21 = vpop.permute.xlu0 %1112 }
 0x15c   : > { %1480 = vrot.lane.b32.xlu1 %v11007_v20, %s7189_s17  ;;  %1179 = vst.msk [vmem:[#allocation3 + $0xf0] sm:$0xff] %vm1148_vm5, %v1113_v21  ;;  %v1769_v21 = vld [vmem:[#allocation2 + $0x91] sm:$0xff] }
 0x15d   : > { %1486 = vrot.lane.b32.xlu0 %v11008_v51, %s7189_s17  ;;  %v1768_v51 = vld [vmem:[#allocation2 + $0x81] sm:$0xff] }
 0x15e   : > { %v1111_v24 = vpop.permute.xlu1 %1110 }
 0x15f   : > { %1178 = vst.msk [vmem:[#allocation3 + $0xe8] sm:$0xff] %vm1148_vm5, %v1111_v24  ;;  %v1246_v52 = vpop.permute.xlu0 %1245 }
 0x160   : > { %1484 = vrot.lane.b32.xlu1 %v11009_v25, %s7189_s17  ;;  %1342 = vst.msk [vmem:[#allocation3] sm:$0xff] %vm1341_vm6, %v1246_v52  ;;  %v1771_v52 = vld [vmem:[#allocation2 + $0xa9] sm:$0xff] }
 0x161   : > { %1490 = vrot.lane.b32.xlu0 %v7760_v38, %s7189_s17 }
 0x162   : > { %v1115_v48 = vpop.permute.xlu1 %1114 }
 0x163   : > { %1180 = vst.msk [vmem:[#allocation3 + $0xf8] sm:$0xff] %vm1148_vm5, %v1115_v48  ;;  %v1250_v28 = vpop.permute.xlu0 %1249  ;;  %vm4227_vm5 = vcmask 589312  }
 0x164   : > { %1488 = vrot.lane.b32.xlu1 %v11010_v32, %s7189_s17  ;;  %1344 = vst.msk [vmem:[#allocation3 + $0x10] sm:$0xff] %vm1341_vm6, %v1250_v28  ;;  %v1770_v32 = vld [vmem:[#allocation2 + $0x99] sm:$0xff] }
 0x165   : > { %1494 = vrot.lane.b32.xlu0 %v7770_v37, %s7189_s17 }
 0x166   : > { %v1248_v49 = vpop.permute.xlu1 %1247 }
 0x167   : > { %1343 = vst.msk [vmem:[#allocation3 + $0x8] sm:$0xff] %vm1341_vm6, %v1248_v49  ;;  %v1254_v38 = vpop.permute.xlu0 %1253  ;;  %v1773_v49 = vld [vmem:[#allocation2 + $0xc1] sm:$0xff] }
 0x168   : > { %1492 = vrot.lane.b32.xlu1 %v7774_v41, %s7189_s17  ;;  %1346 = vst.msk [vmem:[#allocation3 + $0x20] sm:$0xff] %vm1341_vm6, %v1254_v38 }
 0x169   : > { %1498 = vrot.lane.b32.xlu0 %v8072_v29, %s7189_s17 }
 0x16a   : > { %v1252_v33 = vpop.permute.xlu1 %1251 }
 0x16b   : > { %1345 = vst.msk [vmem:[#allocation3 + $0x18] sm:$0xff] %vm1341_vm6, %v1252_v33  ;;  %v1258_v37 = vpop.permute.xlu0 %1257  ;;  %v1772_v33 = vld [vmem:[#allocation2 + $0xb1] sm:$0xff] }
 0x16c   : > { %1496 = vrot.lane.b32.xlu1 %v7782_v40, %s7189_s17  ;;  %1348 = vst.msk [vmem:[#allocation3 + $0x30] sm:$0xff] %vm1341_vm6, %v1258_v37 }
 0x16d   : > { %1632 = vrot.lane.b32.xlu0 %v7475_v54, %s7190_s18 }
 0x16e   : > { %v1256_v35 = vpop.permute.xlu1 %1255 }
 0x16f   : > { %1347 = vst.msk [vmem:[#allocation3 + $0x28] sm:$0xff] %vm1341_vm6, %v1256_v35  ;;  %v1262_v41 = vpop.permute.xlu0 %1261  ;;  %v1775_v35 = vld [vmem:[#allocation2 + $0xd9] sm:$0xff] }
 0x170   : > { %1500 = vrot.lane.b32.xlu1 %v8082_v34, %s7189_s17  ;;  %1350 = vst.msk [vmem:[#allocation3 + $0x40] sm:$0xff] %vm1341_vm6, %v1262_v41 }
 0x171   : > { %1636 = vrot.lane.b32.xlu0 %v7487_v57, %s7190_s18 }
 0x172   : > { %v1260_v42 = vpop.permute.xlu1 %1259 }
 0x173   : > { %1349 = vst.msk [vmem:[#allocation3 + $0x38] sm:$0xff] %vm1341_vm6, %v1260_v42  ;;  %v1266_v40 = vpop.permute.xlu0 %1265  ;;  %v1774_v42 = vld [vmem:[#allocation2 + $0xc9] sm:$0xff] }
 0x174   : > { %1634 = vrot.lane.b32.xlu1 %v7477_v55, %s7190_s18  ;;  %1352 = vst.msk [vmem:[#allocation3 + $0x50] sm:$0xff] %vm1341_vm6, %v1266_v40 }
 0x175   : > { %1640 = vrot.lane.b32.xlu0 %v7497_v60, %s7190_s18 }
 0x176   : > { %v1264_v54 = vpop.permute.xlu1 %1263 }
 0x177   : > { %1351 = vst.msk [vmem:[#allocation3 + $0x48] sm:$0xff] %vm1341_vm6, %v1264_v54  ;;  %v1270_v43 = vpop.permute.xlu0 %1269  ;;  %v1777_v54 = vld [vmem:[#allocation2 + $0xf1] sm:$0xff] }
 0x178   : > { %1638 = vrot.lane.b32.xlu1 %v7489_v58, %s7190_s18  ;;  %1354 = vst.msk [vmem:[#allocation3 + $0x60] sm:$0xff] %vm1341_vm6, %v1270_v43 }
 0x179   : > { %1644 = vrot.lane.b32.xlu0 %v7501_v62, %s7190_s18 }
 0x17a   : > { %v1268_v57 = vpop.permute.xlu1 %1267 }
 0x17b   : > { %1353 = vst.msk [vmem:[#allocation3 + $0x58] sm:$0xff] %vm1341_vm6, %v1268_v57  ;;  %v1274_v55 = vpop.permute.xlu0 %1273  ;;  %v1776_v57 = vld [vmem:[#allocation2 + $0xe1] sm:$0xff] }
 0x17c   : > { %1642 = vrot.lane.b32.xlu1 %v7499_v61, %s7190_s18  ;;  %1356 = vst.msk [vmem:[#allocation3 + $0x70] sm:$0xff] %vm1341_vm6, %v1274_v55 }
 0x17d   : > { %1648 = vrot.lane.b32.xlu0 %v7513_v0, %s7190_s18 }
 0x17e   : > { %v1272_v60 = vpop.permute.xlu1 %1271 }
 0x17f   : > { %1355 = vst.msk [vmem:[#allocation3 + $0x68] sm:$0xff] %vm1341_vm6, %v1272_v60  ;;  %v1278_v58 = vpop.permute.xlu0 %1277  ;;  %v1779_v60 = vld [vmem:[#allocation2 + $0x109] sm:$0xff] }
 0x180   : > { %1646 = vrot.lane.b32.xlu1 %v7511_v63, %s7190_s18  ;;  %1358 = vst.msk [vmem:[#allocation3 + $0x80] sm:$0xff] %vm1341_vm6, %v1278_v58 }
 0x181   : > { %1652 = vrot.lane.b32.xlu0 %v7525_v3, %s7190_s18 }
 0x182   : > { %v1276_v62 = vpop.permute.xlu1 %1275 }
 0x183   : > { %1357 = vst.msk [vmem:[#allocation3 + $0x78] sm:$0xff] %vm1341_vm6, %v1276_v62  ;;  %v1282_v61 = vpop.permute.xlu0 %1281  ;;  %v1778_v62 = vld [vmem:[#allocation2 + $0xf9] sm:$0xff] }
 0x184   : > { %1650 = vrot.lane.b32.xlu1 %v7515_v1, %s7190_s18  ;;  %1360 = vst.msk [vmem:[#allocation3 + $0x90] sm:$0xff] %vm1341_vm6, %v1282_v61 }
 0x185   : > { %1656 = vrot.lane.b32.xlu0 %v7529_v5, %s7190_s18 }
 0x186   : > { %v1280_v0 = vpop.permute.xlu1 %1279 }
 0x187   : > { %1359 = vst.msk [vmem:[#allocation3 + $0x88] sm:$0xff] %vm1341_vm6, %v1280_v0  ;;  %v1286_v63 = vpop.permute.xlu0 %1285  ;;  %v1781_v0 = vld [vmem:[#allocation2 + $0x121] sm:$0xff] }
 0x188   : > { %1654 = vrot.lane.b32.xlu1 %v7527_v4, %s7190_s18  ;;  %1362 = vst.msk [vmem:[#allocation3 + $0xa0] sm:$0xff] %vm1341_vm6, %v1286_v63 }
 0x189   : > { %1660 = vrot.lane.b32.xlu0 %v7541_v7, %s7190_s18 }
 0x18a   : > { %v1284_v3 = vpop.permute.xlu1 %1283 }
 0x18b   : > { %1361 = vst.msk [vmem:[#allocation3 + $0x98] sm:$0xff] %vm1341_vm6, %v1284_v3  ;;  %v1290_v1 = vpop.permute.xlu0 %1289  ;;  %v1780_v3 = vld [vmem:[#allocation2 + $0x111] sm:$0xff] }
 0x18c   : > { %1658 = vrot.lane.b32.xlu1 %v7539_v6, %s7190_s18  ;;  %1364 = vst.msk [vmem:[#allocation3 + $0xb0] sm:$0xff] %vm1341_vm6, %v1290_v1 }
 0x18d   : > { %1664 = vrot.lane.b32.xlu0 %v7551_v9, %s7190_s18 }
 0x18e   : > { %v1288_v5 = vpop.permute.xlu1 %1287 }
 0x18f   : > { %1363 = vst.msk [vmem:[#allocation3 + $0xa8] sm:$0xff] %vm1341_vm6, %v1288_v5  ;;  %v1294_v4 = vpop.permute.xlu0 %1293  ;;  %v1783_v5 = vld [vmem:[#allocation2 + $0x139] sm:$0xff] }
 0x190   : > { %1662 = vrot.lane.b32.xlu1 %v7543_v8, %s7190_s18  ;;  %1366 = vst.msk [vmem:[#allocation3 + $0xc0] sm:$0xff] %vm1341_vm6, %v1294_v4 }
 0x191   : > { %1668 = vrot.lane.b32.xlu0 %v7555_v11, %s7190_s18 }
 0x192   : > { %v1292_v7 = vpop.permute.xlu1 %1291 }
 0x193   : > { %1365 = vst.msk [vmem:[#allocation3 + $0xb8] sm:$0xff] %vm1341_vm6, %v1292_v7  ;;  %v1298_v6 = vpop.permute.xlu0 %1297  ;;  %v1782_v7 = vld [vmem:[#allocation2 + $0x129] sm:$0xff] }
 0x194   : > { %1666 = vrot.lane.b32.xlu1 %v7553_v10, %s7190_s18  ;;  %1368 = vst.msk [vmem:[#allocation3 + $0xd0] sm:$0xff] %vm1341_vm6, %v1298_v6 }
 0x195   : > { %1672 = vrot.lane.b32.xlu0 %v7573_v14, %s7190_s18 }
 0x196   : > { %v1296_v9 = vpop.permute.xlu1 %1295 }
 0x197   : > { %1367 = vst.msk [vmem:[#allocation3 + $0xc8] sm:$0xff] %vm1341_vm6, %v1296_v9  ;;  %v1302_v8 = vpop.permute.xlu0 %1301  ;;  %v1785_v9 = vld [vmem:[#allocation2 + $0x151] sm:$0xff] }
 0x198   : > { %1670 = vrot.lane.b32.xlu1 %v7565_v12, %s7190_s18  ;;  %1370 = vst.msk [vmem:[#allocation3 + $0xe0] sm:$0xff] %vm1341_vm6, %v1302_v8 }
 0x199   : > { %1676 = vrot.lane.b32.xlu0 %v7589_v18, %s7190_s18 }
 0x19a   : > { %v1300_v11 = vpop.permute.xlu1 %1299 }
 0x19b   : > { %1369 = vst.msk [vmem:[#allocation3 + $0xd8] sm:$0xff] %vm1341_vm6, %v1300_v11  ;;  %v1306_v10 = vpop.permute.xlu0 %1305  ;;  %v1784_v11 = vld [vmem:[#allocation2 + $0x141] sm:$0xff] }
 0x19c   : > { %1674 = vrot.lane.b32.xlu1 %v7575_v15, %s7190_s18  ;;  %1372 = vst.msk [vmem:[#allocation3 + $0xf0] sm:$0xff] %vm1341_vm6, %v1306_v10 }
 0x19d   : > { %1680 = vrot.lane.b32.xlu0 %v7605_v22, %s7190_s18 }
 0x19e   : > { %v1304_v14 = vpop.permute.xlu1 %1303 }
 0x19f   : > { %1371 = vst.msk [vmem:[#allocation3 + $0xe8] sm:$0xff] %vm1341_vm6, %v1304_v14  ;;  %v1439_v12 = vpop.permute.xlu0 %1438  ;;  %v1787_v14 = vld [vmem:[#allocation2 + $0x169] sm:$0xff] }
 0x1a0   : > { %1678 = vrot.lane.b32.xlu1 %v7591_v19, %s7190_s18  ;;  %1535 = vst.msk [vmem:[#allocation3] sm:$0xff] %vm1534_vm7, %v1439_v12  ;;  %v1598_v19 = vld [vmem:[#allocation2 + $0x198] sm:$0xff] }
 0x1a1   : > { %1684 = vrot.lane.b32.xlu0 %v7621_v26, %s7190_s18 }
 0x1a2   : > { %v1308_v18 = vpop.permute.xlu1 %1307 }
 0x1a3   : > { %1373 = vst.msk [vmem:[#allocation3 + $0xf8] sm:$0xff] %vm1341_vm6, %v1308_v18  ;;  %v1443_v15 = vpop.permute.xlu0 %1442  ;;  %v1786_v18 = vld [vmem:[#allocation2 + $0x159] sm:$0xff]  ;;  %vm4301_vm6 = vcmask 588800  }
 0x1a4   : > { %1682 = vrot.lane.b32.xlu1 %v7607_v23, %s7190_s18  ;;  %1537 = vst.msk [vmem:[#allocation3 + $0x10] sm:$0xff] %vm1534_vm7, %v1443_v15  ;;  %v1761_v23 = vld [vmem:[#allocation2 + $0x31] sm:$0xff] }
 0x1a5   : > { %1688 = vrot.lane.b32.xlu0 %v7872_v39, %s7190_s18  ;;  %v1599_v39 = vld [vmem:[#allocation2 + $0x1a0] sm:$0xff] }
 0x1a6   : > { %v1441_v22 = vpop.permute.xlu1 %1440 }
 0x1a7   : > { %1536 = vst.msk [vmem:[#allocation3 + $0x8] sm:$0xff] %vm1534_vm7, %v1441_v22  ;;  %v1447_v44 = vpop.permute.xlu0 %1446  ;;  %v2179_v22 = vld [vmem:[%s10848_s1] sm:$0xff] }
 0x1a8   : > { %1686 = vrot.lane.b32.xlu1 %v7623_v27, %s7190_s18  ;;  %1539 = vst.msk [vmem:[#allocation3 + $0x20] sm:$0xff] %vm1534_vm7, %v1447_v44  ;;  %v1763_v27 = vld [vmem:[#allocation2 + $0x49] sm:$0xff] }
 0x1a9   : > { %1692 = vrot.lane.b32.xlu0 %v1598_v19, %s7190_s18  ;;  %v2180_v19 = vld [vmem:[%s10848_s1 + $0x8] sm:$0xff] }
 0x1aa   : > { %v1445_v26 = vpop.permute.xlu1 %1444  ;;  %v7117_v44 = vpack.c.bf16 %v2180_v19, %v2179_v22  ;;  %v1977_v19 = vld [vmem:[#allocation2 + $0x142] sm:$0xff] }
 0x1ab   : > { %1538 = vst.msk [vmem:[#allocation3 + $0x18] sm:$0xff] %vm1534_vm7, %v1445_v26  ;;  %v1451_v45 = vpop.permute.xlu0 %1450 }
 0x1ac   : > { %1690 = vrot.lane.b32.xlu1 %v7882_v36, %s7190_s18  ;;  %1541 = vst.msk [vmem:[#allocation3 + $0x30] sm:$0xff] %vm1534_vm7, %v1451_v45  ;;  %v1765_v36 = vld [vmem:[#allocation2 + $0x61] sm:$0xff]  ;;  %7118 = vmatprep.subr.bf16.mxu0 %v7117_v44 }
 0x1ad   : > { %1825 = vrot.lane.b32.xlu0 %v1761_v23, %s7191_s19  ;;  %v1788_v23 = vld [vmem:[#allocation2 + $0x171] sm:$0xff]  ;;  %7120 = vmatpush3.bf16.msra.mxu0 %v7117_v44 }
 0x1ae   : > { %v1449_v46 = vpop.permute.xlu1 %1448 }
 0x1af   : > { %1540 = vst.msk [vmem:[#allocation3 + $0x28] sm:$0xff] %vm1534_vm7, %v1449_v46  ;;  %v1455_v47 = vpop.permute.xlu0 %1454  ;;  %v2182_v46 = vld [vmem:[%s10848_s1 + $0x18] sm:$0xff] }
 0x1b0   : > { %1694 = vrot.lane.b32.xlu1 %v1599_v39, %s7190_s18  ;;  %1543 = vst.msk [vmem:[#allocation3 + $0x40] sm:$0xff] %vm1534_vm7, %v1455_v47  ;;  %v2181_v39 = vld [vmem:[%s10848_s1 + $0x10] sm:$0xff] }
 0x1b1   : > { %1829 = vrot.lane.b32.xlu0 %v1763_v27, %s7191_s19  ;;  %v1791_v27 = vld [vmem:[#allocation2 + $0x199] sm:$0xff]  ;;  %v7121_v47 = vpack.c.bf16 %v2182_v46, %v2181_v39 }
 0x1b2   : > { %v1453_v53 = vpop.permute.xlu1 %1452 }
 0x1b3   : > { %1542 = vst.msk [vmem:[#allocation3 + $0x38] sm:$0xff] %vm1534_vm7, %v1453_v53  ;;  %v1459_v56 = vpop.permute.xlu0 %1458  ;;  %7122 = vmatprep.subr.bf16.mxu0 %v7121_v47  ;;  %v1954_v53 = vld [vmem:[#allocation2 + $0x32] sm:$0xff] }
 0x1b4   : > { %1827 = vrot.lane.b32.xlu1 %v1762_v50, %s7191_s19  ;;  %1545 = vst.msk [vmem:[#allocation3 + $0x50] sm:$0xff] %vm1534_vm7, %v1459_v56  ;;  %7124 = vmatpush3.bf16.msra.mxu0 %v7121_v47 }
 0x1b5   : > { %1833 = vrot.lane.b32.xlu0 %v1765_v36, %s7191_s19  ;;  %v2183_v36 = vld [vmem:[%s10848_s1 + $0x20] sm:$0xf] }
 0x1b6   : > { %v1457_v2 = vpop.permute.xlu1 %1456  ;;  %7001 = vmatprep.subr.msk.mxu0 %vm2281_vm9, %v2183_v36 }
 0x1b7   : > { %1544 = vst.msk [vmem:[#allocation3 + $0x48] sm:$0xff] %vm1534_vm7, %v1457_v2  ;;  %v1463_v16 = vpop.permute.xlu0 %1462 }
 0x1b8   : > { %1831 = vrot.lane.b32.xlu1 %v1764_v59, %s7191_s19  ;;  %1547 = vst.msk [vmem:[#allocation3 + $0x60] sm:$0xff] %vm1534_vm7, %v1463_v16  ;;  %v1792_v59 = vld [vmem:[#allocation2 + $0x1a1] sm:$0xff]  ;;  %7002 = vmatpush3.msk.msra.mxu0 %vm2281_vm9, %v2183_v36 }
 0x1b9   : > { %1837 = vrot.lane.b32.xlu0 %v1767_v13, %s7191_s19  ;;  %v1956_v13 = vld [vmem:[#allocation2 + $0x4a] sm:$0xff] }
 0x1ba   : > { %v1461_v20 = vpop.permute.xlu1 %1460 }
 0x1bb   : > { %1546 = vst.msk [vmem:[#allocation3 + $0x58] sm:$0xff] %vm1534_vm7, %v1461_v20  ;;  %v1467_v24 = vpop.permute.xlu0 %1466  ;;  %v1958_v20 = vld [vmem:[#allocation2 + $0x62] sm:$0xff] }
 0x1bc   : > { %1835 = vrot.lane.b32.xlu1 %v1766_v17, %s7191_s19  ;;  %1549 = vst.msk [vmem:[#allocation3 + $0x70] sm:$0xff] %vm1534_vm7, %v1467_v24  ;;  %v1955_v17 = vld [vmem:[#allocation2 + $0x3a] sm:$0xff]  ;;  %v1957_v24 = vld [vmem:[#allocation2 + $0x52] sm:$0xff] }
 0x1bd   : > { %1841 = vrot.lane.b32.xlu0 %v1769_v21, %s7191_s19 }
 0x1be   : > { %v1465_v25 = vpop.permute.xlu1 %1464 }
 0x1bf   : > { %1548 = vst.msk [vmem:[#allocation3 + $0x68] sm:$0xff] %vm1534_vm7, %v1465_v25  ;;  %v1471_v48 = vpop.permute.xlu0 %1470  ;;  %v1960_v25 = vld [vmem:[#allocation2 + $0x7a] sm:$0xff] }
 0x1c0   : > { %1839 = vrot.lane.b32.xlu1 %v1768_v51, %s7191_s19  ;;  %1551 = vst.msk [vmem:[#allocation3 + $0x80] sm:$0xff] %vm1534_vm7, %v1471_v48  ;;  %v1959_v48 = vld [vmem:[#allocation2 + $0x6a] sm:$0xff] }
 0x1c1   : > { %1845 = vrot.lane.b32.xlu0 %v1771_v52, %s7191_s19 }
 0x1c2   : > { %v1469_v28 = vpop.permute.xlu1 %1468 }
 0x1c3   : > { %1550 = vst.msk [vmem:[#allocation3 + $0x78] sm:$0xff] %vm1534_vm7, %v1469_v28  ;;  %v1475_v38 = vpop.permute.xlu0 %1474  ;;  %v1962_v28 = vld [vmem:[#allocation2 + $0x92] sm:$0xff] }
 0x1c4   : > { %1843 = vrot.lane.b32.xlu1 %v1770_v32, %s7191_s19  ;;  %1553 = vst.msk [vmem:[#allocation3 + $0x90] sm:$0xff] %vm1534_vm7, %v1475_v38  ;;  %v1961_v38 = vld [vmem:[#allocation2 + $0x82] sm:$0xff] }
 0x1c5   : > { %1849 = vrot.lane.b32.xlu0 %v1773_v49, %s7191_s19 }
 0x1c6   : > { %v1473_v37 = vpop.permute.xlu1 %1472 }
 0x1c7   : > { %1552 = vst.msk [vmem:[#allocation3 + $0x88] sm:$0xff] %vm1534_vm7, %v1473_v37  ;;  %v1479_v41 = vpop.permute.xlu0 %1478  ;;  %v1964_v37 = vld [vmem:[#allocation2 + $0xaa] sm:$0xff] }
 0x1c8   : > { %1847 = vrot.lane.b32.xlu1 %v1772_v33, %s7191_s19  ;;  %1555 = vst.msk [vmem:[#allocation3 + $0xa0] sm:$0xff] %vm1534_vm7, %v1479_v41  ;;  %v1963_v41 = vld [vmem:[#allocation2 + $0x9a] sm:$0xff] }
 0x1c9   : > { %1853 = vrot.lane.b32.xlu0 %v1775_v35, %s7191_s19 }
 0x1ca   : > { %v1477_v40 = vpop.permute.xlu1 %1476 }
 0x1cb   : > { %1554 = vst.msk [vmem:[#allocation3 + $0x98] sm:$0xff] %vm1534_vm7, %v1477_v40  ;;  %v1483_v43 = vpop.permute.xlu0 %1482  ;;  %v1966_v40 = vld [vmem:[#allocation2 + $0xc2] sm:$0xff] }
 0x1cc   : > { %1851 = vrot.lane.b32.xlu1 %v1774_v42, %s7191_s19  ;;  %1557 = vst.msk [vmem:[#allocation3 + $0xb0] sm:$0xff] %vm1534_vm7, %v1483_v43  ;;  %v1965_v43 = vld [vmem:[#allocation2 + $0xb2] sm:$0xff] }
 0x1cd   : > { %1857 = vrot.lane.b32.xlu0 %v1777_v54, %s7191_s19 }
 0x1ce   : > { %v1481_v55 = vpop.permute.xlu1 %1480 }
 0x1cf   : > { %1556 = vst.msk [vmem:[#allocation3 + $0xa8] sm:$0xff] %vm1534_vm7, %v1481_v55  ;;  %v1487_v58 = vpop.permute.xlu0 %1486  ;;  %v1968_v55 = vld [vmem:[#allocation2 + $0xda] sm:$0xff] }
 0x1d0   : > { %1855 = vrot.lane.b32.xlu1 %v1776_v57, %s7191_s19  ;;  %1559 = vst.msk [vmem:[#allocation3 + $0xc0] sm:$0xff] %vm1534_vm7, %v1487_v58  ;;  %v1967_v58 = vld [vmem:[#allocation2 + $0xca] sm:$0xff] }
 0x1d1   : > { %1861 = vrot.lane.b32.xlu0 %v1779_v60, %s7191_s19 }
 0x1d2   : > { %v1485_v61 = vpop.permute.xlu1 %1484 }
 0x1d3   : > { %1558 = vst.msk [vmem:[#allocation3 + $0xb8] sm:$0xff] %vm1534_vm7, %v1485_v61  ;;  %v1491_v63 = vpop.permute.xlu0 %1490  ;;  %v1970_v61 = vld [vmem:[#allocation2 + $0xf2] sm:$0xff] }
 0x1d4   : > { %1859 = vrot.lane.b32.xlu1 %v1778_v62, %s7191_s19  ;;  %1561 = vst.msk [vmem:[#allocation3 + $0xd0] sm:$0xff] %vm1534_vm7, %v1491_v63  ;;  %v1969_v63 = vld [vmem:[#allocation2 + $0xe2] sm:$0xff] }
 0x1d5   : > { %1865 = vrot.lane.b32.xlu0 %v1781_v0, %s7191_s19 }
 0x1d6   : > { %v1489_v1 = vpop.permute.xlu1 %1488 }
 0x1d7   : > { %1560 = vst.msk [vmem:[#allocation3 + $0xc8] sm:$0xff] %vm1534_vm7, %v1489_v1  ;;  %v1495_v4 = vpop.permute.xlu0 %1494  ;;  %v1972_v1 = vld [vmem:[#allocation2 + $0x10a] sm:$0xff] }
 0x1d8   : > { %1863 = vrot.lane.b32.xlu1 %v1780_v3, %s7191_s19  ;;  %1563 = vst.msk [vmem:[#allocation3 + $0xe0] sm:$0xff] %vm1534_vm7, %v1495_v4  ;;  %v1971_v4 = vld [vmem:[#allocation2 + $0xfa] sm:$0xff] }
 0x1d9   : > { %1869 = vrot.lane.b32.xlu0 %v1783_v5, %s7191_s19 }
 0x1da   : > { %v1493_v6 = vpop.permute.xlu1 %1492 }
 0x1db   : > { %1562 = vst.msk [vmem:[#allocation3 + $0xd8] sm:$0xff] %vm1534_vm7, %v1493_v6  ;;  %v1499_v8 = vpop.permute.xlu0 %1498  ;;  %v1974_v6 = vld [vmem:[#allocation2 + $0x122] sm:$0xff] }
 0x1dc   : > { %1867 = vrot.lane.b32.xlu1 %v1782_v7, %s7191_s19  ;;  %1565 = vst.msk [vmem:[#allocation3 + $0xf0] sm:$0xff] %vm1534_vm7, %v1499_v8  ;;  %v1973_v8 = vld [vmem:[#allocation2 + $0x112] sm:$0xff] }
 0x1dd   : > { %1873 = vrot.lane.b32.xlu0 %v1785_v9, %s7191_s19 }
 0x1de   : > { %v1497_v10 = vpop.permute.xlu1 %1496 }
 0x1df   : > { %1564 = vst.msk [vmem:[#allocation3 + $0xe8] sm:$0xff] %vm1534_vm7, %v1497_v10  ;;  %v1633_v12 = vpop.permute.xlu0 %1632  ;;  %v1976_v10 = vld [vmem:[#allocation2 + $0x13a] sm:$0xff] }
 0x1e0   : > { %1871 = vrot.lane.b32.xlu1 %v1784_v11, %s7191_s19  ;;  %1729 = vst.msk [vmem:[#allocation3] sm:$0xff] %vm1728_vm8, %v1633_v12  ;;  %v1975_v12 = vld [vmem:[#allocation2 + $0x12a] sm:$0xff] }
 0x1e1   : > { %1877 = vrot.lane.b32.xlu0 %v1787_v14, %s7191_s19 }
 0x1e2   : > { %v1501_v15 = vpop.permute.xlu1 %1500 }
 0x1e3   : > { %1566 = vst.msk [vmem:[#allocation3 + $0xf8] sm:$0xff] %vm1534_vm7, %v1501_v15  ;;  %v1637_v26 = vpop.permute.xlu0 %1636  ;;  %v1978_v15 = vld [vmem:[#allocation2 + $0x152] sm:$0xff]  ;;  %vm6784_vm7 = vcmask 0  }
 0x1e4   : > { %1875 = vrot.lane.b32.xlu1 %v1786_v18, %s7191_s19  ;;  %1731 = vst.msk [vmem:[#allocation3 + $0x10] sm:$0xff] %vm1728_vm8, %v1637_v26  ;;  %v1980_v26 = vld [vmem:[#allocation2 + $0x16a] sm:$0xff] }
 0x1e5   : > { %1881 = vrot.lane.b32.xlu0 %v7972_v31, %s7191_s19 }
 0x1e6   : > { %v1635_v45 = vpop.permute.xlu1 %1634 }
 0x1e7   : > { %1730 = vst.msk [vmem:[#allocation3 + $0x8] sm:$0xff] %vm1728_vm8, %v1635_v45  ;;  %v1641_v50 = vpop.permute.xlu0 %1640  ;;  %v1979_v45 = vld [vmem:[#allocation2 + $0x15a] sm:$0xff] }
 0x1e8   : > { %1879 = vrot.lane.b32.xlu1 %v1788_v23, %s7191_s19  ;;  %1733 = vst.msk [vmem:[#allocation3 + $0x20] sm:$0xff] %vm1728_vm8, %v1641_v50  ;;  %v1984_v50 = vld [vmem:[#allocation2 + $0x19a] sm:$0xff] }
 0x1e9   : > { %1885 = vrot.lane.b32.xlu0 %v1791_v27, %s7191_s19  ;;  %v1981_v27 = vld [vmem:[#allocation2 + $0x172] sm:$0xff] }
 0x1ea   : > { %v1639_v31 = vpop.permute.xlu1 %1638 }
 0x1eb   : > { %1732 = vst.msk [vmem:[#allocation3 + $0x18] sm:$0xff] %vm1728_vm8, %v1639_v31  ;;  %v1645_v56 = vpop.permute.xlu0 %1644 }
 0x1ec   : > { %1883 = vrot.lane.b32.xlu1 %v7982_v30, %s7191_s19  ;;  %1735 = vst.msk [vmem:[#allocation3 + $0x30] sm:$0xff] %vm1728_vm8, %v1645_v56 }
 0x1ed   : > { %2018 = vrot.lane.b32.xlu0 %v1954_v53, %s7192_s29 }
 0x1ee   : > { %v1643_v2 = vpop.permute.xlu1 %1642 }
 0x1ef   : > { %1734 = vst.msk [vmem:[#allocation3 + $0x28] sm:$0xff] %vm1728_vm8, %v1643_v2  ;;  %v1649_v16 = vpop.permute.xlu0 %1648 }
 0x1f0   : > { %1887 = vrot.lane.b32.xlu1 %v1792_v59, %s7191_s19  ;;  %1737 = vst.msk [vmem:[#allocation3 + $0x40] sm:$0xff] %vm1728_vm8, %v1649_v16  ;;  %s7193_s19 = smov 40  }
 0x1f1   : > { %2022 = vrot.lane.b32.xlu0 %v1956_v13, %s7192_s29 }
 0x1f2   : > { %v1647_v30 = vpop.permute.xlu1 %1646 }
 0x1f3   : > { %1736 = vst.msk [vmem:[#allocation3 + $0x38] sm:$0xff] %vm1728_vm8, %v1647_v30  ;;  %v1653_v21 = vpop.permute.xlu0 %1652 }
 0x1f4   : > { %2020 = vrot.lane.b32.xlu1 %v1955_v17, %s7192_s29  ;;  %1739 = vst.msk [vmem:[#allocation3 + $0x50] sm:$0xff] %vm1728_vm8, %v1653_v21 }
 0x1f5   : > { %2026 = vrot.lane.b32.xlu0 %v1958_v20, %s7192_s29 }
 0x1f6   : > { %v1651_v51 = vpop.permute.xlu1 %1650 }
 0x1f7   : > { %1738 = vst.msk [vmem:[#allocation3 + $0x48] sm:$0xff] %vm1728_vm8, %v1651_v51  ;;  %v1657_v52 = vpop.permute.xlu0 %1656 }
 0x1f8   : > { %2024 = vrot.lane.b32.xlu1 %v1957_v24, %s7192_s29  ;;  %1741 = vst.msk [vmem:[#allocation3 + $0x60] sm:$0xff] %vm1728_vm8, %v1657_v52 }
 0x1f9   : > { %2030 = vrot.lane.b32.xlu0 %v1960_v25, %s7192_s29 }
 0x1fa   : > { %v1655_v32 = vpop.permute.xlu1 %1654 }
 0x1fb   : > { %1740 = vst.msk [vmem:[#allocation3 + $0x58] sm:$0xff] %vm1728_vm8, %v1655_v32  ;;  %v1661_v49 = vpop.permute.xlu0 %1660 }
 0x1fc   : > { %2028 = vrot.lane.b32.xlu1 %v1959_v48, %s7192_s29  ;;  %1743 = vst.msk [vmem:[#allocation3 + $0x70] sm:$0xff] %vm1728_vm8, %v1661_v49 }
 0x1fd   : > { %2034 = vrot.lane.b32.xlu0 %v1962_v28, %s7192_s29 }
 0x1fe   : > { %v1659_v33 = vpop.permute.xlu1 %1658 }
 0x1ff   : > { %1742 = vst.msk [vmem:[#allocation3 + $0x68] sm:$0xff] %vm1728_vm8, %v1659_v33  ;;  %v1665_v35 = vpop.permute.xlu0 %1664 }
 0x200   : > { %2032 = vrot.lane.b32.xlu1 %v1961_v38, %s7192_s29  ;;  %1745 = vst.msk [vmem:[#allocation3 + $0x80] sm:$0xff] %vm1728_vm8, %v1665_v35 }
 0x201   : > { %2038 = vrot.lane.b32.xlu0 %v1964_v37, %s7192_s29 }
 0x202   : > { %v1663_v42 = vpop.permute.xlu1 %1662 }
 0x203   : > { %1744 = vst.msk [vmem:[#allocation3 + $0x78] sm:$0xff] %vm1728_vm8, %v1663_v42  ;;  %v1669_v54 = vpop.permute.xlu0 %1668 }
 0x204   : > { %2036 = vrot.lane.b32.xlu1 %v1963_v41, %s7192_s29  ;;  %1747 = vst.msk [vmem:[#allocation3 + $0x90] sm:$0xff] %vm1728_vm8, %v1669_v54 }
 0x205   : > { %2042 = vrot.lane.b32.xlu0 %v1966_v40, %s7192_s29 }
 0x206   : > { %v1667_v57 = vpop.permute.xlu1 %1666 }
 0x207   : > { %1746 = vst.msk [vmem:[#allocation3 + $0x88] sm:$0xff] %vm1728_vm8, %v1667_v57  ;;  %v1673_v60 = vpop.permute.xlu0 %1672 }
 0x208   : > { %2040 = vrot.lane.b32.xlu1 %v1965_v43, %s7192_s29  ;;  %1749 = vst.msk [vmem:[#allocation3 + $0xa0] sm:$0xff] %vm1728_vm8, %v1673_v60 }
 0x209   : > { %2046 = vrot.lane.b32.xlu0 %v1968_v55, %s7192_s29 }
 0x20a   : > { %v1671_v62 = vpop.permute.xlu1 %1670 }
 0x20b   : > { %1748 = vst.msk [vmem:[#allocation3 + $0x98] sm:$0xff] %vm1728_vm8, %v1671_v62  ;;  %v1677_v0 = vpop.permute.xlu0 %1676 }
 0x20c   : > { %2044 = vrot.lane.b32.xlu1 %v1967_v58, %s7192_s29  ;;  %1751 = vst.msk [vmem:[#allocation3 + $0xb0] sm:$0xff] %vm1728_vm8, %v1677_v0 }
 0x20d   : > { %2050 = vrot.lane.b32.xlu0 %v1970_v61, %s7192_s29 }
 0x20e   : > { %v1675_v3 = vpop.permute.xlu1 %1674 }
 0x20f   : > { %1750 = vst.msk [vmem:[#allocation3 + $0xa8] sm:$0xff] %vm1728_vm8, %v1675_v3  ;;  %v1681_v5 = vpop.permute.xlu0 %1680 }
 0x210   : > { %2048 = vrot.lane.b32.xlu1 %v1969_v63, %s7192_s29  ;;  %1753 = vst.msk [vmem:[#allocation3 + $0xc0] sm:$0xff] %vm1728_vm8, %v1681_v5 }
 0x211   : > { %2054 = vrot.lane.b32.xlu0 %v1972_v1, %s7192_s29 }
 0x212   : > { %v1679_v7 = vpop.permute.xlu1 %1678 }
 0x213   : > { %1752 = vst.msk [vmem:[#allocation3 + $0xb8] sm:$0xff] %vm1728_vm8, %v1679_v7  ;;  %v1685_v9 = vpop.permute.xlu0 %1684 }
 0x214   : > { %2052 = vrot.lane.b32.xlu1 %v1971_v4, %s7192_s29  ;;  %1755 = vst.msk [vmem:[#allocation3 + $0xd0] sm:$0xff] %vm1728_vm8, %v1685_v9 }
 0x215   : > { %2058 = vrot.lane.b32.xlu0 %v1974_v6, %s7192_s29 }
 0x216   : > { %v1683_v11 = vpop.permute.xlu1 %1682 }
 0x217   : > { %1754 = vst.msk [vmem:[#allocation3 + $0xc8] sm:$0xff] %vm1728_vm8, %v1683_v11  ;;  %v1689_v14 = vpop.permute.xlu0 %1688 }
 0x218   : > { %2056 = vrot.lane.b32.xlu1 %v1973_v8, %s7192_s29  ;;  %1757 = vst.msk [vmem:[#allocation3 + $0xe0] sm:$0xff] %vm1728_vm8, %v1689_v14 }
 0x219   : > { %2062 = vrot.lane.b32.xlu0 %v1976_v10, %s7192_s29 }
 0x21a   : > { %v1687_v18 = vpop.permute.xlu1 %1686 }
 0x21b   : > { %1756 = vst.msk [vmem:[#allocation3 + $0xd8] sm:$0xff] %vm1728_vm8, %v1687_v18  ;;  %v1693_v22 = vpop.permute.xlu0 %1692 }
 0x21c   : > { %2060 = vrot.lane.b32.xlu1 %v1975_v12, %s7192_s29  ;;  %1759 = vst.msk [vmem:[#allocation3 + $0xf0] sm:$0xff] %vm1728_vm8, %v1693_v22 }
 0x21d   : > { %2066 = vrot.lane.b32.xlu0 %v1978_v15, %s7192_s29 }
 0x21e   : > { %v1691_v44 = vpop.permute.xlu1 %1690 }
 0x21f   : > { %1758 = vst.msk [vmem:[#allocation3 + $0xe8] sm:$0xff] %vm1728_vm8, %v1691_v44  ;;  %v1826_v23 = vpop.permute.xlu0 %1825 }
 0x220   : > { %2064 = vrot.lane.b32.xlu1 %v1977_v19, %s7192_s29  ;;  %1922 = vst.msk [vmem:[#allocation3] sm:$0xff] %vm1921_vm10, %v1826_v23 }
 0x221   : > { %2070 = vrot.lane.b32.xlu0 %v1980_v26, %s7192_s29 }
 0x222   : > { %v1695_v39 = vpop.permute.xlu1 %1694 }
 0x223   : > { %1760 = vst.msk [vmem:[#allocation3 + $0xf8] sm:$0xff] %vm1728_vm8, %v1695_v39  ;;  %v1830_v46 = vpop.permute.xlu0 %1829 }
 0x224   : > { %2068 = vrot.lane.b32.xlu1 %v1979_v45, %s7192_s29  ;;  %1924 = vst.msk [vmem:[#allocation3 + $0x10] sm:$0xff] %vm1921_vm10, %v1830_v46 }
 0x225   : > { %2074 = vrot.lane.b32.xlu0 %v8072_v29, %s7192_s29  ;;  %v1985_v29 = vld [vmem:[#allocation2 + $0x1a2] sm:$0xff] }
 0x226   : > { %v1828_v47 = vpop.permute.xlu1 %1827 }
 0x227   : > { %1923 = vst.msk [vmem:[#allocation3 + $0x8] sm:$0xff] %vm1921_vm10, %v1828_v47  ;;  %v1834_v31 = vpop.permute.xlu0 %1833 }
 0x228   : > { %2072 = vrot.lane.b32.xlu1 %v1981_v27, %s7192_s29  ;;  %1926 = vst.msk [vmem:[#allocation3 + $0x20] sm:$0xff] %vm1921_vm10, %v1834_v31 }
 0x229   : > { %2078 = vrot.lane.b32.xlu0 %v1984_v50, %s7192_s29 }
 0x22a   : > { %v1832_v53 = vpop.permute.xlu1 %1831 }
 0x22b   : > { %1925 = vst.msk [vmem:[#allocation3 + $0x18] sm:$0xff] %vm1921_vm10, %v1832_v53  ;;  %v1838_v36 = vpop.permute.xlu0 %1837 }
 0x22c   : > { %2076 = vrot.lane.b32.xlu1 %v8082_v34, %s7192_s29  ;;  %1928 = vst.msk [vmem:[#allocation3 + $0x30] sm:$0xff] %vm1921_vm10, %v1838_v36 }
 0x22e   : > { %v1836_v56 = vpop.permute.xlu1 %1835 }
 0x22f   : > { %1927 = vst.msk [vmem:[#allocation3 + $0x28] sm:$0xff] %vm1921_vm10, %v1836_v56  ;;  %v1842_v59 = vpop.permute.xlu0 %1841 }
 0x230   : > { %2080 = vrot.lane.b32.xlu1 %v1985_v29, %s7192_s29  ;;  %1930 = vst.msk [vmem:[#allocation3 + $0x40] sm:$0xff] %vm1921_vm10, %v1842_v59 }
 0x232   : > { %v1840_v2 = vpop.permute.xlu1 %1839 }
 0x233   : > { %1929 = vst.msk [vmem:[#allocation3 + $0x38] sm:$0xff] %vm1921_vm10, %v1840_v2  ;;  %v1846_v13 = vpop.permute.xlu0 %1845 }
 0x234   : > { %1932 = vst.msk [vmem:[#allocation3 + $0x50] sm:$0xff] %vm1921_vm10, %v1846_v13 }
 0x236   : > { %v1844_v16 = vpop.permute.xlu1 %1843 }
 0x237   : > { %1931 = vst.msk [vmem:[#allocation3 + $0x48] sm:$0xff] %vm1921_vm10, %v1844_v16  ;;  %v1850_v34 = vpop.permute.xlu0 %1849 }
 0x238   : > { %1934 = vst.msk [vmem:[#allocation3 + $0x60] sm:$0xff] %vm1921_vm10, %v1850_v34 }
 0x23a   : > { %v1848_v17 = vpop.permute.xlu1 %1847 }
 0x23b   : > { %1933 = vst.msk [vmem:[#allocation3 + $0x58] sm:$0xff] %vm1921_vm10, %v1848_v17  ;;  %v1854_v30 = vpop.permute.xlu0 %1853 }
 0x23c   : > { %1936 = vst.msk [vmem:[#allocation3 + $0x70] sm:$0xff] %vm1921_vm10, %v1854_v30 }
 0x23e   : > { %v1852_v20 = vpop.permute.xlu1 %1851 }
 0x23f   : > { %1935 = vst.msk [vmem:[#allocation3 + $0x68] sm:$0xff] %vm1921_vm10, %v1852_v20  ;;  %v1858_v21 = vpop.permute.xlu0 %1857 }
 0x240   : > { %1938 = vst.msk [vmem:[#allocation3 + $0x80] sm:$0xff] %vm1921_vm10, %v1858_v21 }
 0x242   : > { %v1856_v24 = vpop.permute.xlu1 %1855 }
 0x243   : > { %1937 = vst.msk [vmem:[#allocation3 + $0x78] sm:$0xff] %vm1921_vm10, %v1856_v24  ;;  %v1862_v51 = vpop.permute.xlu0 %1861 }
 0x244   : > { %1940 = vst.msk [vmem:[#allocation3 + $0x90] sm:$0xff] %vm1921_vm10, %v1862_v51 }
 0x246   : > { %v1860_v25 = vpop.permute.xlu1 %1859 }
 0x247   : > { %1939 = vst.msk [vmem:[#allocation3 + $0x88] sm:$0xff] %vm1921_vm10, %v1860_v25  ;;  %v1866_v52 = vpop.permute.xlu0 %1865 }
 0x248   : > { %1942 = vst.msk [vmem:[#allocation3 + $0xa0] sm:$0xff] %vm1921_vm10, %v1866_v52 }
 0x24a   : > { %v1864_v48 = vpop.permute.xlu1 %1863 }
 0x24b   : > { %1941 = vst.msk [vmem:[#allocation3 + $0x98] sm:$0xff] %vm1921_vm10, %v1864_v48  ;;  %v1870_v32 = vpop.permute.xlu0 %1869 }
 0x24c   : > { %1944 = vst.msk [vmem:[#allocation3 + $0xb0] sm:$0xff] %vm1921_vm10, %v1870_v32 }
 0x24e   : > { %v1868_v28 = vpop.permute.xlu1 %1867 }
 0x24f   : > { %1943 = vst.msk [vmem:[#allocation3 + $0xa8] sm:$0xff] %vm1921_vm10, %v1868_v28  ;;  %v1874_v49 = vpop.permute.xlu0 %1873 }
 0x250   : > { %1946 = vst.msk [vmem:[#allocation3 + $0xc0] sm:$0xff] %vm1921_vm10, %v1874_v49 }
 0x252   : > { %v1872_v38 = vpop.permute.xlu1 %1871 }
 0x253   : > { %1945 = vst.msk [vmem:[#allocation3 + $0xb8] sm:$0xff] %vm1921_vm10, %v1872_v38  ;;  %v1878_v33 = vpop.permute.xlu0 %1877 }
 0x254   : > { %1948 = vst.msk [vmem:[#allocation3 + $0xd0] sm:$0xff] %vm1921_vm10, %v1878_v33 }
 0x256   : > { %v1876_v37 = vpop.permute.xlu1 %1875 }
 0x257   : > { %1947 = vst.msk [vmem:[#allocation3 + $0xc8] sm:$0xff] %vm1921_vm10, %v1876_v37  ;;  %v1882_v35 = vpop.permute.xlu0 %1881 }
 0x258   : > { %1950 = vst.msk [vmem:[#allocation3 + $0xe0] sm:$0xff] %vm1921_vm10, %v1882_v35 }
 0x25a   : > { %v1880_v41 = vpop.permute.xlu1 %1879 }
 0x25b   : > { %1949 = vst.msk [vmem:[#allocation3 + $0xd8] sm:$0xff] %vm1921_vm10, %v1880_v41  ;;  %v1886_v42 = vpop.permute.xlu0 %1885 }
 0x25c   : > { %1952 = vst.msk [vmem:[#allocation3 + $0xf0] sm:$0xff] %vm1921_vm10, %v1886_v42 }
 0x25e   : > { %v1884_v40 = vpop.permute.xlu1 %1883 }
 0x25f   : > { %1951 = vst.msk [vmem:[#allocation3 + $0xe8] sm:$0xff] %vm1921_vm10, %v1884_v40  ;;  %v2019_v54 = vpop.permute.xlu0 %2018 }
 0x260   : > { %2115 = vst.msk [vmem:[#allocation3] sm:$0xff] %vm2114_vm11, %v2019_v54 }
 0x262   : > { %v1888_v43 = vpop.permute.xlu1 %1887 }
 0x263   : > { %1953 = vst.msk [vmem:[#allocation3 + $0xf8] sm:$0xff] %vm1921_vm10, %v1888_v43  ;;  %v2023_v57 = vpop.permute.xlu0 %2022  ;;  %v2717_v43 = vld [vmem:[#allocation2 + $0x9] sm:$0xff] }
 0x264   : > { %2117 = vst.msk [vmem:[#allocation3 + $0x10] sm:$0xff] %vm2114_vm11, %v2023_v57  ;;  %2782 = vrot.lane.b32.xlu1 %v2717_v43, %s7186_s14  ;;  %v2716_v57 = vld [vmem:[#allocation2 + $0x1] sm:$0xff] }
 0x265   : > { %2780 = vrot.lane.b32.xlu0 %v2716_v57, %s7186_s14 }
 0x266   : > { %v2021_v55 = vpop.permute.xlu1 %2020 }
 0x267   : > { %2116 = vst.msk [vmem:[#allocation3 + $0x8] sm:$0xff] %vm2114_vm11, %v2021_v55  ;;  %v2027_v60 = vpop.permute.xlu0 %2026  ;;  %v2147_v58 = vld [vmem:[#allocation3] sm:$0xff]  ;;  %v2653_v55 = vld [vmem:[#allocation2 + $0x8] sm:$0xff] }
 0x268   : > { %2119 = vst.msk [vmem:[#allocation3 + $0x20] sm:$0xff] %vm2114_vm11, %v2027_v60  ;;  %7003 = vmatprep.mubr.msk.f32.mxu0 %vm2184_vm12, %v2147_v58  ;;  %v2652_v60 = vld [vmem:[#allocation2] sm:$0xff] }
 0x269   : > { %2684 = vst.msk [vmem:[#allocation3] sm:$0xff] %vm416_vm0, %v2652_v60 }
 0x26a   : > { %v2025_v62 = vpop.permute.xlu1 %2024 }
 0x26b   : > { %2118 = vst.msk [vmem:[#allocation3 + $0x18] sm:$0xff] %vm2114_vm11, %v2025_v62  ;;  %v2031_v61 = vpop.permute.xlu0 %2030  ;;  %v2149_v0 = vld [vmem:[#allocation3 + $0x10] sm:$0xff] }
 0x26c   : > { %2121 = vst.msk [vmem:[#allocation3 + $0x30] sm:$0xff] %vm2114_vm11, %v2031_v61  ;;  %v8425_v62 = vld [vmem:[%s10849_s2] ss:$0 sm:$0xff] }
 0x26e   : > { %v2029_v63 = vpop.permute.xlu1 %2028  ;;  %v2148_v3 = vld [vmem:[#allocation3 + $0x8] sm:$0xff] }
 0x26f   : > { %2120 = vst.msk [vmem:[#allocation3 + $0x28] sm:$0xff] %vm2114_vm11, %v2029_v63  ;;  %7004 = vmatmul.mubr.msk.f32.vlgmr.msra.gmra.mrb[0].mxu0 %vm2184_vm12, %v2148_v3  ;;  %v2035_v1 = vpop.permute.xlu0 %2034  ;;  %v2151_v5 = vld [vmem:[#allocation3 + $0x20] sm:$0xff]  ;;  %v8432_v63 = vld [vmem:[%s10850_s3] ss:$0 sm:$0xff] }
 0x270   : > { %7006 = vmatprep.mubr.msk.f32.mxu0 %vm2184_vm12, %v2149_v0  ;;  %2123 = vst.msk [vmem:[#allocation3 + $0x40] sm:$0xff] %vm2114_vm11, %v2035_v1 }
 0x271   : > { %2685 = vst.msk [vmem:[#allocation3 + $0x8] sm:$0xff] %vm416_vm0, %v2653_v55 }
 0x272   : > { %v2033_v4 = vpop.permute.xlu1 %2032  ;;  %v2150_v7 = vld [vmem:[#allocation3 + $0x18] sm:$0xff] }
 0x273   : > { %2122 = vst.msk [vmem:[#allocation3 + $0x38] sm:$0xff] %vm2114_vm11, %v2033_v4  ;;  %7007 = vmatmul.mubr.msk.f32.gmra.mrb[2].mxu0 %vm2184_vm12, %v2150_v7  ;;  %v2039_v6 = vpop.permute.xlu0 %2038  ;;  %v2153_v9 = vld [vmem:[#allocation3 + $0x30] sm:$0xff] }
 0x274   : > { %7009 = vmatprep.mubr.msk.f32.mxu0 %vm2184_vm12, %v2151_v5  ;;  %2125 = vst.msk [vmem:[#allocation3 + $0x50] sm:$0xff] %vm2114_vm11, %v2039_v6 }
 0x276   : > { %v2037_v8 = vpop.permute.xlu1 %2036  ;;  %v2152_v11 = vld [vmem:[#allocation3 + $0x28] sm:$0xff] }
 0x277   : > { %2124 = vst.msk [vmem:[#allocation3 + $0x48] sm:$0xff] %vm2114_vm11, %v2037_v8  ;;  %7010 = vmatmul.mubr.msk.f32.gmra.mrb[4].mxu0 %vm2184_vm12, %v2152_v11  ;;  %v2043_v10 = vpop.permute.xlu0 %2042  ;;  %v2155_v14 = vld [vmem:[#allocation3 + $0x40] sm:$0xff] }
 0x278   : > { %7012 = vmatprep.mubr.msk.f32.mxu0 %vm2184_vm12, %v2153_v9  ;;  %2127 = vst.msk [vmem:[#allocation3 + $0x60] sm:$0xff] %vm2114_vm11, %v2043_v10 }
 0x27a   : > { %v2041_v12 = vpop.permute.xlu1 %2040  ;;  %v2154_v18 = vld [vmem:[#allocation3 + $0x38] sm:$0xff] }
 0x27b   : > { %2126 = vst.msk [vmem:[#allocation3 + $0x58] sm:$0xff] %vm2114_vm11, %v2041_v12  ;;  %7013 = vmatmul.mubr.msk.f32.gmra.mrb[6].mxu0 %vm2184_vm12, %v2154_v18  ;;  %v2047_v15 = vpop.permute.xlu0 %2046  ;;  %v2157_v22 = vld [vmem:[#allocation3 + $0x50] sm:$0xff] }
 0x27c   : > { %7015 = vmatprep.mubr.msk.f32.mxu0 %vm2184_vm12, %v2155_v14  ;;  %2129 = vst.msk [vmem:[#allocation3 + $0x70] sm:$0xff] %vm2114_vm11, %v2047_v15 }
 0x27e   : > { %v2045_v19 = vpop.permute.xlu1 %2044  ;;  %v2156_v44 = vld [vmem:[#allocation3 + $0x48] sm:$0xff] }
 0x27f   : > { %2128 = vst.msk [vmem:[#allocation3 + $0x68] sm:$0xff] %vm2114_vm11, %v2045_v19  ;;  %7016 = vmatmul.mubr.msk.f32.gmra.mrb[8].mxu0 %vm2184_vm12, %v2156_v44  ;;  %v2051_v26 = vpop.permute.xlu0 %2050  ;;  %v2159_v23 = vld [vmem:[#allocation3 + $0x60] sm:$0xff] }
 0x280   : > { %7018 = vmatprep.mubr.msk.f32.mxu0 %vm2184_vm12, %v2157_v22  ;;  %2131 = vst.msk [vmem:[#allocation3 + $0x80] sm:$0xff] %vm2114_vm11, %v2051_v26 }
 0x282   : > { %v2049_v45 = vpop.permute.xlu1 %2048  ;;  %v2158_v39 = vld [vmem:[#allocation3 + $0x58] sm:$0xff] }
 0x283   : > { %2130 = vst.msk [vmem:[#allocation3 + $0x78] sm:$0xff] %vm2114_vm11, %v2049_v45  ;;  %7019 = vmatmul.mubr.msk.f32.gmra.mrb[10].mxu0 %vm2184_vm12, %v2158_v39  ;;  %v2055_v46 = vpop.permute.xlu0 %2054  ;;  %v2161_v27 = vld [vmem:[#allocation3 + $0x70] sm:$0xff] }
 0x284   : > { %7021 = vmatprep.mubr.msk.f32.mxu0 %vm2184_vm12, %v2159_v23  ;;  %2133 = vst.msk [vmem:[#allocation3 + $0x90] sm:$0xff] %vm2114_vm11, %v2055_v46 }
 0x286   : > { %v2053_v47 = vpop.permute.xlu1 %2052  ;;  %v2160_v50 = vld [vmem:[#allocation3 + $0x68] sm:$0xff] }
 0x287   : > { %2132 = vst.msk [vmem:[#allocation3 + $0x88] sm:$0xff] %vm2114_vm11, %v2053_v47  ;;  %7022 = vmatmul.mubr.msk.f32.gmra.mrb[12].mxu0 %vm2184_vm12, %v2160_v50  ;;  %v2059_v31 = vpop.permute.xlu0 %2058  ;;  %v2163_v53 = vld [vmem:[#allocation3 + $0x80] sm:$0xff] }
 0x288   : > { %7024 = vmatprep.mubr.msk.f32.mxu0 %vm2184_vm12, %v2161_v27  ;;  %2135 = vst.msk [vmem:[#allocation3 + $0xa0] sm:$0xff] %vm2114_vm11, %v2059_v31 }
 0x28a   : > { %v2057_v36 = vpop.permute.xlu1 %2056  ;;  %v2162_v29 = vld [vmem:[#allocation3 + $0x78] sm:$0xff] }
 0x28b   : > { %2134 = vst.msk [vmem:[#allocation3 + $0x98] sm:$0xff] %vm2114_vm11, %v2057_v36  ;;  %7025 = vmatmul.mubr.msk.f32.gmra.mrb[14].mxu0 %vm2184_vm12, %v2162_v29  ;;  %v2063_v56 = vpop.permute.xlu0 %2062  ;;  %v2165_v59 = vld [vmem:[#allocation3 + $0x90] sm:$0xff] }
 0x28c   : > { %7027 = vmatprep.mubr.msk.f32.mxu0 %vm2184_vm12, %v2163_v53  ;;  %2137 = vst.msk [vmem:[#allocation3 + $0xb0] sm:$0xff] %vm2114_vm11, %v2063_v56 }
 0x28e   : > { %v2061_v2 = vpop.permute.xlu1 %2060  ;;  %v2164_v13 = vld [vmem:[#allocation3 + $0x88] sm:$0xff] }
 0x28f   : > { %2136 = vst.msk [vmem:[#allocation3 + $0xa8] sm:$0xff] %vm2114_vm11, %v2061_v2  ;;  %7028 = vmatmul.mubr.msk.f32.gmra.mrb[16].mxu0 %vm2184_vm12, %v2164_v13  ;;  %v2067_v16 = vpop.permute.xlu0 %2066  ;;  %v2167_v34 = vld [vmem:[#allocation3 + $0xa0] sm:$0xff] }
 0x290   : > { %7030 = vmatprep.mubr.msk.f32.mxu0 %vm2184_vm12, %v2165_v59  ;;  %2139 = vst.msk [vmem:[#allocation3 + $0xc0] sm:$0xff] %vm2114_vm11, %v2067_v16 }
 0x292   : > { %v2065_v17 = vpop.permute.xlu1 %2064  ;;  %v2166_v30 = vld [vmem:[#allocation3 + $0x98] sm:$0xff] }
 0x293   : > { %2138 = vst.msk [vmem:[#allocation3 + $0xb8] sm:$0xff] %vm2114_vm11, %v2065_v17  ;;  %7031 = vmatmul.mubr.msk.f32.gmra.mrb[18].mxu0 %vm2184_vm12, %v2166_v30  ;;  %v2071_v20 = vpop.permute.xlu0 %2070  ;;  %v2169_v21 = vld [vmem:[#allocation3 + $0xb0] sm:$0xff] }
 0x294   : > { %7033 = vmatprep.mubr.msk.f32.mxu0 %vm2184_vm12, %v2167_v34  ;;  %2141 = vst.msk [vmem:[#allocation3 + $0xd0] sm:$0xff] %vm2114_vm11, %v2071_v20 }
 0x296   : > { %v2069_v24 = vpop.permute.xlu1 %2068  ;;  %v2168_v51 = vld [vmem:[#allocation3 + $0xa8] sm:$0xff] }
 0x297   : > { %2140 = vst.msk [vmem:[#allocation3 + $0xc8] sm:$0xff] %vm2114_vm11, %v2069_v24  ;;  %7034 = vmatmul.mubr.msk.f32.gmra.mrb[20].mxu0 %vm2184_vm12, %v2168_v51  ;;  %v2075_v25 = vpop.permute.xlu0 %2074  ;;  %v2171_v52 = vld [vmem:[#allocation3 + $0xc0] sm:$0xff] }
 0x298   : > { %7036 = vmatprep.mubr.msk.f32.mxu0 %vm2184_vm12, %v2169_v21  ;;  %2143 = vst.msk [vmem:[#allocation3 + $0xe0] sm:$0xff] %vm2114_vm11, %v2075_v25 }
 0x29a   : > { %v2073_v48 = vpop.permute.xlu1 %2072  ;;  %v2170_v32 = vld [vmem:[#allocation3 + $0xb8] sm:$0xff] }
 0x29b   : > { %2142 = vst.msk [vmem:[#allocation3 + $0xd8] sm:$0xff] %vm2114_vm11, %v2073_v48  ;;  %7037 = vmatmul.mubr.msk.f32.gmra.mrb[22].mxu0 %vm2184_vm12, %v2170_v32  ;;  %v2079_v28 = vpop.permute.xlu0 %2078  ;;  %v2173_v49 = vld [vmem:[#allocation3 + $0xd0] sm:$0xff] }
 0x29c   : > { %7039 = vmatprep.mubr.msk.f32.mxu0 %vm2184_vm12, %v2171_v52  ;;  %2145 = vst.msk [vmem:[#allocation3 + $0xf0] sm:$0xff] %vm2114_vm11, %v2079_v28 }
 0x29e   : > { %v2077_v38 = vpop.permute.xlu1 %2076  ;;  %v2172_v33 = vld [vmem:[#allocation3 + $0xc8] sm:$0xff] }
 0x29f   : > { %2144 = vst.msk [vmem:[#allocation3 + $0xe8] sm:$0xff] %vm2114_vm11, %v2077_v38  ;;  %7040 = vmatmul.mubr.msk.f32.gmra.mrb[24].mxu0 %vm2184_vm12, %v2172_v33  ;;  %v2175_v37 = vld [vmem:[#allocation3 + $0xe0] sm:$0xff] }
 0x2a0   : > { %7042 = vmatprep.mubr.msk.f32.mxu0 %vm2184_vm12, %v2173_v49 }
 0x2a2   : > { %v2174_v35 = vld [vmem:[#allocation3 + $0xd8] sm:$0xff]  ;;  %v2081_v41 = vpop.permute.xlu1 %2080 }
 0x2a3   : > { %7043 = vmatmul.mubr.msk.f32.gmra.mrb[26].mxu0 %vm2184_vm12, %v2174_v35  ;;  %2146 = vst.msk [vmem:[#allocation3 + $0xf8] sm:$0xff] %vm2114_vm11, %v2081_v41  ;;  %v2177_v42 = vld [vmem:[#allocation3 + $0xf0] sm:$0xff] }
 0x2a4   : > { %7045 = vmatprep.mubr.msk.f32.mxu0 %vm2184_vm12, %v2175_v37 }
 0x2a6   : > { %v2176_v40 = vld [vmem:[#allocation3 + $0xe8] sm:$0xff] }
 0x2a7   : > { %7046 = vmatmul.mubr.msk.f32.gmra.mrb[28].mxu0 %vm2184_vm12, %v2176_v40 }
 0x2a8   : > { %7048 = vmatprep.mubr.msk.f32.mxu0 %vm2184_vm12, %v2177_v42 }
 0x2aa   : > { %v2178_v54 = vld [vmem:[#allocation3 + $0xf8] sm:$0xff] }
 0x2ab   : > { %7049 = vmatmul.mubr.msk.f32.gmra.mrb[30].mxu0 %vm2184_vm12, %v2178_v54 }
 0x2d6   : > { %v2783_v58 = vpop.permute.xlu1 %2782 }
 0x2d7   : > { %2878 = vst.msk [vmem:[#allocation3 + $0x8] sm:$0xff] %vm2876_vm13, %v2783_v58  ;;  %v2781_v61 = vpop.permute.xlu0 %2780 }
 0x2d8   : > { %2877 = vst.msk [vmem:[#allocation3] sm:$0xff] %vm2876_vm13, %v2781_v61 }
 0x342   : > { %v7005_v0 = vpop.f32.mrb[0].mxu0 }
 0x343   : > { %v2518_v3 = vmul.f32 %v7005_v0, %v8425_v62  ;;  %v2351_v1 = vpop.f32.mrb[1].mxu0 }
 0x344   : > { %v2517_v5 = vmul.f32 %v8425_v62, %v2351_v1 }
 0x345   : > { %v2557_v4 = vadd.f32 %v8432_v63, %v2518_v3 }
 0x346   : > { %v2556_v7 = vadd.f32 %v8432_v63, %v2517_v5  ;;  %v7008_v6 = vpop.f32.mrb[2].mxu0 }
 0x347   : > { %v2589_v9 = vmax.f32 %v2557_v4, 0.0  ;;  %v2520_v8 = vmul.f32 %v7008_v6, %v8425_v62  ;;  %v2361_v11 = vpop.f32.mrb[3].mxu0 }
 0x348   : > { %v2588_v10 = vmax.f32 %v2556_v7, 0.0  ;;  %v2519_v14 = vmul.f32 %v8425_v62, %v2361_v11 }
 0x349   : > { %2621 = vst.msk [vmem:[#allocation2 + $0x21] sm:$0xff] %vm416_vm0, %v2589_v9  ;;  %v2559_v12 = vadd.f32 %v8432_v63, %v2520_v8 }
 0x34a   : > { %2620 = vst.msk [vmem:[#allocation2 + $0x19] sm:$0xff] %vm416_vm0, %v2588_v10  ;;  %v2558_v18 = vadd.f32 %v8432_v63, %v2519_v14  ;;  %v7011_v15 = vpop.f32.mrb[4].mxu0 }
 0x34b   : > { %v2591_v22 = vmax.f32 %v2559_v12, 0.0  ;;  %v2522_v19 = vmul.f32 %v7011_v15, %v8425_v62  ;;  %v2371_v44 = vpop.f32.mrb[5].mxu0 }
 0x34c   : > { %v2590_v26 = vmax.f32 %v2558_v18, 0.0  ;;  %v2521_v23 = vmul.f32 %v8425_v62, %v2371_v44 }
 0x34d   : > { %2623 = vst.msk [vmem:[#allocation2 + $0x39] sm:$0xff] %vm416_vm0, %v2591_v22  ;;  %v2561_v45 = vadd.f32 %v8432_v63, %v2522_v19 }
 0x34e   : > { %2622 = vst.msk [vmem:[#allocation2 + $0x31] sm:$0xff] %vm416_vm0, %v2590_v26  ;;  %v2560_v39 = vadd.f32 %v8432_v63, %v2521_v23  ;;  %v7014_v46 = vpop.f32.mrb[6].mxu0 }
 0x34f   : > { %v2593_v27 = vmax.f32 %v2561_v45, 0.0  ;;  %v2524_v47 = vmul.f32 %v7014_v46, %v8425_v62  ;;  %v2381_v50 = vpop.f32.mrb[7].mxu0 }
 0x350   : > { %v2592_v31 = vmax.f32 %v2560_v39, 0.0  ;;  %v2523_v53 = vmul.f32 %v8425_v62, %v2381_v50  ;;  %v8452_v36 = vld [vmem:[#allocation2 + $0x21] sm:$0xff] }
 0x351   : > { %2625 = vst.msk [vmem:[#allocation2 + $0x51] sm:$0xff] %vm416_vm0, %v2593_v27  ;;  %v2563_v29 = vadd.f32 %v8432_v63, %v2524_v47  ;;  %2786 = vrot.lane.b32.xlu1 %v8452_v36, %s7186_s14  ;;  %v8458_v56 = vld [vmem:[#allocation2 + $0x19] sm:$0xff] }
 0x352   : > { %v8460_v59 = vld [vmem:[#allocation2 + $0x20] sm:$0xff]  ;;  %2624 = vst.msk [vmem:[#allocation2 + $0x49] sm:$0xff] %vm416_vm0, %v2592_v31  ;;  %v2562_v2 = vadd.f32 %v8432_v63, %v2523_v53  ;;  %2784 = vrot.lane.b32.xlu0 %v8458_v56, %s7186_s14  ;;  %v7017_v13 = vpop.f32.mrb[8].mxu0  ;;  %v8468_v16 = vld [vmem:[#allocation2 + $0x18] sm:$0xff] }
 0x353   : > { %2687 = vst.msk [vmem:[#allocation3 + $0x18] sm:$0xff] %vm416_vm0, %v8460_v59  ;;  %v2595_v34 = vmax.f32 %v2563_v29, 0.0  ;;  %v2526_v17 = vmul.f32 %v7017_v13, %v8425_v62  ;;  %v2391_v30 = vpop.f32.mrb[9].mxu0  ;;  %2686 = vst.msk [vmem:[#allocation3 + $0x10] sm:$0xff] %vm416_vm0, %v8468_v16 }
 0x354   : > { %v2594_v20 = vmax.f32 %v2562_v2, 0.0  ;;  %v2525_v21 = vmul.f32 %v8425_v62, %v2391_v30  ;;  %v8474_v24 = vld [vmem:[#allocation2 + $0x39] sm:$0xff] }
 0x355   : > { %2627 = vst.msk [vmem:[#allocation2 + $0x69] sm:$0xff] %vm416_vm0, %v2595_v34  ;;  %v2565_v51 = vadd.f32 %v8432_v63, %v2526_v17  ;;  %2790 = vrot.lane.b32.xlu1 %v8474_v24, %s7186_s14  ;;  %v8480_v25 = vld [vmem:[#allocation2 + $0x31] sm:$0xff] }
 0x356   : > { %v8482_v52 = vld [vmem:[#allocation2 + $0x38] sm:$0xff]  ;;  %2626 = vst.msk [vmem:[#allocation2 + $0x61] sm:$0xff] %vm416_vm0, %v2594_v20  ;;  %v2564_v48 = vadd.f32 %v8432_v63, %v2525_v21  ;;  %2788 = vrot.lane.b32.xlu0 %v8480_v25, %s7186_s14  ;;  %v7020_v32 = vpop.f32.mrb[10].mxu0  ;;  %v8490_v28 = vld [vmem:[#allocation2 + $0x30] sm:$0xff] }
 0x357   : > { %2689 = vst.msk [vmem:[#allocation3 + $0x28] sm:$0xff] %vm416_vm0, %v8482_v52  ;;  %v2597_v49 = vmax.f32 %v2565_v51, 0.0  ;;  %v2528_v38 = vmul.f32 %v7020_v32, %v8425_v62  ;;  %v2401_v33 = vpop.f32.mrb[11].mxu0  ;;  %2688 = vst.msk [vmem:[#allocation3 + $0x20] sm:$0xff] %vm416_vm0, %v8490_v28 }
 0x358   : > { %v2596_v37 = vmax.f32 %v2564_v48, 0.0  ;;  %v2527_v35 = vmul.f32 %v8425_v62, %v2401_v33  ;;  %v8496_v41 = vld [vmem:[#allocation2 + $0x51] sm:$0xff] }
 0x359   : > { %2629 = vst.msk [vmem:[#allocation2 + $0x81] sm:$0xff] %vm416_vm0, %v2597_v49  ;;  %v2567_v42 = vadd.f32 %v8432_v63, %v2528_v38  ;;  %2794 = vrot.lane.b32.xlu1 %v8496_v41, %s7186_s14  ;;  %v8502_v40 = vld [vmem:[#allocation2 + $0x49] sm:$0xff] }
 0x35a   : > { %v8504_v54 = vld [vmem:[#allocation2 + $0x50] sm:$0xff]  ;;  %2628 = vst.msk [vmem:[#allocation2 + $0x79] sm:$0xff] %vm416_vm0, %v2596_v37  ;;  %v2566_v43 = vadd.f32 %v8432_v63, %v2527_v35  ;;  %2792 = vrot.lane.b32.xlu0 %v8502_v40, %s7186_s14  ;;  %v7023_v57 = vpop.f32.mrb[12].mxu0  ;;  %v8512_v55 = vld [vmem:[#allocation2 + $0x48] sm:$0xff] }
 0x35b   : > { %2691 = vst.msk [vmem:[#allocation3 + $0x38] sm:$0xff] %vm416_vm0, %v8504_v54  ;;  %v2599_v60 = vmax.f32 %v2567_v42, 0.0  ;;  %v2530_v58 = vmul.f32 %v7023_v57, %v8425_v62  ;;  %v2411_v61 = vpop.f32.mrb[13].mxu0  ;;  %2690 = vst.msk [vmem:[#allocation3 + $0x30] sm:$0xff] %vm416_vm0, %v8512_v55 }
 0x35c   : > { %v2598_v0 = vmax.f32 %v2566_v43, 0.0  ;;  %v2529_v3 = vmul.f32 %v8425_v62, %v2411_v61  ;;  %v8518_v1 = vld [vmem:[#allocation2 + $0x69] sm:$0xff] }
 0x35d   : > { %2631 = vst.msk [vmem:[#allocation2 + $0x99] sm:$0xff] %vm416_vm0, %v2599_v60  ;;  %v2569_v5 = vadd.f32 %v8432_v63, %v2530_v58  ;;  %2798 = vrot.lane.b32.xlu1 %v8518_v1, %s7186_s14  ;;  %v8524_v4 = vld [vmem:[#allocation2 + $0x61] sm:$0xff] }
 0x35e   : > { %v8526_v7 = vld [vmem:[#allocation2 + $0x68] sm:$0xff]  ;;  %2630 = vst.msk [vmem:[#allocation2 + $0x91] sm:$0xff] %vm416_vm0, %v2598_v0  ;;  %v2568_v6 = vadd.f32 %v8432_v63, %v2529_v3  ;;  %2796 = vrot.lane.b32.xlu0 %v8524_v4, %s7186_s14  ;;  %v7026_v9 = vpop.f32.mrb[14].mxu0  ;;  %v8534_v8 = vld [vmem:[#allocation2 + $0x60] sm:$0xff] }
 0x35f   : > { %2693 = vst.msk [vmem:[#allocation3 + $0x48] sm:$0xff] %vm416_vm0, %v8526_v7  ;;  %v2601_v11 = vmax.f32 %v2569_v5, 0.0  ;;  %v2532_v10 = vmul.f32 %v7026_v9, %v8425_v62  ;;  %v2421_v14 = vpop.f32.mrb[15].mxu0  ;;  %2692 = vst.msk [vmem:[#allocation3 + $0x40] sm:$0xff] %vm416_vm0, %v8534_v8 }
 0x360   : > { %v2600_v12 = vmax.f32 %v2568_v6, 0.0  ;;  %v2531_v18 = vmul.f32 %v8425_v62, %v2421_v14  ;;  %v8540_v15 = vld [vmem:[#allocation2 + $0x81] sm:$0xff] }
 0x361   : > { %2633 = vst.msk [vmem:[#allocation2 + $0xb1] sm:$0xff] %vm416_vm0, %v2601_v11  ;;  %v2571_v22 = vadd.f32 %v8432_v63, %v2532_v10  ;;  %2802 = vrot.lane.b32.xlu1 %v8540_v15, %s7186_s14  ;;  %v8546_v19 = vld [vmem:[#allocation2 + $0x79] sm:$0xff] }
 0x362   : > { %v8548_v44 = vld [vmem:[#allocation2 + $0x80] sm:$0xff]  ;;  %2632 = vst.msk [vmem:[#allocation2 + $0xa9] sm:$0xff] %vm416_vm0, %v2600_v12  ;;  %v2570_v26 = vadd.f32 %v8432_v63, %v2531_v18  ;;  %2800 = vrot.lane.b32.xlu0 %v8546_v19, %s7186_s14  ;;  %v7029_v23 = vpop.f32.mrb[16].mxu0  ;;  %v8556_v45 = vld [vmem:[#allocation2 + $0x78] sm:$0xff] }
 0x363   : > { %2695 = vst.msk [vmem:[#allocation3 + $0x58] sm:$0xff] %vm416_vm0, %v8548_v44  ;;  %v2603_v39 = vmax.f32 %v2571_v22, 0.0  ;;  %v2534_v46 = vmul.f32 %v7029_v23, %v8425_v62  ;;  %v2431_v27 = vpop.f32.mrb[17].mxu0  ;;  %2694 = vst.msk [vmem:[#allocation3 + $0x50] sm:$0xff] %vm416_vm0, %v8556_v45 }
 0x364   : > { %v2602_v47 = vmax.f32 %v2570_v26, 0.0  ;;  %v2533_v50 = vmul.f32 %v8425_v62, %v2431_v27  ;;  %v8562_v31 = vld [vmem:[#allocation2 + $0x99] sm:$0xff] }
 0x365   : > { %2635 = vst.msk [vmem:[#allocation2 + $0xc9] sm:$0xff] %vm416_vm0, %v2603_v39  ;;  %v2573_v53 = vadd.f32 %v8432_v63, %v2534_v46  ;;  %2806 = vrot.lane.b32.xlu1 %v8562_v31, %s7186_s14  ;;  %v8568_v29 = vld [vmem:[#allocation2 + $0x91] sm:$0xff] }
 0x366   : > { %v8570_v2 = vld [vmem:[#allocation2 + $0x98] sm:$0xff]  ;;  %2634 = vst.msk [vmem:[#allocation2 + $0xc1] sm:$0xff] %vm416_vm0, %v2602_v47  ;;  %v2572_v13 = vadd.f32 %v8432_v63, %v2533_v50  ;;  %2804 = vrot.lane.b32.xlu0 %v8568_v29, %s7186_s14  ;;  %v7032_v34 = vpop.f32.mrb[18].mxu0  ;;  %v8578_v17 = vld [vmem:[#allocation2 + $0x90] sm:$0xff] }
 0x367   : > { %2697 = vst.msk [vmem:[#allocation3 + $0x68] sm:$0xff] %vm416_vm0, %v8570_v2  ;;  %v2605_v30 = vmax.f32 %v2573_v53, 0.0  ;;  %v2536_v20 = vmul.f32 %v7032_v34, %v8425_v62  ;;  %v2441_v21 = vpop.f32.mrb[19].mxu0  ;;  %2696 = vst.msk [vmem:[#allocation3 + $0x60] sm:$0xff] %vm416_vm0, %v8578_v17 }
 0x368   : > { %v2604_v51 = vmax.f32 %v2572_v13, 0.0  ;;  %v2535_v48 = vmul.f32 %v8425_v62, %v2441_v21  ;;  %v8584_v32 = vld [vmem:[#allocation2 + $0xb1] sm:$0xff] }
 0x369   : > { %2637 = vst.msk [vmem:[#allocation2 + $0xe1] sm:$0xff] %vm416_vm0, %v2605_v30  ;;  %v2575_v49 = vadd.f32 %v8432_v63, %v2536_v20  ;;  %2810 = vrot.lane.b32.xlu1 %v8584_v32, %s7186_s14  ;;  %v8590_v38 = vld [vmem:[#allocation2 + $0xa9] sm:$0xff] }
 0x36a   : > { %v8592_v33 = vld [vmem:[#allocation2 + $0xb0] sm:$0xff]  ;;  %2636 = vst.msk [vmem:[#allocation2 + $0xd9] sm:$0xff] %vm416_vm0, %v2604_v51  ;;  %v2574_v37 = vadd.f32 %v8432_v63, %v2535_v48  ;;  %2808 = vrot.lane.b32.xlu0 %v8590_v38, %s7186_s14  ;;  %v7035_v35 = vpop.f32.mrb[20].mxu0  ;;  %v8600_v42 = vld [vmem:[#allocation2 + $0xa8] sm:$0xff] }
 0x36b   : > { %2699 = vst.msk [vmem:[#allocation3 + $0x78] sm:$0xff] %vm416_vm0, %v8592_v33  ;;  %v2607_v43 = vmax.f32 %v2575_v49, 0.0  ;;  %v2538_v57 = vmul.f32 %v7035_v35, %v8425_v62  ;;  %v2451_v60 = vpop.f32.mrb[21].mxu0  ;;  %2698 = vst.msk [vmem:[#allocation3 + $0x70] sm:$0xff] %vm416_vm0, %v8600_v42 }
 0x36c   : > { %v2606_v58 = vmax.f32 %v2574_v37, 0.0  ;;  %v2537_v61 = vmul.f32 %v8425_v62, %v2451_v60  ;;  %v8606_v0 = vld [vmem:[#allocation2 + $0xc9] sm:$0xff] }
 0x36d   : > { %2639 = vst.msk [vmem:[#allocation2 + $0xf9] sm:$0xff] %vm416_vm0, %v2607_v43  ;;  %v2577_v3 = vadd.f32 %v8432_v63, %v2538_v57  ;;  %2814 = vrot.lane.b32.xlu1 %v8606_v0, %s7186_s14  ;;  %v8612_v5 = vld [vmem:[#allocation2 + $0xc1] sm:$0xff] }
 0x36e   : > { %v8614_v6 = vld [vmem:[#allocation2 + $0xc8] sm:$0xff]  ;;  %2638 = vst.msk [vmem:[#allocation2 + $0xf1] sm:$0xff] %vm416_vm0, %v2606_v58  ;;  %v2576_v9 = vadd.f32 %v8432_v63, %v2537_v61  ;;  %2812 = vrot.lane.b32.xlu0 %v8612_v5, %s7186_s14  ;;  %v7038_v11 = vpop.f32.mrb[22].mxu0  ;;  %v8622_v10 = vld [vmem:[#allocation2 + $0xc0] sm:$0xff] }
 0x36f   : > { %2701 = vst.msk [vmem:[#allocation3 + $0x88] sm:$0xff] %vm416_vm0, %v8614_v6  ;;  %v2609_v14 = vmax.f32 %v2577_v3, 0.0  ;;  %v2540_v12 = vmul.f32 %v7038_v11, %v8425_v62  ;;  %v2461_v18 = vpop.f32.mrb[23].mxu0  ;;  %2700 = vst.msk [vmem:[#allocation3 + $0x80] sm:$0xff] %vm416_vm0, %v8622_v10 }
 0x370   : > { %v2608_v22 = vmax.f32 %v2576_v9, 0.0  ;;  %v2539_v26 = vmul.f32 %v8425_v62, %v2461_v18  ;;  %v8628_v23 = vld [vmem:[#allocation2 + $0xe1] sm:$0xff] }
 0x371   : > { %2641 = vst.msk [vmem:[#allocation2 + $0x111] sm:$0xff] %vm416_vm0, %v2609_v14  ;;  %v2579_v39 = vadd.f32 %v8432_v63, %v2540_v12  ;;  %2818 = vrot.lane.b32.xlu1 %v8628_v23, %s7186_s14  ;;  %v8634_v46 = vld [vmem:[#allocation2 + $0xd9] sm:$0xff] }
 0x372   : > { %v8636_v27 = vld [vmem:[#allocation2 + $0xe0] sm:$0xff]  ;;  %2640 = vst.msk [vmem:[#allocation2 + $0x109] sm:$0xff] %vm416_vm0, %v2608_v22  ;;  %v2578_v47 = vadd.f32 %v8432_v63, %v2539_v26  ;;  %2816 = vrot.lane.b32.xlu0 %v8634_v46, %s7186_s14  ;;  %v7041_v50 = vpop.f32.mrb[24].mxu0  ;;  %v8644_v53 = vld [vmem:[#allocation2 + $0xd8] sm:$0xff] }
 0x373   : > { %2703 = vst.msk [vmem:[#allocation3 + $0x98] sm:$0xff] %vm416_vm0, %v8636_v27  ;;  %v2611_v13 = vmax.f32 %v2579_v39, 0.0  ;;  %v2542_v34 = vmul.f32 %v7041_v50, %v8425_v62  ;;  %v2471_v30 = vpop.f32.mrb[25].mxu0  ;;  %2702 = vst.msk [vmem:[#allocation3 + $0x90] sm:$0xff] %vm416_vm0, %v8644_v53 }
 0x374   : > { %v2610_v20 = vmax.f32 %v2578_v47, 0.0  ;;  %v2541_v21 = vmul.f32 %v8425_v62, %v2471_v30  ;;  %v8650_v51 = vld [vmem:[#allocation2 + $0xf9] sm:$0xff] }
 0x375   : > { %2643 = vst.msk [vmem:[#allocation2 + $0x129] sm:$0xff] %vm416_vm0, %v2611_v13  ;;  %v2581_v48 = vadd.f32 %v8432_v63, %v2542_v34  ;;  %2822 = vrot.lane.b32.xlu1 %v8650_v51, %s7186_s14  ;;  %v8656_v49 = vld [vmem:[#allocation2 + $0xf1] sm:$0xff] }
 0x376   : > { %v8658_v37 = vld [vmem:[#allocation2 + $0xf8] sm:$0xff]  ;;  %2642 = vst.msk [vmem:[#allocation2 + $0x121] sm:$0xff] %vm416_vm0, %v2610_v20  ;;  %v2580_v35 = vadd.f32 %v8432_v63, %v2541_v21  ;;  %2820 = vrot.lane.b32.xlu0 %v8656_v49, %s7186_s14  ;;  %v7044_v43 = vpop.f32.mrb[26].mxu0  ;;  %v8666_v57 = vld [vmem:[#allocation2 + $0xf0] sm:$0xff] }
 0x377   : > { %2705 = vst.msk [vmem:[#allocation3 + $0xa8] sm:$0xff] %vm416_vm0, %v8658_v37  ;;  %v2613_v60 = vmax.f32 %v2581_v48, 0.0  ;;  %v2544_v58 = vmul.f32 %v7044_v43, %v8425_v62  ;;  %v2481_v61 = vpop.f32.mrb[27].mxu0  ;;  %2704 = vst.msk [vmem:[#allocation3 + $0xa0] sm:$0xff] %vm416_vm0, %v8666_v57 }
 0x378   : > { %v2612_v3 = vmax.f32 %v2580_v35, 0.0  ;;  %v2543_v9 = vmul.f32 %v8425_v62, %v2481_v61  ;;  %v8672_v11 = vld [vmem:[#allocation2 + $0x111] sm:$0xff] }
 0x379   : > { %2645 = vst.msk [vmem:[#allocation2 + $0x141] sm:$0xff] %vm416_vm0, %v2613_v60  ;;  %v2583_v14 = vadd.f32 %v8432_v63, %v2544_v58  ;;  %2826 = vrot.lane.b32.xlu1 %v8672_v11, %s7186_s14  ;;  %v8678_v12 = vld [vmem:[#allocation2 + $0x109] sm:$0xff] }
 0x37a   : > { %v8680_v18 = vld [vmem:[#allocation2 + $0x110] sm:$0xff]  ;;  %2644 = vst.msk [vmem:[#allocation2 + $0x139] sm:$0xff] %vm416_vm0, %v2612_v3  ;;  %v2582_v22 = vadd.f32 %v8432_v63, %v2543_v9  ;;  %2824 = vrot.lane.b32.xlu0 %v8678_v12, %s7186_s14  ;;  %v7047_v26 = vpop.f32.mrb[28].mxu0  ;;  %v8688_v39 = vld [vmem:[#allocation2 + $0x108] sm:$0xff] }
 0x37b   : > { %2707 = vst.msk [vmem:[#allocation3 + $0xb8] sm:$0xff] %vm416_vm0, %v8680_v18  ;;  %v2615_v47 = vmax.f32 %v2583_v14, 0.0  ;;  %v2546_v50 = vmul.f32 %v7047_v26, %v8425_v62  ;;  %v2491_v13 = vpop.f32.mrb[29].mxu0  ;;  %2706 = vst.msk [vmem:[#allocation3 + $0xb0] sm:$0xff] %vm416_vm0, %v8688_v39 }
 0x37c   : > { %v2614_v34 = vmax.f32 %v2582_v22, 0.0  ;;  %v2545_v30 = vmul.f32 %v8425_v62, %v2491_v13  ;;  %v8694_v20 = vld [vmem:[#allocation2 + $0x129] sm:$0xff] }
 0x37d   : > { %2647 = vst.msk [vmem:[#allocation2 + $0x159] sm:$0xff] %vm416_vm0, %v2615_v47  ;;  %v2585_v21 = vadd.f32 %v8432_v63, %v2546_v50  ;;  %2830 = vrot.lane.b32.xlu1 %v8694_v20, %s7186_s14  ;;  %v8700_v48 = vld [vmem:[#allocation2 + $0x121] sm:$0xff] }
 0x37e   : > { %v8702_v35 = vld [vmem:[#allocation2 + $0x128] sm:$0xff]  ;;  %2646 = vst.msk [vmem:[#allocation2 + $0x151] sm:$0xff] %vm416_vm0, %v2614_v34  ;;  %v2584_v43 = vadd.f32 %v8432_v63, %v2545_v30  ;;  %2828 = vrot.lane.b32.xlu0 %v8700_v48, %s7186_s14  ;;  %v8710_v60 = vld [vmem:[#allocation2 + $0x120] sm:$0xff]  ;;  %v7050_v58 = vpop.f32.mrb[30].mxu0 }
 0x37f   : > { %2709 = vst.msk [vmem:[#allocation3 + $0xc8] sm:$0xff] %vm416_vm0, %v8702_v35  ;;  %v2617_v61 = vmax.f32 %v2585_v21, 0.0  ;;  %2708 = vst.msk [vmem:[#allocation3 + $0xc0] sm:$0xff] %vm416_vm0, %v8710_v60  ;;  %v2548_v3 = vmul.f32 %v7050_v58, %v8425_v62  ;;  %v2501_v9 = vpop.f32.mrb[31].mxu0 }
 0x380   : > { %v2616_v14 = vmax.f32 %v2584_v43, 0.0  ;;  %v8715_v22 = vld [vmem:[#allocation2 + $0x141] sm:$0xff]  ;;  %v2547_v26 = vmul.f32 %v8425_v62, %v2501_v9 }
 0x381   : > { %2649 = vst.msk [vmem:[#allocation2 + $0x171] sm:$0xff] %vm416_vm0, %v2617_v61  ;;  %2834 = vrot.lane.b32.xlu1 %v8715_v22, %s7186_s14  ;;  %v8721_v47 = vld [vmem:[#allocation2 + $0x139] sm:$0xff]  ;;  %v2587_v13 = vadd.f32 %v8432_v63, %v2548_v3 }
 0x382   : > { %v8723_v50 = vld [vmem:[#allocation2 + $0x140] sm:$0xff]  ;;  %2648 = vst.msk [vmem:[#allocation2 + $0x169] sm:$0xff] %vm416_vm0, %v2616_v14  ;;  %2832 = vrot.lane.b32.xlu0 %v8721_v47, %s7186_s14  ;;  %v8731_v62 = vld [vmem:[#allocation2 + $0x138] sm:$0xff]  ;;  %v2586_v34 = vadd.f32 %v8432_v63, %v2547_v26  ;;  %v2910_v26 = vld [vmem:[#allocation2 + $0xa] sm:$0xff] }
 0x383   : > { %2711 = vst.msk [vmem:[#allocation3 + $0xd8] sm:$0xff] %vm416_vm0, %v8723_v50  ;;  %2710 = vst.msk [vmem:[#allocation3 + $0xd0] sm:$0xff] %vm416_vm0, %v8731_v62  ;;  %v2619_v30 = vmax.f32 %v2587_v13, 0.0 }
 0x384   : > { %v8736_v21 = vld [vmem:[#allocation2 + $0x159] sm:$0xff]  ;;  %v2618_v43 = vmax.f32 %v2586_v34, 0.0  ;;  %v2909_v34 = vld [vmem:[#allocation2 + $0x2] sm:$0xff] }
 0x385   : > { %2838 = vrot.lane.b32.xlu1 %v8736_v21, %s7186_s14  ;;  %v8740_v58 = vld [vmem:[#allocation2 + $0x151] sm:$0xff]  ;;  %2651 = vst.msk [vmem:[#allocation2 + $0x189] sm:$0xff] %vm416_vm0, %v2619_v30  ;;  %v8772_v30 = vld [vmem:[#allocation2 + $0x22] sm:$0xff] }
 0x386   : > { %11011 = vst [vmem:[#allocation7_spill] sm:$0xff] %v8740_v58  ;;  %v8742_v61 = vld [vmem:[#allocation2 + $0x158] sm:$0xff]  ;;  %2836 = vrot.lane.b32.xlu0 %v8740_v58, %s7186_s14  ;;  %v8749_v63 = vld [vmem:[#allocation2 + $0x150] sm:$0xff]  ;;  %2650 = vst.msk [vmem:[#allocation2 + $0x181] sm:$0xff] %vm416_vm0, %v2618_v43 }
 0x387   : > { %2713 = vst.msk [vmem:[#allocation3 + $0xe8] sm:$0xff] %vm416_vm0, %v8742_v61  ;;  %2712 = vst.msk [vmem:[#allocation3 + $0xe0] sm:$0xff] %vm416_vm0, %v8749_v63  ;;  %v8776_v43 = vld [vmem:[#allocation2 + $0x1a] sm:$0xff] }
 0x388   : > { %v8754_v3 = vld [vmem:[#allocation2 + $0x171] sm:$0xff]  ;;  %11014 = vst [vmem:[#allocation10_spill] sm:$0xff] %v8772_v30  ;;  %11015 = vst [vmem:[#allocation11_spill] sm:$0xff] %v8776_v43 }
 0x389   : > { %11012 = vst [vmem:[#allocation8_spill] sm:$0xff] %v8754_v3  ;;  %2842 = vrot.lane.b32.xlu1 %v8754_v3, %s7186_s14  ;;  %v8758_v9 = vld [vmem:[#allocation2 + $0x169] sm:$0xff]  ;;  %v8784_v3 = vld [vmem:[#allocation2 + $0x32] sm:$0xff] }
 0x38a   : > { %11013 = vst [vmem:[#allocation9_spill] sm:$0xff] %v8758_v9  ;;  %v8760_v14 = vld [vmem:[#allocation2 + $0x170] sm:$0xff]  ;;  %2840 = vrot.lane.b32.xlu0 %v8758_v9, %s7186_s14  ;;  %v8766_v13 = vld [vmem:[#allocation2 + $0x168] sm:$0xff]  ;;  %v8780_v9 = vld [vmem:[#allocation2 + $0x3a] sm:$0xff] }
 0x38b   : > { %2715 = vst.msk [vmem:[#allocation3 + $0xf8] sm:$0xff] %vm416_vm0, %v8760_v14  ;;  %2714 = vst.msk [vmem:[#allocation3 + $0xf0] sm:$0xff] %vm416_vm0, %v8766_v13  ;;  %v8887_v58 = vld [vmem:[#allocation2 + $0x172] sm:$0xff] }
 0x38c   : > { %11016 = vst [vmem:[#allocation12_spill] sm:$0xff] %v8780_v9  ;;  %11017 = vst [vmem:[#allocation13_spill] sm:$0xff] %v8784_v3 }
 0x38d   : > { %2975 = vrot.lane.b32.xlu1 %v2910_v26, %s7188_s16  ;;  %v8788_v26 = vld [vmem:[#allocation2 + $0x52] sm:$0xff] }
 0x38e   : > { %2973 = vrot.lane.b32.xlu0 %v2909_v34, %s7188_s16  ;;  %11018 = vst [vmem:[#allocation14_spill] sm:$0xff] %v8788_v26  ;;  %v8792_v34 = vld [vmem:[#allocation2 + $0x4a] sm:$0xff] }
 0x38f   : > { %11019 = vst [vmem:[#allocation15_spill] sm:$0xff] %v8792_v34 }
 0x391   : > { %2979 = vrot.lane.b32.xlu1 %v8772_v30, %s7188_s16 }
 0x392   : > { %2977 = vrot.lane.b32.xlu0 %v8776_v43, %s7188_s16  ;;  %v8796_v43 = vld [vmem:[#allocation2 + $0x6a] sm:$0xff] }
 0x393   : > { %11020 = vst [vmem:[#allocation16_spill] sm:$0xff] %v8796_v43 }
 0x395   : > { %2983 = vrot.lane.b32.xlu1 %v8780_v9, %s7188_s16  ;;  %v8800_v9 = vld [vmem:[#allocation2 + $0x62] sm:$0xff] }
 0x396   : > { %2981 = vrot.lane.b32.xlu0 %v8784_v3, %s7188_s16  ;;  %11021 = vst [vmem:[#allocation17_spill] sm:$0xff] %v8800_v9  ;;  %v8804_v3 = vld [vmem:[#allocation2 + $0x82] sm:$0xff] }
 0x397   : > { %11022 = vst [vmem:[#allocation18_spill] sm:$0xff] %v8804_v3 }
 0x399   : > { %2987 = vrot.lane.b32.xlu1 %v8788_v26, %s7188_s16  ;;  %v8808_v26 = vld [vmem:[#allocation2 + $0x7a] sm:$0xff] }
 0x39a   : > { %2985 = vrot.lane.b32.xlu0 %v8792_v34, %s7188_s16  ;;  %11023 = vst [vmem:[#allocation19_spill] sm:$0xff] %v8808_v26  ;;  %v8812_v34 = vld [vmem:[#allocation2 + $0x9a] sm:$0xff] }
 0x39b   : > { %11024 = vst [vmem:[#allocation20_spill] sm:$0xff] %v8812_v34 }
 0x39d   : > { %2991 = vrot.lane.b32.xlu1 %v8796_v43, %s7188_s16  ;;  %v8816_v43 = vld [vmem:[#allocation2 + $0x92] sm:$0xff] }
 0x39e   : > { %2989 = vrot.lane.b32.xlu0 %v8800_v9, %s7188_s16  ;;  %11025 = vst [vmem:[#allocation21_spill] sm:$0xff] %v8816_v43  ;;  %v8820_v9 = vld [vmem:[#allocation2 + $0xb2] sm:$0xff] }
 0x39f   : > { %11026 = vst [vmem:[#allocation22_spill] sm:$0xff] %v8820_v9 }
 0x3a1   : > { %2995 = vrot.lane.b32.xlu1 %v8804_v3, %s7188_s16  ;;  %v8824_v3 = vld [vmem:[#allocation2 + $0xaa] sm:$0xff] }
 0x3a2   : > { %2993 = vrot.lane.b32.xlu0 %v8808_v26, %s7188_s16  ;;  %11027 = vst [vmem:[#allocation23_spill] sm:$0xff] %v8824_v3  ;;  %v8828_v26 = vld [vmem:[#allocation2 + $0xca] sm:$0xff] }
 0x3a3   : > { %11028 = vst [vmem:[#allocation24_spill] sm:$0xff] %v8828_v26 }
 0x3a5   : > { %2999 = vrot.lane.b32.xlu1 %v8812_v34, %s7188_s16  ;;  %v8832_v34 = vld [vmem:[#allocation2 + $0xc2] sm:$0xff] }
 0x3a6   : > { %2997 = vrot.lane.b32.xlu0 %v8816_v43, %s7188_s16  ;;  %11029 = vst [vmem:[#allocation25_spill] sm:$0xff] %v8832_v34  ;;  %v8836_v43 = vld [vmem:[#allocation2 + $0xe2] sm:$0xff] }
 0x3a7   : > { %11030 = vst [vmem:[#allocation26_spill] sm:$0xff] %v8836_v43 }
 0x3a9   : > { %3003 = vrot.lane.b32.xlu1 %v8820_v9, %s7188_s16  ;;  %v8840_v9 = vld [vmem:[#allocation2 + $0xda] sm:$0xff] }
 0x3aa   : > { %3001 = vrot.lane.b32.xlu0 %v8824_v3, %s7188_s16  ;;  %11031 = vst [vmem:[#allocation27_spill] sm:$0xff] %v8840_v9  ;;  %v8844_v3 = vld [vmem:[#allocation2 + $0xfa] sm:$0xff] }
 0x3ab   : > { %11032 = vst [vmem:[#allocation28_spill] sm:$0xff] %v8844_v3 }
 0x3ad   : > { %3007 = vrot.lane.b32.xlu1 %v8828_v26, %s7188_s16  ;;  %v8848_v26 = vld [vmem:[#allocation2 + $0xf2] sm:$0xff] }
 0x3ae   : > { %3005 = vrot.lane.b32.xlu0 %v8832_v34, %s7188_s16  ;;  %11033 = vst [vmem:[#allocation29_spill] sm:$0xff] %v8848_v26  ;;  %v8852_v34 = vld [vmem:[#allocation2 + $0x112] sm:$0xff] }
 0x3af   : > { %11034 = vst [vmem:[#allocation30_spill] sm:$0xff] %v8852_v34 }
 0x3b1   : > { %3011 = vrot.lane.b32.xlu1 %v8836_v43, %s7188_s16  ;;  %v8856_v43 = vld [vmem:[#allocation2 + $0x10a] sm:$0xff] }
 0x3b2   : > { %3009 = vrot.lane.b32.xlu0 %v8840_v9, %s7188_s16  ;;  %11035 = vst [vmem:[#allocation31_spill] sm:$0xff] %v8856_v43  ;;  %v8860_v9 = vld [vmem:[#allocation2 + $0x12a] sm:$0xff] }
 0x3b3   : > { %11036 = vst [vmem:[#allocation32_spill] sm:$0xff] %v8860_v9 }
 0x3b5   : > { %3015 = vrot.lane.b32.xlu1 %v8844_v3, %s7188_s16  ;;  %v8864_v3 = vld [vmem:[#allocation2 + $0x122] sm:$0xff] }
 0x3b6   : > { %3013 = vrot.lane.b32.xlu0 %v8848_v26, %s7188_s16  ;;  %11037 = vst [vmem:[#allocation33_spill] sm:$0xff] %v8864_v3  ;;  %v8868_v26 = vld [vmem:[#allocation2 + $0x142] sm:$0xff] }
 0x3b7   : > { %11038 = vst [vmem:[#allocation34_spill] sm:$0xff] %v8868_v26 }
 0x3b9   : > { %3019 = vrot.lane.b32.xlu1 %v8852_v34, %s7188_s16  ;;  %v8872_v34 = vld [vmem:[#allocation2 + $0x13a] sm:$0xff] }
 0x3ba   : > { %3017 = vrot.lane.b32.xlu0 %v8856_v43, %s7188_s16  ;;  %11039 = vst [vmem:[#allocation35_spill] sm:$0xff] %v8872_v34 }
 0x3bd   : > { %3023 = vrot.lane.b32.xlu1 %v8860_v9, %s7188_s16  ;;  %v8877_v9 = vld [vmem:[#allocation2 + $0x15a] sm:$0xff] }
 0x3be   : > { %3021 = vrot.lane.b32.xlu0 %v8864_v3, %s7188_s16  ;;  %v8882_v3 = vld [vmem:[#allocation2 + $0x152] sm:$0xff] }
 0x3bf   : > { %11040 = vst [vmem:[#allocation36_spill] sm:$0xff] %v8882_v3 }
 0x3c1   : > { %3027 = vrot.lane.b32.xlu1 %v8868_v26, %s7188_s16 }
 0x3c2   : > { %3025 = vrot.lane.b32.xlu0 %v8872_v34, %s7188_s16 }
 0x3c3   : > { %v2787_v43 = vpop.permute.xlu1 %2786 }
 0x3c4   : > { %2880 = vst.msk [vmem:[#allocation3 + $0x18] sm:$0xff] %vm2876_vm13, %v2787_v43  ;;  %v2785_v30 = vpop.permute.xlu0 %2784 }
 0x3c5   : > { %2879 = vst.msk [vmem:[#allocation3 + $0x10] sm:$0xff] %vm2876_vm13, %v2785_v30  ;;  %3031 = vrot.lane.b32.xlu1 %v8877_v9, %s7188_s16  ;;  %v8892_v30 = vld [vmem:[#allocation2 + $0x16a] sm:$0xff] }
 0x3c6   : > { %3029 = vrot.lane.b32.xlu0 %v8882_v3, %s7188_s16 }
 0x3c7   : > { %v2791_v26 = vpop.permute.xlu1 %2790 }
 0x3c8   : > { %2882 = vst.msk [vmem:[#allocation3 + $0x28] sm:$0xff] %vm2876_vm13, %v2791_v26  ;;  %v2789_v34 = vpop.permute.xlu0 %2788 }
 0x3c9   : > { %2881 = vst.msk [vmem:[#allocation3 + $0x20] sm:$0xff] %vm2876_vm13, %v2789_v34  ;;  %3035 = vrot.lane.b32.xlu1 %v8887_v58, %s7188_s16 }
 0x3ca   : > { %3033 = vrot.lane.b32.xlu0 %v8892_v30, %s7188_s16 }
 0x3cb   : > { %v2795_v43 = vpop.permute.xlu1 %2794 }
 0x3cc   : > { %2884 = vst.msk [vmem:[#allocation3 + $0x38] sm:$0xff] %vm2876_vm13, %v2795_v43  ;;  %v2793_v3 = vpop.permute.xlu0 %2792 }
 0x3cd   : > { %2883 = vst.msk [vmem:[#allocation3 + $0x30] sm:$0xff] %vm2876_vm13, %v2793_v3  ;;  %3168 = vrot.lane.b32.xlu1 %v8460_v59, %s7190_s18 }
 0x3ce   : > { %3166 = vrot.lane.b32.xlu0 %v8468_v16, %s7190_s18 }
 0x3cf   : > { %v2799_v26 = vpop.permute.xlu1 %2798 }
 0x3d0   : > { %2886 = vst.msk [vmem:[#allocation3 + $0x48] sm:$0xff] %vm2876_vm13, %v2799_v26  ;;  %v2797_v34 = vpop.permute.xlu0 %2796 }
 0x3d1   : > { %2885 = vst.msk [vmem:[#allocation3 + $0x40] sm:$0xff] %vm2876_vm13, %v2797_v34  ;;  %3172 = vrot.lane.b32.xlu1 %v8482_v52, %s7190_s18 }
 0x3d2   : > { %3170 = vrot.lane.b32.xlu0 %v8490_v28, %s7190_s18 }
 0x3d3   : > { %v2803_v43 = vpop.permute.xlu1 %2802 }
 0x3d4   : > { %2888 = vst.msk [vmem:[#allocation3 + $0x58] sm:$0xff] %vm2876_vm13, %v2803_v43  ;;  %v2801_v3 = vpop.permute.xlu0 %2800 }
 0x3d5   : > { %2887 = vst.msk [vmem:[#allocation3 + $0x50] sm:$0xff] %vm2876_vm13, %v2801_v3  ;;  %3176 = vrot.lane.b32.xlu1 %v8504_v54, %s7190_s18 }
 0x3d6   : > { %3174 = vrot.lane.b32.xlu0 %v8512_v55, %s7190_s18 }
 0x3d7   : > { %v2807_v59 = vpop.permute.xlu1 %2806 }
 0x3d8   : > { %2890 = vst.msk [vmem:[#allocation3 + $0x68] sm:$0xff] %vm2876_vm13, %v2807_v59  ;;  %v2805_v16 = vpop.permute.xlu0 %2804 }
 0x3d9   : > { %2889 = vst.msk [vmem:[#allocation3 + $0x60] sm:$0xff] %vm2876_vm13, %v2805_v16  ;;  %3180 = vrot.lane.b32.xlu1 %v8526_v7, %s7190_s18 }
 0x3da   : > { %3178 = vrot.lane.b32.xlu0 %v8534_v8, %s7190_s18 }
 0x3db   : > { %v2811_v26 = vpop.permute.xlu1 %2810 }
 0x3dc   : > { %2892 = vst.msk [vmem:[#allocation3 + $0x78] sm:$0xff] %vm2876_vm13, %v2811_v26  ;;  %v2809_v34 = vpop.permute.xlu0 %2808 }
 0x3dd   : > { %2891 = vst.msk [vmem:[#allocation3 + $0x70] sm:$0xff] %vm2876_vm13, %v2809_v34  ;;  %3184 = vrot.lane.b32.xlu1 %v8548_v44, %s7190_s18 }
 0x3de   : > { %3182 = vrot.lane.b32.xlu0 %v8556_v45, %s7190_s18 }
 0x3df   : > { %v2815_v43 = vpop.permute.xlu1 %2814 }
 0x3e0   : > { %2894 = vst.msk [vmem:[#allocation3 + $0x88] sm:$0xff] %vm2876_vm13, %v2815_v43  ;;  %v2813_v3 = vpop.permute.xlu0 %2812 }
 0x3e1   : > { %2893 = vst.msk [vmem:[#allocation3 + $0x80] sm:$0xff] %vm2876_vm13, %v2813_v3  ;;  %3188 = vrot.lane.b32.xlu1 %v8570_v2, %s7190_s18 }
 0x3e2   : > { %3186 = vrot.lane.b32.xlu0 %v8578_v17, %s7190_s18 }
 0x3e3   : > { %v2819_v59 = vpop.permute.xlu1 %2818 }
 0x3e4   : > { %2896 = vst.msk [vmem:[#allocation3 + $0x98] sm:$0xff] %vm2876_vm13, %v2819_v59  ;;  %v2817_v16 = vpop.permute.xlu0 %2816 }
 0x3e5   : > { %2895 = vst.msk [vmem:[#allocation3 + $0x90] sm:$0xff] %vm2876_vm13, %v2817_v16  ;;  %3192 = vrot.lane.b32.xlu1 %v8592_v33, %s7190_s18 }
 0x3e6   : > { %3190 = vrot.lane.b32.xlu0 %v8600_v42, %s7190_s18 }
 0x3e7   : > { %v2823_v26 = vpop.permute.xlu1 %2822 }
 0x3e8   : > { %2898 = vst.msk [vmem:[#allocation3 + $0xa8] sm:$0xff] %vm2876_vm13, %v2823_v26  ;;  %v2821_v34 = vpop.permute.xlu0 %2820 }
 0x3e9   : > { %2897 = vst.msk [vmem:[#allocation3 + $0xa0] sm:$0xff] %vm2876_vm13, %v2821_v34  ;;  %3196 = vrot.lane.b32.xlu1 %v8614_v6, %s7190_s18 }
 0x3ea   : > { %3194 = vrot.lane.b32.xlu0 %v8622_v10, %s7190_s18 }
 0x3eb   : > { %v2827_v43 = vpop.permute.xlu1 %2826 }
 0x3ec   : > { %2900 = vst.msk [vmem:[#allocation3 + $0xb8] sm:$0xff] %vm2876_vm13, %v2827_v43  ;;  %v2825_v3 = vpop.permute.xlu0 %2824 }
 0x3ed   : > { %2899 = vst.msk [vmem:[#allocation3 + $0xb0] sm:$0xff] %vm2876_vm13, %v2825_v3  ;;  %3200 = vrot.lane.b32.xlu1 %v8636_v27, %s7190_s18 }
 0x3ee   : > { %3198 = vrot.lane.b32.xlu0 %v8644_v53, %s7190_s18 }
 0x3ef   : > { %v2831_v59 = vpop.permute.xlu1 %2830 }
 0x3f0   : > { %2902 = vst.msk [vmem:[#allocation3 + $0xc8] sm:$0xff] %vm2876_vm13, %v2831_v59  ;;  %v2829_v16 = vpop.permute.xlu0 %2828 }
 0x3f1   : > { %2901 = vst.msk [vmem:[#allocation3 + $0xc0] sm:$0xff] %vm2876_vm13, %v2829_v16  ;;  %3204 = vrot.lane.b32.xlu1 %v8658_v37, %s7190_s18 }
 0x3f2   : > { %3202 = vrot.lane.b32.xlu0 %v8666_v57, %s7190_s18 }
 0x3f3   : > { %v2835_v26 = vpop.permute.xlu1 %2834 }
 0x3f4   : > { %2904 = vst.msk [vmem:[#allocation3 + $0xd8] sm:$0xff] %vm2876_vm13, %v2835_v26  ;;  %v2833_v34 = vpop.permute.xlu0 %2832 }
 0x3f5   : > { %2903 = vst.msk [vmem:[#allocation3 + $0xd0] sm:$0xff] %vm2876_vm13, %v2833_v34  ;;  %3208 = vrot.lane.b32.xlu1 %v8680_v18, %s7190_s18 }
 0x3f6   : > { %3206 = vrot.lane.b32.xlu0 %v8688_v39, %s7190_s18 }
 0x3f7   : > { %v2839_v43 = vpop.permute.xlu1 %2838 }
 0x3f8   : > { %2906 = vst.msk [vmem:[#allocation3 + $0xe8] sm:$0xff] %vm2876_vm13, %v2839_v43  ;;  %v2837_v3 = vpop.permute.xlu0 %2836 }
 0x3f9   : > { %2905 = vst.msk [vmem:[#allocation3 + $0xe0] sm:$0xff] %vm2876_vm13, %v2837_v3  ;;  %3212 = vrot.lane.b32.xlu1 %v8702_v35, %s7190_s18 }
 0x3fa   : > { %3210 = vrot.lane.b32.xlu0 %v8710_v60, %s7190_s18 }
 0x3fb   : > { %v2843_v59 = vpop.permute.xlu1 %2842 }
 0x3fc   : > { %2908 = vst.msk [vmem:[#allocation3 + $0xf8] sm:$0xff] %vm2876_vm13, %v2843_v59  ;;  %v2841_v16 = vpop.permute.xlu0 %2840  ;;  %v8986_v59 = vld [vmem:[#allocation2 + $0x188] sm:$0xff] }
 0x3fd   : > { %2907 = vst.msk [vmem:[#allocation3 + $0xf0] sm:$0xff] %vm2876_vm13, %v2841_v16  ;;  %3216 = vrot.lane.b32.xlu1 %v8723_v50, %s7190_s18 }
 0x3fe   : > { %3214 = vrot.lane.b32.xlu0 %v8731_v62, %s7190_s18 }
 0x3ff   : > { %v2976_v26 = vpop.permute.xlu1 %2975 }
 0x400   : > { %3071 = vst.msk [vmem:[#allocation3 + $0x8] sm:$0xff] %vm3069_vm14, %v2976_v26  ;;  %v2974_v34 = vpop.permute.xlu0 %2973  ;;  %v8988_v26 = vld [vmem:[#allocation2 + $0x180] sm:$0xff] }
 0x401   : > { %3070 = vst.msk [vmem:[#allocation3] sm:$0xff] %vm3069_vm14, %v2974_v34  ;;  %3220 = vrot.lane.b32.xlu1 %v8742_v61, %s7190_s18 }
 0x402   : > { %3218 = vrot.lane.b32.xlu0 %v8749_v63, %s7190_s18 }
 0x403   : > { %v2980_v43 = vpop.permute.xlu1 %2979 }
 0x404   : > { %3073 = vst.msk [vmem:[#allocation3 + $0x18] sm:$0xff] %vm3069_vm14, %v2980_v43  ;;  %v2978_v3 = vpop.permute.xlu0 %2977 }
 0x405   : > { %3072 = vst.msk [vmem:[#allocation3 + $0x10] sm:$0xff] %vm3069_vm14, %v2978_v3  ;;  %3224 = vrot.lane.b32.xlu1 %v8760_v14, %s7190_s18 }
 0x406   : > { %3222 = vrot.lane.b32.xlu0 %v8766_v13, %s7190_s18 }
 0x407   : > { %v2984_v16 = vpop.permute.xlu1 %2983 }
 0x408   : > { %3075 = vst.msk [vmem:[#allocation3 + $0x28] sm:$0xff] %vm3069_vm14, %v2984_v16  ;;  %v2982_v34 = vpop.permute.xlu0 %2981 }
 0x409   : > { %3074 = vst.msk [vmem:[#allocation3 + $0x20] sm:$0xff] %vm3069_vm14, %v2982_v34  ;;  %3228 = vrot.lane.b32.xlu1 %v8986_v59, %s7190_s18 }
 0x40a   : > { %3226 = vrot.lane.b32.xlu0 %v8988_v26, %s7190_s18 }
 0x40b   : > { %v2988_v43 = vpop.permute.xlu1 %2987 }
 0x40c   : > { %3077 = vst.msk [vmem:[#allocation3 + $0x38] sm:$0xff] %vm3069_vm14, %v2988_v43  ;;  %v2986_v3 = vpop.permute.xlu0 %2985 }
 0x40d   : > { %3076 = vst.msk [vmem:[#allocation3 + $0x30] sm:$0xff] %vm3069_vm14, %v2986_v3  ;;  %3361 = vrot.lane.b32.xlu1 %v8452_v36, %s7192_s29 }
 0x40e   : > { %3359 = vrot.lane.b32.xlu0 %v8458_v56, %s7192_s29 }
 0x40f   : > { %v2992_v16 = vpop.permute.xlu1 %2991 }
 0x410   : > { %3079 = vst.msk [vmem:[#allocation3 + $0x48] sm:$0xff] %vm3069_vm14, %v2992_v16  ;;  %v2990_v34 = vpop.permute.xlu0 %2989  ;;  %v11043_v16 = vld [vmem:[#allocation9_spill] sm:$0xff] }
 0x411   : > { %3078 = vst.msk [vmem:[#allocation3 + $0x40] sm:$0xff] %vm3069_vm14, %v2990_v34  ;;  %3365 = vrot.lane.b32.xlu1 %v8474_v24, %s7192_s29 }
 0x412   : > { %3363 = vrot.lane.b32.xlu0 %v8480_v25, %s7192_s29 }
 0x413   : > { %v2996_v43 = vpop.permute.xlu1 %2995 }
 0x414   : > { %3081 = vst.msk [vmem:[#allocation3 + $0x58] sm:$0xff] %vm3069_vm14, %v2996_v43  ;;  %v2994_v3 = vpop.permute.xlu0 %2993 }
 0x415   : > { %3080 = vst.msk [vmem:[#allocation3 + $0x50] sm:$0xff] %vm3069_vm14, %v2994_v3  ;;  %3369 = vrot.lane.b32.xlu1 %v8496_v41, %s7192_s29  ;;  %v9092_v3 = vld [vmem:[#allocation2 + $0x181] sm:$0xff] }
 0x416   : > { %3367 = vrot.lane.b32.xlu0 %v8502_v40, %s7192_s29 }
 0x417   : > { %v3000_v36 = vpop.permute.xlu1 %2999 }
 0x418   : > { %3083 = vst.msk [vmem:[#allocation3 + $0x68] sm:$0xff] %vm3069_vm14, %v3000_v36  ;;  %v2998_v56 = vpop.permute.xlu0 %2997 }
 0x419   : > { %3082 = vst.msk [vmem:[#allocation3 + $0x60] sm:$0xff] %vm3069_vm14, %v2998_v56  ;;  %3373 = vrot.lane.b32.xlu1 %v8518_v1, %s7192_s29 }
 0x41a   : > { %3371 = vrot.lane.b32.xlu0 %v8524_v4, %s7192_s29 }
 0x41b   : > { %v3004_v24 = vpop.permute.xlu1 %3003 }
 0x41c   : > { %3085 = vst.msk [vmem:[#allocation3 + $0x78] sm:$0xff] %vm3069_vm14, %v3004_v24  ;;  %v3002_v25 = vpop.permute.xlu0 %3001  ;;  %v11044_v24 = vld [vmem:[#allocation10_spill] sm:$0xff] }
 0x41d   : > { %3084 = vst.msk [vmem:[#allocation3 + $0x70] sm:$0xff] %vm3069_vm14, %v3002_v25  ;;  %3377 = vrot.lane.b32.xlu1 %v8540_v15, %s7192_s29  ;;  %v11045_v25 = vld [vmem:[#allocation11_spill] sm:$0xff] }
 0x41e   : > { %3375 = vrot.lane.b32.xlu0 %v8546_v19, %s7192_s29 }
 0x41f   : > { %v3008_v41 = vpop.permute.xlu1 %3007 }
 0x420   : > { %3087 = vst.msk [vmem:[#allocation3 + $0x88] sm:$0xff] %vm3069_vm14, %v3008_v41  ;;  %v3006_v40 = vpop.permute.xlu0 %3005 }
 0x421   : > { %3086 = vst.msk [vmem:[#allocation3 + $0x80] sm:$0xff] %vm3069_vm14, %v3006_v40  ;;  %3381 = vrot.lane.b32.xlu1 %v8562_v31, %s7192_s29 }
 0x422   : > { %3379 = vrot.lane.b32.xlu0 %v8568_v29, %s7192_s29 }
 0x423   : > { %v3012_v1 = vpop.permute.xlu1 %3011 }
 0x424   : > { %3089 = vst.msk [vmem:[#allocation3 + $0x98] sm:$0xff] %vm3069_vm14, %v3012_v1  ;;  %v3010_v4 = vpop.permute.xlu0 %3009  ;;  %v11046_v1 = vld [vmem:[#allocation12_spill] sm:$0xff] }
 0x425   : > { %3088 = vst.msk [vmem:[#allocation3 + $0x90] sm:$0xff] %vm3069_vm14, %v3010_v4  ;;  %3385 = vrot.lane.b32.xlu1 %v8584_v32, %s7192_s29  ;;  %v11047_v4 = vld [vmem:[#allocation13_spill] sm:$0xff] }
 0x426   : > { %3383 = vrot.lane.b32.xlu0 %v8590_v38, %s7192_s29 }
 0x427   : > { %v3016_v15 = vpop.permute.xlu1 %3015 }
 0x428   : > { %3091 = vst.msk [vmem:[#allocation3 + $0xa8] sm:$0xff] %vm3069_vm14, %v3016_v15  ;;  %v3014_v19 = vpop.permute.xlu0 %3013 }
 0x429   : > { %3090 = vst.msk [vmem:[#allocation3 + $0xa0] sm:$0xff] %vm3069_vm14, %v3014_v19  ;;  %3389 = vrot.lane.b32.xlu1 %v8606_v0, %s7192_s29 }
 0x42a   : > { %3387 = vrot.lane.b32.xlu0 %v8612_v5, %s7192_s29 }
 0x42b   : > { %v3020_v31 = vpop.permute.xlu1 %3019 }
 0x42c   : > { %3093 = vst.msk [vmem:[#allocation3 + $0xb8] sm:$0xff] %vm3069_vm14, %v3020_v31  ;;  %v3018_v29 = vpop.permute.xlu0 %3017  ;;  %v11048_v31 = vld [vmem:[#allocation14_spill] sm:$0xff] }
 0x42d   : > { %3092 = vst.msk [vmem:[#allocation3 + $0xb0] sm:$0xff] %vm3069_vm14, %v3018_v29  ;;  %3393 = vrot.lane.b32.xlu1 %v8628_v23, %s7192_s29  ;;  %v11049_v29 = vld [vmem:[#allocation15_spill] sm:$0xff] }
 0x42e   : > { %3391 = vrot.lane.b32.xlu0 %v8634_v46, %s7192_s29 }
 0x42f   : > { %v3024_v32 = vpop.permute.xlu1 %3023 }
 0x430   : > { %3095 = vst.msk [vmem:[#allocation3 + $0xc8] sm:$0xff] %vm3069_vm14, %v3024_v32  ;;  %v3022_v38 = vpop.permute.xlu0 %3021 }
 0x431   : > { %3094 = vst.msk [vmem:[#allocation3 + $0xc0] sm:$0xff] %vm3069_vm14, %v3022_v38  ;;  %3397 = vrot.lane.b32.xlu1 %v8650_v51, %s7192_s29 }
 0x432   : > { %3395 = vrot.lane.b32.xlu0 %v8656_v49, %s7192_s29 }
 0x433   : > { %v3028_v0 = vpop.permute.xlu1 %3027 }
 0x434   : > { %3097 = vst.msk [vmem:[#allocation3 + $0xd8] sm:$0xff] %vm3069_vm14, %v3028_v0  ;;  %v3026_v5 = vpop.permute.xlu0 %3025  ;;  %v11050_v0 = vld [vmem:[#allocation16_spill] sm:$0xff] }
 0x435   : > { %3096 = vst.msk [vmem:[#allocation3 + $0xd0] sm:$0xff] %vm3069_vm14, %v3026_v5  ;;  %3401 = vrot.lane.b32.xlu1 %v8672_v11, %s7192_s29  ;;  %v11051_v5 = vld [vmem:[#allocation17_spill] sm:$0xff] }
 0x436   : > { %3399 = vrot.lane.b32.xlu0 %v8678_v12, %s7192_s29 }
 0x437   : > { %v3032_v23 = vpop.permute.xlu1 %3031 }
 0x438   : > { %3099 = vst.msk [vmem:[#allocation3 + $0xe8] sm:$0xff] %vm3069_vm14, %v3032_v23  ;;  %v3030_v46 = vpop.permute.xlu0 %3029 }
 0x439   : > { %3098 = vst.msk [vmem:[#allocation3 + $0xe0] sm:$0xff] %vm3069_vm14, %v3030_v46  ;;  %3405 = vrot.lane.b32.xlu1 %v8694_v20, %s7192_s29  ;;  %v11041_v20 = vld [vmem:[#allocation7_spill] sm:$0xff] }
 0x43a   : > { %3403 = vrot.lane.b32.xlu0 %v8700_v48, %s7192_s29 }
 0x43b   : > { %v3036_v51 = vpop.permute.xlu1 %3035 }
 0x43c   : > { %3101 = vst.msk [vmem:[#allocation3 + $0xf8] sm:$0xff] %vm3069_vm14, %v3036_v51  ;;  %v3034_v49 = vpop.permute.xlu0 %3033  ;;  %v11052_v51 = vld [vmem:[#allocation18_spill] sm:$0xff] }
 0x43d   : > { %3100 = vst.msk [vmem:[#allocation3 + $0xf0] sm:$0xff] %vm3069_vm14, %v3034_v49  ;;  %3409 = vrot.lane.b32.xlu1 %v8715_v22, %s7192_s29  ;;  %v11053_v49 = vld [vmem:[#allocation19_spill] sm:$0xff] }
 0x43e   : > { %3407 = vrot.lane.b32.xlu0 %v8721_v47, %s7192_s29  ;;  %v11042_v47 = vld [vmem:[#allocation8_spill] sm:$0xff] }
 0x43f   : > { %v3169_v11 = vpop.permute.xlu1 %3168 }
 0x440   : > { %3264 = vst.msk [vmem:[#allocation3 + $0x8] sm:$0xff] %vm3262_vm15, %v3169_v11  ;;  %v3167_v12 = vpop.permute.xlu0 %3166 }
 0x441   : > { %3263 = vst.msk [vmem:[#allocation3] sm:$0xff] %vm3262_vm15, %v3167_v12  ;;  %3413 = vrot.lane.b32.xlu1 %v8736_v21, %s7192_s29  ;;  %v9087_v21 = vld [vmem:[#allocation2 + $0x189] sm:$0xff] }
 0x442   : > { %3411 = vrot.lane.b32.xlu0 %v11041_v20, %s7192_s29  ;;  %v11054_v20 = vld [vmem:[#allocation20_spill] sm:$0xff] }
 0x443   : > { %v3173_v48 = vpop.permute.xlu1 %3172 }
 0x444   : > { %3266 = vst.msk [vmem:[#allocation3 + $0x18] sm:$0xff] %vm3262_vm15, %v3173_v48  ;;  %v3171_v22 = vpop.permute.xlu0 %3170  ;;  %v11055_v48 = vld [vmem:[#allocation21_spill] sm:$0xff] }
 0x445   : > { %3265 = vst.msk [vmem:[#allocation3 + $0x10] sm:$0xff] %vm3262_vm15, %v3171_v22  ;;  %3417 = vrot.lane.b32.xlu1 %v11042_v47, %s7192_s29 }
 0x446   : > { %3415 = vrot.lane.b32.xlu0 %v11043_v16, %s7192_s29  ;;  %v11056_v16 = vld [vmem:[#allocation22_spill] sm:$0xff] }
 0x447   : > { %v3177_v34 = vpop.permute.xlu1 %3176 }
 0x448   : > { %3268 = vst.msk [vmem:[#allocation3 + $0x28] sm:$0xff] %vm3262_vm15, %v3177_v34  ;;  %v3175_v43 = vpop.permute.xlu0 %3174  ;;  %v11057_v34 = vld [vmem:[#allocation23_spill] sm:$0xff] }
 0x449   : > { %3267 = vst.msk [vmem:[#allocation3 + $0x20] sm:$0xff] %vm3262_vm15, %v3175_v43  ;;  %3421 = vrot.lane.b32.xlu1 %v9087_v21, %s7192_s29 }
 0x44a   : > { %3419 = vrot.lane.b32.xlu0 %v9092_v3, %s7192_s29 }
 0x44b   : > { %v3181_v36 = vpop.permute.xlu1 %3180 }
 0x44c   : > { %3270 = vst.msk [vmem:[#allocation3 + $0x38] sm:$0xff] %vm3262_vm15, %v3181_v36  ;;  %v3179_v56 = vpop.permute.xlu0 %3178 }
 0x44d   : > { %3269 = vst.msk [vmem:[#allocation3 + $0x30] sm:$0xff] %vm3262_vm15, %v3179_v56  ;;  %3554 = vrot.lane.b32.xlu1 %v11044_v24, %s7193_s19  ;;  %v11058_v56 = vld [vmem:[#allocation24_spill] sm:$0xff]  ;;  %v11059_v24 = vld [vmem:[#allocation25_spill] sm:$0xff] }
 0x44e   : > { %3552 = vrot.lane.b32.xlu0 %v11045_v25, %s7193_s19 }
 0x44f   : > { %v3185_v41 = vpop.permute.xlu1 %3184 }
 0x450   : > { %3272 = vst.msk [vmem:[#allocation3 + $0x48] sm:$0xff] %vm3262_vm15, %v3185_v41  ;;  %v3183_v40 = vpop.permute.xlu0 %3182 }
 0x451   : > { %3271 = vst.msk [vmem:[#allocation3 + $0x40] sm:$0xff] %vm3262_vm15, %v3183_v40  ;;  %3558 = vrot.lane.b32.xlu1 %v11046_v1, %s7193_s19  ;;  %v11060_v40 = vld [vmem:[#allocation26_spill] sm:$0xff]  ;;  %v11061_v1 = vld [vmem:[#allocation27_spill] sm:$0xff] }
 0x452   : > { %3556 = vrot.lane.b32.xlu0 %v11047_v4, %s7193_s19 }
 0x453   : > { %v3189_v15 = vpop.permute.xlu1 %3188 }
 0x454   : > { %3274 = vst.msk [vmem:[#allocation3 + $0x58] sm:$0xff] %vm3262_vm15, %v3189_v15  ;;  %v3187_v19 = vpop.permute.xlu0 %3186 }
 0x455   : > { %3273 = vst.msk [vmem:[#allocation3 + $0x50] sm:$0xff] %vm3262_vm15, %v3187_v19  ;;  %3562 = vrot.lane.b32.xlu1 %v11048_v31, %s7193_s19  ;;  %v11062_v19 = vld [vmem:[#allocation28_spill] sm:$0xff]  ;;  %v11063_v31 = vld [vmem:[#allocation29_spill] sm:$0xff] }
 0x456   : > { %3560 = vrot.lane.b32.xlu0 %v11049_v29, %s7193_s19 }
 0x457   : > { %v3193_v32 = vpop.permute.xlu1 %3192 }
 0x458   : > { %3276 = vst.msk [vmem:[#allocation3 + $0x68] sm:$0xff] %vm3262_vm15, %v3193_v32  ;;  %v3191_v38 = vpop.permute.xlu0 %3190 }
 0x459   : > { %3275 = vst.msk [vmem:[#allocation3 + $0x60] sm:$0xff] %vm3262_vm15, %v3191_v38  ;;  %3566 = vrot.lane.b32.xlu1 %v11050_v0, %s7193_s19  ;;  %v11064_v38 = vld [vmem:[#allocation30_spill] sm:$0xff]  ;;  %v11065_v0 = vld [vmem:[#allocation31_spill] sm:$0xff] }
 0x45a   : > { %3564 = vrot.lane.b32.xlu0 %v11051_v5, %s7193_s19 }
 0x45b   : > { %v3197_v23 = vpop.permute.xlu1 %3196 }
 0x45c   : > { %3278 = vst.msk [vmem:[#allocation3 + $0x78] sm:$0xff] %vm3262_vm15, %v3197_v23  ;;  %v3195_v46 = vpop.permute.xlu0 %3194 }
 0x45d   : > { %3277 = vst.msk [vmem:[#allocation3 + $0x70] sm:$0xff] %vm3262_vm15, %v3195_v46  ;;  %3570 = vrot.lane.b32.xlu1 %v11052_v51, %s7193_s19  ;;  %v11066_v46 = vld [vmem:[#allocation32_spill] sm:$0xff]  ;;  %v11067_v51 = vld [vmem:[#allocation33_spill] sm:$0xff] }
 0x45e   : > { %3568 = vrot.lane.b32.xlu0 %v11053_v49, %s7193_s19 }
 0x45f   : > { %v3201_v11 = vpop.permute.xlu1 %3200 }
 0x460   : > { %3280 = vst.msk [vmem:[#allocation3 + $0x88] sm:$0xff] %vm3262_vm15, %v3201_v11  ;;  %v3199_v12 = vpop.permute.xlu0 %3198 }
 0x461   : > { %3279 = vst.msk [vmem:[#allocation3 + $0x80] sm:$0xff] %vm3262_vm15, %v3199_v12  ;;  %3574 = vrot.lane.b32.xlu1 %v11054_v20, %s7193_s19  ;;  %v11068_v12 = vld [vmem:[#allocation34_spill] sm:$0xff]  ;;  %v11069_v20 = vld [vmem:[#allocation35_spill] sm:$0xff] }
 0x462   : > { %3572 = vrot.lane.b32.xlu0 %v11055_v48, %s7193_s19 }
 0x463   : > { %v3205_v22 = vpop.permute.xlu1 %3204 }
 0x464   : > { %3282 = vst.msk [vmem:[#allocation3 + $0x98] sm:$0xff] %vm3262_vm15, %v3205_v22  ;;  %v3203_v47 = vpop.permute.xlu0 %3202 }
 0x465   : > { %3281 = vst.msk [vmem:[#allocation3 + $0x90] sm:$0xff] %vm3262_vm15, %v3203_v47  ;;  %3578 = vrot.lane.b32.xlu1 %v11056_v16, %s7193_s19  ;;  %v11070_v47 = vld [vmem:[#allocation36_spill] sm:$0xff] }
 0x466   : > { %3576 = vrot.lane.b32.xlu0 %v11057_v34, %s7193_s19 }
 0x467   : > { %v3209_v43 = vpop.permute.xlu1 %3208 }
 0x468   : > { %3284 = vst.msk [vmem:[#allocation3 + $0xa8] sm:$0xff] %vm3262_vm15, %v3209_v43  ;;  %v3207_v36 = vpop.permute.xlu0 %3206 }
 0x469   : > { %3283 = vst.msk [vmem:[#allocation3 + $0xa0] sm:$0xff] %vm3262_vm15, %v3207_v36  ;;  %3582 = vrot.lane.b32.xlu1 %v11058_v56, %s7193_s19  ;;  %v9192_v56 = vld [vmem:[#allocation2 + $0x182] sm:$0xff] }
 0x46a   : > { %3580 = vrot.lane.b32.xlu0 %v11059_v24, %s7193_s19 }
 0x46b   : > { %v3213_v25 = vpop.permute.xlu1 %3212 }
 0x46c   : > { %3286 = vst.msk [vmem:[#allocation3 + $0xb8] sm:$0xff] %vm3262_vm15, %v3213_v25  ;;  %v3211_v41 = vpop.permute.xlu0 %3210 }
 0x46d   : > { %3285 = vst.msk [vmem:[#allocation3 + $0xb0] sm:$0xff] %vm3262_vm15, %v3211_v41  ;;  %3586 = vrot.lane.b32.xlu1 %v11060_v40, %s7193_s19 }
 0x46e   : > { %3584 = vrot.lane.b32.xlu0 %v11061_v1, %s7193_s19  ;;  %v3711_v1 = vld [vmem:[#allocation2 + $0x198] sm:$0xff] }
 0x46f   : > { %v3217_v4 = vpop.permute.xlu1 %3216 }
 0x470   : > { %3288 = vst.msk [vmem:[#allocation3 + $0xc8] sm:$0xff] %vm3262_vm15, %v3217_v4  ;;  %v3215_v15 = vpop.permute.xlu0 %3214 }
 0x471   : > { %3287 = vst.msk [vmem:[#allocation3 + $0xc0] sm:$0xff] %vm3262_vm15, %v3215_v15  ;;  %3590 = vrot.lane.b32.xlu1 %v11062_v19, %s7193_s19  ;;  %v3875_v19 = vld [vmem:[#allocation2 + $0x39] sm:$0xff] }
 0x472   : > { %3588 = vrot.lane.b32.xlu0 %v11063_v31, %s7193_s19  ;;  %v3874_v31 = vld [vmem:[#allocation2 + $0x31] sm:$0xff] }
 0x473   : > { %v3221_v29 = vpop.permute.xlu1 %3220 }
 0x474   : > { %3290 = vst.msk [vmem:[#allocation3 + $0xd8] sm:$0xff] %vm3262_vm15, %v3221_v29  ;;  %v3219_v32 = vpop.permute.xlu0 %3218 }
 0x475   : > { %3289 = vst.msk [vmem:[#allocation3 + $0xd0] sm:$0xff] %vm3262_vm15, %v3219_v32  ;;  %3594 = vrot.lane.b32.xlu1 %v11064_v38, %s7193_s19  ;;  %v3877_v38 = vld [vmem:[#allocation2 + $0x51] sm:$0xff] }
 0x476   : > { %3592 = vrot.lane.b32.xlu0 %v11065_v0, %s7193_s19  ;;  %v3876_v0 = vld [vmem:[#allocation2 + $0x49] sm:$0xff] }
 0x477   : > { %v3225_v5 = vpop.permute.xlu1 %3224 }
 0x478   : > { %3292 = vst.msk [vmem:[#allocation3 + $0xe8] sm:$0xff] %vm3262_vm15, %v3225_v5  ;;  %v3223_v23 = vpop.permute.xlu0 %3222 }
 0x479   : > { %3291 = vst.msk [vmem:[#allocation3 + $0xe0] sm:$0xff] %vm3262_vm15, %v3223_v23  ;;  %3598 = vrot.lane.b32.xlu1 %v11066_v46, %s7193_s19  ;;  %v3879_v46 = vld [vmem:[#allocation2 + $0x69] sm:$0xff] }
 0x47a   : > { %3596 = vrot.lane.b32.xlu0 %v11067_v51, %s7193_s19  ;;  %v3878_v51 = vld [vmem:[#allocation2 + $0x61] sm:$0xff] }
 0x47b   : > { %v3229_v49 = vpop.permute.xlu1 %3228 }
 0x47c   : > { %3294 = vst.msk [vmem:[#allocation3 + $0xf8] sm:$0xff] %vm3262_vm15, %v3229_v49  ;;  %v3227_v11 = vpop.permute.xlu0 %3226  ;;  %v4294_v49 = vld [vmem:[%s10851_s4 + $0x10] sm:$0xff] }
 0x47d   : > { %3293 = vst.msk [vmem:[#allocation3 + $0xf0] sm:$0xff] %vm3262_vm15, %v3227_v11  ;;  %3602 = vrot.lane.b32.xlu1 %v11068_v12, %s7193_s19  ;;  %v4295_v11 = vld [vmem:[%s10851_s4 + $0x18] sm:$0xff] }
 0x47e   : > { %3600 = vrot.lane.b32.xlu0 %v11069_v20, %s7193_s19  ;;  %v7129_v12 = vpack.c.bf16 %v4295_v11, %v4294_v49 }
 0x47f   : > { %v3362_v48 = vpop.permute.xlu1 %3361 }
 0x480   : > { %3457 = vst.msk [vmem:[#allocation3 + $0x8] sm:$0xff] %vm3455_vm1, %v3362_v48  ;;  %v3360_v22 = vpop.permute.xlu0 %3359 }
 0x481   : > { %3456 = vst.msk [vmem:[#allocation3] sm:$0xff] %vm3455_vm1, %v3360_v22  ;;  %3606 = vrot.lane.b32.xlu1 %v8877_v9, %s7193_s19  ;;  %v9187_v9 = vld [vmem:[#allocation2 + $0x18a] sm:$0xff]  ;;  %v3881_v22 = vld [vmem:[#allocation2 + $0x81] sm:$0xff] }
 0x482   : > { %3604 = vrot.lane.b32.xlu0 %v11070_v47, %s7193_s19  ;;  %v3880_v47 = vld [vmem:[#allocation2 + $0x79] sm:$0xff] }
 0x483   : > { %v3366_v16 = vpop.permute.xlu1 %3365 }
 0x484   : > { %3459 = vst.msk [vmem:[#allocation3 + $0x18] sm:$0xff] %vm3455_vm1, %v3366_v16  ;;  %v3364_v34 = vpop.permute.xlu0 %3363 }
 0x485   : > { %3458 = vst.msk [vmem:[#allocation3 + $0x10] sm:$0xff] %vm3455_vm1, %v3364_v34  ;;  %3610 = vrot.lane.b32.xlu1 %v8887_v58, %s7193_s19 }
 0x486   : > { %3608 = vrot.lane.b32.xlu0 %v8892_v30, %s7193_s19 }
 0x487   : > { %v3370_v43 = vpop.permute.xlu1 %3369 }
 0x488   : > { %3461 = vst.msk [vmem:[#allocation3 + $0x28] sm:$0xff] %vm3455_vm1, %v3370_v43  ;;  %v3368_v36 = vpop.permute.xlu0 %3367  ;;  %v3883_v43 = vld [vmem:[#allocation2 + $0x99] sm:$0xff] }
 0x489   : > { %3460 = vst.msk [vmem:[#allocation3 + $0x20] sm:$0xff] %vm3455_vm1, %v3368_v36  ;;  %3614 = vrot.lane.b32.xlu1 %v9187_v9, %s7193_s19  ;;  %v3882_v36 = vld [vmem:[#allocation2 + $0x91] sm:$0xff] }
 0x48a   : > { %3612 = vrot.lane.b32.xlu0 %v9192_v56, %s7193_s19 }
 0x48b   : > { %v3374_v58 = vpop.permute.xlu1 %3373 }
 0x48c   : > { %3463 = vst.msk [vmem:[#allocation3 + $0x38] sm:$0xff] %vm3455_vm1, %v3374_v58  ;;  %v3372_v30 = vpop.permute.xlu0 %3371 }
 0x48d   : > { %3462 = vst.msk [vmem:[#allocation3 + $0x30] sm:$0xff] %vm3455_vm1, %v3372_v30  ;;  %3747 = vrot.lane.b32.xlu1 %v8482_v52, %s7194_s20 }
 0x48e   : > { %3745 = vrot.lane.b32.xlu0 %v8490_v28, %s7194_s20 }
 0x48f   : > { %v3378_v24 = vpop.permute.xlu1 %3377 }
 0x490   : > { %3465 = vst.msk [vmem:[#allocation3 + $0x48] sm:$0xff] %vm3455_vm1, %v3378_v24  ;;  %v3376_v25 = vpop.permute.xlu0 %3375  ;;  %v3885_v24 = vld [vmem:[#allocation2 + $0xb1] sm:$0xff] }
 0x491   : > { %3464 = vst.msk [vmem:[#allocation3 + $0x40] sm:$0xff] %vm3455_vm1, %v3376_v25  ;;  %3751 = vrot.lane.b32.xlu1 %v8504_v54, %s7194_s20  ;;  %v3884_v25 = vld [vmem:[#allocation2 + $0xa9] sm:$0xff] }
 0x492   : > { %3749 = vrot.lane.b32.xlu0 %v8512_v55, %s7194_s20 }
 0x493   : > { %v3382_v41 = vpop.permute.xlu1 %3381 }
 0x494   : > { %3467 = vst.msk [vmem:[#allocation3 + $0x58] sm:$0xff] %vm3455_vm1, %v3382_v41  ;;  %v3380_v40 = vpop.permute.xlu0 %3379  ;;  %v4296_v41 = vld [vmem:[%s10851_s4 + $0x20] sm:$0xff] }
 0x495   : > { %3466 = vst.msk [vmem:[#allocation3 + $0x50] sm:$0xff] %vm3455_vm1, %v3380_v40  ;;  %3755 = vrot.lane.b32.xlu1 %v8526_v7, %s7194_s20  ;;  %v4297_v40 = vld [vmem:[%s10851_s4 + $0x28] sm:$0xff] }
 0x496   : > { %3753 = vrot.lane.b32.xlu0 %v8534_v8, %s7194_s20 }
 0x497   : > { %v3386_v52 = vpop.permute.xlu1 %3385 }
 0x498   : > { %3469 = vst.msk [vmem:[#allocation3 + $0x68] sm:$0xff] %vm3455_vm1, %v3386_v52  ;;  %v3384_v28 = vpop.permute.xlu0 %3383  ;;  %v7133_v52 = vpack.c.bf16 %v4297_v40, %v4296_v41  ;;  %v4076_v40 = vld [vmem:[#allocation2 + $0x9a] sm:$0xff] }
 0x499   : > { %3468 = vst.msk [vmem:[#allocation3 + $0x60] sm:$0xff] %vm3455_vm1, %v3384_v28  ;;  %3759 = vrot.lane.b32.xlu1 %v8548_v44, %s7194_s20 }
 0x49a   : > { %3757 = vrot.lane.b32.xlu0 %v8556_v45, %s7194_s20 }
 0x49b   : > { %v3390_v54 = vpop.permute.xlu1 %3389 }
 0x49c   : > { %3471 = vst.msk [vmem:[#allocation3 + $0x78] sm:$0xff] %vm3455_vm1, %v3390_v54  ;;  %v3388_v55 = vpop.permute.xlu0 %3387 }
 0x49d   : > { %3470 = vst.msk [vmem:[#allocation3 + $0x70] sm:$0xff] %vm3455_vm1, %v3388_v55  ;;  %3763 = vrot.lane.b32.xlu1 %v8570_v2, %s7194_s20  ;;  %v3887_v55 = vld [vmem:[#allocation2 + $0xc9] sm:$0xff] }
 0x49e   : > { %3761 = vrot.lane.b32.xlu0 %v8578_v17, %s7194_s20 }
 0x49f   : > { %v3394_v7 = vpop.permute.xlu1 %3393 }
 0x4a0   : > { %3473 = vst.msk [vmem:[#allocation3 + $0x88] sm:$0xff] %vm3455_vm1, %v3394_v7  ;;  %v3392_v8 = vpop.permute.xlu0 %3391  ;;  %v3886_v7 = vld [vmem:[#allocation2 + $0xc1] sm:$0xff] }
 0x4a1   : > { %3472 = vst.msk [vmem:[#allocation3 + $0x80] sm:$0xff] %vm3455_vm1, %v3392_v8  ;;  %3767 = vrot.lane.b32.xlu1 %v8592_v33, %s7194_s20 }
 0x4a2   : > { %3765 = vrot.lane.b32.xlu0 %v8600_v42, %s7194_s20 }
 0x4a3   : > { %v3398_v44 = vpop.permute.xlu1 %3397 }
 0x4a4   : > { %3475 = vst.msk [vmem:[#allocation3 + $0x98] sm:$0xff] %vm3455_vm1, %v3398_v44  ;;  %v3396_v45 = vpop.permute.xlu0 %3395 }
 0x4a5   : > { %3474 = vst.msk [vmem:[#allocation3 + $0x90] sm:$0xff] %vm3455_vm1, %v3396_v45  ;;  %3771 = vrot.lane.b32.xlu1 %v8614_v6, %s7194_s20  ;;  %v3889_v45 = vld [vmem:[#allocation2 + $0xe1] sm:$0xff] }
 0x4a6   : > { %3769 = vrot.lane.b32.xlu0 %v8622_v10, %s7194_s20 }
 0x4a7   : > { %v3402_v2 = vpop.permute.xlu1 %3401 }
 0x4a8   : > { %3477 = vst.msk [vmem:[#allocation3 + $0xa8] sm:$0xff] %vm3455_vm1, %v3402_v2  ;;  %v3400_v17 = vpop.permute.xlu0 %3399  ;;  %v3888_v2 = vld [vmem:[#allocation2 + $0xd9] sm:$0xff] }
 0x4a9   : > { %3476 = vst.msk [vmem:[#allocation3 + $0xa0] sm:$0xff] %vm3455_vm1, %v3400_v17  ;;  %3775 = vrot.lane.b32.xlu1 %v8636_v27, %s7194_s20 }
 0x4aa   : > { %3773 = vrot.lane.b32.xlu0 %v8644_v53, %s7194_s20 }
 0x4ab   : > { %v3406_v33 = vpop.permute.xlu1 %3405 }
 0x4ac   : > { %3479 = vst.msk [vmem:[#allocation3 + $0xb8] sm:$0xff] %vm3455_vm1, %v3406_v33  ;;  %v3404_v42 = vpop.permute.xlu0 %3403 }
 0x4ad   : > { %3478 = vst.msk [vmem:[#allocation3 + $0xb0] sm:$0xff] %vm3455_vm1, %v3404_v42  ;;  %3779 = vrot.lane.b32.xlu1 %v8658_v37, %s7194_s20  ;;  %v3891_v42 = vld [vmem:[#allocation2 + $0xf9] sm:$0xff] }
 0x4ae   : > { %3777 = vrot.lane.b32.xlu0 %v8666_v57, %s7194_s20 }
 0x4af   : > { %v3410_v6 = vpop.permute.xlu1 %3409 }
 0x4b0   : > { %3481 = vst.msk [vmem:[#allocation3 + $0xc8] sm:$0xff] %vm3455_vm1, %v3410_v6  ;;  %v3408_v10 = vpop.permute.xlu0 %3407  ;;  %v3890_v6 = vld [vmem:[#allocation2 + $0xf1] sm:$0xff] }
 0x4b1   : > { %3480 = vst.msk [vmem:[#allocation3 + $0xc0] sm:$0xff] %vm3455_vm1, %v3408_v10  ;;  %3783 = vrot.lane.b32.xlu1 %v8680_v18, %s7194_s20 }
 0x4b2   : > { %3781 = vrot.lane.b32.xlu0 %v8688_v39, %s7194_s20 }
 0x4b3   : > { %v3414_v27 = vpop.permute.xlu1 %3413 }
 0x4b4   : > { %3483 = vst.msk [vmem:[#allocation3 + $0xd8] sm:$0xff] %vm3455_vm1, %v3414_v27  ;;  %v3412_v53 = vpop.permute.xlu0 %3411 }
 0x4b5   : > { %3482 = vst.msk [vmem:[#allocation3 + $0xd0] sm:$0xff] %vm3455_vm1, %v3412_v53  ;;  %3787 = vrot.lane.b32.xlu1 %v8702_v35, %s7194_s20  ;;  %v3893_v53 = vld [vmem:[#allocation2 + $0x111] sm:$0xff] }
 0x4b6   : > { %3785 = vrot.lane.b32.xlu0 %v8710_v60, %s7194_s20 }
 0x4b7   : > { %v3418_v37 = vpop.permute.xlu1 %3417 }
 0x4b8   : > { %3485 = vst.msk [vmem:[#allocation3 + $0xe8] sm:$0xff] %vm3455_vm1, %v3418_v37  ;;  %v3416_v57 = vpop.permute.xlu0 %3415  ;;  %v4298_v37 = vld [vmem:[%s10851_s4 + $0x30] sm:$0xff] }
 0x4b9   : > { %3484 = vst.msk [vmem:[#allocation3 + $0xe0] sm:$0xff] %vm3455_vm1, %v3416_v57  ;;  %3791 = vrot.lane.b32.xlu1 %v8723_v50, %s7194_s20  ;;  %v4299_v57 = vld [vmem:[%s10851_s4 + $0x38] sm:$0xff] }
 0x4ba   : > { %3789 = vrot.lane.b32.xlu0 %v8731_v62, %s7194_s20 }
 0x4bb   : > { %v3422_v18 = vpop.permute.xlu1 %3421 }
 0x4bc   : > { %3487 = vst.msk [vmem:[#allocation3 + $0xf8] sm:$0xff] %vm3455_vm1, %v3422_v18  ;;  %v3420_v39 = vpop.permute.xlu0 %3419  ;;  %v3892_v18 = vld [vmem:[#allocation2 + $0x109] sm:$0xff] }
 0x4bd   : > { %3486 = vst.msk [vmem:[#allocation3 + $0xf0] sm:$0xff] %vm3455_vm1, %v3420_v39  ;;  %3795 = vrot.lane.b32.xlu1 %v8742_v61, %s7194_s20  ;;  %v3712_v61 = vld [vmem:[#allocation2 + $0x1a0] sm:$0xff]  ;;  %v7137_v39 = vpack.c.bf16 %v4299_v57, %v4298_v37  ;;  %v4083_v37 = vld [vmem:[#allocation2 + $0xf2] sm:$0xff] }
 0x4be   : > { %3793 = vrot.lane.b32.xlu0 %v8749_v63, %s7194_s20 }
 0x4bf   : > { %v3555_v35 = vpop.permute.xlu1 %3554 }
 0x4c0   : > { %3650 = vst.msk [vmem:[#allocation3 + $0x8] sm:$0xff] %vm3648_vm2, %v3555_v35  ;;  %v3553_v60 = vpop.permute.xlu0 %3552 }
 0x4c1   : > { %3649 = vst.msk [vmem:[#allocation3] sm:$0xff] %vm3648_vm2, %v3553_v60  ;;  %3799 = vrot.lane.b32.xlu1 %v8760_v14, %s7194_s20 }
 0x4c2   : > { %3797 = vrot.lane.b32.xlu0 %v8766_v13, %s7194_s20  ;;  %v4292_v13 = vld [vmem:[%s10851_s4] sm:$0xff] }
 0x4c3   : > { %v3559_v50 = vpop.permute.xlu1 %3558 }
 0x4c4   : > { %3652 = vst.msk [vmem:[#allocation3 + $0x18] sm:$0xff] %vm3648_vm2, %v3559_v50  ;;  %v3557_v62 = vpop.permute.xlu0 %3556  ;;  %v3895_v50 = vld [vmem:[#allocation2 + $0x129] sm:$0xff] }
 0x4c5   : > { %3651 = vst.msk [vmem:[#allocation3 + $0x10] sm:$0xff] %vm3648_vm2, %v3557_v62  ;;  %3803 = vrot.lane.b32.xlu1 %v8986_v59, %s7194_s20  ;;  %v4293_v59 = vld [vmem:[%s10851_s4 + $0x8] sm:$0xff] }
 0x4c6   : > { %3801 = vrot.lane.b32.xlu0 %v8988_v26, %s7194_s20  ;;  %v7125_v26 = vpack.c.bf16 %v4293_v59, %v4292_v13  ;;  %v3894_v62 = vld [vmem:[#allocation2 + $0x121] sm:$0xff] }
 0x4c7   : > { %v3563_v63 = vpop.permute.xlu1 %3562 }
 0x4c8   : > { %3654 = vst.msk [vmem:[#allocation3 + $0x28] sm:$0xff] %vm3648_vm2, %v3563_v63  ;;  %v3561_v14 = vpop.permute.xlu0 %3560  ;;  %7126 = vmatprep.subr.bf16.mxu0 %v7125_v26  ;;  %7141 = vmatprep.subr.bf16.mxu1 %v7125_v26 }
 0x4c9   : > { %3653 = vst.msk [vmem:[#allocation3 + $0x20] sm:$0xff] %vm3648_vm2, %v3561_v14  ;;  %3807 = vrot.lane.b32.xlu1 %v3712_v61, %s7194_s20  ;;  %7128 = vmatpush3.bf16.msra.mxu0 %v7125_v26  ;;  %v3896_v14 = vld [vmem:[#allocation2 + $0x139] sm:$0xff] }
 0x4ca   : > { %3805 = vrot.lane.b32.xlu0 %v3711_v1, %s7194_s20  ;;  %7146 = vmatpush3.bf16.msra.mxu1 %v7125_v26  ;;  %v3897_v1 = vld [vmem:[#allocation2 + $0x141] sm:$0xff]  ;;  %v3899_v26 = vld [vmem:[#allocation2 + $0x159] sm:$0xff] }
 0x4cb   : > { %v3567_v4 = vpop.permute.xlu1 %3566  ;;  %7130 = vmatprep.subr.bf16.mxu0 %v7129_v12  ;;  %7142 = vmatprep.subr.bf16.mxu1 %v7129_v12 }
 0x4cc   : > { %3656 = vst.msk [vmem:[#allocation3 + $0x38] sm:$0xff] %vm3648_vm2, %v3567_v4  ;;  %v3565_v15 = vpop.permute.xlu0 %3564  ;;  %v3898_v4 = vld [vmem:[#allocation2 + $0x151] sm:$0xff] }
 0x4cd   : > { %3655 = vst.msk [vmem:[#allocation3 + $0x30] sm:$0xff] %vm3648_vm2, %v3565_v15  ;;  %3940 = vrot.lane.b32.xlu1 %v3875_v19, %s7195_s25  ;;  %7132 = vmatpush3.bf16.msra.mxu0 %v7129_v12  ;;  %v4300_v15 = vld [vmem:[%s10851_s4 + $0x40] sm:$0xff] }
 0x4ce   : > { %3938 = vrot.lane.b32.xlu0 %v3874_v31, %s7195_s25  ;;  %7147 = vmatpush3.bf16.msra.mxu1 %v7129_v12 }
 0x4cf   : > { %v3571_v29 = vpop.permute.xlu1 %3570  ;;  %7134 = vmatprep.subr.bf16.mxu0 %v7133_v52  ;;  %7143 = vmatprep.subr.bf16.mxu1 %v7133_v52 }
 0x4d0   : > { %3658 = vst.msk [vmem:[#allocation3 + $0x48] sm:$0xff] %vm3648_vm2, %v3571_v29  ;;  %v3569_v32 = vpop.permute.xlu0 %3568  ;;  %v3901_v29 = vld [vmem:[#allocation2 + $0x171] sm:$0xff] }
 0x4d1   : > { %3657 = vst.msk [vmem:[#allocation3 + $0x40] sm:$0xff] %vm3648_vm2, %v3569_v32  ;;  %3944 = vrot.lane.b32.xlu1 %v3877_v38, %s7195_s25  ;;  %7136 = vmatpush3.bf16.msra.mxu0 %v7133_v52  ;;  %v3900_v32 = vld [vmem:[#allocation2 + $0x169] sm:$0xff] }
 0x4d2   : > { %3942 = vrot.lane.b32.xlu0 %v3876_v0, %s7195_s25  ;;  %7148 = vmatpush3.bf16.msra.mxu1 %v7133_v52  ;;  %v4075_v52 = vld [vmem:[#allocation2 + $0x92] sm:$0xff] }
 0x4d3   : > { %v3575_v5 = vpop.permute.xlu1 %3574  ;;  %7138 = vmatprep.subr.bf16.mxu0 %v7137_v39  ;;  %7144 = vmatprep.subr.bf16.mxu1 %v7137_v39 }
 0x4d4   : > { %3660 = vst.msk [vmem:[#allocation3 + $0x58] sm:$0xff] %vm3648_vm2, %v3575_v5  ;;  %v3573_v23 = vpop.permute.xlu0 %3572  ;;  %v3905_v5 = vld [vmem:[#allocation2 + $0x1a1] sm:$0xff] }
 0x4d5   : > { %3659 = vst.msk [vmem:[#allocation3 + $0x50] sm:$0xff] %vm3648_vm2, %v3573_v23  ;;  %3948 = vrot.lane.b32.xlu1 %v3879_v46, %s7195_s25  ;;  %7140 = vmatpush3.bf16.msra.mxu0 %v7137_v39  ;;  %v3904_v46 = vld [vmem:[#allocation2 + $0x199] sm:$0xff] }
 0x4d6   : > { %3946 = vrot.lane.b32.xlu0 %v3878_v51, %s7195_s25  ;;  %7149 = vmatpush3.bf16.msra.mxu1 %v7137_v39  ;;  %v4086_v39 = vld [vmem:[#allocation2 + $0x112] sm:$0xff] }
 0x4d7   : > { %v3579_v20 = vpop.permute.xlu1 %3578  ;;  %7067 = vmatprep.subr.mxu0 %v4300_v15  ;;  %7145 = vmatprep.subr.mxu1 %v4300_v15 }
 0x4d8   : > { %3662 = vst.msk [vmem:[#allocation3 + $0x68] sm:$0xff] %vm3648_vm2, %v3579_v20  ;;  %v3577_v48 = vpop.permute.xlu0 %3576 }
 0x4d9   : > { %3661 = vst.msk [vmem:[#allocation3 + $0x60] sm:$0xff] %vm3648_vm2, %v3577_v48  ;;  %3952 = vrot.lane.b32.xlu1 %v3881_v22, %s7195_s25  ;;  %7068 = vmatpush3.msra.mxu0 %v4300_v15  ;;  %v4070_v48 = vld [vmem:[#allocation2 + $0x52] sm:$0xff]  ;;  %v4069_v22 = vld [vmem:[#allocation2 + $0x4a] sm:$0xff] }
 0x4da   : > { %3950 = vrot.lane.b32.xlu0 %v3880_v47, %s7195_s25  ;;  %7150 = vmatpush3.msra.mxu1 %v4300_v15  ;;  %v4091_v15 = vld [vmem:[#allocation2 + $0x152] sm:$0xff] }
 0x4db   : > { %v3583_v16 = vpop.permute.xlu1 %3582 }
 0x4dc   : > { %3664 = vst.msk [vmem:[#allocation3 + $0x78] sm:$0xff] %vm3648_vm2, %v3583_v16  ;;  %v3581_v34 = vpop.permute.xlu0 %3580 }
 0x4dd   : > { %3663 = vst.msk [vmem:[#allocation3 + $0x70] sm:$0xff] %vm3648_vm2, %v3581_v34  ;;  %3956 = vrot.lane.b32.xlu1 %v3883_v43, %s7195_s25  ;;  %v4072_v34 = vld [vmem:[#allocation2 + $0x6a] sm:$0xff]  ;;  %v4071_v43 = vld [vmem:[#allocation2 + $0x62] sm:$0xff] }
 0x4de   : > { %3954 = vrot.lane.b32.xlu0 %v3882_v36, %s7195_s25 }
 0x4df   : > { %v3587_v58 = vpop.permute.xlu1 %3586 }
 0x4e0   : > { %3666 = vst.msk [vmem:[#allocation3 + $0x88] sm:$0xff] %vm3648_vm2, %v3587_v58  ;;  %v3585_v30 = vpop.permute.xlu0 %3584 }
 0x4e1   : > { %3665 = vst.msk [vmem:[#allocation3 + $0x80] sm:$0xff] %vm3648_vm2, %v3585_v30  ;;  %3960 = vrot.lane.b32.xlu1 %v3885_v24, %s7195_s25  ;;  %v4074_v30 = vld [vmem:[#allocation2 + $0x82] sm:$0xff]  ;;  %v4073_v24 = vld [vmem:[#allocation2 + $0x7a] sm:$0xff] }
 0x4e2   : > { %3958 = vrot.lane.b32.xlu0 %v3884_v25, %s7195_s25 }
 0x4e3   : > { %v3591_v28 = vpop.permute.xlu1 %3590 }
 0x4e4   : > { %3668 = vst.msk [vmem:[#allocation3 + $0x98] sm:$0xff] %vm3648_vm2, %v3591_v28  ;;  %v3589_v54 = vpop.permute.xlu0 %3588 }
 0x4e5   : > { %3667 = vst.msk [vmem:[#allocation3 + $0x90] sm:$0xff] %vm3648_vm2, %v3589_v54  ;;  %3964 = vrot.lane.b32.xlu1 %v3887_v55, %s7195_s25  ;;  %v4078_v55 = vld [vmem:[#allocation2 + $0xb2] sm:$0xff] }
 0x4e6   : > { %3962 = vrot.lane.b32.xlu0 %v3886_v7, %s7195_s25  ;;  %v4077_v7 = vld [vmem:[#allocation2 + $0xaa] sm:$0xff] }
 0x4e7   : > { %v3595_v8 = vpop.permute.xlu1 %3594 }
 0x4e8   : > { %3670 = vst.msk [vmem:[#allocation3 + $0xa8] sm:$0xff] %vm3648_vm2, %v3595_v8  ;;  %v3593_v44 = vpop.permute.xlu0 %3592 }
 0x4e9   : > { %3669 = vst.msk [vmem:[#allocation3 + $0xa0] sm:$0xff] %vm3648_vm2, %v3593_v44  ;;  %3968 = vrot.lane.b32.xlu1 %v3889_v45, %s7195_s25  ;;  %v4080_v45 = vld [vmem:[#allocation2 + $0xca] sm:$0xff] }
 0x4ea   : > { %3966 = vrot.lane.b32.xlu0 %v3888_v2, %s7195_s25  ;;  %v4079_v2 = vld [vmem:[#allocation2 + $0xc2] sm:$0xff] }
 0x4eb   : > { %v3599_v17 = vpop.permute.xlu1 %3598 }
 0x4ec   : > { %3672 = vst.msk [vmem:[#allocation3 + $0xb8] sm:$0xff] %vm3648_vm2, %v3599_v17  ;;  %v3597_v33 = vpop.permute.xlu0 %3596 }
 0x4ed   : > { %3671 = vst.msk [vmem:[#allocation3 + $0xb0] sm:$0xff] %vm3648_vm2, %v3597_v33  ;;  %3972 = vrot.lane.b32.xlu1 %v3891_v42, %s7195_s25  ;;  %v4082_v42 = vld [vmem:[#allocation2 + $0xe2] sm:$0xff] }
 0x4ee   : > { %3970 = vrot.lane.b32.xlu0 %v3890_v6, %s7195_s25  ;;  %v4081_v6 = vld [vmem:[#allocation2 + $0xda] sm:$0xff] }
 0x4ef   : > { %v3603_v10 = vpop.permute.xlu1 %3602 }
 0x4f0   : > { %3674 = vst.msk [vmem:[#allocation3 + $0xc8] sm:$0xff] %vm3648_vm2, %v3603_v10  ;;  %v3601_v27 = vpop.permute.xlu0 %3600 }
 0x4f1   : > { %3673 = vst.msk [vmem:[#allocation3 + $0xc0] sm:$0xff] %vm3648_vm2, %v3601_v27  ;;  %3976 = vrot.lane.b32.xlu1 %v3893_v53, %s7195_s25  ;;  %v4084_v53 = vld [vmem:[#allocation2 + $0xfa] sm:$0xff] }
 0x4f2   : > { %3974 = vrot.lane.b32.xlu0 %v3892_v18, %s7195_s25 }
 0x4f3   : > { %v3607_v35 = vpop.permute.xlu1 %3606 }
 0x4f4   : > { %3676 = vst.msk [vmem:[#allocation3 + $0xd8] sm:$0xff] %vm3648_vm2, %v3607_v35  ;;  %v3605_v60 = vpop.permute.xlu0 %3604  ;;  %v4085_v35 = vld [vmem:[#allocation2 + $0x10a] sm:$0xff] }
 0x4f5   : > { %3675 = vst.msk [vmem:[#allocation3 + $0xd0] sm:$0xff] %vm3648_vm2, %v3605_v60  ;;  %3980 = vrot.lane.b32.xlu1 %v3895_v50, %s7195_s25 }
 0x4f6   : > { %3978 = vrot.lane.b32.xlu0 %v3894_v62, %s7195_s25  ;;  %v4088_v62 = vld [vmem:[#allocation2 + $0x12a] sm:$0xff] }
 0x4f7   : > { %v3611_v61 = vpop.permute.xlu1 %3610 }
 0x4f8   : > { %3678 = vst.msk [vmem:[#allocation3 + $0xe8] sm:$0xff] %vm3648_vm2, %v3611_v61  ;;  %v3609_v63 = vpop.permute.xlu0 %3608  ;;  %v4087_v61 = vld [vmem:[#allocation2 + $0x122] sm:$0xff] }
 0x4f9   : > { %3677 = vst.msk [vmem:[#allocation3 + $0xe0] sm:$0xff] %vm3648_vm2, %v3609_v63  ;;  %3984 = vrot.lane.b32.xlu1 %v3897_v1, %s7195_s25 }
 0x4fa   : > { %3982 = vrot.lane.b32.xlu0 %v3896_v14, %s7195_s25  ;;  %v4090_v14 = vld [vmem:[#allocation2 + $0x142] sm:$0xff] }
 0x4fb   : > { %v3615_v13 = vpop.permute.xlu1 %3614 }
 0x4fc   : > { %3680 = vst.msk [vmem:[#allocation3 + $0xf8] sm:$0xff] %vm3648_vm2, %v3615_v13  ;;  %v3613_v59 = vpop.permute.xlu0 %3612  ;;  %v4089_v13 = vld [vmem:[#allocation2 + $0x13a] sm:$0xff] }
 0x4fd   : > { %3679 = vst.msk [vmem:[#allocation3 + $0xf0] sm:$0xff] %vm3648_vm2, %v3613_v59  ;;  %3988 = vrot.lane.b32.xlu1 %v3899_v26, %s7195_s25 }
 0x4fe   : > { %3986 = vrot.lane.b32.xlu0 %v3898_v4, %s7195_s25  ;;  %v4092_v4 = vld [vmem:[#allocation2 + $0x15a] sm:$0xff] }
 0x4ff   : > { %v3748_v19 = vpop.permute.xlu1 %3747 }
 0x500   : > { %3843 = vst.msk [vmem:[#allocation3 + $0x8] sm:$0xff] %vm3841_vm3, %v3748_v19  ;;  %v3746_v31 = vpop.permute.xlu0 %3745 }
 0x501   : > { %3842 = vst.msk [vmem:[#allocation3] sm:$0xff] %vm3841_vm3, %v3746_v31  ;;  %3992 = vrot.lane.b32.xlu1 %v3901_v29, %s7195_s25  ;;  %v4094_v29 = vld [vmem:[#allocation2 + $0x172] sm:$0xff] }
 0x502   : > { %3990 = vrot.lane.b32.xlu0 %v3900_v32, %s7195_s25  ;;  %v4093_v32 = vld [vmem:[#allocation2 + $0x16a] sm:$0xff] }
 0x503   : > { %v3752_v38 = vpop.permute.xlu1 %3751 }
 0x504   : > { %3845 = vst.msk [vmem:[#allocation3 + $0x18] sm:$0xff] %vm3841_vm3, %v3752_v38  ;;  %v3750_v0 = vpop.permute.xlu0 %3749 }
 0x505   : > { %3844 = vst.msk [vmem:[#allocation3 + $0x10] sm:$0xff] %vm3841_vm3, %v3750_v0  ;;  %3996 = vrot.lane.b32.xlu1 %v9087_v21, %s7195_s25  ;;  %v4068_v21 = vld [vmem:[#allocation2 + $0x3a] sm:$0xff] }
 0x506   : > { %3994 = vrot.lane.b32.xlu0 %v9092_v3, %s7195_s25  ;;  %v4067_v3 = vld [vmem:[#allocation2 + $0x32] sm:$0xff] }
 0x507   : > { %v3756_v23 = vpop.permute.xlu1 %3755 }
 0x508   : > { %3847 = vst.msk [vmem:[#allocation3 + $0x28] sm:$0xff] %vm3841_vm3, %v3756_v23  ;;  %v3754_v51 = vpop.permute.xlu0 %3753 }
 0x509   : > { %3846 = vst.msk [vmem:[#allocation3 + $0x20] sm:$0xff] %vm3841_vm3, %v3754_v51  ;;  %4000 = vrot.lane.b32.xlu1 %v3905_v5, %s7195_s25  ;;  %v4098_v5 = vld [vmem:[#allocation2 + $0x1a2] sm:$0xff] }
 0x50a   : > { %3998 = vrot.lane.b32.xlu0 %v3904_v46, %s7195_s25  ;;  %v4097_v46 = vld [vmem:[#allocation2 + $0x19a] sm:$0xff] }
 0x50b   : > { %v3760_v49 = vpop.permute.xlu1 %3759 }
 0x50c   : > { %3849 = vst.msk [vmem:[#allocation3 + $0x38] sm:$0xff] %vm3841_vm3, %v3760_v49  ;;  %v3758_v11 = vpop.permute.xlu0 %3757 }
 0x50d   : > { %3848 = vst.msk [vmem:[#allocation3 + $0x30] sm:$0xff] %vm3841_vm3, %v3758_v11  ;;  %4133 = vrot.lane.b32.xlu1 %v4068_v21, %s7196_s11 }
 0x50e   : > { %4131 = vrot.lane.b32.xlu0 %v4067_v3, %s7196_s11 }
 0x50f   : > { %v3764_v12 = vpop.permute.xlu1 %3763 }
 0x510   : > { %3851 = vst.msk [vmem:[#allocation3 + $0x48] sm:$0xff] %vm3841_vm3, %v3764_v12  ;;  %v3762_v20 = vpop.permute.xlu0 %3761 }
 0x511   : > { %3850 = vst.msk [vmem:[#allocation3 + $0x40] sm:$0xff] %vm3841_vm3, %v3762_v20  ;;  %4137 = vrot.lane.b32.xlu1 %v4070_v48, %s7196_s11 }
 0x512   : > { %4135 = vrot.lane.b32.xlu0 %v4069_v22, %s7196_s11 }
 0x513   : > { %v3768_v47 = vpop.permute.xlu1 %3767 }
 0x514   : > { %3853 = vst.msk [vmem:[#allocation3 + $0x58] sm:$0xff] %vm3841_vm3, %v3768_v47  ;;  %v3766_v16 = vpop.permute.xlu0 %3765 }
 0x515   : > { %3852 = vst.msk [vmem:[#allocation3 + $0x50] sm:$0xff] %vm3841_vm3, %v3766_v16  ;;  %4141 = vrot.lane.b32.xlu1 %v4072_v34, %s7196_s11 }
 0x516   : > { %4139 = vrot.lane.b32.xlu0 %v4071_v43, %s7196_s11 }
 0x517   : > { %v3772_v36 = vpop.permute.xlu1 %3771 }
 0x518   : > { %3855 = vst.msk [vmem:[#allocation3 + $0x68] sm:$0xff] %vm3841_vm3, %v3772_v36  ;;  %v3770_v58 = vpop.permute.xlu0 %3769 }
 0x519   : > { %3854 = vst.msk [vmem:[#allocation3 + $0x60] sm:$0xff] %vm3841_vm3, %v3770_v58  ;;  %4145 = vrot.lane.b32.xlu1 %v4074_v30, %s7196_s11 }
 0x51a   : > { %4143 = vrot.lane.b32.xlu0 %v4073_v24, %s7196_s11 }
 0x51b   : > { %v3776_v25 = vpop.permute.xlu1 %3775 }
 0x51c   : > { %3857 = vst.msk [vmem:[#allocation3 + $0x78] sm:$0xff] %vm3841_vm3, %v3776_v25  ;;  %v3774_v41 = vpop.permute.xlu0 %3773 }
 0x51d   : > { %3856 = vst.msk [vmem:[#allocation3 + $0x70] sm:$0xff] %vm3841_vm3, %v3774_v41  ;;  %4149 = vrot.lane.b32.xlu1 %v4076_v40, %s7196_s11 }
 0x51e   : > { %4147 = vrot.lane.b32.xlu0 %v4075_v52, %s7196_s11 }
 0x51f   : > { %v3780_v28 = vpop.permute.xlu1 %3779 }
 0x520   : > { %3859 = vst.msk [vmem:[#allocation3 + $0x88] sm:$0xff] %vm3841_vm3, %v3780_v28  ;;  %v3778_v54 = vpop.permute.xlu0 %3777 }
 0x521   : > { %3858 = vst.msk [vmem:[#allocation3 + $0x80] sm:$0xff] %vm3841_vm3, %v3778_v54  ;;  %4153 = vrot.lane.b32.xlu1 %v4078_v55, %s7196_s11 }
 0x522   : > { %4151 = vrot.lane.b32.xlu0 %v4077_v7, %s7196_s11 }
 0x523   : > { %v3784_v8 = vpop.permute.xlu1 %3783 }
 0x524   : > { %3861 = vst.msk [vmem:[#allocation3 + $0x98] sm:$0xff] %vm3841_vm3, %v3784_v8  ;;  %v3782_v44 = vpop.permute.xlu0 %3781 }
 0x525   : > { %3860 = vst.msk [vmem:[#allocation3 + $0x90] sm:$0xff] %vm3841_vm3, %v3782_v44  ;;  %4157 = vrot.lane.b32.xlu1 %v4080_v45, %s7196_s11 }
 0x526   : > { %4155 = vrot.lane.b32.xlu0 %v4079_v2, %s7196_s11 }
 0x527   : > { %v3788_v17 = vpop.permute.xlu1 %3787 }
 0x528   : > { %3863 = vst.msk [vmem:[#allocation3 + $0xa8] sm:$0xff] %vm3841_vm3, %v3788_v17  ;;  %v3786_v33 = vpop.permute.xlu0 %3785 }
 0x529   : > { %3862 = vst.msk [vmem:[#allocation3 + $0xa0] sm:$0xff] %vm3841_vm3, %v3786_v33  ;;  %4161 = vrot.lane.b32.xlu1 %v4082_v42, %s7196_s11 }
 0x52a   : > { %4159 = vrot.lane.b32.xlu0 %v4081_v6, %s7196_s11 }
 0x52b   : > { %v3792_v10 = vpop.permute.xlu1 %3791 }
 0x52c   : > { %3865 = vst.msk [vmem:[#allocation3 + $0xb8] sm:$0xff] %vm3841_vm3, %v3792_v10  ;;  %v3790_v27 = vpop.permute.xlu0 %3789 }
 0x52d   : > { %3864 = vst.msk [vmem:[#allocation3 + $0xb0] sm:$0xff] %vm3841_vm3, %v3790_v27  ;;  %4165 = vrot.lane.b32.xlu1 %v4084_v53, %s7196_s11 }
 0x52e   : > { %4163 = vrot.lane.b32.xlu0 %v4083_v37, %s7196_s11 }
 0x52f   : > { %v3796_v57 = vpop.permute.xlu1 %3795 }
 0x530   : > { %3867 = vst.msk [vmem:[#allocation3 + $0xc8] sm:$0xff] %vm3841_vm3, %v3796_v57  ;;  %v3794_v18 = vpop.permute.xlu0 %3793 }
 0x531   : > { %3866 = vst.msk [vmem:[#allocation3 + $0xc0] sm:$0xff] %vm3841_vm3, %v3794_v18  ;;  %4169 = vrot.lane.b32.xlu1 %v4086_v39, %s7196_s11 }
 0x532   : > { %4167 = vrot.lane.b32.xlu0 %v4085_v35, %s7196_s11 }
 0x533   : > { %v3800_v60 = vpop.permute.xlu1 %3799 }
 0x534   : > { %3869 = vst.msk [vmem:[#allocation3 + $0xd8] sm:$0xff] %vm3841_vm3, %v3800_v60  ;;  %v3798_v50 = vpop.permute.xlu0 %3797 }
 0x535   : > { %3868 = vst.msk [vmem:[#allocation3 + $0xd0] sm:$0xff] %vm3841_vm3, %v3798_v50  ;;  %4173 = vrot.lane.b32.xlu1 %v4088_v62, %s7196_s11 }
 0x536   : > { %4171 = vrot.lane.b32.xlu0 %v4087_v61, %s7196_s11 }
 0x537   : > { %v3804_v63 = vpop.permute.xlu1 %3803 }
 0x538   : > { %3871 = vst.msk [vmem:[#allocation3 + $0xe8] sm:$0xff] %vm3841_vm3, %v3804_v63  ;;  %v3802_v1 = vpop.permute.xlu0 %3801 }
 0x539   : > { %3870 = vst.msk [vmem:[#allocation3 + $0xe0] sm:$0xff] %vm3841_vm3, %v3802_v1  ;;  %4177 = vrot.lane.b32.xlu1 %v4090_v14, %s7196_s11 }
 0x53a   : > { %4175 = vrot.lane.b32.xlu0 %v4089_v13, %s7196_s11 }
 0x53b   : > { %v3808_v59 = vpop.permute.xlu1 %3807 }
 0x53c   : > { %3873 = vst.msk [vmem:[#allocation3 + $0xf8] sm:$0xff] %vm3841_vm3, %v3808_v59  ;;  %v3806_v26 = vpop.permute.xlu0 %3805 }
 0x53d   : > { %3872 = vst.msk [vmem:[#allocation3 + $0xf0] sm:$0xff] %vm3841_vm3, %v3806_v26  ;;  %4181 = vrot.lane.b32.xlu1 %v4092_v4, %s7196_s11 }
 0x53e   : > { %4179 = vrot.lane.b32.xlu0 %v4091_v15, %s7196_s11 }
 0x53f   : > { %v3941_v19 = vpop.permute.xlu1 %3940 }
 0x540   : > { %4036 = vst.msk [vmem:[#allocation3 + $0x8] sm:$0xff] %vm4034_vm4, %v3941_v19  ;;  %v3939_v31 = vpop.permute.xlu0 %3938 }
 0x541   : > { %4035 = vst.msk [vmem:[#allocation3] sm:$0xff] %vm4034_vm4, %v3939_v31  ;;  %4185 = vrot.lane.b32.xlu1 %v4094_v29, %s7196_s11 }
 0x542   : > { %4183 = vrot.lane.b32.xlu0 %v4093_v32, %s7196_s11 }
 0x543   : > { %v3945_v38 = vpop.permute.xlu1 %3944 }
 0x544   : > { %4038 = vst.msk [vmem:[#allocation3 + $0x18] sm:$0xff] %vm4034_vm4, %v3945_v38  ;;  %v3943_v0 = vpop.permute.xlu0 %3942 }
 0x545   : > { %4037 = vst.msk [vmem:[#allocation3 + $0x10] sm:$0xff] %vm4034_vm4, %v3943_v0  ;;  %4189 = vrot.lane.b32.xlu1 %v9187_v9, %s7196_s11 }
 0x546   : > { %4187 = vrot.lane.b32.xlu0 %v9192_v56, %s7196_s11 }
 0x547   : > { %v3949_v23 = vpop.permute.xlu1 %3948 }
 0x548   : > { %4040 = vst.msk [vmem:[#allocation3 + $0x28] sm:$0xff] %vm4034_vm4, %v3949_v23  ;;  %v3947_v51 = vpop.permute.xlu0 %3946 }
 0x549   : > { %4039 = vst.msk [vmem:[#allocation3 + $0x20] sm:$0xff] %vm4034_vm4, %v3947_v51  ;;  %4193 = vrot.lane.b32.xlu1 %v4098_v5, %s7196_s11 }
 0x54a   : > { %4191 = vrot.lane.b32.xlu0 %v4097_v46, %s7196_s11 }
 0x54b   : > { %v3953_v49 = vpop.permute.xlu1 %3952 }
 0x54c   : > { %4042 = vst.msk [vmem:[#allocation3 + $0x38] sm:$0xff] %vm4034_vm4, %v3953_v49  ;;  %v3951_v11 = vpop.permute.xlu0 %3950 }
 0x54d   : > { %4041 = vst.msk [vmem:[#allocation3 + $0x30] sm:$0xff] %vm4034_vm4, %v3951_v11 }
 0x54f   : > { %v3957_v9 = vpop.permute.xlu1 %3956 }
 0x550   : > { %4044 = vst.msk [vmem:[#allocation3 + $0x48] sm:$0xff] %vm4034_vm4, %v3957_v9  ;;  %v3955_v56 = vpop.permute.xlu0 %3954 }
 0x551   : > { %4043 = vst.msk [vmem:[#allocation3 + $0x40] sm:$0xff] %vm4034_vm4, %v3955_v56 }
 0x553   : > { %v3961_v21 = vpop.permute.xlu1 %3960 }
 0x554   : > { %4046 = vst.msk [vmem:[#allocation3 + $0x58] sm:$0xff] %vm4034_vm4, %v3961_v21  ;;  %v3959_v3 = vpop.permute.xlu0 %3958 }
 0x555   : > { %4045 = vst.msk [vmem:[#allocation3 + $0x50] sm:$0xff] %vm4034_vm4, %v3959_v3 }
 0x557   : > { %v3965_v12 = vpop.permute.xlu1 %3964 }
 0x558   : > { %4048 = vst.msk [vmem:[#allocation3 + $0x68] sm:$0xff] %vm4034_vm4, %v3965_v12  ;;  %v3963_v20 = vpop.permute.xlu0 %3962 }
 0x559   : > { %4047 = vst.msk [vmem:[#allocation3 + $0x60] sm:$0xff] %vm4034_vm4, %v3963_v20 }
 0x55b   : > { %v3969_v48 = vpop.permute.xlu1 %3968 }
 0x55c   : > { %4050 = vst.msk [vmem:[#allocation3 + $0x78] sm:$0xff] %vm4034_vm4, %v3969_v48  ;;  %v3967_v22 = vpop.permute.xlu0 %3966 }
 0x55d   : > { %4049 = vst.msk [vmem:[#allocation3 + $0x70] sm:$0xff] %vm4034_vm4, %v3967_v22 }
 0x55f   : > { %v3973_v47 = vpop.permute.xlu1 %3972 }
 0x560   : > { %4052 = vst.msk [vmem:[#allocation3 + $0x88] sm:$0xff] %vm4034_vm4, %v3973_v47  ;;  %v3971_v16 = vpop.permute.xlu0 %3970 }
 0x561   : > { %4051 = vst.msk [vmem:[#allocation3 + $0x80] sm:$0xff] %vm4034_vm4, %v3971_v16 }
 0x563   : > { %v3977_v34 = vpop.permute.xlu1 %3976 }
 0x564   : > { %4054 = vst.msk [vmem:[#allocation3 + $0x98] sm:$0xff] %vm4034_vm4, %v3977_v34  ;;  %v3975_v43 = vpop.permute.xlu0 %3974 }
 0x565   : > { %4053 = vst.msk [vmem:[#allocation3 + $0x90] sm:$0xff] %vm4034_vm4, %v3975_v43 }
 0x567   : > { %v3981_v36 = vpop.permute.xlu1 %3980 }
 0x568   : > { %4056 = vst.msk [vmem:[#allocation3 + $0xa8] sm:$0xff] %vm4034_vm4, %v3981_v36  ;;  %v3979_v58 = vpop.permute.xlu0 %3978 }
 0x569   : > { %4055 = vst.msk [vmem:[#allocation3 + $0xa0] sm:$0xff] %vm4034_vm4, %v3979_v58 }
 0x56b   : > { %v3985_v30 = vpop.permute.xlu1 %3984 }
 0x56c   : > { %4058 = vst.msk [vmem:[#allocation3 + $0xb8] sm:$0xff] %vm4034_vm4, %v3985_v30  ;;  %v3983_v24 = vpop.permute.xlu0 %3982 }
 0x56d   : > { %4057 = vst.msk [vmem:[#allocation3 + $0xb0] sm:$0xff] %vm4034_vm4, %v3983_v24 }
 0x56f   : > { %v3989_v25 = vpop.permute.xlu1 %3988 }
 0x570   : > { %4060 = vst.msk [vmem:[#allocation3 + $0xc8] sm:$0xff] %vm4034_vm4, %v3989_v25  ;;  %v3987_v41 = vpop.permute.xlu0 %3986 }
 0x571   : > { %4059 = vst.msk [vmem:[#allocation3 + $0xc0] sm:$0xff] %vm4034_vm4, %v3987_v41 }
 0x573   : > { %v3993_v40 = vpop.permute.xlu1 %3992 }
 0x574   : > { %4062 = vst.msk [vmem:[#allocation3 + $0xd8] sm:$0xff] %vm4034_vm4, %v3993_v40  ;;  %v3991_v52 = vpop.permute.xlu0 %3990 }
 0x575   : > { %4061 = vst.msk [vmem:[#allocation3 + $0xd0] sm:$0xff] %vm4034_vm4, %v3991_v52 }
 0x577   : > { %v3997_v28 = vpop.permute.xlu1 %3996 }
 0x578   : > { %4064 = vst.msk [vmem:[#allocation3 + $0xe8] sm:$0xff] %vm4034_vm4, %v3997_v28  ;;  %v3995_v54 = vpop.permute.xlu0 %3994 }
 0x579   : > { %4063 = vst.msk [vmem:[#allocation3 + $0xe0] sm:$0xff] %vm4034_vm4, %v3995_v54 }
 0x57b   : > { %v4001_v55 = vpop.permute.xlu1 %4000 }
 0x57c   : > { %4066 = vst.msk [vmem:[#allocation3 + $0xf8] sm:$0xff] %vm4034_vm4, %v4001_v55  ;;  %v3999_v7 = vpop.permute.xlu0 %3998 }
 0x57d   : > { %4065 = vst.msk [vmem:[#allocation3 + $0xf0] sm:$0xff] %vm4034_vm4, %v3999_v7 }
 0x57f   : > { %v4134_v8 = vpop.permute.xlu1 %4133 }
 0x580   : > { %4229 = vst.msk [vmem:[#allocation3 + $0x8] sm:$0xff] %vm4227_vm5, %v4134_v8  ;;  %v4132_v44 = vpop.permute.xlu0 %4131  ;;  %v4830_v8 = vld [vmem:[#allocation2 + $0x9] sm:$0xff] }
 0x581   : > { %4228 = vst.msk [vmem:[#allocation3] sm:$0xff] %vm4227_vm5, %v4132_v44  ;;  %4895 = vrot.lane.b32.xlu1 %v4830_v8, %s7186_s14  ;;  %v4829_v44 = vld [vmem:[#allocation2 + $0x1] sm:$0xff] }
 0x582   : > { %4893 = vrot.lane.b32.xlu0 %v4829_v44, %s7186_s14 }
 0x583   : > { %v4138_v45 = vpop.permute.xlu1 %4137 }
 0x584   : > { %4231 = vst.msk [vmem:[#allocation3 + $0x18] sm:$0xff] %vm4227_vm5, %v4138_v45  ;;  %v4136_v2 = vpop.permute.xlu0 %4135  ;;  %v4766_v45 = vld [vmem:[#allocation2 + $0x8] sm:$0xff] }
 0x585   : > { %4230 = vst.msk [vmem:[#allocation3 + $0x10] sm:$0xff] %vm4227_vm5, %v4136_v2  ;;  %v4765_v2 = vld [vmem:[#allocation2] sm:$0xff] }
 0x587   : > { %v4142_v17 = vpop.permute.xlu1 %4141  ;;  %v4261_v6 = vld [vmem:[#allocation3 + $0x8] sm:$0xff] }
 0x588   : > { %4233 = vst.msk [vmem:[#allocation3 + $0x28] sm:$0xff] %vm4227_vm5, %v4142_v17  ;;  %v4140_v33 = vpop.permute.xlu0 %4139  ;;  %v4260_v42 = vld [vmem:[#allocation3] sm:$0xff]  ;;  %v9546_v17 = vld [vmem:[%s10852_s5] ss:$0 sm:$0xff] }
 0x589   : > { %4232 = vst.msk [vmem:[#allocation3 + $0x20] sm:$0xff] %vm4227_vm5, %v4140_v33  ;;  %7069 = vmatprep.mubr.msk.f32.mxu0 %vm4301_vm6, %v4260_v42 }
 0x58a   : > { %7070 = vmatmul.mubr.msk.f32.vlgmr.msra.gmra.mrb[32].mxu0 %vm4301_vm6, %v4261_v6  ;;  %4798 = vst.msk [vmem:[#allocation3 + $0x8] sm:$0xff] %vm416_vm0, %v4766_v45  ;;  %4797 = vst.msk [vmem:[#allocation3] sm:$0xff] %vm416_vm0, %v4765_v2  ;;  %v9551_v6 = vld [vmem:[%s10853_s6] ss:$0 sm:$0xff] }
 0x58b   : > { %v4146_v10 = vpop.permute.xlu1 %4145  ;;  %v4263_v37 = vld [vmem:[#allocation3 + $0x18] sm:$0xff] }
 0x58c   : > { %4235 = vst.msk [vmem:[#allocation3 + $0x38] sm:$0xff] %vm4227_vm5, %v4146_v10  ;;  %v4144_v27 = vpop.permute.xlu0 %4143  ;;  %v4262_v53 = vld [vmem:[#allocation3 + $0x10] sm:$0xff] }
 0x58d   : > { %4234 = vst.msk [vmem:[#allocation3 + $0x30] sm:$0xff] %vm4227_vm5, %v4144_v27  ;;  %7072 = vmatprep.mubr.msk.f32.mxu1 %vm4301_vm6, %v4262_v53 }
 0x58e   : > { %7073 = vmatmul.mubr.msk.f32.vlgmr.msra.gmra.mrb[0].mxu1 %vm4301_vm6, %v4263_v37 }
 0x58f   : > { %v4150_v57 = vpop.permute.xlu1 %4149  ;;  %v4265_v35 = vld [vmem:[#allocation3 + $0x28] sm:$0xff] }
 0x590   : > { %4237 = vst.msk [vmem:[#allocation3 + $0x48] sm:$0xff] %vm4227_vm5, %v4150_v57  ;;  %v4148_v18 = vpop.permute.xlu0 %4147  ;;  %v4264_v39 = vld [vmem:[#allocation3 + $0x20] sm:$0xff] }
 0x591   : > { %4236 = vst.msk [vmem:[#allocation3 + $0x40] sm:$0xff] %vm4227_vm5, %v4148_v18  ;;  %7075 = vmatprep.mubr.msk.f32.mxu1 %vm4301_vm6, %v4264_v39 }
 0x592   : > { %7076 = vmatmul.mubr.msk.f32.gmra.mrb[2].mxu1 %vm4301_vm6, %v4265_v35 }
 0x593   : > { %v4154_v60 = vpop.permute.xlu1 %4153  ;;  %v4267_v61 = vld [vmem:[#allocation3 + $0x38] sm:$0xff] }
 0x594   : > { %4239 = vst.msk [vmem:[#allocation3 + $0x58] sm:$0xff] %vm4227_vm5, %v4154_v60  ;;  %v4152_v50 = vpop.permute.xlu0 %4151  ;;  %v4266_v62 = vld [vmem:[#allocation3 + $0x30] sm:$0xff] }
 0x595   : > { %4238 = vst.msk [vmem:[#allocation3 + $0x50] sm:$0xff] %vm4227_vm5, %v4152_v50  ;;  %7078 = vmatprep.mubr.msk.f32.mxu1 %vm4301_vm6, %v4266_v62 }
 0x596   : > { %7079 = vmatmul.mubr.msk.f32.gmra.mrb[4].mxu1 %vm4301_vm6, %v4267_v61 }
 0x597   : > { %v4158_v63 = vpop.permute.xlu1 %4157  ;;  %v4269_v13 = vld [vmem:[#allocation3 + $0x48] sm:$0xff] }
 0x598   : > { %4241 = vst.msk [vmem:[#allocation3 + $0x68] sm:$0xff] %vm4227_vm5, %v4158_v63  ;;  %v4156_v1 = vpop.permute.xlu0 %4155  ;;  %v4268_v14 = vld [vmem:[#allocation3 + $0x40] sm:$0xff] }
 0x599   : > { %4240 = vst.msk [vmem:[#allocation3 + $0x60] sm:$0xff] %vm4227_vm5, %v4156_v1  ;;  %7081 = vmatprep.mubr.msk.f32.mxu1 %vm4301_vm6, %v4268_v14 }
 0x59a   : > { %7082 = vmatmul.mubr.msk.f32.gmra.mrb[6].mxu1 %vm4301_vm6, %v4269_v13 }
 0x59b   : > { %v4162_v59 = vpop.permute.xlu1 %4161  ;;  %v4271_v15 = vld [vmem:[#allocation3 + $0x58] sm:$0xff] }
 0x59c   : > { %4243 = vst.msk [vmem:[#allocation3 + $0x78] sm:$0xff] %vm4227_vm5, %v4162_v59  ;;  %v4160_v26 = vpop.permute.xlu0 %4159  ;;  %v4270_v4 = vld [vmem:[#allocation3 + $0x50] sm:$0xff] }
 0x59d   : > { %4242 = vst.msk [vmem:[#allocation3 + $0x70] sm:$0xff] %vm4227_vm5, %v4160_v26  ;;  %7084 = vmatprep.mubr.msk.f32.mxu1 %vm4301_vm6, %v4270_v4 }
 0x59e   : > { %7085 = vmatmul.mubr.msk.f32.gmra.mrb[8].mxu1 %vm4301_vm6, %v4271_v15 }
 0x59f   : > { %v4166_v19 = vpop.permute.xlu1 %4165  ;;  %v4273_v32 = vld [vmem:[#allocation3 + $0x68] sm:$0xff] }
 0x5a0   : > { %4245 = vst.msk [vmem:[#allocation3 + $0x88] sm:$0xff] %vm4227_vm5, %v4166_v19  ;;  %v4164_v31 = vpop.permute.xlu0 %4163  ;;  %v4272_v29 = vld [vmem:[#allocation3 + $0x60] sm:$0xff] }
 0x5a1   : > { %4244 = vst.msk [vmem:[#allocation3 + $0x80] sm:$0xff] %vm4227_vm5, %v4164_v31  ;;  %7087 = vmatprep.mubr.msk.f32.mxu1 %vm4301_vm6, %v4272_v29 }
 0x5a2   : > { %7088 = vmatmul.mubr.msk.f32.gmra.mrb[10].mxu1 %vm4301_vm6, %v4273_v32 }
 0x5a3   : > { %v4170_v38 = vpop.permute.xlu1 %4169  ;;  %v4275_v23 = vld [vmem:[#allocation3 + $0x78] sm:$0xff] }
 0x5a4   : > { %4247 = vst.msk [vmem:[#allocation3 + $0x98] sm:$0xff] %vm4227_vm5, %v4170_v38  ;;  %v4168_v0 = vpop.permute.xlu0 %4167  ;;  %v4274_v5 = vld [vmem:[#allocation3 + $0x70] sm:$0xff] }
 0x5a5   : > { %4246 = vst.msk [vmem:[#allocation3 + $0x90] sm:$0xff] %vm4227_vm5, %v4168_v0  ;;  %7090 = vmatprep.mubr.msk.f32.mxu1 %vm4301_vm6, %v4274_v5 }
 0x5a6   : > { %7091 = vmatmul.mubr.msk.f32.gmra.mrb[12].mxu1 %vm4301_vm6, %v4275_v23 }
 0x5a7   : > { %v4174_v46 = vpop.permute.xlu1 %4173  ;;  %v4277_v11 = vld [vmem:[#allocation3 + $0x88] sm:$0xff] }
 0x5a8   : > { %4249 = vst.msk [vmem:[#allocation3 + $0xa8] sm:$0xff] %vm4227_vm5, %v4174_v46  ;;  %v4172_v51 = vpop.permute.xlu0 %4171  ;;  %v4276_v49 = vld [vmem:[#allocation3 + $0x80] sm:$0xff] }
 0x5a9   : > { %4248 = vst.msk [vmem:[#allocation3 + $0xa0] sm:$0xff] %vm4227_vm5, %v4172_v51  ;;  %7093 = vmatprep.mubr.msk.f32.mxu1 %vm4301_vm6, %v4276_v49 }
 0x5aa   : > { %7094 = vmatmul.mubr.msk.f32.gmra.mrb[14].mxu1 %vm4301_vm6, %v4277_v11 }
 0x5ab   : > { %v4178_v9 = vpop.permute.xlu1 %4177  ;;  %v4279_v3 = vld [vmem:[#allocation3 + $0x98] sm:$0xff] }
 0x5ac   : > { %4251 = vst.msk [vmem:[#allocation3 + $0xb8] sm:$0xff] %vm4227_vm5, %v4178_v9  ;;  %v4176_v56 = vpop.permute.xlu0 %4175  ;;  %v4278_v21 = vld [vmem:[#allocation3 + $0x90] sm:$0xff] }
 0x5ad   : > { %4250 = vst.msk [vmem:[#allocation3 + $0xb0] sm:$0xff] %vm4227_vm5, %v4176_v56  ;;  %7096 = vmatprep.mubr.msk.f32.mxu1 %vm4301_vm6, %v4278_v21 }
 0x5ae   : > { %7097 = vmatmul.mubr.msk.f32.gmra.mrb[16].mxu1 %vm4301_vm6, %v4279_v3 }
 0x5af   : > { %v4182_v12 = vpop.permute.xlu1 %4181  ;;  %v4281_v22 = vld [vmem:[#allocation3 + $0xa8] sm:$0xff] }
 0x5b0   : > { %4253 = vst.msk [vmem:[#allocation3 + $0xc8] sm:$0xff] %vm4227_vm5, %v4182_v12  ;;  %v4180_v20 = vpop.permute.xlu0 %4179  ;;  %v4280_v48 = vld [vmem:[#allocation3 + $0xa0] sm:$0xff] }
 0x5b1   : > { %4252 = vst.msk [vmem:[#allocation3 + $0xc0] sm:$0xff] %vm4227_vm5, %v4180_v20  ;;  %7099 = vmatprep.mubr.msk.f32.mxu1 %vm4301_vm6, %v4280_v48 }
 0x5b2   : > { %7100 = vmatmul.mubr.msk.f32.gmra.mrb[18].mxu1 %vm4301_vm6, %v4281_v22 }
 0x5b3   : > { %v4186_v47 = vpop.permute.xlu1 %4185  ;;  %v4283_v43 = vld [vmem:[#allocation3 + $0xb8] sm:$0xff] }
 0x5b4   : > { %4255 = vst.msk [vmem:[#allocation3 + $0xd8] sm:$0xff] %vm4227_vm5, %v4186_v47  ;;  %v4184_v16 = vpop.permute.xlu0 %4183  ;;  %v4282_v34 = vld [vmem:[#allocation3 + $0xb0] sm:$0xff] }
 0x5b5   : > { %4254 = vst.msk [vmem:[#allocation3 + $0xd0] sm:$0xff] %vm4227_vm5, %v4184_v16  ;;  %7102 = vmatprep.mubr.msk.f32.mxu1 %vm4301_vm6, %v4282_v34 }
 0x5b6   : > { %7103 = vmatmul.mubr.msk.f32.gmra.mrb[20].mxu1 %vm4301_vm6, %v4283_v43 }
 0x5b7   : > { %v4190_v36 = vpop.permute.xlu1 %4189  ;;  %v4285_v24 = vld [vmem:[#allocation3 + $0xc8] sm:$0xff] }
 0x5b8   : > { %4257 = vst.msk [vmem:[#allocation3 + $0xe8] sm:$0xff] %vm4227_vm5, %v4190_v36  ;;  %v4188_v58 = vpop.permute.xlu0 %4187  ;;  %v4284_v30 = vld [vmem:[#allocation3 + $0xc0] sm:$0xff] }
 0x5b9   : > { %4256 = vst.msk [vmem:[#allocation3 + $0xe0] sm:$0xff] %vm4227_vm5, %v4188_v58  ;;  %7105 = vmatprep.mubr.msk.f32.mxu1 %vm4301_vm6, %v4284_v30 }
 0x5ba   : > { %7106 = vmatmul.mubr.msk.f32.gmra.mrb[22].mxu1 %vm4301_vm6, %v4285_v24 }
 0x5bb   : > { %v4194_v25 = vpop.permute.xlu1 %4193  ;;  %v4287_v52 = vld [vmem:[#allocation3 + $0xd8] sm:$0xff] }
 0x5bc   : > { %v4286_v41 = vld [vmem:[#allocation3 + $0xd0] sm:$0xff]  ;;  %v4192_v40 = vpop.permute.xlu0 %4191  ;;  %4259 = vst.msk [vmem:[#allocation3 + $0xf8] sm:$0xff] %vm4227_vm5, %v4194_v25 }
 0x5bd   : > { %7108 = vmatprep.mubr.msk.f32.mxu1 %vm4301_vm6, %v4286_v41  ;;  %4258 = vst.msk [vmem:[#allocation3 + $0xf0] sm:$0xff] %vm4227_vm5, %v4192_v40 }
 0x5be   : > { %7109 = vmatmul.mubr.msk.f32.gmra.mrb[24].mxu1 %vm4301_vm6, %v4287_v52 }
 0x5bf   : > { %v4289_v54 = vld [vmem:[#allocation3 + $0xe8] sm:$0xff] }
 0x5c0   : > { %v4288_v28 = vld [vmem:[#allocation3 + $0xe0] sm:$0xff] }
 0x5c1   : > { %7111 = vmatprep.mubr.msk.f32.mxu1 %vm4301_vm6, %v4288_v28 }
 0x5c2   : > { %7112 = vmatmul.mubr.msk.f32.gmra.mrb[26].mxu1 %vm4301_vm6, %v4289_v54 }
 0x5c3   : > { %v4291_v55 = vld [vmem:[#allocation3 + $0xf8] sm:$0xff] }
 0x5c4   : > { %v4290_v7 = vld [vmem:[#allocation3 + $0xf0] sm:$0xff] }
 0x5c5   : > { %7114 = vmatprep.mubr.msk.f32.mxu1 %vm4301_vm6, %v4290_v7 }
 0x5c6   : > { %7115 = vmatmul.mubr.msk.f32.gmra.mrb[28].mxu1 %vm4301_vm6, %v4291_v55 }
 0x5f3   : > { %v4896_v33 = vpop.permute.xlu1 %4895 }
 0x5f4   : > { %4990 = vst.msk [vmem:[#allocation3 + $0x8] sm:$0xff] %vm2876_vm13, %v4896_v33  ;;  %v4894_v10 = vpop.permute.xlu0 %4893 }
 0x5f5   : > { %4989 = vst.msk [vmem:[#allocation3] sm:$0xff] %vm2876_vm13, %v4894_v10 }
 0x65d   : > { %v7071_v42 = vpop.f32.mrb[32].mxu0 }
 0x65e   : > { %v4631_v27 = vmul.f32 %v7071_v42, %v9546_v17  ;;  %v4464_v53 = vpop.f32.mrb[33].mxu0 }
 0x65f   : > { %v4630_v37 = vmul.f32 %v9546_v17, %v4464_v53 }
 0x660   : > { %v4670_v57 = vadd.f32 %v9551_v6, %v4631_v27 }
 0x661   : > { %v4669_v18 = vadd.f32 %v9551_v6, %v4630_v37  ;;  %v7074_v39 = vpop.f32.mrb[0].mxu1 }
 0x662   : > { %v4702_v35 = vmax.f32 %v4670_v57, 0.0  ;;  %v4633_v60 = vmul.f32 %v7074_v39, %v9546_v17  ;;  %v4474_v50 = vpop.f32.mrb[1].mxu1 }
 0x663   : > { %v4701_v62 = vmax.f32 %v4669_v18, 0.0  ;;  %v4632_v61 = vmul.f32 %v9546_v17, %v4474_v50 }
 0x664   : > { %4734 = vst.msk [vmem:[#allocation2 + $0x21] sm:$0xff] %vm416_vm0, %v4702_v35  ;;  %v4672_v63 = vadd.f32 %v9551_v6, %v4633_v60 }
 0x665   : > { %4733 = vst.msk [vmem:[#allocation2 + $0x19] sm:$0xff] %vm416_vm0, %v4701_v62  ;;  %v4671_v1 = vadd.f32 %v9551_v6, %v4632_v61  ;;  %v7077_v14 = vpop.f32.mrb[2].mxu1 }
 0x666   : > { %v4704_v13 = vmax.f32 %v4672_v63, 0.0  ;;  %v4635_v59 = vmul.f32 %v7077_v14, %v9546_v17  ;;  %v4484_v26 = vpop.f32.mrb[3].mxu1 }
 0x667   : > { %v4703_v4 = vmax.f32 %v4671_v1, 0.0  ;;  %v4634_v15 = vmul.f32 %v9546_v17, %v4484_v26 }
 0x668   : > { %4736 = vst.msk [vmem:[#allocation2 + $0x39] sm:$0xff] %vm416_vm0, %v4704_v13  ;;  %v4674_v19 = vadd.f32 %v9551_v6, %v4635_v59 }
 0x669   : > { %4735 = vst.msk [vmem:[#allocation2 + $0x31] sm:$0xff] %vm416_vm0, %v4703_v4  ;;  %v4673_v31 = vadd.f32 %v9551_v6, %v4634_v15  ;;  %v7080_v29 = vpop.f32.mrb[4].mxu1 }
 0x66a   : > { %v4706_v32 = vmax.f32 %v4674_v19, 0.0  ;;  %v4637_v38 = vmul.f32 %v7080_v29, %v9546_v17  ;;  %v4494_v0 = vpop.f32.mrb[5].mxu1 }
 0x66b   : > { %v4705_v5 = vmax.f32 %v4673_v31, 0.0  ;;  %v4636_v23 = vmul.f32 %v9546_v17, %v4494_v0  ;;  %v9573_v46 = vld [vmem:[#allocation2 + $0x21] sm:$0xff] }
 0x66c   : > { %4738 = vst.msk [vmem:[#allocation2 + $0x51] sm:$0xff] %vm416_vm0, %v4706_v32  ;;  %v4676_v51 = vadd.f32 %v9551_v6, %v4637_v38  ;;  %4899 = vrot.lane.b32.xlu1 %v9573_v46, %s7186_s14  ;;  %v9579_v49 = vld [vmem:[#allocation2 + $0x19] sm:$0xff] }
 0x66d   : > { %v9581_v11 = vld [vmem:[#allocation2 + $0x20] sm:$0xff]  ;;  %4737 = vst.msk [vmem:[#allocation2 + $0x49] sm:$0xff] %vm416_vm0, %v4705_v5  ;;  %v4675_v9 = vadd.f32 %v9551_v6, %v4636_v23  ;;  %4897 = vrot.lane.b32.xlu0 %v9579_v49, %s7186_s14  ;;  %v7083_v56 = vpop.f32.mrb[6].mxu1  ;;  %v9589_v21 = vld [vmem:[#allocation2 + $0x18] sm:$0xff] }
 0x66e   : > { %4800 = vst.msk [vmem:[#allocation3 + $0x18] sm:$0xff] %vm416_vm0, %v9581_v11  ;;  %v4708_v3 = vmax.f32 %v4676_v51, 0.0  ;;  %v4639_v12 = vmul.f32 %v7083_v56, %v9546_v17  ;;  %v4504_v20 = vpop.f32.mrb[7].mxu1  ;;  %4799 = vst.msk [vmem:[#allocation3 + $0x10] sm:$0xff] %vm416_vm0, %v9589_v21 }
 0x66f   : > { %v4707_v48 = vmax.f32 %v4675_v9, 0.0  ;;  %v4638_v22 = vmul.f32 %v9546_v17, %v4504_v20  ;;  %v9595_v47 = vld [vmem:[#allocation2 + $0x39] sm:$0xff] }
 0x670   : > { %4740 = vst.msk [vmem:[#allocation2 + $0x69] sm:$0xff] %vm416_vm0, %v4708_v3  ;;  %v4678_v16 = vadd.f32 %v9551_v6, %v4639_v12  ;;  %4903 = vrot.lane.b32.xlu1 %v9595_v47, %s7186_s14  ;;  %v9601_v34 = vld [vmem:[#allocation2 + $0x31] sm:$0xff] }
 0x671   : > { %v9603_v43 = vld [vmem:[#allocation2 + $0x38] sm:$0xff]  ;;  %4739 = vst.msk [vmem:[#allocation2 + $0x61] sm:$0xff] %vm416_vm0, %v4707_v48  ;;  %v4677_v36 = vadd.f32 %v9551_v6, %v4638_v22  ;;  %4901 = vrot.lane.b32.xlu0 %v9601_v34, %s7186_s14  ;;  %v7086_v58 = vpop.f32.mrb[8].mxu1  ;;  %v9611_v30 = vld [vmem:[#allocation2 + $0x30] sm:$0xff] }
 0x672   : > { %4802 = vst.msk [vmem:[#allocation3 + $0x28] sm:$0xff] %vm416_vm0, %v9603_v43  ;;  %v4710_v24 = vmax.f32 %v4678_v16, 0.0  ;;  %v4641_v25 = vmul.f32 %v7086_v58, %v9546_v17  ;;  %v4514_v41 = vpop.f32.mrb[9].mxu1  ;;  %4801 = vst.msk [vmem:[#allocation3 + $0x20] sm:$0xff] %vm416_vm0, %v9611_v30 }
 0x673   : > { %v4709_v40 = vmax.f32 %v4677_v36, 0.0  ;;  %v4640_v52 = vmul.f32 %v9546_v17, %v4514_v41  ;;  %v9617_v28 = vld [vmem:[#allocation2 + $0x51] sm:$0xff] }
 0x674   : > { %4742 = vst.msk [vmem:[#allocation2 + $0x81] sm:$0xff] %vm416_vm0, %v4710_v24  ;;  %v4680_v54 = vadd.f32 %v9551_v6, %v4641_v25  ;;  %4907 = vrot.lane.b32.xlu1 %v9617_v28, %s7186_s14  ;;  %v9623_v55 = vld [vmem:[#allocation2 + $0x49] sm:$0xff] }
 0x675   : > { %v9625_v7 = vld [vmem:[#allocation2 + $0x50] sm:$0xff]  ;;  %4741 = vst.msk [vmem:[#allocation2 + $0x79] sm:$0xff] %vm416_vm0, %v4709_v40  ;;  %v4679_v8 = vadd.f32 %v9551_v6, %v4640_v52  ;;  %4905 = vrot.lane.b32.xlu0 %v9623_v55, %s7186_s14  ;;  %v7089_v44 = vpop.f32.mrb[10].mxu1  ;;  %v9633_v45 = vld [vmem:[#allocation2 + $0x48] sm:$0xff] }
 0x676   : > { %4804 = vst.msk [vmem:[#allocation3 + $0x38] sm:$0xff] %vm416_vm0, %v9625_v7  ;;  %v4712_v2 = vmax.f32 %v4680_v54, 0.0  ;;  %v4643_v33 = vmul.f32 %v7089_v44, %v9546_v17  ;;  %v4524_v42 = vpop.f32.mrb[11].mxu1  ;;  %4803 = vst.msk [vmem:[#allocation3 + $0x30] sm:$0xff] %vm416_vm0, %v9633_v45 }
 0x677   : > { %v4711_v10 = vmax.f32 %v4679_v8, 0.0  ;;  %v4642_v27 = vmul.f32 %v9546_v17, %v4524_v42  ;;  %v9639_v53 = vld [vmem:[#allocation2 + $0x69] sm:$0xff] }
 0x678   : > { %4744 = vst.msk [vmem:[#allocation2 + $0x99] sm:$0xff] %vm416_vm0, %v4712_v2  ;;  %v4682_v37 = vadd.f32 %v9551_v6, %v4643_v33  ;;  %4911 = vrot.lane.b32.xlu1 %v9639_v53, %s7186_s14  ;;  %v9645_v57 = vld [vmem:[#allocation2 + $0x61] sm:$0xff] }
 0x679   : > { %v9647_v18 = vld [vmem:[#allocation2 + $0x68] sm:$0xff]  ;;  %4743 = vst.msk [vmem:[#allocation2 + $0x91] sm:$0xff] %vm416_vm0, %v4711_v10  ;;  %v4681_v39 = vadd.f32 %v9551_v6, %v4642_v27  ;;  %4909 = vrot.lane.b32.xlu0 %v9645_v57, %s7186_s14  ;;  %v7092_v35 = vpop.f32.mrb[12].mxu1  ;;  %v9655_v60 = vld [vmem:[#allocation2 + $0x60] sm:$0xff] }
 0x67a   : > { %4806 = vst.msk [vmem:[#allocation3 + $0x48] sm:$0xff] %vm416_vm0, %v9647_v18  ;;  %v4714_v50 = vmax.f32 %v4682_v37, 0.0  ;;  %v4645_v62 = vmul.f32 %v7092_v35, %v9546_v17  ;;  %v4534_v61 = vpop.f32.mrb[13].mxu1  ;;  %4805 = vst.msk [vmem:[#allocation3 + $0x40] sm:$0xff] %vm416_vm0, %v9655_v60 }
 0x67b   : > { %v4713_v63 = vmax.f32 %v4681_v39, 0.0  ;;  %v4644_v1 = vmul.f32 %v9546_v17, %v4534_v61  ;;  %v9661_v14 = vld [vmem:[#allocation2 + $0x81] sm:$0xff] }
 0x67c   : > { %4746 = vst.msk [vmem:[#allocation2 + $0xb1] sm:$0xff] %vm416_vm0, %v4714_v50  ;;  %v4684_v13 = vadd.f32 %v9551_v6, %v4645_v62  ;;  %4915 = vrot.lane.b32.xlu1 %v9661_v14, %s7186_s14  ;;  %v9667_v59 = vld [vmem:[#allocation2 + $0x79] sm:$0xff] }
 0x67d   : > { %v9669_v26 = vld [vmem:[#allocation2 + $0x80] sm:$0xff]  ;;  %4745 = vst.msk [vmem:[#allocation2 + $0xa9] sm:$0xff] %vm416_vm0, %v4713_v63  ;;  %v4683_v4 = vadd.f32 %v9551_v6, %v4644_v1  ;;  %4913 = vrot.lane.b32.xlu0 %v9667_v59, %s7186_s14  ;;  %v7095_v15 = vpop.f32.mrb[14].mxu1  ;;  %v9677_v19 = vld [vmem:[#allocation2 + $0x78] sm:$0xff] }
 0x67e   : > { %4808 = vst.msk [vmem:[#allocation3 + $0x58] sm:$0xff] %vm416_vm0, %v9669_v26  ;;  %v4716_v31 = vmax.f32 %v4684_v13, 0.0  ;;  %v4647_v29 = vmul.f32 %v7095_v15, %v9546_v17  ;;  %v4544_v32 = vpop.f32.mrb[15].mxu1  ;;  %4807 = vst.msk [vmem:[#allocation3 + $0x50] sm:$0xff] %vm416_vm0, %v9677_v19 }
 0x67f   : > { %v4715_v38 = vmax.f32 %v4683_v4, 0.0  ;;  %v4646_v0 = vmul.f32 %v9546_v17, %v4544_v32  ;;  %v9683_v5 = vld [vmem:[#allocation2 + $0x99] sm:$0xff] }
 0x680   : > { %4748 = vst.msk [vmem:[#allocation2 + $0xc9] sm:$0xff] %vm416_vm0, %v4716_v31  ;;  %v4686_v23 = vadd.f32 %v9551_v6, %v4647_v29  ;;  %4919 = vrot.lane.b32.xlu1 %v9683_v5, %s7186_s14  ;;  %v9689_v51 = vld [vmem:[#allocation2 + $0x91] sm:$0xff] }
 0x681   : > { %v9691_v9 = vld [vmem:[#allocation2 + $0x98] sm:$0xff]  ;;  %4747 = vst.msk [vmem:[#allocation2 + $0xc1] sm:$0xff] %vm416_vm0, %v4715_v38  ;;  %v4685_v56 = vadd.f32 %v9551_v6, %v4646_v0  ;;  %4917 = vrot.lane.b32.xlu0 %v9689_v51, %s7186_s14  ;;  %v7098_v3 = vpop.f32.mrb[16].mxu1  ;;  %v9699_v12 = vld [vmem:[#allocation2 + $0x90] sm:$0xff] }
 0x682   : > { %4810 = vst.msk [vmem:[#allocation3 + $0x68] sm:$0xff] %vm416_vm0, %v9691_v9  ;;  %v4718_v20 = vmax.f32 %v4686_v23, 0.0  ;;  %v4649_v48 = vmul.f32 %v7098_v3, %v9546_v17  ;;  %v4554_v22 = vpop.f32.mrb[17].mxu1  ;;  %4809 = vst.msk [vmem:[#allocation3 + $0x60] sm:$0xff] %vm416_vm0, %v9699_v12 }
 0x683   : > { %v4717_v16 = vmax.f32 %v4685_v56, 0.0  ;;  %v4648_v36 = vmul.f32 %v9546_v17, %v4554_v22  ;;  %v9705_v58 = vld [vmem:[#allocation2 + $0xb1] sm:$0xff] }
 0x684   : > { %4750 = vst.msk [vmem:[#allocation2 + $0xe1] sm:$0xff] %vm416_vm0, %v4718_v20  ;;  %v4688_v24 = vadd.f32 %v9551_v6, %v4649_v48  ;;  %4923 = vrot.lane.b32.xlu1 %v9705_v58, %s7186_s14  ;;  %v9711_v25 = vld [vmem:[#allocation2 + $0xa9] sm:$0xff] }
 0x685   : > { %v9713_v41 = vld [vmem:[#allocation2 + $0xb0] sm:$0xff]  ;;  %4749 = vst.msk [vmem:[#allocation2 + $0xd9] sm:$0xff] %vm416_vm0, %v4717_v16  ;;  %v4687_v40 = vadd.f32 %v9551_v6, %v4648_v36  ;;  %4921 = vrot.lane.b32.xlu0 %v9711_v25, %s7186_s14  ;;  %v7101_v52 = vpop.f32.mrb[18].mxu1  ;;  %v9721_v54 = vld [vmem:[#allocation2 + $0xa8] sm:$0xff] }
 0x686   : > { %4812 = vst.msk [vmem:[#allocation3 + $0x78] sm:$0xff] %vm416_vm0, %v9713_v41  ;;  %v4720_v8 = vmax.f32 %v4688_v24, 0.0  ;;  %v4651_v44 = vmul.f32 %v7101_v52, %v9546_v17  ;;  %v4564_v2 = vpop.f32.mrb[19].mxu1  ;;  %4811 = vst.msk [vmem:[#allocation3 + $0x70] sm:$0xff] %vm416_vm0, %v9721_v54 }
 0x687   : > { %v4719_v33 = vmax.f32 %v4687_v40, 0.0  ;;  %v4650_v42 = vmul.f32 %v9546_v17, %v4564_v2  ;;  %v9727_v10 = vld [vmem:[#allocation2 + $0xc9] sm:$0xff] }
 0x688   : > { %4752 = vst.msk [vmem:[#allocation2 + $0xf9] sm:$0xff] %vm416_vm0, %v4720_v8  ;;  %v4690_v27 = vadd.f32 %v9551_v6, %v4651_v44  ;;  %4927 = vrot.lane.b32.xlu1 %v9727_v10, %s7186_s14  ;;  %v9733_v37 = vld [vmem:[#allocation2 + $0xc1] sm:$0xff] }
 0x689   : > { %v9735_v39 = vld [vmem:[#allocation2 + $0xc8] sm:$0xff]  ;;  %4751 = vst.msk [vmem:[#allocation2 + $0xf1] sm:$0xff] %vm416_vm0, %v4719_v33  ;;  %v4689_v35 = vadd.f32 %v9551_v6, %v4650_v42  ;;  %4925 = vrot.lane.b32.xlu0 %v9733_v37, %s7186_s14  ;;  %v7104_v50 = vpop.f32.mrb[20].mxu1  ;;  %v9743_v62 = vld [vmem:[#allocation2 + $0xc0] sm:$0xff] }
 0x68a   : > { %4814 = vst.msk [vmem:[#allocation3 + $0x88] sm:$0xff] %vm416_vm0, %v9735_v39  ;;  %v4722_v61 = vmax.f32 %v4690_v27, 0.0  ;;  %v4653_v63 = vmul.f32 %v7104_v50, %v9546_v17  ;;  %v4574_v1 = vpop.f32.mrb[21].mxu1  ;;  %4813 = vst.msk [vmem:[#allocation3 + $0x80] sm:$0xff] %vm416_vm0, %v9743_v62 }
 0x68b   : > { %v4721_v13 = vmax.f32 %v4689_v35, 0.0  ;;  %v4652_v4 = vmul.f32 %v9546_v17, %v4574_v1  ;;  %v9749_v15 = vld [vmem:[#allocation2 + $0xe1] sm:$0xff] }
 0x68c   : > { %4754 = vst.msk [vmem:[#allocation2 + $0x111] sm:$0xff] %vm416_vm0, %v4722_v61  ;;  %v4692_v31 = vadd.f32 %v9551_v6, %v4653_v63  ;;  %4931 = vrot.lane.b32.xlu1 %v9749_v15, %s7186_s14  ;;  %v9755_v29 = vld [vmem:[#allocation2 + $0xd9] sm:$0xff] }
 0x68d   : > { %v9757_v32 = vld [vmem:[#allocation2 + $0xe0] sm:$0xff]  ;;  %4753 = vst.msk [vmem:[#allocation2 + $0x109] sm:$0xff] %vm416_vm0, %v4721_v13  ;;  %v4691_v38 = vadd.f32 %v9551_v6, %v4652_v4  ;;  %4929 = vrot.lane.b32.xlu0 %v9755_v29, %s7186_s14  ;;  %v7107_v0 = vpop.f32.mrb[22].mxu1  ;;  %v9765_v23 = vld [vmem:[#allocation2 + $0xd8] sm:$0xff] }
 0x68e   : > { %4816 = vst.msk [vmem:[#allocation3 + $0x98] sm:$0xff] %vm416_vm0, %v9757_v32  ;;  %v4724_v56 = vmax.f32 %v4692_v31, 0.0  ;;  %v4655_v3 = vmul.f32 %v7107_v0, %v9546_v17  ;;  %v4584_v20 = vpop.f32.mrb[23].mxu1  ;;  %4815 = vst.msk [vmem:[#allocation3 + $0x90] sm:$0xff] %vm416_vm0, %v9765_v23 }
 0x68f   : > { %v4723_v48 = vmax.f32 %v4691_v38, 0.0  ;;  %v4654_v22 = vmul.f32 %v9546_v17, %v4584_v20  ;;  %v9771_v16 = vld [vmem:[#allocation2 + $0xf9] sm:$0xff] }
 0x690   : > { %4756 = vst.msk [vmem:[#allocation2 + $0x129] sm:$0xff] %vm416_vm0, %v4724_v56  ;;  %v4694_v36 = vadd.f32 %v9551_v6, %v4655_v3  ;;  %4935 = vrot.lane.b32.xlu1 %v9771_v16, %s7186_s14  ;;  %v9777_v24 = vld [vmem:[#allocation2 + $0xf1] sm:$0xff] }
 0x691   : > { %v9779_v40 = vld [vmem:[#allocation2 + $0xf8] sm:$0xff]  ;;  %4755 = vst.msk [vmem:[#allocation2 + $0x121] sm:$0xff] %vm416_vm0, %v4723_v48  ;;  %v4693_v52 = vadd.f32 %v9551_v6, %v4654_v22  ;;  %4933 = vrot.lane.b32.xlu0 %v9777_v24, %s7186_s14  ;;  %v7110_v8 = vpop.f32.mrb[24].mxu1  ;;  %v9787_v44 = vld [vmem:[#allocation2 + $0xf0] sm:$0xff] }
 0x692   : > { %4818 = vst.msk [vmem:[#allocation3 + $0xa8] sm:$0xff] %vm416_vm0, %v9779_v40  ;;  %v4726_v2 = vmax.f32 %v4694_v36, 0.0  ;;  %v4657_v33 = vmul.f32 %v7110_v8, %v9546_v17  ;;  %v4594_v42 = vpop.f32.mrb[25].mxu1  ;;  %4817 = vst.msk [vmem:[#allocation3 + $0xa0] sm:$0xff] %vm416_vm0, %v9787_v44 }
 0x693   : > { %v4725_v27 = vmax.f32 %v4693_v52, 0.0  ;;  %v4656_v35 = vmul.f32 %v9546_v17, %v4594_v42  ;;  %v9793_v50 = vld [vmem:[#allocation2 + $0x111] sm:$0xff] }
 0x694   : > { %4758 = vst.msk [vmem:[#allocation2 + $0x141] sm:$0xff] %vm416_vm0, %v4726_v2  ;;  %v4696_v61 = vadd.f32 %v9551_v6, %v4657_v33  ;;  %4939 = vrot.lane.b32.xlu1 %v9793_v50, %s7186_s14  ;;  %v9799_v63 = vld [vmem:[#allocation2 + $0x109] sm:$0xff] }
 0x695   : > { %v9801_v1 = vld [vmem:[#allocation2 + $0x110] sm:$0xff]  ;;  %4757 = vst.msk [vmem:[#allocation2 + $0x139] sm:$0xff] %vm416_vm0, %v4725_v27  ;;  %v4695_v13 = vadd.f32 %v9551_v6, %v4656_v35  ;;  %4937 = vrot.lane.b32.xlu0 %v9799_v63, %s7186_s14  ;;  %v7113_v4 = vpop.f32.mrb[26].mxu1  ;;  %v9809_v31 = vld [vmem:[#allocation2 + $0x108] sm:$0xff] }
 0x696   : > { %4820 = vst.msk [vmem:[#allocation3 + $0xb8] sm:$0xff] %vm416_vm0, %v9801_v1  ;;  %v4728_v38 = vmax.f32 %v4696_v61, 0.0  ;;  %v4659_v0 = vmul.f32 %v7113_v4, %v9546_v17  ;;  %v4604_v56 = vpop.f32.mrb[27].mxu1  ;;  %4819 = vst.msk [vmem:[#allocation3 + $0xb0] sm:$0xff] %vm416_vm0, %v9809_v31 }
 0x697   : > { %v4727_v3 = vmax.f32 %v4695_v13, 0.0  ;;  %v4658_v20 = vmul.f32 %v9546_v17, %v4604_v56  ;;  %v9815_v48 = vld [vmem:[#allocation2 + $0x129] sm:$0xff] }
 0x698   : > { %4760 = vst.msk [vmem:[#allocation2 + $0x159] sm:$0xff] %vm416_vm0, %v4728_v38  ;;  %v4698_v22 = vadd.f32 %v9551_v6, %v4659_v0  ;;  %4943 = vrot.lane.b32.xlu1 %v9815_v48, %s7186_s14  ;;  %v9821_v36 = vld [vmem:[#allocation2 + $0x121] sm:$0xff] }
 0x699   : > { %v9823_v52 = vld [vmem:[#allocation2 + $0x128] sm:$0xff]  ;;  %4759 = vst.msk [vmem:[#allocation2 + $0x151] sm:$0xff] %vm416_vm0, %v4727_v3  ;;  %v4697_v8 = vadd.f32 %v9551_v6, %v4658_v20  ;;  %4941 = vrot.lane.b32.xlu0 %v9821_v36, %s7186_s14  ;;  %v9831_v2 = vld [vmem:[#allocation2 + $0x120] sm:$0xff]  ;;  %v7116_v33 = vpop.f32.mrb[28].mxu1 }
 0x69a   : > { %4822 = vst.msk [vmem:[#allocation3 + $0xc8] sm:$0xff] %vm416_vm0, %v9823_v52  ;;  %v4730_v42 = vmax.f32 %v4698_v22, 0.0  ;;  %4821 = vst.msk [vmem:[#allocation3 + $0xc0] sm:$0xff] %vm416_vm0, %v9831_v2  ;;  %v4661_v27 = vmul.f32 %v7116_v33, %v9546_v17  ;;  %v4614_v35 = vpop.f32.mrb[29].mxu1 }
 0x69b   : > { %v4729_v61 = vmax.f32 %v4697_v8, 0.0  ;;  %v9836_v13 = vld [vmem:[#allocation2 + $0x141] sm:$0xff]  ;;  %v4660_v4 = vmul.f32 %v9546_v17, %v4614_v35 }
 0x69c   : > { %4762 = vst.msk [vmem:[#allocation2 + $0x171] sm:$0xff] %vm416_vm0, %v4730_v42  ;;  %4947 = vrot.lane.b32.xlu1 %v9836_v13, %s7186_s14  ;;  %v9842_v38 = vld [vmem:[#allocation2 + $0x139] sm:$0xff]  ;;  %v4700_v56 = vadd.f32 %v9551_v6, %v4661_v27 }
 0x69d   : > { %v9844_v0 = vld [vmem:[#allocation2 + $0x140] sm:$0xff]  ;;  %4761 = vst.msk [vmem:[#allocation2 + $0x169] sm:$0xff] %vm416_vm0, %v4729_v61  ;;  %4945 = vrot.lane.b32.xlu0 %v9842_v38, %s7186_s14  ;;  %v9852_v17 = vld [vmem:[#allocation2 + $0x138] sm:$0xff]  ;;  %v4699_v3 = vadd.f32 %v9551_v6, %v4660_v4  ;;  %v5022_v4 = vld [vmem:[#allocation2 + $0xa] sm:$0xff] }
 0x69e   : > { %4824 = vst.msk [vmem:[#allocation3 + $0xd8] sm:$0xff] %vm416_vm0, %v9844_v0  ;;  %4823 = vst.msk [vmem:[#allocation3 + $0xd0] sm:$0xff] %vm416_vm0, %v9852_v17  ;;  %v4732_v20 = vmax.f32 %v4700_v56, 0.0 }
 0x69f   : > { %v9857_v22 = vld [vmem:[#allocation2 + $0x159] sm:$0xff]  ;;  %v4731_v8 = vmax.f32 %v4699_v3, 0.0  ;;  %v5021_v3 = vld [vmem:[#allocation2 + $0x2] sm:$0xff] }
 0x6a0   : > { %4951 = vrot.lane.b32.xlu1 %v9857_v22, %s7186_s14  ;;  %v9861_v33 = vld [vmem:[#allocation2 + $0x151] sm:$0xff]  ;;  %4764 = vst.msk [vmem:[#allocation2 + $0x189] sm:$0xff] %vm416_vm0, %v4732_v20  ;;  %v9893_v20 = vld [vmem:[#allocation2 + $0x22] sm:$0xff] }
 0x6a1   : > { %11071 = vst [vmem:[#allocation7_spill] sm:$0xff] %v9861_v33  ;;  %v9863_v42 = vld [vmem:[#allocation2 + $0x158] sm:$0xff]  ;;  %4949 = vrot.lane.b32.xlu0 %v9861_v33, %s7186_s14  ;;  %v9870_v6 = vld [vmem:[#allocation2 + $0x150] sm:$0xff]  ;;  %4763 = vst.msk [vmem:[#allocation2 + $0x181] sm:$0xff] %vm416_vm0, %v4731_v8 }
 0x6a2   : > { %4826 = vst.msk [vmem:[#allocation3 + $0xe8] sm:$0xff] %vm416_vm0, %v9863_v42  ;;  %4825 = vst.msk [vmem:[#allocation3 + $0xe0] sm:$0xff] %vm416_vm0, %v9870_v6  ;;  %v9897_v8 = vld [vmem:[#allocation2 + $0x1a] sm:$0xff] }
 0x6a3   : > { %v9875_v27 = vld [vmem:[#allocation2 + $0x171] sm:$0xff]  ;;  %11074 = vst [vmem:[#allocation10_spill] sm:$0xff] %v9893_v20  ;;  %11075 = vst [vmem:[#allocation11_spill] sm:$0xff] %v9897_v8 }
 0x6a4   : > { %11072 = vst [vmem:[#allocation8_spill] sm:$0xff] %v9875_v27  ;;  %4955 = vrot.lane.b32.xlu1 %v9875_v27, %s7186_s14  ;;  %v9879_v35 = vld [vmem:[#allocation2 + $0x169] sm:$0xff]  ;;  %v9905_v27 = vld [vmem:[#allocation2 + $0x32] sm:$0xff] }
 0x6a5   : > { %11073 = vst [vmem:[#allocation9_spill] sm:$0xff] %v9879_v35  ;;  %v9881_v61 = vld [vmem:[#allocation2 + $0x170] sm:$0xff]  ;;  %4953 = vrot.lane.b32.xlu0 %v9879_v35, %s7186_s14  ;;  %v9887_v56 = vld [vmem:[#allocation2 + $0x168] sm:$0xff]  ;;  %v9901_v35 = vld [vmem:[#allocation2 + $0x3a] sm:$0xff] }
 0x6a6   : > { %4828 = vst.msk [vmem:[#allocation3 + $0xf8] sm:$0xff] %vm416_vm0, %v9881_v61  ;;  %4827 = vst.msk [vmem:[#allocation3 + $0xf0] sm:$0xff] %vm416_vm0, %v9887_v56  ;;  %v10008_v33 = vld [vmem:[#allocation2 + $0x172] sm:$0xff]  ;;  %vm6706_vm0 = vcmask 7168  }
 0x6a7   : > { %11076 = vst [vmem:[#allocation12_spill] sm:$0xff] %v9901_v35  ;;  %11077 = vst [vmem:[#allocation13_spill] sm:$0xff] %v9905_v27 }
 0x6a8   : > { %5087 = vrot.lane.b32.xlu1 %v5022_v4, %s7188_s16  ;;  %v9909_v4 = vld [vmem:[#allocation2 + $0x52] sm:$0xff] }
 0x6a9   : > { %5085 = vrot.lane.b32.xlu0 %v5021_v3, %s7188_s16  ;;  %11078 = vst [vmem:[#allocation14_spill] sm:$0xff] %v9909_v4  ;;  %v9913_v3 = vld [vmem:[#allocation2 + $0x4a] sm:$0xff] }
 0x6aa   : > { %11079 = vst [vmem:[#allocation15_spill] sm:$0xff] %v9913_v3 }
 0x6ac   : > { %5091 = vrot.lane.b32.xlu1 %v9893_v20, %s7188_s16 }
 0x6ad   : > { %5089 = vrot.lane.b32.xlu0 %v9897_v8, %s7188_s16  ;;  %v9917_v8 = vld [vmem:[#allocation2 + $0x6a] sm:$0xff] }
 0x6ae   : > { %11080 = vst [vmem:[#allocation16_spill] sm:$0xff] %v9917_v8 }
 0x6b0   : > { %5095 = vrot.lane.b32.xlu1 %v9901_v35, %s7188_s16  ;;  %v9921_v35 = vld [vmem:[#allocation2 + $0x62] sm:$0xff] }
 0x6b1   : > { %5093 = vrot.lane.b32.xlu0 %v9905_v27, %s7188_s16  ;;  %11081 = vst [vmem:[#allocation17_spill] sm:$0xff] %v9921_v35  ;;  %v9925_v27 = vld [vmem:[#allocation2 + $0x82] sm:$0xff] }
 0x6b2   : > { %11082 = vst [vmem:[#allocation18_spill] sm:$0xff] %v9925_v27 }
 0x6b4   : > { %5099 = vrot.lane.b32.xlu1 %v9909_v4, %s7188_s16  ;;  %v9929_v4 = vld [vmem:[#allocation2 + $0x7a] sm:$0xff] }
 0x6b5   : > { %5097 = vrot.lane.b32.xlu0 %v9913_v3, %s7188_s16  ;;  %11083 = vst [vmem:[#allocation19_spill] sm:$0xff] %v9929_v4  ;;  %v9933_v3 = vld [vmem:[#allocation2 + $0x9a] sm:$0xff] }
 0x6b6   : > { %11084 = vst [vmem:[#allocation20_spill] sm:$0xff] %v9933_v3 }
 0x6b8   : > { %5103 = vrot.lane.b32.xlu1 %v9917_v8, %s7188_s16  ;;  %v9937_v8 = vld [vmem:[#allocation2 + $0x92] sm:$0xff] }
 0x6b9   : > { %5101 = vrot.lane.b32.xlu0 %v9921_v35, %s7188_s16  ;;  %11085 = vst [vmem:[#allocation21_spill] sm:$0xff] %v9937_v8  ;;  %v9941_v35 = vld [vmem:[#allocation2 + $0xb2] sm:$0xff] }
 0x6ba   : > { %11086 = vst [vmem:[#allocation22_spill] sm:$0xff] %v9941_v35 }
 0x6bc   : > { %5107 = vrot.lane.b32.xlu1 %v9925_v27, %s7188_s16  ;;  %v9945_v27 = vld [vmem:[#allocation2 + $0xaa] sm:$0xff] }
 0x6bd   : > { %5105 = vrot.lane.b32.xlu0 %v9929_v4, %s7188_s16  ;;  %11087 = vst [vmem:[#allocation23_spill] sm:$0xff] %v9945_v27  ;;  %v9949_v4 = vld [vmem:[#allocation2 + $0xca] sm:$0xff] }
 0x6be   : > { %11088 = vst [vmem:[#allocation24_spill] sm:$0xff] %v9949_v4 }
 0x6c0   : > { %5111 = vrot.lane.b32.xlu1 %v9933_v3, %s7188_s16  ;;  %v9953_v3 = vld [vmem:[#allocation2 + $0xc2] sm:$0xff] }
 0x6c1   : > { %5109 = vrot.lane.b32.xlu0 %v9937_v8, %s7188_s16  ;;  %11089 = vst [vmem:[#allocation25_spill] sm:$0xff] %v9953_v3  ;;  %v9957_v8 = vld [vmem:[#allocation2 + $0xe2] sm:$0xff] }
 0x6c2   : > { %11090 = vst [vmem:[#allocation26_spill] sm:$0xff] %v9957_v8 }
 0x6c4   : > { %5115 = vrot.lane.b32.xlu1 %v9941_v35, %s7188_s16  ;;  %v9961_v35 = vld [vmem:[#allocation2 + $0xda] sm:$0xff] }
 0x6c5   : > { %5113 = vrot.lane.b32.xlu0 %v9945_v27, %s7188_s16  ;;  %11091 = vst [vmem:[#allocation27_spill] sm:$0xff] %v9961_v35  ;;  %v9965_v27 = vld [vmem:[#allocation2 + $0xfa] sm:$0xff] }
 0x6c6   : > { %11092 = vst [vmem:[#allocation28_spill] sm:$0xff] %v9965_v27 }
 0x6c8   : > { %5119 = vrot.lane.b32.xlu1 %v9949_v4, %s7188_s16  ;;  %v9969_v4 = vld [vmem:[#allocation2 + $0xf2] sm:$0xff] }
 0x6c9   : > { %5117 = vrot.lane.b32.xlu0 %v9953_v3, %s7188_s16  ;;  %11093 = vst [vmem:[#allocation29_spill] sm:$0xff] %v9969_v4  ;;  %v9973_v3 = vld [vmem:[#allocation2 + $0x112] sm:$0xff] }
 0x6ca   : > { %11094 = vst [vmem:[#allocation30_spill] sm:$0xff] %v9973_v3 }
 0x6cc   : > { %5123 = vrot.lane.b32.xlu1 %v9957_v8, %s7188_s16  ;;  %v9977_v8 = vld [vmem:[#allocation2 + $0x10a] sm:$0xff] }
 0x6cd   : > { %5121 = vrot.lane.b32.xlu0 %v9961_v35, %s7188_s16  ;;  %11095 = vst [vmem:[#allocation31_spill] sm:$0xff] %v9977_v8  ;;  %v9981_v35 = vld [vmem:[#allocation2 + $0x12a] sm:$0xff] }
 0x6ce   : > { %11096 = vst [vmem:[#allocation32_spill] sm:$0xff] %v9981_v35 }
 0x6d0   : > { %5127 = vrot.lane.b32.xlu1 %v9965_v27, %s7188_s16  ;;  %v9985_v27 = vld [vmem:[#allocation2 + $0x122] sm:$0xff] }
 0x6d1   : > { %5125 = vrot.lane.b32.xlu0 %v9969_v4, %s7188_s16  ;;  %11097 = vst [vmem:[#allocation33_spill] sm:$0xff] %v9985_v27  ;;  %v9989_v4 = vld [vmem:[#allocation2 + $0x142] sm:$0xff] }
 0x6d2   : > { %11098 = vst [vmem:[#allocation34_spill] sm:$0xff] %v9989_v4 }
 0x6d4   : > { %5131 = vrot.lane.b32.xlu1 %v9973_v3, %s7188_s16  ;;  %v9993_v3 = vld [vmem:[#allocation2 + $0x13a] sm:$0xff] }
 0x6d5   : > { %5129 = vrot.lane.b32.xlu0 %v9977_v8, %s7188_s16  ;;  %11099 = vst [vmem:[#allocation35_spill] sm:$0xff] %v9993_v3 }
 0x6d8   : > { %5135 = vrot.lane.b32.xlu1 %v9981_v35, %s7188_s16  ;;  %v9998_v35 = vld [vmem:[#allocation2 + $0x15a] sm:$0xff] }
 0x6d9   : > { %5133 = vrot.lane.b32.xlu0 %v9985_v27, %s7188_s16  ;;  %v10003_v27 = vld [vmem:[#allocation2 + $0x152] sm:$0xff] }
 0x6da   : > { %11100 = vst [vmem:[#allocation36_spill] sm:$0xff] %v10003_v27 }
 0x6dc   : > { %5139 = vrot.lane.b32.xlu1 %v9989_v4, %s7188_s16 }
 0x6dd   : > { %5137 = vrot.lane.b32.xlu0 %v9993_v3, %s7188_s16 }
 0x6de   : > { %v4900_v8 = vpop.permute.xlu1 %4899 }
 0x6df   : > { %4992 = vst.msk [vmem:[#allocation3 + $0x18] sm:$0xff] %vm2876_vm13, %v4900_v8  ;;  %v4898_v20 = vpop.permute.xlu0 %4897 }
 0x6e0   : > { %4991 = vst.msk [vmem:[#allocation3 + $0x10] sm:$0xff] %vm2876_vm13, %v4898_v20  ;;  %5143 = vrot.lane.b32.xlu1 %v9998_v35, %s7188_s16  ;;  %v10013_v20 = vld [vmem:[#allocation2 + $0x16a] sm:$0xff] }
 0x6e1   : > { %5141 = vrot.lane.b32.xlu0 %v10003_v27, %s7188_s16 }
 0x6e2   : > { %v4904_v4 = vpop.permute.xlu1 %4903 }
 0x6e3   : > { %4994 = vst.msk [vmem:[#allocation3 + $0x28] sm:$0xff] %vm2876_vm13, %v4904_v4  ;;  %v4902_v3 = vpop.permute.xlu0 %4901 }
 0x6e4   : > { %4993 = vst.msk [vmem:[#allocation3 + $0x20] sm:$0xff] %vm2876_vm13, %v4902_v3  ;;  %5147 = vrot.lane.b32.xlu1 %v10008_v33, %s7188_s16 }
 0x6e5   : > { %5145 = vrot.lane.b32.xlu0 %v10013_v20, %s7188_s16 }
 0x6e6   : > { %v4908_v8 = vpop.permute.xlu1 %4907 }
 0x6e7   : > { %4996 = vst.msk [vmem:[#allocation3 + $0x38] sm:$0xff] %vm2876_vm13, %v4908_v8  ;;  %v4906_v27 = vpop.permute.xlu0 %4905 }
 0x6e8   : > { %4995 = vst.msk [vmem:[#allocation3 + $0x30] sm:$0xff] %vm2876_vm13, %v4906_v27  ;;  %5279 = vrot.lane.b32.xlu1 %v9581_v11, %s7190_s18 }
 0x6e9   : > { %5277 = vrot.lane.b32.xlu0 %v9589_v21, %s7190_s18 }
 0x6ea   : > { %v4912_v4 = vpop.permute.xlu1 %4911 }
 0x6eb   : > { %4998 = vst.msk [vmem:[#allocation3 + $0x48] sm:$0xff] %vm2876_vm13, %v4912_v4  ;;  %v4910_v3 = vpop.permute.xlu0 %4909 }
 0x6ec   : > { %4997 = vst.msk [vmem:[#allocation3 + $0x40] sm:$0xff] %vm2876_vm13, %v4910_v3  ;;  %5283 = vrot.lane.b32.xlu1 %v9603_v43, %s7190_s18 }
 0x6ed   : > { %5281 = vrot.lane.b32.xlu0 %v9611_v30, %s7190_s18 }
 0x6ee   : > { %v4916_v8 = vpop.permute.xlu1 %4915 }
 0x6ef   : > { %5000 = vst.msk [vmem:[#allocation3 + $0x58] sm:$0xff] %vm2876_vm13, %v4916_v8  ;;  %v4914_v27 = vpop.permute.xlu0 %4913 }
 0x6f0   : > { %4999 = vst.msk [vmem:[#allocation3 + $0x50] sm:$0xff] %vm2876_vm13, %v4914_v27  ;;  %5287 = vrot.lane.b32.xlu1 %v9625_v7, %s7190_s18 }
 0x6f1   : > { %5285 = vrot.lane.b32.xlu0 %v9633_v45, %s7190_s18 }
 0x6f2   : > { %v4920_v11 = vpop.permute.xlu1 %4919 }
 0x6f3   : > { %5002 = vst.msk [vmem:[#allocation3 + $0x68] sm:$0xff] %vm2876_vm13, %v4920_v11  ;;  %v4918_v21 = vpop.permute.xlu0 %4917 }
 0x6f4   : > { %5001 = vst.msk [vmem:[#allocation3 + $0x60] sm:$0xff] %vm2876_vm13, %v4918_v21  ;;  %5291 = vrot.lane.b32.xlu1 %v9647_v18, %s7190_s18 }
 0x6f5   : > { %5289 = vrot.lane.b32.xlu0 %v9655_v60, %s7190_s18 }
 0x6f6   : > { %v4924_v4 = vpop.permute.xlu1 %4923 }
 0x6f7   : > { %5004 = vst.msk [vmem:[#allocation3 + $0x78] sm:$0xff] %vm2876_vm13, %v4924_v4  ;;  %v4922_v3 = vpop.permute.xlu0 %4921 }
 0x6f8   : > { %5003 = vst.msk [vmem:[#allocation3 + $0x70] sm:$0xff] %vm2876_vm13, %v4922_v3  ;;  %5295 = vrot.lane.b32.xlu1 %v9669_v26, %s7190_s18 }
 0x6f9   : > { %5293 = vrot.lane.b32.xlu0 %v9677_v19, %s7190_s18 }
 0x6fa   : > { %v4928_v8 = vpop.permute.xlu1 %4927 }
 0x6fb   : > { %5006 = vst.msk [vmem:[#allocation3 + $0x88] sm:$0xff] %vm2876_vm13, %v4928_v8  ;;  %v4926_v27 = vpop.permute.xlu0 %4925 }
 0x6fc   : > { %5005 = vst.msk [vmem:[#allocation3 + $0x80] sm:$0xff] %vm2876_vm13, %v4926_v27  ;;  %5299 = vrot.lane.b32.xlu1 %v9691_v9, %s7190_s18 }
 0x6fd   : > { %5297 = vrot.lane.b32.xlu0 %v9699_v12, %s7190_s18 }
 0x6fe   : > { %v4932_v11 = vpop.permute.xlu1 %4931 }
 0x6ff   : > { %5008 = vst.msk [vmem:[#allocation3 + $0x98] sm:$0xff] %vm2876_vm13, %v4932_v11  ;;  %v4930_v21 = vpop.permute.xlu0 %4929  ;;  %v5243_v11 = vld [vmem:[#allocation2 + $0x180] sm:$0xff] }
 0x700   : > { %5007 = vst.msk [vmem:[#allocation3 + $0x90] sm:$0xff] %vm2876_vm13, %v4930_v21  ;;  %5303 = vrot.lane.b32.xlu1 %v9713_v41, %s7190_s18 }
 0x701   : > { %5301 = vrot.lane.b32.xlu0 %v9721_v54, %s7190_s18 }
 0x702   : > { %v4936_v4 = vpop.permute.xlu1 %4935 }
 0x703   : > { %5010 = vst.msk [vmem:[#allocation3 + $0xa8] sm:$0xff] %vm2876_vm13, %v4936_v4  ;;  %v4934_v3 = vpop.permute.xlu0 %4933 }
 0x704   : > { %5009 = vst.msk [vmem:[#allocation3 + $0xa0] sm:$0xff] %vm2876_vm13, %v4934_v3  ;;  %5307 = vrot.lane.b32.xlu1 %v9735_v39, %s7190_s18 }
 0x705   : > { %5305 = vrot.lane.b32.xlu0 %v9743_v62, %s7190_s18 }
 0x706   : > { %v4940_v9 = vpop.permute.xlu1 %4939 }
 0x707   : > { %5012 = vst.msk [vmem:[#allocation3 + $0xb8] sm:$0xff] %vm2876_vm13, %v4940_v9  ;;  %v4938_v8 = vpop.permute.xlu0 %4937 }
 0x708   : > { %5011 = vst.msk [vmem:[#allocation3 + $0xb0] sm:$0xff] %vm2876_vm13, %v4938_v8  ;;  %5311 = vrot.lane.b32.xlu1 %v9757_v32, %s7190_s18 }
 0x709   : > { %5309 = vrot.lane.b32.xlu0 %v9765_v23, %s7190_s18 }
 0x70a   : > { %v4944_v41 = vpop.permute.xlu1 %4943 }
 0x70b   : > { %5014 = vst.msk [vmem:[#allocation3 + $0xc8] sm:$0xff] %vm2876_vm13, %v4944_v41  ;;  %v4942_v27 = vpop.permute.xlu0 %4941 }
 0x70c   : > { %5013 = vst.msk [vmem:[#allocation3 + $0xc0] sm:$0xff] %vm2876_vm13, %v4942_v27  ;;  %5315 = vrot.lane.b32.xlu1 %v9779_v40, %s7190_s18  ;;  %v10207_v27 = vld [vmem:[#allocation2 + $0x181] sm:$0xff] }
 0x70d   : > { %5313 = vrot.lane.b32.xlu0 %v9787_v44, %s7190_s18 }
 0x70e   : > { %v4948_v39 = vpop.permute.xlu1 %4947 }
 0x70f   : > { %5016 = vst.msk [vmem:[#allocation3 + $0xd8] sm:$0xff] %vm2876_vm13, %v4948_v39  ;;  %v4946_v62 = vpop.permute.xlu0 %4945 }
 0x710   : > { %5015 = vst.msk [vmem:[#allocation3 + $0xd0] sm:$0xff] %vm2876_vm13, %v4946_v62  ;;  %5319 = vrot.lane.b32.xlu1 %v9801_v1, %s7190_s18 }
 0x711   : > { %5317 = vrot.lane.b32.xlu0 %v9809_v31, %s7190_s18 }
 0x712   : > { %v4952_v32 = vpop.permute.xlu1 %4951 }
 0x713   : > { %5018 = vst.msk [vmem:[#allocation3 + $0xe8] sm:$0xff] %vm2876_vm13, %v4952_v32  ;;  %v4950_v23 = vpop.permute.xlu0 %4949  ;;  %v11104_v32 = vld [vmem:[#allocation10_spill] sm:$0xff] }
 0x714   : > { %5017 = vst.msk [vmem:[#allocation3 + $0xe0] sm:$0xff] %vm2876_vm13, %v4950_v23  ;;  %5323 = vrot.lane.b32.xlu1 %v9823_v52, %s7190_s18  ;;  %v11105_v23 = vld [vmem:[#allocation11_spill] sm:$0xff] }
 0x715   : > { %5321 = vrot.lane.b32.xlu0 %v9831_v2, %s7190_s18 }
 0x716   : > { %v4956_v40 = vpop.permute.xlu1 %4955 }
 0x717   : > { %5020 = vst.msk [vmem:[#allocation3 + $0xf8] sm:$0xff] %vm2876_vm13, %v4956_v40  ;;  %v4954_v44 = vpop.permute.xlu0 %4953 }
 0x718   : > { %5019 = vst.msk [vmem:[#allocation3 + $0xf0] sm:$0xff] %vm2876_vm13, %v4954_v44  ;;  %5327 = vrot.lane.b32.xlu1 %v9844_v0, %s7190_s18  ;;  %v5244_v0 = vld [vmem:[#allocation2 + $0x188] sm:$0xff] }
 0x719   : > { %5325 = vrot.lane.b32.xlu0 %v9852_v17, %s7190_s18 }
 0x71a   : > { %v5088_v1 = vpop.permute.xlu1 %5087 }
 0x71b   : > { %5182 = vst.msk [vmem:[#allocation3 + $0x8] sm:$0xff] %vm3069_vm14, %v5088_v1  ;;  %v5086_v31 = vpop.permute.xlu0 %5085  ;;  %v11106_v1 = vld [vmem:[#allocation12_spill] sm:$0xff] }
 0x71c   : > { %5181 = vst.msk [vmem:[#allocation3] sm:$0xff] %vm3069_vm14, %v5086_v31  ;;  %5331 = vrot.lane.b32.xlu1 %v9863_v42, %s7190_s18  ;;  %v11107_v31 = vld [vmem:[#allocation13_spill] sm:$0xff] }
 0x71d   : > { %5329 = vrot.lane.b32.xlu0 %v9870_v6, %s7190_s18 }
 0x71e   : > { %v5092_v52 = vpop.permute.xlu1 %5091 }
 0x71f   : > { %5184 = vst.msk [vmem:[#allocation3 + $0x18] sm:$0xff] %vm3069_vm14, %v5092_v52  ;;  %v5090_v2 = vpop.permute.xlu0 %5089 }
 0x720   : > { %5183 = vst.msk [vmem:[#allocation3 + $0x10] sm:$0xff] %vm3069_vm14, %v5090_v2  ;;  %5335 = vrot.lane.b32.xlu1 %v9881_v61, %s7190_s18 }
 0x721   : > { %5333 = vrot.lane.b32.xlu0 %v9887_v56, %s7190_s18 }
 0x722   : > { %v5096_v17 = vpop.permute.xlu1 %5095 }
 0x723   : > { %5186 = vst.msk [vmem:[#allocation3 + $0x28] sm:$0xff] %vm3069_vm14, %v5096_v17  ;;  %v5094_v42 = vpop.permute.xlu0 %5093  ;;  %v11109_v17 = vld [vmem:[#allocation15_spill] sm:$0xff] }
 0x724   : > { %5185 = vst.msk [vmem:[#allocation3 + $0x20] sm:$0xff] %vm3069_vm14, %v5094_v42  ;;  %5339 = vrot.lane.b32.xlu1 %v5244_v0, %s7190_s18  ;;  %v11108_v0 = vld [vmem:[#allocation14_spill] sm:$0xff] }
 0x725   : > { %5337 = vrot.lane.b32.xlu0 %v5243_v11, %s7190_s18 }
 0x726   : > { %v5100_v6 = vpop.permute.xlu1 %5099 }
 0x727   : > { %5188 = vst.msk [vmem:[#allocation3 + $0x38] sm:$0xff] %vm3069_vm14, %v5100_v6  ;;  %v5098_v21 = vpop.permute.xlu0 %5097  ;;  %v11110_v6 = vld [vmem:[#allocation16_spill] sm:$0xff] }
 0x728   : > { %5187 = vst.msk [vmem:[#allocation3 + $0x30] sm:$0xff] %vm3069_vm14, %v5098_v21  ;;  %5471 = vrot.lane.b32.xlu1 %v9573_v46, %s7192_s29  ;;  %v11111_v21 = vld [vmem:[#allocation17_spill] sm:$0xff] }
 0x729   : > { %5469 = vrot.lane.b32.xlu0 %v9579_v49, %s7192_s29 }
 0x72a   : > { %v5104_v61 = vpop.permute.xlu1 %5103 }
 0x72b   : > { %5190 = vst.msk [vmem:[#allocation3 + $0x48] sm:$0xff] %vm3069_vm14, %v5104_v61  ;;  %v5102_v56 = vpop.permute.xlu0 %5101 }
 0x72c   : > { %5189 = vst.msk [vmem:[#allocation3 + $0x40] sm:$0xff] %vm3069_vm14, %v5102_v56  ;;  %5475 = vrot.lane.b32.xlu1 %v9595_v47, %s7192_s29 }
 0x72d   : > { %5473 = vrot.lane.b32.xlu0 %v9601_v34, %s7192_s29 }
 0x72e   : > { %v5108_v4 = vpop.permute.xlu1 %5107 }
 0x72f   : > { %5192 = vst.msk [vmem:[#allocation3 + $0x58] sm:$0xff] %vm3069_vm14, %v5108_v4  ;;  %v5106_v3 = vpop.permute.xlu0 %5105  ;;  %v11112_v4 = vld [vmem:[#allocation18_spill] sm:$0xff] }
 0x730   : > { %5191 = vst.msk [vmem:[#allocation3 + $0x50] sm:$0xff] %vm3069_vm14, %v5106_v3  ;;  %5479 = vrot.lane.b32.xlu1 %v9617_v28, %s7192_s29  ;;  %v11113_v3 = vld [vmem:[#allocation19_spill] sm:$0xff] }
 0x731   : > { %5477 = vrot.lane.b32.xlu0 %v9623_v55, %s7192_s29 }
 0x732   : > { %v5112_v46 = vpop.permute.xlu1 %5111 }
 0x733   : > { %5194 = vst.msk [vmem:[#allocation3 + $0x68] sm:$0xff] %vm3069_vm14, %v5112_v46  ;;  %v5110_v49 = vpop.permute.xlu0 %5109 }
 0x734   : > { %5193 = vst.msk [vmem:[#allocation3 + $0x60] sm:$0xff] %vm3069_vm14, %v5110_v49  ;;  %5483 = vrot.lane.b32.xlu1 %v9639_v53, %s7192_s29 }
 0x735   : > { %5481 = vrot.lane.b32.xlu0 %v9645_v57, %s7192_s29 }
 0x736   : > { %v5116_v47 = vpop.permute.xlu1 %5115 }
 0x737   : > { %5196 = vst.msk [vmem:[#allocation3 + $0x78] sm:$0xff] %vm3069_vm14, %v5116_v47  ;;  %v5114_v34 = vpop.permute.xlu0 %5113  ;;  %v11114_v47 = vld [vmem:[#allocation20_spill] sm:$0xff] }
 0x738   : > { %5195 = vst.msk [vmem:[#allocation3 + $0x70] sm:$0xff] %vm3069_vm14, %v5114_v34  ;;  %5487 = vrot.lane.b32.xlu1 %v9661_v14, %s7192_s29  ;;  %v11115_v34 = vld [vmem:[#allocation21_spill] sm:$0xff] }
 0x739   : > { %5485 = vrot.lane.b32.xlu0 %v9667_v59, %s7192_s29 }
 0x73a   : > { %v5120_v28 = vpop.permute.xlu1 %5119 }
 0x73b   : > { %5198 = vst.msk [vmem:[#allocation3 + $0x88] sm:$0xff] %vm3069_vm14, %v5120_v28  ;;  %v5118_v55 = vpop.permute.xlu0 %5117 }
 0x73c   : > { %5197 = vst.msk [vmem:[#allocation3 + $0x80] sm:$0xff] %vm3069_vm14, %v5118_v55  ;;  %5491 = vrot.lane.b32.xlu1 %v9683_v5, %s7192_s29 }
 0x73d   : > { %5489 = vrot.lane.b32.xlu0 %v9689_v51, %s7192_s29 }
 0x73e   : > { %v5124_v53 = vpop.permute.xlu1 %5123 }
 0x73f   : > { %5200 = vst.msk [vmem:[#allocation3 + $0x98] sm:$0xff] %vm3069_vm14, %v5124_v53  ;;  %v5122_v57 = vpop.permute.xlu0 %5121  ;;  %v11116_v53 = vld [vmem:[#allocation22_spill] sm:$0xff] }
 0x740   : > { %5199 = vst.msk [vmem:[#allocation3 + $0x90] sm:$0xff] %vm3069_vm14, %v5122_v57  ;;  %5495 = vrot.lane.b32.xlu1 %v9705_v58, %s7192_s29  ;;  %v11117_v57 = vld [vmem:[#allocation23_spill] sm:$0xff] }
 0x741   : > { %5493 = vrot.lane.b32.xlu0 %v9711_v25, %s7192_s29 }
 0x742   : > { %v5128_v14 = vpop.permute.xlu1 %5127 }
 0x743   : > { %5202 = vst.msk [vmem:[#allocation3 + $0xa8] sm:$0xff] %vm3069_vm14, %v5128_v14  ;;  %v5126_v59 = vpop.permute.xlu0 %5125 }
 0x744   : > { %5201 = vst.msk [vmem:[#allocation3 + $0xa0] sm:$0xff] %vm3069_vm14, %v5126_v59  ;;  %5499 = vrot.lane.b32.xlu1 %v9727_v10, %s7192_s29 }
 0x745   : > { %5497 = vrot.lane.b32.xlu0 %v9733_v37, %s7192_s29 }
 0x746   : > { %v5132_v5 = vpop.permute.xlu1 %5131 }
 0x747   : > { %5204 = vst.msk [vmem:[#allocation3 + $0xb8] sm:$0xff] %vm3069_vm14, %v5132_v5  ;;  %v5130_v51 = vpop.permute.xlu0 %5129  ;;  %v11118_v5 = vld [vmem:[#allocation24_spill] sm:$0xff] }
 0x748   : > { %5203 = vst.msk [vmem:[#allocation3 + $0xb0] sm:$0xff] %vm3069_vm14, %v5130_v51  ;;  %5503 = vrot.lane.b32.xlu1 %v9749_v15, %s7192_s29  ;;  %v11119_v51 = vld [vmem:[#allocation25_spill] sm:$0xff] }
 0x749   : > { %5501 = vrot.lane.b32.xlu0 %v9755_v29, %s7192_s29 }
 0x74a   : > { %v5136_v58 = vpop.permute.xlu1 %5135 }
 0x74b   : > { %5206 = vst.msk [vmem:[#allocation3 + $0xc8] sm:$0xff] %vm3069_vm14, %v5136_v58  ;;  %v5134_v25 = vpop.permute.xlu0 %5133 }
 0x74c   : > { %5205 = vst.msk [vmem:[#allocation3 + $0xc0] sm:$0xff] %vm3069_vm14, %v5134_v25  ;;  %5507 = vrot.lane.b32.xlu1 %v9771_v16, %s7192_s29 }
 0x74d   : > { %5505 = vrot.lane.b32.xlu0 %v9777_v24, %s7192_s29 }
 0x74e   : > { %v5140_v10 = vpop.permute.xlu1 %5139 }
 0x74f   : > { %5208 = vst.msk [vmem:[#allocation3 + $0xd8] sm:$0xff] %vm3069_vm14, %v5140_v10  ;;  %v5138_v37 = vpop.permute.xlu0 %5137  ;;  %v11120_v10 = vld [vmem:[#allocation26_spill] sm:$0xff] }
 0x750   : > { %5207 = vst.msk [vmem:[#allocation3 + $0xd0] sm:$0xff] %vm3069_vm14, %v5138_v37  ;;  %5511 = vrot.lane.b32.xlu1 %v9793_v50, %s7192_s29  ;;  %v11121_v37 = vld [vmem:[#allocation27_spill] sm:$0xff] }
 0x751   : > { %5509 = vrot.lane.b32.xlu0 %v9799_v63, %s7192_s29 }
 0x752   : > { %v5144_v15 = vpop.permute.xlu1 %5143 }
 0x753   : > { %5210 = vst.msk [vmem:[#allocation3 + $0xe8] sm:$0xff] %vm3069_vm14, %v5144_v15  ;;  %v5142_v29 = vpop.permute.xlu0 %5141 }
 0x754   : > { %5209 = vst.msk [vmem:[#allocation3 + $0xe0] sm:$0xff] %vm3069_vm14, %v5142_v29  ;;  %5515 = vrot.lane.b32.xlu1 %v9815_v48, %s7192_s29  ;;  %v11101_v48 = vld [vmem:[#allocation7_spill] sm:$0xff] }
 0x755   : > { %5513 = vrot.lane.b32.xlu0 %v9821_v36, %s7192_s29 }
 0x756   : > { %v5148_v16 = vpop.permute.xlu1 %5147 }
 0x757   : > { %5212 = vst.msk [vmem:[#allocation3 + $0xf8] sm:$0xff] %vm3069_vm14, %v5148_v16  ;;  %v5146_v24 = vpop.permute.xlu0 %5145  ;;  %v11122_v16 = vld [vmem:[#allocation28_spill] sm:$0xff] }
 0x758   : > { %5211 = vst.msk [vmem:[#allocation3 + $0xf0] sm:$0xff] %vm3069_vm14, %v5146_v24  ;;  %5519 = vrot.lane.b32.xlu1 %v9836_v13, %s7192_s29  ;;  %v11102_v13 = vld [vmem:[#allocation8_spill] sm:$0xff]  ;;  %v11123_v24 = vld [vmem:[#allocation29_spill] sm:$0xff] }
 0x759   : > { %5517 = vrot.lane.b32.xlu0 %v9842_v38, %s7192_s29  ;;  %v11103_v38 = vld [vmem:[#allocation9_spill] sm:$0xff] }
 0x75a   : > { %v5280_v50 = vpop.permute.xlu1 %5279 }
 0x75b   : > { %5374 = vst.msk [vmem:[#allocation3 + $0x8] sm:$0xff] %vm3262_vm15, %v5280_v50  ;;  %v5278_v63 = vpop.permute.xlu0 %5277 }
 0x75c   : > { %5373 = vst.msk [vmem:[#allocation3] sm:$0xff] %vm3262_vm15, %v5278_v63  ;;  %5523 = vrot.lane.b32.xlu1 %v9857_v22, %s7192_s29  ;;  %v10202_v22 = vld [vmem:[#allocation2 + $0x189] sm:$0xff] }
 0x75d   : > { %5521 = vrot.lane.b32.xlu0 %v11101_v48, %s7192_s29  ;;  %v11124_v48 = vld [vmem:[#allocation30_spill] sm:$0xff] }
 0x75e   : > { %v5284_v36 = vpop.permute.xlu1 %5283 }
 0x75f   : > { %5376 = vst.msk [vmem:[#allocation3 + $0x18] sm:$0xff] %vm3262_vm15, %v5284_v36  ;;  %v5282_v9 = vpop.permute.xlu0 %5281  ;;  %v11125_v36 = vld [vmem:[#allocation31_spill] sm:$0xff] }
 0x760   : > { %5375 = vst.msk [vmem:[#allocation3 + $0x10] sm:$0xff] %vm3262_vm15, %v5282_v9  ;;  %5527 = vrot.lane.b32.xlu1 %v11102_v13, %s7192_s29 }
 0x761   : > { %5525 = vrot.lane.b32.xlu0 %v11103_v38, %s7192_s29  ;;  %v11126_v38 = vld [vmem:[#allocation32_spill] sm:$0xff] }
 0x762   : > { %v5288_v8 = vpop.permute.xlu1 %5287 }
 0x763   : > { %5378 = vst.msk [vmem:[#allocation3 + $0x28] sm:$0xff] %vm3262_vm15, %v5288_v8  ;;  %v5286_v41 = vpop.permute.xlu0 %5285  ;;  %v11127_v8 = vld [vmem:[#allocation33_spill] sm:$0xff] }
 0x764   : > { %5377 = vst.msk [vmem:[#allocation3 + $0x20] sm:$0xff] %vm3262_vm15, %v5286_v41  ;;  %5531 = vrot.lane.b32.xlu1 %v10202_v22, %s7192_s29 }
 0x765   : > { %5529 = vrot.lane.b32.xlu0 %v10207_v27, %s7192_s29 }
 0x766   : > { %v5292_v39 = vpop.permute.xlu1 %5291 }
 0x767   : > { %5380 = vst.msk [vmem:[#allocation3 + $0x38] sm:$0xff] %vm3262_vm15, %v5292_v39  ;;  %v5290_v62 = vpop.permute.xlu0 %5289 }
 0x768   : > { %5379 = vst.msk [vmem:[#allocation3 + $0x30] sm:$0xff] %vm3262_vm15, %v5290_v62  ;;  %5663 = vrot.lane.b32.xlu1 %v11104_v32, %s7193_s19  ;;  %v11128_v62 = vld [vmem:[#allocation34_spill] sm:$0xff]  ;;  %v11129_v32 = vld [vmem:[#allocation35_spill] sm:$0xff] }
 0x769   : > { %5661 = vrot.lane.b32.xlu0 %v11105_v23, %s7193_s19 }
 0x76a   : > { %v5296_v40 = vpop.permute.xlu1 %5295 }
 0x76b   : > { %5382 = vst.msk [vmem:[#allocation3 + $0x48] sm:$0xff] %vm3262_vm15, %v5296_v40  ;;  %v5294_v44 = vpop.permute.xlu0 %5293 }
 0x76c   : > { %5381 = vst.msk [vmem:[#allocation3 + $0x40] sm:$0xff] %vm3262_vm15, %v5294_v44  ;;  %5667 = vrot.lane.b32.xlu1 %v11106_v1, %s7193_s19  ;;  %v11130_v44 = vld [vmem:[#allocation36_spill] sm:$0xff] }
 0x76d   : > { %5665 = vrot.lane.b32.xlu0 %v11107_v31, %s7193_s19 }
 0x76e   : > { %v5300_v52 = vpop.permute.xlu1 %5299 }
 0x76f   : > { %5384 = vst.msk [vmem:[#allocation3 + $0x58] sm:$0xff] %vm3262_vm15, %v5300_v52  ;;  %v5298_v2 = vpop.permute.xlu0 %5297 }
 0x770   : > { %5383 = vst.msk [vmem:[#allocation3 + $0x50] sm:$0xff] %vm3262_vm15, %v5298_v2  ;;  %5671 = vrot.lane.b32.xlu1 %v11108_v0, %s7193_s19  ;;  %v10307_v0 = vld [vmem:[#allocation2 + $0x182] sm:$0xff] }
 0x771   : > { %5669 = vrot.lane.b32.xlu0 %v11109_v17, %s7193_s19 }
 0x772   : > { %v5304_v11 = vpop.permute.xlu1 %5303 }
 0x773   : > { %5386 = vst.msk [vmem:[#allocation3 + $0x68] sm:$0xff] %vm3262_vm15, %v5304_v11  ;;  %v5302_v42 = vpop.permute.xlu0 %5301 }
 0x774   : > { %5385 = vst.msk [vmem:[#allocation3 + $0x60] sm:$0xff] %vm3262_vm15, %v5302_v42  ;;  %5675 = vrot.lane.b32.xlu1 %v11110_v6, %s7193_s19 }
 0x775   : > { %5673 = vrot.lane.b32.xlu0 %v11111_v21, %s7193_s19 }
 0x776   : > { %v5308_v61 = vpop.permute.xlu1 %5307 }
 0x777   : > { %5388 = vst.msk [vmem:[#allocation3 + $0x78] sm:$0xff] %vm3262_vm15, %v5308_v61  ;;  %v5306_v56 = vpop.permute.xlu0 %5305 }
 0x778   : > { %5387 = vst.msk [vmem:[#allocation3 + $0x70] sm:$0xff] %vm3262_vm15, %v5306_v56  ;;  %5679 = vrot.lane.b32.xlu1 %v11112_v4, %s7193_s19 }
 0x779   : > { %5677 = vrot.lane.b32.xlu0 %v11113_v3, %s7193_s19  ;;  %v6175_v3 = vld [vmem:[#allocation2 + $0x4a] sm:$0xff] }
 0x77a   : > { %v5312_v46 = vpop.permute.xlu1 %5311 }
 0x77b   : > { %5390 = vst.msk [vmem:[#allocation3 + $0x88] sm:$0xff] %vm3262_vm15, %v5312_v46  ;;  %v5310_v49 = vpop.permute.xlu0 %5309  ;;  %v5983_v46 = vld [vmem:[#allocation2 + $0x49] sm:$0xff] }
 0x77c   : > { %5389 = vst.msk [vmem:[#allocation3 + $0x80] sm:$0xff] %vm3262_vm15, %v5310_v49  ;;  %5683 = vrot.lane.b32.xlu1 %v11114_v47, %s7193_s19 }
 0x77d   : > { %5681 = vrot.lane.b32.xlu0 %v11115_v34, %s7193_s19  ;;  %v6176_v34 = vld [vmem:[#allocation2 + $0x52] sm:$0xff] }
 0x77e   : > { %v5316_v28 = vpop.permute.xlu1 %5315 }
 0x77f   : > { %5392 = vst.msk [vmem:[#allocation3 + $0x98] sm:$0xff] %vm3262_vm15, %v5316_v28  ;;  %v5314_v55 = vpop.permute.xlu0 %5313  ;;  %v5984_v28 = vld [vmem:[#allocation2 + $0x51] sm:$0xff] }
 0x780   : > { %5391 = vst.msk [vmem:[#allocation3 + $0x90] sm:$0xff] %vm3262_vm15, %v5314_v55  ;;  %5687 = vrot.lane.b32.xlu1 %v11116_v53, %s7193_s19 }
 0x781   : > { %5685 = vrot.lane.b32.xlu0 %v11117_v57, %s7193_s19  ;;  %v6177_v57 = vld [vmem:[#allocation2 + $0x62] sm:$0xff] }
 0x782   : > { %v5320_v14 = vpop.permute.xlu1 %5319 }
 0x783   : > { %5394 = vst.msk [vmem:[#allocation3 + $0xa8] sm:$0xff] %vm3262_vm15, %v5320_v14  ;;  %v5318_v59 = vpop.permute.xlu0 %5317  ;;  %v5985_v14 = vld [vmem:[#allocation2 + $0x61] sm:$0xff] }
 0x784   : > { %5393 = vst.msk [vmem:[#allocation3 + $0xa0] sm:$0xff] %vm3262_vm15, %v5318_v59  ;;  %5691 = vrot.lane.b32.xlu1 %v11118_v5, %s7193_s19 }
 0x785   : > { %5689 = vrot.lane.b32.xlu0 %v11119_v51, %s7193_s19  ;;  %v6178_v51 = vld [vmem:[#allocation2 + $0x6a] sm:$0xff] }
 0x786   : > { %v5324_v58 = vpop.permute.xlu1 %5323 }
 0x787   : > { %5396 = vst.msk [vmem:[#allocation3 + $0xb8] sm:$0xff] %vm3262_vm15, %v5324_v58  ;;  %v5322_v25 = vpop.permute.xlu0 %5321  ;;  %v5986_v58 = vld [vmem:[#allocation2 + $0x69] sm:$0xff] }
 0x788   : > { %5395 = vst.msk [vmem:[#allocation3 + $0xb0] sm:$0xff] %vm3262_vm15, %v5322_v25  ;;  %5695 = vrot.lane.b32.xlu1 %v11120_v10, %s7193_s19 }
 0x789   : > { %5693 = vrot.lane.b32.xlu0 %v11121_v37, %s7193_s19  ;;  %v6179_v37 = vld [vmem:[#allocation2 + $0x7a] sm:$0xff] }
 0x78a   : > { %v5328_v15 = vpop.permute.xlu1 %5327 }
 0x78b   : > { %5398 = vst.msk [vmem:[#allocation3 + $0xc8] sm:$0xff] %vm3262_vm15, %v5328_v15  ;;  %v5326_v29 = vpop.permute.xlu0 %5325  ;;  %v5987_v15 = vld [vmem:[#allocation2 + $0x79] sm:$0xff] }
 0x78c   : > { %5397 = vst.msk [vmem:[#allocation3 + $0xc0] sm:$0xff] %vm3262_vm15, %v5326_v29  ;;  %5699 = vrot.lane.b32.xlu1 %v11122_v16, %s7193_s19 }
 0x78d   : > { %5697 = vrot.lane.b32.xlu0 %v11123_v24, %s7193_s19  ;;  %v5988_v24 = vld [vmem:[#allocation2 + $0x81] sm:$0xff] }
 0x78e   : > { %v5332_v50 = vpop.permute.xlu1 %5331 }
 0x78f   : > { %5400 = vst.msk [vmem:[#allocation3 + $0xd8] sm:$0xff] %vm3262_vm15, %v5332_v50  ;;  %v5330_v63 = vpop.permute.xlu0 %5329 }
 0x790   : > { %5399 = vst.msk [vmem:[#allocation3 + $0xd0] sm:$0xff] %vm3262_vm15, %v5330_v63  ;;  %5703 = vrot.lane.b32.xlu1 %v11124_v48, %s7193_s19  ;;  %v5989_v48 = vld [vmem:[#allocation2 + $0x91] sm:$0xff] }
 0x791   : > { %5701 = vrot.lane.b32.xlu0 %v11125_v36, %s7193_s19  ;;  %v6180_v36 = vld [vmem:[#allocation2 + $0x82] sm:$0xff] }
 0x792   : > { %v5336_v9 = vpop.permute.xlu1 %5335 }
 0x793   : > { %5402 = vst.msk [vmem:[#allocation3 + $0xe8] sm:$0xff] %vm3262_vm15, %v5336_v9  ;;  %v5334_v13 = vpop.permute.xlu0 %5333 }
 0x794   : > { %5401 = vst.msk [vmem:[#allocation3 + $0xe0] sm:$0xff] %vm3262_vm15, %v5334_v13  ;;  %5707 = vrot.lane.b32.xlu1 %v11126_v38, %s7193_s19  ;;  %v5798_v38 = vld [vmem:[#allocation2 + $0x98] sm:$0xff] }
 0x795   : > { %5705 = vrot.lane.b32.xlu0 %v11127_v8, %s7193_s19 }
 0x796   : > { %v5340_v41 = vpop.permute.xlu1 %5339 }
 0x797   : > { %5404 = vst.msk [vmem:[#allocation3 + $0xf8] sm:$0xff] %vm3262_vm15, %v5340_v41  ;;  %v5338_v39 = vpop.permute.xlu0 %5337 }
 0x798   : > { %5403 = vst.msk [vmem:[#allocation3 + $0xf0] sm:$0xff] %vm3262_vm15, %v5338_v39  ;;  %5711 = vrot.lane.b32.xlu1 %v11128_v62, %s7193_s19  ;;  %v5990_v39 = vld [vmem:[#allocation2 + $0x99] sm:$0xff] }
 0x799   : > { %5709 = vrot.lane.b32.xlu0 %v11129_v32, %s7193_s19 }
 0x79a   : > { %v5472_v23 = vpop.permute.xlu1 %5471 }
 0x79b   : > { %5566 = vst.msk [vmem:[#allocation3 + $0x8] sm:$0xff] %vm3455_vm1, %v5472_v23  ;;  %v5470_v40 = vpop.permute.xlu0 %5469  ;;  %v5991_v23 = vld [vmem:[#allocation2 + $0xa9] sm:$0xff] }
 0x79c   : > { %5565 = vst.msk [vmem:[#allocation3] sm:$0xff] %vm3455_vm1, %v5470_v40  ;;  %5715 = vrot.lane.b32.xlu1 %v9998_v35, %s7193_s19  ;;  %v10302_v35 = vld [vmem:[#allocation2 + $0x18a] sm:$0xff]  ;;  %v6182_v40 = vld [vmem:[#allocation2 + $0x9a] sm:$0xff] }
 0x79d   : > { %5713 = vrot.lane.b32.xlu0 %v11130_v44, %s7193_s19 }
 0x79e   : > { %v5476_v1 = vpop.permute.xlu1 %5475 }
 0x79f   : > { %5568 = vst.msk [vmem:[#allocation3 + $0x18] sm:$0xff] %vm3455_vm1, %v5476_v1  ;;  %v5474_v31 = vpop.permute.xlu0 %5473 }
 0x7a0   : > { %5567 = vst.msk [vmem:[#allocation3 + $0x10] sm:$0xff] %vm3455_vm1, %v5474_v31  ;;  %5719 = vrot.lane.b32.xlu1 %v10008_v33, %s7193_s19  ;;  %v5800_v31 = vld [vmem:[#allocation2 + $0xb0] sm:$0xff] }
 0x7a1   : > { %5717 = vrot.lane.b32.xlu0 %v10013_v20, %s7193_s19 }
 0x7a2   : > { %v5480_v52 = vpop.permute.xlu1 %5479 }
 0x7a3   : > { %5570 = vst.msk [vmem:[#allocation3 + $0x28] sm:$0xff] %vm3455_vm1, %v5480_v52  ;;  %v5478_v2 = vpop.permute.xlu0 %5477 }
 0x7a4   : > { %5569 = vst.msk [vmem:[#allocation3 + $0x20] sm:$0xff] %vm3455_vm1, %v5478_v2  ;;  %5723 = vrot.lane.b32.xlu1 %v10302_v35, %s7193_s19 }
 0x7a5   : > { %5721 = vrot.lane.b32.xlu0 %v10307_v0, %s7193_s19 }
 0x7a6   : > { %v5484_v33 = vpop.permute.xlu1 %5483 }
 0x7a7   : > { %5572 = vst.msk [vmem:[#allocation3 + $0x38] sm:$0xff] %vm3455_vm1, %v5484_v33  ;;  %v5482_v20 = vpop.permute.xlu0 %5481  ;;  %v5801_v33 = vld [vmem:[#allocation2 + $0xc0] sm:$0xff] }
 0x7a8   : > { %5571 = vst.msk [vmem:[#allocation3 + $0x30] sm:$0xff] %vm3455_vm1, %v5482_v20  ;;  %5855 = vrot.lane.b32.xlu1 %v9603_v43, %s7194_s20  ;;  %v5992_v20 = vld [vmem:[#allocation2 + $0xb1] sm:$0xff] }
 0x7a9   : > { %5853 = vrot.lane.b32.xlu0 %v9611_v30, %s7194_s20 }
 0x7aa   : > { %v5488_v17 = vpop.permute.xlu1 %5487 }
 0x7ab   : > { %5574 = vst.msk [vmem:[#allocation3 + $0x48] sm:$0xff] %vm3455_vm1, %v5488_v17  ;;  %v5486_v11 = vpop.permute.xlu0 %5485 }
 0x7ac   : > { %5573 = vst.msk [vmem:[#allocation3 + $0x40] sm:$0xff] %vm3455_vm1, %v5486_v11  ;;  %5859 = vrot.lane.b32.xlu1 %v9625_v7, %s7194_s20 }
 0x7ad   : > { %5857 = vrot.lane.b32.xlu0 %v9633_v45, %s7194_s20 }
 0x7ae   : > { %v5492_v42 = vpop.permute.xlu1 %5491 }
 0x7af   : > { %5576 = vst.msk [vmem:[#allocation3 + $0x58] sm:$0xff] %vm3455_vm1, %v5492_v42  ;;  %v5490_v6 = vpop.permute.xlu0 %5489  ;;  %v5993_v42 = vld [vmem:[#allocation2 + $0xc1] sm:$0xff] }
 0x7b0   : > { %5575 = vst.msk [vmem:[#allocation3 + $0x50] sm:$0xff] %vm3455_vm1, %v5490_v6  ;;  %5863 = vrot.lane.b32.xlu1 %v9647_v18, %s7194_s20  ;;  %v5982_v18 = vld [vmem:[#allocation2 + $0x39] sm:$0xff] }
 0x7b1   : > { %5861 = vrot.lane.b32.xlu0 %v9655_v60, %s7194_s20  ;;  %v5981_v60 = vld [vmem:[#allocation2 + $0x31] sm:$0xff] }
 0x7b2   : > { %v5496_v43 = vpop.permute.xlu1 %5495  ;;  %v6184_v6 = vld [vmem:[#allocation2 + $0xb2] sm:$0xff] }
 0x7b3   : > { %5578 = vst.msk [vmem:[#allocation3 + $0x68] sm:$0xff] %vm3455_vm1, %v5496_v43  ;;  %v5494_v30 = vpop.permute.xlu0 %5493 }
 0x7b4   : > { %5577 = vst.msk [vmem:[#allocation3 + $0x60] sm:$0xff] %vm3455_vm1, %v5494_v30  ;;  %5867 = vrot.lane.b32.xlu1 %v9669_v26, %s7194_s20  ;;  %v6174_v26 = vld [vmem:[#allocation2 + $0x3a] sm:$0xff] }
 0x7b5   : > { %5865 = vrot.lane.b32.xlu0 %v9677_v19, %s7194_s20  ;;  %v6173_v19 = vld [vmem:[#allocation2 + $0x32] sm:$0xff] }
 0x7b6   : > { %v5500_v7 = vpop.permute.xlu1 %5499 }
 0x7b7   : > { %5580 = vst.msk [vmem:[#allocation3 + $0x78] sm:$0xff] %vm3455_vm1, %v5500_v7  ;;  %v5498_v45 = vpop.permute.xlu0 %5497  ;;  %v6185_v7 = vld [vmem:[#allocation2 + $0xc2] sm:$0xff] }
 0x7b8   : > { %5579 = vst.msk [vmem:[#allocation3 + $0x70] sm:$0xff] %vm3455_vm1, %v5498_v45  ;;  %6047 = vrot.lane.b32.xlu1 %v5982_v18, %s7195_s25  ;;  %v5802_v45 = vld [vmem:[#allocation2 + $0xc8] sm:$0xff] }
 0x7b9   : > { %6045 = vrot.lane.b32.xlu0 %v5981_v60, %s7195_s25 }
 0x7ba   : > { %v5504_v21 = vpop.permute.xlu1 %5503 }
 0x7bb   : > { %5582 = vst.msk [vmem:[#allocation3 + $0x88] sm:$0xff] %vm3455_vm1, %v5504_v21  ;;  %v5502_v61 = vpop.permute.xlu0 %5501  ;;  %v5803_v21 = vld [vmem:[#allocation2 + $0xd8] sm:$0xff] }
 0x7bc   : > { %5581 = vst.msk [vmem:[#allocation3 + $0x80] sm:$0xff] %vm3455_vm1, %v5502_v61  ;;  %6239 = vrot.lane.b32.xlu1 %v6174_v26, %s7196_s11  ;;  %v5994_v61 = vld [vmem:[#allocation2 + $0xc9] sm:$0xff] }
 0x7bd   : > { %6237 = vrot.lane.b32.xlu0 %v6173_v19, %s7196_s11 }
 0x7be   : > { %v5508_v56 = vpop.permute.xlu1 %5507 }
 0x7bf   : > { %5584 = vst.msk [vmem:[#allocation3 + $0x98] sm:$0xff] %vm3455_vm1, %v5508_v56  ;;  %v5506_v4 = vpop.permute.xlu0 %5505  ;;  %v5995_v56 = vld [vmem:[#allocation2 + $0xd9] sm:$0xff] }
 0x7c0   : > { %5583 = vst.msk [vmem:[#allocation3 + $0x90] sm:$0xff] %vm3455_vm1, %v5506_v4  ;;  %6241 = vrot.lane.b32.xlu1 %v6175_v3, %s7196_s11  ;;  %v6186_v4 = vld [vmem:[#allocation2 + $0xca] sm:$0xff] }
 0x7c1   : > { %6049 = vrot.lane.b32.xlu0 %v5983_v46, %s7195_s25 }
 0x7c2   : > { %v5512_v49 = vpop.permute.xlu1 %5511 }
 0x7c3   : > { %5586 = vst.msk [vmem:[#allocation3 + $0xa8] sm:$0xff] %vm3455_vm1, %v5512_v49  ;;  %v5510_v47 = vpop.permute.xlu0 %5509  ;;  %v6187_v49 = vld [vmem:[#allocation2 + $0xda] sm:$0xff] }
 0x7c4   : > { %5585 = vst.msk [vmem:[#allocation3 + $0xa0] sm:$0xff] %vm3455_vm1, %v5510_v47  ;;  %6243 = vrot.lane.b32.xlu1 %v6176_v34, %s7196_s11  ;;  %v5804_v47 = vld [vmem:[#allocation2 + $0xe0] sm:$0xff] }
 0x7c5   : > { %6051 = vrot.lane.b32.xlu0 %v5984_v28, %s7195_s25 }
 0x7c6   : > { %v5516_v55 = vpop.permute.xlu1 %5515 }
 0x7c7   : > { %5588 = vst.msk [vmem:[#allocation3 + $0xb8] sm:$0xff] %vm3455_vm1, %v5516_v55  ;;  %v5514_v53 = vpop.permute.xlu0 %5513  ;;  %v5805_v55 = vld [vmem:[#allocation2 + $0xf0] sm:$0xff] }
 0x7c8   : > { %5587 = vst.msk [vmem:[#allocation3 + $0xb0] sm:$0xff] %vm3455_vm1, %v5514_v53  ;;  %6245 = vrot.lane.b32.xlu1 %v6177_v57, %s7196_s11  ;;  %v5996_v53 = vld [vmem:[#allocation2 + $0xe1] sm:$0xff] }
 0x7c9   : > { %6053 = vrot.lane.b32.xlu0 %v5985_v14, %s7195_s25 }
 0x7ca   : > { %v5520_v59 = vpop.permute.xlu1 %5519 }
 0x7cb   : > { %5590 = vst.msk [vmem:[#allocation3 + $0xc8] sm:$0xff] %vm3455_vm1, %v5520_v59  ;;  %v5518_v5 = vpop.permute.xlu0 %5517  ;;  %v5997_v59 = vld [vmem:[#allocation2 + $0xf1] sm:$0xff] }
 0x7cc   : > { %5589 = vst.msk [vmem:[#allocation3 + $0xc0] sm:$0xff] %vm3455_vm1, %v5518_v5  ;;  %6247 = vrot.lane.b32.xlu1 %v6178_v51, %s7196_s11  ;;  %v6188_v5 = vld [vmem:[#allocation2 + $0xe2] sm:$0xff] }
 0x7cd   : > { %6055 = vrot.lane.b32.xlu0 %v5986_v58, %s7195_s25 }
 0x7ce   : > { %v5524_v25 = vpop.permute.xlu1 %5523 }
 0x7cf   : > { %5592 = vst.msk [vmem:[#allocation3 + $0xd8] sm:$0xff] %vm3455_vm1, %v5524_v25  ;;  %v5522_v10 = vpop.permute.xlu0 %5521  ;;  %v6189_v25 = vld [vmem:[#allocation2 + $0xf2] sm:$0xff] }
 0x7d0   : > { %5591 = vst.msk [vmem:[#allocation3 + $0xd0] sm:$0xff] %vm3455_vm1, %v5522_v10  ;;  %6249 = vrot.lane.b32.xlu1 %v6179_v37, %s7196_s11  ;;  %v5806_v10 = vld [vmem:[#allocation2 + $0xf8] sm:$0xff] }
 0x7d1   : > { %6057 = vrot.lane.b32.xlu0 %v5987_v15, %s7195_s25 }
 0x7d2   : > { %v5528_v29 = vpop.permute.xlu1 %5527 }
 0x7d3   : > { %5594 = vst.msk [vmem:[#allocation3 + $0xe8] sm:$0xff] %vm3455_vm1, %v5528_v29  ;;  %v5526_v16 = vpop.permute.xlu0 %5525  ;;  %v5807_v29 = vld [vmem:[#allocation2 + $0x108] sm:$0xff] }
 0x7d4   : > { %5593 = vst.msk [vmem:[#allocation3 + $0xe0] sm:$0xff] %vm3455_vm1, %v5526_v16  ;;  %5869 = vrot.lane.b32.xlu1 %v9699_v12, %s7194_s20  ;;  %v6181_v12 = vld [vmem:[#allocation2 + $0x92] sm:$0xff] }
 0x7d5   : > { %6059 = vrot.lane.b32.xlu0 %v5988_v24, %s7195_s25  ;;  %v5998_v16 = vld [vmem:[#allocation2 + $0xf9] sm:$0xff] }
 0x7d6   : > { %v5532_v50 = vpop.permute.xlu1 %5531 }
 0x7d7   : > { %5596 = vst.msk [vmem:[#allocation3 + $0xf8] sm:$0xff] %vm3455_vm1, %v5532_v50  ;;  %v5530_v63 = vpop.permute.xlu0 %5529 }
 0x7d8   : > { %5595 = vst.msk [vmem:[#allocation3 + $0xf0] sm:$0xff] %vm3455_vm1, %v5530_v63  ;;  %6061 = vrot.lane.b32.xlu1 %v5989_v48, %s7195_s25  ;;  %v5999_v63 = vld [vmem:[#allocation2 + $0x109] sm:$0xff]  ;;  %v6190_v48 = vld [vmem:[#allocation2 + $0xfa] sm:$0xff] }
 0x7d9   : > { %6251 = vrot.lane.b32.xlu0 %v6180_v36, %s7196_s11 }
 0x7da   : > { %v5664_v9 = vpop.permute.xlu1 %5663 }
 0x7db   : > { %5758 = vst.msk [vmem:[#allocation3 + $0x8] sm:$0xff] %vm3648_vm2, %v5664_v9  ;;  %v5662_v13 = vpop.permute.xlu0 %5661 }
 0x7dc   : > { %5757 = vst.msk [vmem:[#allocation3] sm:$0xff] %vm3648_vm2, %v5662_v13  ;;  %6253 = vrot.lane.b32.xlu1 %v6181_v12, %s7196_s11  ;;  %v6191_v13 = vld [vmem:[#allocation2 + $0x10a] sm:$0xff] }
 0x7dd   : > { %5871 = vrot.lane.b32.xlu0 %v5798_v38, %s7194_s20  ;;  %v5808_v12 = vld [vmem:[#allocation2 + $0x110] sm:$0xff] }
 0x7de   : > { %v5668_v8 = vpop.permute.xlu1 %5667 }
 0x7df   : > { %5760 = vst.msk [vmem:[#allocation3 + $0x18] sm:$0xff] %vm3648_vm2, %v5668_v8  ;;  %v5666_v41 = vpop.permute.xlu0 %5665 }
 0x7e0   : > { %5759 = vst.msk [vmem:[#allocation3 + $0x10] sm:$0xff] %vm3648_vm2, %v5666_v41  ;;  %5873 = vrot.lane.b32.xlu1 %v9721_v54, %s7194_s20  ;;  %v6183_v54 = vld [vmem:[#allocation2 + $0xaa] sm:$0xff]  ;;  %v5809_v41 = vld [vmem:[#allocation2 + $0x120] sm:$0xff] }
 0x7e1   : > { %6063 = vrot.lane.b32.xlu0 %v5990_v39, %s7195_s25  ;;  %v6000_v39 = vld [vmem:[#allocation2 + $0x111] sm:$0xff] }
 0x7e2   : > { %v5672_v62 = vpop.permute.xlu1 %5671 }
 0x7e3   : > { %5762 = vst.msk [vmem:[#allocation3 + $0x28] sm:$0xff] %vm3648_vm2, %v5672_v62  ;;  %v5670_v32 = vpop.permute.xlu0 %5669 }
 0x7e4   : > { %5761 = vst.msk [vmem:[#allocation3 + $0x20] sm:$0xff] %vm3648_vm2, %v5670_v32  ;;  %6065 = vrot.lane.b32.xlu1 %v5991_v23, %s7195_s25  ;;  %v6001_v23 = vld [vmem:[#allocation2 + $0x121] sm:$0xff] }
 0x7e5   : > { %6255 = vrot.lane.b32.xlu0 %v6182_v40, %s7196_s11  ;;  %v6192_v40 = vld [vmem:[#allocation2 + $0x112] sm:$0xff] }
 0x7e6   : > { %v5676_v44 = vpop.permute.xlu1 %5675 }
 0x7e7   : > { %5764 = vst.msk [vmem:[#allocation3 + $0x38] sm:$0xff] %vm3648_vm2, %v5676_v44  ;;  %v5674_v1 = vpop.permute.xlu0 %5673 }
 0x7e8   : > { %5763 = vst.msk [vmem:[#allocation3 + $0x30] sm:$0xff] %vm3648_vm2, %v5674_v1  ;;  %6257 = vrot.lane.b32.xlu1 %v6183_v54, %s7196_s11  ;;  %v6193_v54 = vld [vmem:[#allocation2 + $0x122] sm:$0xff] }
 0x7e9   : > { %5875 = vrot.lane.b32.xlu0 %v5800_v31, %s7194_s20  ;;  %v5810_v31 = vld [vmem:[#allocation2 + $0x128] sm:$0xff] }
 0x7ea   : > { %v5680_v52 = vpop.permute.xlu1 %5679 }
 0x7eb   : > { %5766 = vst.msk [vmem:[#allocation3 + $0x48] sm:$0xff] %vm3648_vm2, %v5680_v52  ;;  %v5678_v2 = vpop.permute.xlu0 %5677 }
 0x7ec   : > { %5765 = vst.msk [vmem:[#allocation3 + $0x40] sm:$0xff] %vm3648_vm2, %v5678_v2  ;;  %5877 = vrot.lane.b32.xlu1 %v5801_v33, %s7194_s20  ;;  %v5811_v33 = vld [vmem:[#allocation2 + $0x138] sm:$0xff] }
 0x7ed   : > { %6067 = vrot.lane.b32.xlu0 %v5992_v20, %s7195_s25  ;;  %v6002_v20 = vld [vmem:[#allocation2 + $0x129] sm:$0xff] }
 0x7ee   : > { %v5684_v17 = vpop.permute.xlu1 %5683 }
 0x7ef   : > { %5768 = vst.msk [vmem:[#allocation3 + $0x58] sm:$0xff] %vm3648_vm2, %v5684_v17  ;;  %v5682_v11 = vpop.permute.xlu0 %5681 }
 0x7f0   : > { %5767 = vst.msk [vmem:[#allocation3 + $0x50] sm:$0xff] %vm3648_vm2, %v5682_v11  ;;  %6069 = vrot.lane.b32.xlu1 %v5993_v42, %s7195_s25  ;;  %v6003_v42 = vld [vmem:[#allocation2 + $0x139] sm:$0xff] }
 0x7f1   : > { %6259 = vrot.lane.b32.xlu0 %v6184_v6, %s7196_s11  ;;  %v6194_v6 = vld [vmem:[#allocation2 + $0x12a] sm:$0xff] }
 0x7f2   : > { %v5688_v43 = vpop.permute.xlu1 %5687 }
 0x7f3   : > { %5770 = vst.msk [vmem:[#allocation3 + $0x68] sm:$0xff] %vm3648_vm2, %v5688_v43  ;;  %v5686_v30 = vpop.permute.xlu0 %5685 }
 0x7f4   : > { %5769 = vst.msk [vmem:[#allocation3 + $0x60] sm:$0xff] %vm3648_vm2, %v5686_v30  ;;  %6261 = vrot.lane.b32.xlu1 %v6185_v7, %s7196_s11  ;;  %v6195_v7 = vld [vmem:[#allocation2 + $0x13a] sm:$0xff] }
 0x7f5   : > { %5879 = vrot.lane.b32.xlu0 %v5802_v45, %s7194_s20  ;;  %v5812_v45 = vld [vmem:[#allocation2 + $0x140] sm:$0xff] }
 0x7f6   : > { %v5692_v18 = vpop.permute.xlu1 %5691 }
 0x7f7   : > { %5772 = vst.msk [vmem:[#allocation3 + $0x78] sm:$0xff] %vm3648_vm2, %v5692_v18  ;;  %v5690_v60 = vpop.permute.xlu0 %5689 }
 0x7f8   : > { %5771 = vst.msk [vmem:[#allocation3 + $0x70] sm:$0xff] %vm3648_vm2, %v5690_v60  ;;  %5881 = vrot.lane.b32.xlu1 %v5803_v21, %s7194_s20  ;;  %v5813_v21 = vld [vmem:[#allocation2 + $0x150] sm:$0xff] }
 0x7f9   : > { %6071 = vrot.lane.b32.xlu0 %v5994_v61, %s7195_s25  ;;  %v6004_v61 = vld [vmem:[#allocation2 + $0x141] sm:$0xff] }
 0x7fa   : > { %v5696_v26 = vpop.permute.xlu1 %5695 }
 0x7fb   : > { %5774 = vst.msk [vmem:[#allocation3 + $0x88] sm:$0xff] %vm3648_vm2, %v5696_v26  ;;  %v5694_v19 = vpop.permute.xlu0 %5693 }
 0x7fc   : > { %5773 = vst.msk [vmem:[#allocation3 + $0x80] sm:$0xff] %vm3648_vm2, %v5694_v19  ;;  %6073 = vrot.lane.b32.xlu1 %v5995_v56, %s7195_s25  ;;  %v6005_v56 = vld [vmem:[#allocation2 + $0x151] sm:$0xff] }
 0x7fd   : > { %6263 = vrot.lane.b32.xlu0 %v6186_v4, %s7196_s11  ;;  %v6196_v4 = vld [vmem:[#allocation2 + $0x142] sm:$0xff] }
 0x7fe   : > { %v5700_v3 = vpop.permute.xlu1 %5699 }
 0x7ff   : > { %5776 = vst.msk [vmem:[#allocation3 + $0x98] sm:$0xff] %vm3648_vm2, %v5700_v3  ;;  %v5698_v46 = vpop.permute.xlu0 %5697 }
 0x800   : > { %5775 = vst.msk [vmem:[#allocation3 + $0x90] sm:$0xff] %vm3648_vm2, %v5698_v46  ;;  %6265 = vrot.lane.b32.xlu1 %v6187_v49, %s7196_s11  ;;  %v6197_v49 = vld [vmem:[#allocation2 + $0x152] sm:$0xff] }
 0x801   : > { %5883 = vrot.lane.b32.xlu0 %v5804_v47, %s7194_s20  ;;  %v5814_v47 = vld [vmem:[#allocation2 + $0x158] sm:$0xff] }
 0x802   : > { %v5704_v34 = vpop.permute.xlu1 %5703 }
 0x803   : > { %5778 = vst.msk [vmem:[#allocation3 + $0xa8] sm:$0xff] %vm3648_vm2, %v5704_v34  ;;  %v5702_v28 = vpop.permute.xlu0 %5701 }
 0x804   : > { %5777 = vst.msk [vmem:[#allocation3 + $0xa0] sm:$0xff] %vm3648_vm2, %v5702_v28  ;;  %5885 = vrot.lane.b32.xlu1 %v5805_v55, %s7194_s20  ;;  %v5815_v55 = vld [vmem:[#allocation2 + $0x168] sm:$0xff] }
 0x805   : > { %6075 = vrot.lane.b32.xlu0 %v5996_v53, %s7195_s25  ;;  %v6006_v53 = vld [vmem:[#allocation2 + $0x159] sm:$0xff] }
 0x806   : > { %v5708_v57 = vpop.permute.xlu1 %5707 }
 0x807   : > { %5780 = vst.msk [vmem:[#allocation3 + $0xb8] sm:$0xff] %vm3648_vm2, %v5708_v57  ;;  %v5706_v14 = vpop.permute.xlu0 %5705 }
 0x808   : > { %5779 = vst.msk [vmem:[#allocation3 + $0xb0] sm:$0xff] %vm3648_vm2, %v5706_v14  ;;  %6077 = vrot.lane.b32.xlu1 %v5997_v59, %s7195_s25  ;;  %v6007_v59 = vld [vmem:[#allocation2 + $0x169] sm:$0xff] }
 0x809   : > { %6267 = vrot.lane.b32.xlu0 %v6188_v5, %s7196_s11  ;;  %v6198_v5 = vld [vmem:[#allocation2 + $0x15a] sm:$0xff] }
 0x80a   : > { %v5712_v51 = vpop.permute.xlu1 %5711 }
 0x80b   : > { %5782 = vst.msk [vmem:[#allocation3 + $0xc8] sm:$0xff] %vm3648_vm2, %v5712_v51  ;;  %v5710_v58 = vpop.permute.xlu0 %5709 }
 0x80c   : > { %5781 = vst.msk [vmem:[#allocation3 + $0xc0] sm:$0xff] %vm3648_vm2, %v5710_v58  ;;  %6269 = vrot.lane.b32.xlu1 %v6189_v25, %s7196_s11  ;;  %v6199_v25 = vld [vmem:[#allocation2 + $0x16a] sm:$0xff] }
 0x80d   : > { %5887 = vrot.lane.b32.xlu0 %v5806_v10, %s7194_s20  ;;  %v5816_v10 = vld [vmem:[#allocation2 + $0x170] sm:$0xff] }
 0x80e   : > { %v5716_v37 = vpop.permute.xlu1 %5715 }
 0x80f   : > { %5784 = vst.msk [vmem:[#allocation3 + $0xd8] sm:$0xff] %vm3648_vm2, %v5716_v37  ;;  %v5714_v15 = vpop.permute.xlu0 %5713 }
 0x810   : > { %5783 = vst.msk [vmem:[#allocation3 + $0xd0] sm:$0xff] %vm3648_vm2, %v5714_v15  ;;  %5889 = vrot.lane.b32.xlu1 %v5807_v29, %s7194_s20  ;;  %v5817_v29 = vld [vmem:[#allocation2 + $0x180] sm:$0xff] }
 0x811   : > { %6079 = vrot.lane.b32.xlu0 %v5998_v16, %s7195_s25  ;;  %v6008_v16 = vld [vmem:[#allocation2 + $0x171] sm:$0xff] }
 0x812   : > { %v5720_v24 = vpop.permute.xlu1 %5719 }
 0x813   : > { %5786 = vst.msk [vmem:[#allocation3 + $0xe8] sm:$0xff] %vm3648_vm2, %v5720_v24  ;;  %v5718_v50 = vpop.permute.xlu0 %5717 }
 0x814   : > { %5785 = vst.msk [vmem:[#allocation3 + $0xe0] sm:$0xff] %vm3648_vm2, %v5718_v50  ;;  %6081 = vrot.lane.b32.xlu1 %v5999_v63, %s7195_s25  ;;  %v6200_v63 = vld [vmem:[#allocation2 + $0x172] sm:$0xff] }
 0x815   : > { %6271 = vrot.lane.b32.xlu0 %v6190_v48, %s7196_s11 }
 0x816   : > { %v5724_v36 = vpop.permute.xlu1 %5723 }
 0x817   : > { %5788 = vst.msk [vmem:[#allocation3 + $0xf8] sm:$0xff] %vm3648_vm2, %v5724_v36  ;;  %v5722_v9 = vpop.permute.xlu0 %5721 }
 0x818   : > { %5787 = vst.msk [vmem:[#allocation3 + $0xf0] sm:$0xff] %vm3648_vm2, %v5722_v9  ;;  %6273 = vrot.lane.b32.xlu1 %v6191_v13, %s7196_s11  ;;  %v5818_v9 = vld [vmem:[#allocation2 + $0x188] sm:$0xff]  ;;  %v5819_v13 = vld [vmem:[#allocation2 + $0x198] sm:$0xff] }
 0x819   : > { %5891 = vrot.lane.b32.xlu0 %v5808_v12, %s7194_s20 }
 0x81a   : > { %v5856_v38 = vpop.permute.xlu1 %5855 }
 0x81b   : > { %5950 = vst.msk [vmem:[#allocation3 + $0x8] sm:$0xff] %vm3841_vm3, %v5856_v38  ;;  %v5854_v8 = vpop.permute.xlu0 %5853  ;;  %v6011_v38 = vld [vmem:[#allocation2 + $0x199] sm:$0xff] }
 0x81c   : > { %5949 = vst.msk [vmem:[#allocation3] sm:$0xff] %vm3841_vm3, %v5854_v8  ;;  %5893 = vrot.lane.b32.xlu1 %v5809_v41, %s7194_s20  ;;  %v6203_v41 = vld [vmem:[#allocation2 + $0x19a] sm:$0xff] }
 0x81d   : > { %6083 = vrot.lane.b32.xlu0 %v6000_v39, %s7195_s25 }
 0x81e   : > { %v5860_v62 = vpop.permute.xlu1 %5859 }
 0x81f   : > { %5952 = vst.msk [vmem:[#allocation3 + $0x18] sm:$0xff] %vm3841_vm3, %v5860_v62  ;;  %v5858_v32 = vpop.permute.xlu0 %5857  ;;  %v5820_v62 = vld [vmem:[#allocation2 + $0x1a0] sm:$0xff] }
 0x820   : > { %5951 = vst.msk [vmem:[#allocation3 + $0x10] sm:$0xff] %vm3841_vm3, %v5858_v32  ;;  %6085 = vrot.lane.b32.xlu1 %v6001_v23, %s7195_s25 }
 0x821   : > { %6275 = vrot.lane.b32.xlu0 %v6192_v40, %s7196_s11  ;;  %v6012_v40 = vld [vmem:[#allocation2 + $0x1a1] sm:$0xff] }
 0x822   : > { %v5864_v44 = vpop.permute.xlu1 %5863 }
 0x823   : > { %5954 = vst.msk [vmem:[#allocation3 + $0x28] sm:$0xff] %vm3841_vm3, %v5864_v44  ;;  %v5862_v1 = vpop.permute.xlu0 %5861 }
 0x824   : > { %5953 = vst.msk [vmem:[#allocation3 + $0x20] sm:$0xff] %vm3841_vm3, %v5862_v1  ;;  %6277 = vrot.lane.b32.xlu1 %v6193_v54, %s7196_s11 }
 0x825   : > { %5895 = vrot.lane.b32.xlu0 %v5810_v31, %s7194_s20 }
 0x826   : > { %v5868_v52 = vpop.permute.xlu1 %5867 }
 0x827   : > { %5956 = vst.msk [vmem:[#allocation3 + $0x38] sm:$0xff] %vm3841_vm3, %v5868_v52  ;;  %v5866_v2 = vpop.permute.xlu0 %5865 }
 0x828   : > { %5955 = vst.msk [vmem:[#allocation3 + $0x30] sm:$0xff] %vm3841_vm3, %v5866_v2  ;;  %5897 = vrot.lane.b32.xlu1 %v5811_v33, %s7194_s20 }
 0x829   : > { %6087 = vrot.lane.b32.xlu0 %v6002_v20, %s7195_s25 }
 0x82a   : > { %v6048_v17 = vpop.permute.xlu1 %6047 }
 0x82b   : > { %6142 = vst.msk [vmem:[#allocation3 + $0x8] sm:$0xff] %vm4034_vm4, %v6048_v17  ;;  %v6046_v11 = vpop.permute.xlu0 %6045 }
 0x82c   : > { %6141 = vst.msk [vmem:[#allocation3] sm:$0xff] %vm4034_vm4, %v6046_v11  ;;  %6089 = vrot.lane.b32.xlu1 %v6003_v42, %s7195_s25 }
 0x82d   : > { %6279 = vrot.lane.b32.xlu0 %v6194_v6, %s7196_s11 }
 0x82e   : > { %v6240_v43 = vpop.permute.xlu1 %6239 }
 0x82f   : > { %6334 = vst.msk [vmem:[#allocation3 + $0x8] sm:$0xff] %vm4227_vm5, %v6240_v43  ;;  %v6238_v30 = vpop.permute.xlu0 %6237 }
 0x830   : > { %6333 = vst.msk [vmem:[#allocation3] sm:$0xff] %vm4227_vm5, %v6238_v30  ;;  %6281 = vrot.lane.b32.xlu1 %v6195_v7, %s7196_s11  ;;  %v10532_v30 = vld [vmem:[%s10854_s7] ss:$0 sm:$0xff] }
 0x831   : > { %5899 = vrot.lane.b32.xlu0 %v5812_v45, %s7194_s20 }
 0x832   : > { %v6242_v18 = vpop.permute.xlu1 %6241 }
 0x833   : > { %v6050_v60 = vpop.permute.xlu0 %6049 }
 0x834   : > { %6143 = vst.msk [vmem:[#allocation3 + $0x10] sm:$0xff] %vm4034_vm4, %v6050_v60  ;;  %5901 = vrot.lane.b32.xlu1 %v5813_v21, %s7194_s20 }
 0x835   : > { %6335 = vst.msk [vmem:[#allocation3 + $0x10] sm:$0xff] %vm4227_vm5, %v6242_v18  ;;  %6091 = vrot.lane.b32.xlu0 %v6004_v61, %s7195_s25 }
 0x836   : > { %v6244_v26 = vpop.permute.xlu1 %6243  ;;  %v6366_v60 = vld [vmem:[#allocation3 + $0x8] sm:$0xff] }
 0x837   : > { %v6052_v19 = vpop.permute.xlu0 %6051  ;;  %v6365_v43 = vld [vmem:[#allocation3] sm:$0xff] }
 0x838   : > { %6144 = vst.msk [vmem:[#allocation3 + $0x18] sm:$0xff] %vm4034_vm4, %v6052_v19  ;;  %6093 = vrot.lane.b32.xlu1 %v6005_v56, %s7195_s25  ;;  %v6404_v18 = vmul.f32 %v10532_v30, %v6365_v43  ;;  %v6405_v56 = vmul.f32 %v10532_v30, %v6366_v60 }
 0x839   : > { %6336 = vst.msk [vmem:[#allocation3 + $0x18] sm:$0xff] %vm4227_vm5, %v6244_v26  ;;  %6283 = vrot.lane.b32.xlu0 %v6196_v4, %s7196_s11 }
 0x83a   : > { %v6246_v3 = vpop.permute.xlu1 %6245  ;;  %v6436_v19 = vsel %vm4301_vm6, %v6404_v18, 0.0 }
 0x83b   : > { %v6054_v46 = vpop.permute.xlu0 %6053 }
 0x83c   : > { %6145 = vst.msk [vmem:[#allocation3 + $0x20] sm:$0xff] %vm4034_vm4, %v6054_v46  ;;  %6285 = vrot.lane.b32.xlu1 %v6197_v49, %s7196_s11  ;;  %v6367_v21 = vld [vmem:[#allocation3 + $0x10] sm:$0xff] }
 0x83d   : > { %6337 = vst.msk [vmem:[#allocation3 + $0x20] sm:$0xff] %vm4227_vm5, %v6246_v3  ;;  %5903 = vrot.lane.b32.xlu0 %v5814_v47, %s7194_s20  ;;  %v6406_v4 = vmul.f32 %v10532_v30, %v6367_v21 }
 0x83e   : > { %v6248_v34 = vpop.permute.xlu1 %6247 }
 0x83f   : > { %v6056_v28 = vpop.permute.xlu0 %6055 }
 0x840   : > { %6146 = vst.msk [vmem:[#allocation3 + $0x28] sm:$0xff] %vm4034_vm4, %v6056_v28  ;;  %5905 = vrot.lane.b32.xlu1 %v5815_v55, %s7194_s20  ;;  %v6368_v3 = vld [vmem:[#allocation3 + $0x18] sm:$0xff]  ;;  %v6442_v28 = vsel %vm4301_vm6, %v6406_v4, 0.0 }
 0x841   : > { %6338 = vst.msk [vmem:[#allocation3 + $0x28] sm:$0xff] %vm4227_vm5, %v6248_v34  ;;  %6095 = vrot.lane.b32.xlu0 %v6006_v53, %s7195_s25  ;;  %v6439_v34 = vsel %vm4301_vm6, %v6405_v56, 0.0  ;;  %v6407_v55 = vmul.f32 %v10532_v30, %v6368_v3 }
 0x842   : > { %v6250_v57 = vpop.permute.xlu1 %6249 }
 0x843   : > { %v6058_v14 = vpop.permute.xlu0 %6057 }
 0x844   : > { %6147 = vst.msk [vmem:[#allocation3 + $0x30] sm:$0xff] %vm4034_vm4, %v6058_v14  ;;  %6097 = vrot.lane.b32.xlu1 %v6007_v59, %s7195_s25  ;;  %v6369_v46 = vld [vmem:[#allocation3 + $0x20] sm:$0xff] }
 0x845   : > { %6339 = vst.msk [vmem:[#allocation3 + $0x30] sm:$0xff] %vm4227_vm5, %v6250_v57  ;;  %6287 = vrot.lane.b32.xlu0 %v6198_v5, %s7196_s11  ;;  %v6408_v53 = vmul.f32 %v10532_v30, %v6369_v46 }
 0x846   : > { %v5870_v51 = vpop.permute.xlu1 %5869 }
 0x847   : > { %5957 = vst.msk [vmem:[#allocation3 + $0x40] sm:$0xff] %vm3841_vm3, %v5870_v51  ;;  %v6060_v58 = vpop.permute.xlu0 %6059  ;;  %v6445_v51 = vsel %vm4301_vm6, %v6407_v55, 0.0 }
 0x848   : > { %6148 = vst.msk [vmem:[#allocation3 + $0x38] sm:$0xff] %vm4034_vm4, %v6060_v58  ;;  %6289 = vrot.lane.b32.xlu1 %v6199_v25, %s7196_s11  ;;  %v6370_v57 = vld [vmem:[#allocation3 + $0x28] sm:$0xff]  ;;  %v6448_v58 = vsel %vm4301_vm6, %v6408_v53, 0.0 }
 0x849   : > { %5907 = vrot.lane.b32.xlu0 %v5816_v10, %s7194_s20  ;;  %v6409_v25 = vmul.f32 %v10532_v30, %v6370_v57 }
 0x84a   : > { %v6062_v37 = vpop.permute.xlu1 %6061 }
 0x84b   : > { %6149 = vst.msk [vmem:[#allocation3 + $0x40] sm:$0xff] %vm4034_vm4, %v6062_v37  ;;  %v6252_v15 = vpop.permute.xlu0 %6251 }
 0x84c   : > { %6340 = vst.msk [vmem:[#allocation3 + $0x38] sm:$0xff] %vm4227_vm5, %v6252_v15  ;;  %5909 = vrot.lane.b32.xlu1 %v5817_v29, %s7194_s20  ;;  %v6371_v14 = vld [vmem:[#allocation3 + $0x30] sm:$0xff] }
 0x84d   : > { %6099 = vrot.lane.b32.xlu0 %v6008_v16, %s7195_s25  ;;  %v6410_v10 = vmul.f32 %v10532_v30, %v6371_v14 }
 0x84e   : > { %v6254_v24 = vpop.permute.xlu1 %6253 }
 0x84f   : > { %6341 = vst.msk [vmem:[#allocation3 + $0x40] sm:$0xff] %vm4227_vm5, %v6254_v24  ;;  %v5872_v50 = vpop.permute.xlu0 %5871  ;;  %v6451_v24 = vsel %vm4301_vm6, %v6409_v25, 0.0 }
 0x850   : > { %5958 = vst.msk [vmem:[#allocation3 + $0x48] sm:$0xff] %vm3841_vm3, %v5872_v50  ;;  %6101 = vrot.lane.b32.xlu1 %v10207_v27, %s7195_s25  ;;  %v6454_v50 = vsel %vm4301_vm6, %v6410_v10, 0.0 }
 0x851   : > { %6291 = vrot.lane.b32.xlu0 %v6200_v63, %s7196_s11 }
 0x852   : > { %v5874_v48 = vpop.permute.xlu1 %5873 }
 0x853   : > { %5959 = vst.msk [vmem:[#allocation3 + $0x50] sm:$0xff] %vm3841_vm3, %v5874_v48  ;;  %v6064_v36 = vpop.permute.xlu0 %6063  ;;  %v6372_v15 = vld [vmem:[#allocation3 + $0x38] sm:$0xff] }
 0x854   : > { %6150 = vst.msk [vmem:[#allocation3 + $0x48] sm:$0xff] %vm4034_vm4, %v6064_v36  ;;  %6293 = vrot.lane.b32.xlu1 %v10307_v0, %s7196_s11  ;;  %v6411_v48 = vmul.f32 %v10532_v30, %v6372_v15 }
 0x855   : > { %5911 = vrot.lane.b32.xlu0 %v5818_v9, %s7194_s20 }
 0x856   : > { %v6066_v12 = vpop.permute.xlu1 %6065  ;;  %v6373_v37 = vld [vmem:[#allocation3 + $0x40] sm:$0xff] }
 0x857   : > { %6151 = vst.msk [vmem:[#allocation3 + $0x50] sm:$0xff] %vm4034_vm4, %v6066_v12  ;;  %v6256_v27 = vpop.permute.xlu0 %6255  ;;  %v6412_v63 = vmul.f32 %v10532_v30, %v6373_v37 }
 0x858   : > { %6342 = vst.msk [vmem:[#allocation3 + $0x48] sm:$0xff] %vm4227_vm5, %v6256_v27  ;;  %5913 = vrot.lane.b32.xlu1 %v5819_v13, %s7194_s20 }
 0x859   : > { %6103 = vrot.lane.b32.xlu0 %v10202_v22, %s7195_s25  ;;  %v6204_v22 = vld [vmem:[#allocation2 + $0x1a2] sm:$0xff]  ;;  %v6460_v27 = vsel %vm4301_vm6, %v6412_v63, 0.0 }
 0x85a   : > { %v6258_v8 = vpop.permute.xlu1 %6257 }
 0x85b   : > { %6343 = vst.msk [vmem:[#allocation3 + $0x50] sm:$0xff] %vm4227_vm5, %v6258_v8  ;;  %v5876_v0 = vpop.permute.xlu0 %5875 }
 0x85c   : > { %5960 = vst.msk [vmem:[#allocation3 + $0x58] sm:$0xff] %vm3841_vm3, %v5876_v0  ;;  %6105 = vrot.lane.b32.xlu1 %v6011_v38, %s7195_s25  ;;  %v6457_v38 = vsel %vm4301_vm6, %v6411_v48, 0.0 }
 0x85d   : > { %6295 = vrot.lane.b32.xlu0 %v10302_v35, %s7196_s11 }
 0x85e   : > { %v5878_v39 = vpop.permute.xlu1 %5877 }
 0x85f   : > { %5961 = vst.msk [vmem:[#allocation3 + $0x60] sm:$0xff] %vm3841_vm3, %v5878_v39  ;;  %v6068_v32 = vpop.permute.xlu0 %6067  ;;  %v6374_v9 = vld [vmem:[#allocation3 + $0x48] sm:$0xff] }
 0x860   : > { %6152 = vst.msk [vmem:[#allocation3 + $0x58] sm:$0xff] %vm4034_vm4, %v6068_v32  ;;  %6297 = vrot.lane.b32.xlu1 %v6203_v41, %s7196_s11  ;;  %v6413_v0 = vmul.f32 %v10532_v30, %v6374_v9 }
 0x861   : > { %5915 = vrot.lane.b32.xlu0 %v5820_v62, %s7194_s20 }
 0x862   : > { %v6070_v23 = vpop.permute.xlu1 %6069  ;;  %v6375_v36 = vld [vmem:[#allocation3 + $0x50] sm:$0xff] }
 0x863   : > { %6153 = vst.msk [vmem:[#allocation3 + $0x60] sm:$0xff] %vm4034_vm4, %v6070_v23  ;;  %v6260_v44 = vpop.permute.xlu0 %6259  ;;  %v6414_v8 = vmul.f32 %v10532_v30, %v6375_v36  ;;  %v6463_v23 = vsel %vm4301_vm6, %v6413_v0, 0.0 }
 0x864   : > { %6344 = vst.msk [vmem:[#allocation3 + $0x58] sm:$0xff] %vm4227_vm5, %v6260_v44  ;;  %6299 = vrot.lane.b32.xlu1 %v6204_v22, %s7196_s11 }
 0x865   : > { %6107 = vrot.lane.b32.xlu0 %v6012_v40, %s7195_s25  ;;  %v6466_v22 = vsel %vm4301_vm6, %v6414_v8, 0.0 }
 0x866   : > { %v6262_v35 = vpop.permute.xlu1 %6261 }
 0x867   : > { %6345 = vst.msk [vmem:[#allocation3 + $0x60] sm:$0xff] %vm4227_vm5, %v6262_v35  ;;  %v5880_v1 = vpop.permute.xlu0 %5879 }
 0x868   : > { %5962 = vst.msk [vmem:[#allocation3 + $0x68] sm:$0xff] %vm3841_vm3, %v5880_v1 }
 0x86a   : > { %v5882_v54 = vpop.permute.xlu1 %5881 }
 0x86b   : > { %5963 = vst.msk [vmem:[#allocation3 + $0x70] sm:$0xff] %vm3841_vm3, %v5882_v54  ;;  %v6072_v31 = vpop.permute.xlu0 %6071  ;;  %v6376_v39 = vld [vmem:[#allocation3 + $0x58] sm:$0xff] }
 0x86c   : > { %6154 = vst.msk [vmem:[#allocation3 + $0x68] sm:$0xff] %vm4034_vm4, %v6072_v31  ;;  %v6415_v44 = vmul.f32 %v10532_v30, %v6376_v39 }
 0x86e   : > { %v6074_v52 = vpop.permute.xlu1 %6073  ;;  %v6377_v41 = vld [vmem:[#allocation3 + $0x60] sm:$0xff] }
 0x86f   : > { %6155 = vst.msk [vmem:[#allocation3 + $0x70] sm:$0xff] %vm4034_vm4, %v6074_v52  ;;  %v6264_v2 = vpop.permute.xlu0 %6263  ;;  %v6416_v40 = vmul.f32 %v10532_v30, %v6377_v41 }
 0x870   : > { %6346 = vst.msk [vmem:[#allocation3 + $0x68] sm:$0xff] %vm4227_vm5, %v6264_v2  ;;  %v6469_v2 = vsel %vm4301_vm6, %v6415_v44, 0.0 }
 0x871   : > { %v6472_v52 = vsel %vm4301_vm6, %v6416_v40, 0.0 }
 0x872   : > { %v6266_v33 = vpop.permute.xlu1 %6265 }
 0x873   : > { %6347 = vst.msk [vmem:[#allocation3 + $0x70] sm:$0xff] %vm4227_vm5, %v6266_v33  ;;  %v5884_v20 = vpop.permute.xlu0 %5883 }
 0x874   : > { %5964 = vst.msk [vmem:[#allocation3 + $0x78] sm:$0xff] %vm3841_vm3, %v5884_v20 }
 0x876   : > { %v5886_v17 = vpop.permute.xlu1 %5885 }
 0x877   : > { %5965 = vst.msk [vmem:[#allocation3 + $0x80] sm:$0xff] %vm3841_vm3, %v5886_v17  ;;  %v6076_v11 = vpop.permute.xlu0 %6075  ;;  %v6378_v1 = vld [vmem:[#allocation3 + $0x68] sm:$0xff] }
 0x878   : > { %6156 = vst.msk [vmem:[#allocation3 + $0x78] sm:$0xff] %vm4034_vm4, %v6076_v11  ;;  %v6417_v20 = vmul.f32 %v10532_v30, %v6378_v1 }
 0x87a   : > { %v6078_v42 = vpop.permute.xlu1 %6077  ;;  %v6379_v35 = vld [vmem:[#allocation3 + $0x70] sm:$0xff] }
 0x87b   : > { %6157 = vst.msk [vmem:[#allocation3 + $0x80] sm:$0xff] %vm4034_vm4, %v6078_v42  ;;  %v6268_v6 = vpop.permute.xlu0 %6267  ;;  %v6418_v33 = vmul.f32 %v10532_v30, %v6379_v35 }
 0x87c   : > { %6348 = vst.msk [vmem:[#allocation3 + $0x78] sm:$0xff] %vm4227_vm5, %v6268_v6 }
 0x87d   : > { %v6478_v43 = vsel %vm4301_vm6, %v6418_v33, 0.0 }
 0x87e   : > { %v6270_v7 = vpop.permute.xlu1 %6269 }
 0x87f   : > { %6349 = vst.msk [vmem:[#allocation3 + $0x80] sm:$0xff] %vm4227_vm5, %v6270_v7  ;;  %v5888_v45 = vpop.permute.xlu0 %5887  ;;  %v6475_v7 = vsel %vm4301_vm6, %v6417_v20, 0.0 }
 0x880   : > { %5966 = vst.msk [vmem:[#allocation3 + $0x88] sm:$0xff] %vm3841_vm3, %v5888_v45 }
 0x882   : > { %v5890_v61 = vpop.permute.xlu1 %5889 }
 0x883   : > { %5967 = vst.msk [vmem:[#allocation3 + $0x90] sm:$0xff] %vm3841_vm3, %v5890_v61  ;;  %v6080_v26 = vpop.permute.xlu0 %6079  ;;  %v6380_v11 = vld [vmem:[#allocation3 + $0x78] sm:$0xff] }
 0x884   : > { %6158 = vst.msk [vmem:[#allocation3 + $0x88] sm:$0xff] %vm4034_vm4, %v6080_v26  ;;  %6437 = vadd.xlane.f32.xlu0 %v6436_v19  ;;  %v6419_v18 = vmul.f32 %v10532_v30, %v6380_v11 }
 0x886   : > { %v6082_v49 = vpop.permute.xlu1 %6081  ;;  %v6381_v17 = vld [vmem:[#allocation3 + $0x80] sm:$0xff]  ;;  %v6481_v56 = vsel %vm4301_vm6, %v6419_v18, 0.0 }
 0x887   : > { %6159 = vst.msk [vmem:[#allocation3 + $0x90] sm:$0xff] %vm4034_vm4, %v6082_v49  ;;  %v6272_v47 = vpop.permute.xlu0 %6271  ;;  %v6420_v45 = vmul.f32 %v10532_v30, %v6381_v17 }
 0x888   : > { %6350 = vst.msk [vmem:[#allocation3 + $0x88] sm:$0xff] %vm4227_vm5, %v6272_v47  ;;  %6440 = vadd.xlane.f32.xlu1 %v6439_v34  ;;  %6443 = vadd.xlane.f32.xlu0 %v6442_v28 }
 0x889   : > { %v6484_v19 = vsel %vm4301_vm6, %v6420_v45, 0.0 }
 0x88a   : > { %v6274_v59 = vpop.permute.xlu1 %6273 }
 0x88b   : > { %6351 = vst.msk [vmem:[#allocation3 + $0x90] sm:$0xff] %vm4227_vm5, %v6274_v59  ;;  %v5892_v5 = vpop.permute.xlu0 %5891 }
 0x88c   : > { %5968 = vst.msk [vmem:[#allocation3 + $0x98] sm:$0xff] %vm3841_vm3, %v5892_v5  ;;  %6446 = vadd.xlane.f32.xlu0 %v6445_v51  ;;  %6449 = vadd.xlane.f32.xlu1 %v6448_v58 }
 0x88e   : > { %v5894_v29 = vpop.permute.xlu1 %5893 }
 0x88f   : > { %5969 = vst.msk [vmem:[#allocation3 + $0xa0] sm:$0xff] %vm3841_vm3, %v5894_v29  ;;  %v6084_v16 = vpop.permute.xlu0 %6083  ;;  %v6382_v21 = vld [vmem:[#allocation3 + $0x88] sm:$0xff] }
 0x890   : > { %6160 = vst.msk [vmem:[#allocation3 + $0x98] sm:$0xff] %vm4034_vm4, %v6084_v16  ;;  %6452 = vadd.xlane.f32.xlu0 %v6451_v24  ;;  %6455 = vadd.xlane.f32.xlu1 %v6454_v50  ;;  %v6421_v3 = vmul.f32 %v10532_v30, %v6382_v21 }
 0x892   : > { %v6086_v13 = vpop.permute.xlu1 %6085  ;;  %v6383_v60 = vld [vmem:[#allocation3 + $0x90] sm:$0xff]  ;;  %v6487_v55 = vsel %vm4301_vm6, %v6421_v3, 0.0 }
 0x893   : > { %6161 = vst.msk [vmem:[#allocation3 + $0xa0] sm:$0xff] %vm4034_vm4, %v6086_v13  ;;  %v6276_v12 = vpop.permute.xlu0 %6275  ;;  %v6422_v4 = vmul.f32 %v10532_v30, %v6383_v60 }
 0x894   : > { %6352 = vst.msk [vmem:[#allocation3 + $0x98] sm:$0xff] %vm4227_vm5, %v6276_v12  ;;  %6461 = vadd.xlane.f32.xlu1 %v6460_v27  ;;  %6458 = vadd.xlane.f32.xlu0 %v6457_v38 }
 0x895   : > { %v6490_v28 = vsel %vm4301_vm6, %v6422_v4, 0.0 }
 0x896   : > { %v6278_v62 = vpop.permute.xlu1 %6277 }
 0x897   : > { %6353 = vst.msk [vmem:[#allocation3 + $0xa0] sm:$0xff] %vm4227_vm5, %v6278_v62  ;;  %v5896_v32 = vpop.permute.xlu0 %5895 }
 0x898   : > { %5970 = vst.msk [vmem:[#allocation3 + $0xa8] sm:$0xff] %vm3841_vm3, %v5896_v32  ;;  %6467 = vadd.xlane.f32.xlu1 %v6466_v22  ;;  %6464 = vadd.xlane.f32.xlu0 %v6463_v23 }
 0x89a   : > { %v5898_v54 = vpop.permute.xlu1 %5897 }
 0x89b   : > { %5971 = vst.msk [vmem:[#allocation3 + $0xb0] sm:$0xff] %vm3841_vm3, %v5898_v54  ;;  %v6088_v31 = vpop.permute.xlu0 %6087  ;;  %v6384_v49 = vld [vmem:[#allocation3 + $0x98] sm:$0xff] }
 0x89c   : > { %6162 = vst.msk [vmem:[#allocation3 + $0xa8] sm:$0xff] %vm4034_vm4, %v6088_v31  ;;  %6473 = vadd.xlane.f32.xlu1 %v6472_v52  ;;  %6470 = vadd.xlane.f32.xlu0 %v6469_v2  ;;  %v6423_v57 = vmul.f32 %v10532_v30, %v6384_v49 }
 0x89e   : > { %v6090_v42 = vpop.permute.xlu1 %6089  ;;  %v6385_v46 = vld [vmem:[#allocation3 + $0xa0] sm:$0xff]  ;;  %v6493_v25 = vsel %vm4301_vm6, %v6423_v57, 0.0 }
 0x89f   : > { %6163 = vst.msk [vmem:[#allocation3 + $0xb0] sm:$0xff] %vm4034_vm4, %v6090_v42  ;;  %v6280_v6 = vpop.permute.xlu0 %6279  ;;  %v6424_v53 = vmul.f32 %v10532_v30, %v6385_v46 }
 0x8a0   : > { %6354 = vst.msk [vmem:[#allocation3 + $0xa8] sm:$0xff] %vm4227_vm5, %v6280_v6  ;;  %6479 = vadd.xlane.f32.xlu1 %v6478_v43  ;;  %6476 = vadd.xlane.f32.xlu0 %v6475_v7 }
 0x8a1   : > { %v6496_v58 = vsel %vm4301_vm6, %v6424_v53, 0.0 }
 0x8a2   : > { %v6282_v61 = vpop.permute.xlu1 %6281 }
 0x8a3   : > { %6355 = vst.msk [vmem:[#allocation3 + $0xb0] sm:$0xff] %vm4227_vm5, %v6282_v61  ;;  %v5900_v26 = vpop.permute.xlu0 %5899 }
 0x8a4   : > { %5972 = vst.msk [vmem:[#allocation3 + $0xb8] sm:$0xff] %vm3841_vm3, %v5900_v26  ;;  %6485 = vadd.xlane.f32.xlu1 %v6484_v19  ;;  %6482 = vadd.xlane.f32.xlu0 %v6481_v56 }
 0x8a6   : > { %v5902_v47 = vpop.permute.xlu1 %5901 }
 0x8a7   : > { %5973 = vst.msk [vmem:[#allocation3 + $0xc0] sm:$0xff] %vm3841_vm3, %v5902_v47  ;;  %v6092_v34 = vpop.permute.xlu0 %6091  ;;  %v6386_v14 = vld [vmem:[#allocation3 + $0xa8] sm:$0xff] }
 0x8a8   : > { %6164 = vst.msk [vmem:[#allocation3 + $0xb8] sm:$0xff] %vm4034_vm4, %v6092_v34  ;;  %6491 = vadd.xlane.f32.xlu1 %v6490_v28  ;;  %6488 = vadd.xlane.f32.xlu0 %v6487_v55  ;;  %v6425_v37 = vmul.f32 %v10532_v30, %v6386_v14  ;;  %v10644_v28 = vld [vmem:[#allocation4] ss:$0 sm:$0xff]  ;;  %v10646_v55 = vld [vmem:[#allocation5] ss:$0 sm:$0xff] }
 0x8aa   : > { %v6094_v59 = vpop.permute.xlu1 %6093  ;;  %v6387_v5 = vld [vmem:[#allocation3 + $0xb0] sm:$0xff]  ;;  %v6499_v24 = vsel %vm4301_vm6, %v6425_v37, 0.0 }
 0x8ab   : > { %6165 = vst.msk [vmem:[#allocation3 + $0xc0] sm:$0xff] %vm4034_vm4, %v6094_v59  ;;  %v6284_v51 = vpop.permute.xlu0 %6283  ;;  %v6426_v10 = vmul.f32 %v10532_v30, %v6387_v5 }
 0x8ac   : > { %6356 = vst.msk [vmem:[#allocation3 + $0xb8] sm:$0xff] %vm4227_vm5, %v6284_v51  ;;  %6497 = vadd.xlane.f32.xlu1 %v6496_v58  ;;  %6494 = vadd.xlane.f32.xlu0 %v6493_v25 }
 0x8ad   : > { %v6502_v16 = vsel %vm4301_vm6, %v6426_v10, 0.0 }
 0x8ae   : > { %v6286_v15 = vpop.permute.xlu1 %6285 }
 0x8af   : > { %6357 = vst.msk [vmem:[#allocation3 + $0xc0] sm:$0xff] %vm4227_vm5, %v6286_v15  ;;  %v5904_v29 = vpop.permute.xlu0 %5903  ;;  %v6643_v15 = vld [vmem:[%s10856_s10 + $0x8] sm:$0xff] }
 0x8b0   : > { %5974 = vst.msk [vmem:[#allocation3 + $0xc8] sm:$0xff] %vm3841_vm3, %v5904_v29  ;;  %6503 = vadd.xlane.f32.xlu1 %v6502_v16  ;;  %6500 = vadd.xlane.f32.xlu0 %v6499_v24  ;;  %v6644_v29 = vld [vmem:[%s10856_s10 + $0x10] sm:$0xff] }
 0x8b2   : > { %v5906_v50 = vpop.permute.xlu1 %5905 }
 0x8b3   : > { %5975 = vst.msk [vmem:[#allocation3 + $0xd0] sm:$0xff] %vm3841_vm3, %v5906_v50  ;;  %v6096_v63 = vpop.permute.xlu0 %6095  ;;  %v6388_v48 = vld [vmem:[#allocation3 + $0xb8] sm:$0xff] }
 0x8b4   : > { %6166 = vst.msk [vmem:[#allocation3 + $0xc8] sm:$0xff] %vm4034_vm4, %v6096_v63  ;;  %v6427_v36 = vmul.f32 %v10532_v30, %v6388_v48 }
 0x8b6   : > { %v6098_v9 = vpop.permute.xlu1 %6097  ;;  %v6505_v13 = vsel %vm4301_vm6, %v6427_v36, 0.0  ;;  %v6389_v12 = vld [vmem:[#allocation3 + $0xc0] sm:$0xff] }
 0x8b7   : > { %6167 = vst.msk [vmem:[#allocation3 + $0xd0] sm:$0xff] %vm4034_vm4, %v6098_v9  ;;  %6506 = vadd.xlane.f32.xlu0 %v6505_v13  ;;  %v6288_v27 = vpop.permute.xlu0 %6287  ;;  %v6428_v38 = vmul.f32 %v10532_v30, %v6389_v12 }
 0x8b8   : > { %6358 = vst.msk [vmem:[#allocation3 + $0xc8] sm:$0xff] %vm4227_vm5, %v6288_v27 }
 0x8b9   : > { %v6508_v8 = vsel %vm4301_vm6, %v6428_v38, 0.0 }
 0x8ba   : > { %v6290_v0 = vpop.permute.xlu1 %6289  ;;  %6509 = vadd.xlane.f32.xlu1 %v6508_v8 }
 0x8bb   : > { %6359 = vst.msk [vmem:[#allocation3 + $0xd0] sm:$0xff] %vm4227_vm5, %v6290_v0  ;;  %v5908_v41 = vpop.permute.xlu0 %5907 }
 0x8bc   : > { %5976 = vst.msk [vmem:[#allocation3 + $0xd8] sm:$0xff] %vm3841_vm3, %v5908_v41 }
 0x8be   : > { %v5910_v39 = vpop.permute.xlu1 %5909 }
 0x8bf   : > { %5977 = vst.msk [vmem:[#allocation3 + $0xe0] sm:$0xff] %vm3841_vm3, %v5910_v39  ;;  %v6100_v62 = vpop.permute.xlu0 %6099  ;;  %v6390_v32 = vld [vmem:[#allocation3 + $0xc8] sm:$0xff] }
 0x8c0   : > { %6168 = vst.msk [vmem:[#allocation3 + $0xd8] sm:$0xff] %vm4034_vm4, %v6100_v62  ;;  %v6429_v22 = vmul.f32 %v10532_v30, %v6390_v32  ;;  %v6646_v62 = vld [vmem:[%s10856_s10 + $0x20] sm:$0xff] }
 0x8c2   : > { %v6102_v23 = vpop.permute.xlu1 %6101  ;;  %v6511_v40 = vsel %vm4301_vm6, %v6429_v22, 0.0  ;;  %v6391_v44 = vld [vmem:[#allocation3 + $0xd0] sm:$0xff]  ;;  %v6645_v22 = vld [vmem:[%s10856_s10 + $0x18] sm:$0xff] }
 0x8c3   : > { %6169 = vst.msk [vmem:[#allocation3 + $0xe0] sm:$0xff] %vm4034_vm4, %v6102_v23  ;;  %6512 = vadd.xlane.f32.xlu0 %v6511_v40  ;;  %v6292_v35 = vpop.permute.xlu0 %6291  ;;  %v6430_v1 = vmul.f32 %v10532_v30, %v6391_v44 }
 0x8c4   : > { %6360 = vst.msk [vmem:[#allocation3 + $0xd8] sm:$0xff] %vm4227_vm5, %v6292_v35 }
 0x8c5   : > { %v6514_v54 = vsel %vm4301_vm6, %v6430_v1, 0.0 }
 0x8c6   : > { %v6294_v31 = vpop.permute.xlu1 %6293  ;;  %6515 = vadd.xlane.f32.xlu1 %v6514_v54 }
 0x8c7   : > { %6361 = vst.msk [vmem:[#allocation3 + $0xe0] sm:$0xff] %vm4227_vm5, %v6294_v31  ;;  %v5912_v52 = vpop.permute.xlu0 %5911 }
 0x8c8   : > { %5978 = vst.msk [vmem:[#allocation3 + $0xe8] sm:$0xff] %vm3841_vm3, %v5912_v52 }
 0x8ca   : > { %v5914_v2 = vpop.permute.xlu1 %5913 }
 0x8cb   : > { %5979 = vst.msk [vmem:[#allocation3 + $0xf0] sm:$0xff] %vm3841_vm3, %v5914_v2  ;;  %v6104_v33 = vpop.permute.xlu0 %6103  ;;  %v6392_v20 = vld [vmem:[#allocation3 + $0xd8] sm:$0xff] }
 0x8cc   : > { %6170 = vst.msk [vmem:[#allocation3 + $0xe8] sm:$0xff] %vm4034_vm4, %v6104_v33  ;;  %v6431_v17 = vmul.f32 %v10532_v30, %v6392_v20 }
 0x8ce   : > { %v6106_v11 = vpop.permute.xlu1 %6105  ;;  %v6517_v42 = vsel %vm4301_vm6, %v6431_v17, 0.0  ;;  %v6393_v6 = vld [vmem:[#allocation3 + $0xe0] sm:$0xff] }
 0x8cf   : > { %6171 = vst.msk [vmem:[#allocation3 + $0xf0] sm:$0xff] %vm4034_vm4, %v6106_v11  ;;  %6518 = vadd.xlane.f32.xlu0 %v6517_v42  ;;  %v6296_v43 = vpop.permute.xlu0 %6295  ;;  %v6432_v7 = vmul.f32 %v10532_v30, %v6393_v6  ;;  %v6648_v11 = vld [vmem:[%s10856_s10 + $0x30] sm:$0xff]  ;;  %v6647_v6 = vld [vmem:[%s10856_s10 + $0x28] sm:$0xff] }
 0x8d0   : > { %6362 = vst.msk [vmem:[#allocation3 + $0xe8] sm:$0xff] %vm4227_vm5, %v6296_v43 }
 0x8d1   : > { %v6520_v45 = vsel %vm4301_vm6, %v6432_v7, 0.0 }
 0x8d2   : > { %v6298_v18 = vpop.permute.xlu1 %6297  ;;  %6521 = vadd.xlane.f32.xlu1 %v6520_v45 }
 0x8d3   : > { %6363 = vst.msk [vmem:[#allocation3 + $0xf0] sm:$0xff] %vm4227_vm5, %v6298_v18  ;;  %v5916_v60 = vpop.permute.xlu0 %5915 }
 0x8d4   : > { %5980 = vst.msk [vmem:[#allocation3 + $0xf8] sm:$0xff] %vm3841_vm3, %v5916_v60 }
 0x8d6   : > { %v6300_v21 = vpop.permute.xlu1 %6299 }
 0x8d7   : > { %v6108_v61 = vpop.permute.xlu0 %6107  ;;  %v6394_v26 = vld [vmem:[#allocation3 + $0xe8] sm:$0xff] }
 0x8d8   : > { %6172 = vst.msk [vmem:[#allocation3 + $0xf8] sm:$0xff] %vm4034_vm4, %v6108_v61  ;;  %v6433_v19 = vmul.f32 %v10532_v30, %v6394_v26 }
 0x8d9   : > { %6364 = vst.msk [vmem:[#allocation3 + $0xf8] sm:$0xff] %vm4227_vm5, %v6300_v21 }
 0x8da   : > { %v6523_v56 = vsel %vm4301_vm6, %v6433_v19, 0.0  ;;  %v6395_v4 = vld [vmem:[#allocation3 + $0xf0] sm:$0xff] }
 0x8db   : > { %6524 = vadd.xlane.f32.xlu0 %v6523_v56  ;;  %v6434_v3 = vmul.f32 %v10532_v30, %v6395_v4  ;;  %v6649_v4 = vld [vmem:[%s10856_s10 + $0x38] sm:$0xff] }
 0x8dd   : > { %v6526_v46 = vsel %vm4301_vm6, %v6434_v3, 0.0 }
 0x8de   : > { %6527 = vadd.xlane.f32.xlu1 %v6526_v46 }
 0x8e0   : > { %v6396_v49 = vld [vmem:[#allocation3 + $0xf8] sm:$0xff] }
 0x8e1   : > { %v6435_v47 = vmul.f32 %v10532_v30, %v6396_v49  ;;  %v6642_v30 = vld [vmem:[%s10856_s10] sm:$0xff] }
 0x8e3   : > { %v6529_v34 = vsel %vm4301_vm6, %v6435_v47, 0.0  ;;  %v6650_v47 = vld [vmem:[%s10856_s10 + $0x40] sm:$0xff] }
 0x8e4   : > { %6530 = vadd.xlane.f32.xlu0 %v6529_v34 }
 0x911   : > { %v6438_v53 = vpop.xlane.xlu0 %6437 }
 0x912   : > { %v6539_v57 = vmul.f32 %v10644_v28, %v6438_v53 }
 0x914   : > { %v6578_v14 = vadd.f32 %v10646_v55, %v6539_v57 }
 0x915   : > { %v6441_v59 = vpop.xlane.xlu1 %6440  ;;  %v6444_v5 = vpop.xlane.xlu0 %6443 }
 0x916   : > { %v6610_v51 = vmax.f32 %v6578_v14, 0.0  ;;  %v6540_v58 = vmul.f32 %v10644_v28, %v6441_v59  ;;  %v6541_v25 = vmul.f32 %v10644_v28, %v6444_v5 }
 0x918   : > { %v6579_v10 = vadd.f32 %v10646_v55, %v6540_v58  ;;  %v6580_v37 = vadd.f32 %v10646_v55, %v6541_v25  ;;  %v6674_v50 = vmul.f32 %v6642_v30, %v6610_v51 }
 0x919   : > { %v6450_v16 = vpop.xlane.xlu1 %6449  ;;  %v6447_v24 = vpop.xlane.xlu0 %6446 }
 0x91a   : > { %v6611_v63 = vmax.f32 %v6579_v10, 0.0  ;;  %v6612_v48 = vmax.f32 %v6580_v37, 0.0  ;;  %v6543_v36 = vmul.f32 %v10644_v28, %v6450_v16  ;;  %v6542_v9 = vmul.f32 %v10644_v28, %v6447_v24  ;;  %v6652_v24 = vld [vmem:[%s10856_s10 + $0x50] sm:$0xff] }
 0x91b   : > { %v6707_v41 = vsel %vm6706_vm0, %v6674_v50, 0.0  ;;  %v6651_v50 = vld [vmem:[%s10856_s10 + $0x48] sm:$0xff] }
 0x91c   : > { %v6675_v13 = vmul.f32 %v6643_v15, %v6611_v63  ;;  %v6676_v12 = vmul.f32 %v6644_v29, %v6612_v48  ;;  %v6582_v27 = vadd.f32 %v10646_v55, %v6543_v36  ;;  %v6581_v38 = vadd.f32 %v10646_v55, %v6542_v9 }
 0x91d   : > { %v6456_v8 = vpop.xlane.xlu1 %6455  ;;  %v6453_v0 = vpop.xlane.xlu0 %6452 }
 0x91e   : > { %v6708_v39 = vsel %vm6706_vm0, %v6675_v13, 0.0  ;;  %v6614_v32 = vmax.f32 %v6582_v27, 0.0  ;;  %v6545_v23 = vmul.f32 %v10644_v28, %v6456_v8  ;;  %v6613_v44 = vmax.f32 %v6581_v38, 0.0 }
 0x91f   : > { %v6709_v40 = vadd.f32 %v6708_v39, %v6707_v41  ;;  %v6544_v35 = vmul.f32 %v10644_v28, %v6453_v0  ;;  %v6710_v1 = vsel %vm6706_vm0, %v6676_v12, 0.0 }
 0x920   : > { %v6584_v54 = vadd.f32 %v10646_v55, %v6545_v23  ;;  %v6678_v52 = vmul.f32 %v6646_v62, %v6614_v32  ;;  %v6677_v2 = vmul.f32 %v6645_v22, %v6613_v44  ;;  %v6653_v32 = vld [vmem:[%s10856_s10 + $0x58] sm:$0xff] }
 0x921   : > { %v6711_v31 = vadd.f32 %v6710_v1, %v6709_v40  ;;  %v6583_v33 = vadd.f32 %v10646_v55, %v6544_v35  ;;  %v6462_v20 = vpop.xlane.xlu1 %6461  ;;  %v6459_v17 = vpop.xlane.xlu0 %6458 }
 0x922   : > { %v6616_v42 = vmax.f32 %v6584_v54, 0.0  ;;  %v6547_v43 = vmul.f32 %v10644_v28, %v6462_v20  ;;  %v6546_v7 = vmul.f32 %v10644_v28, %v6459_v17  ;;  %v6712_v45 = vsel %vm6706_vm0, %v6677_v2, 0.0 }
 0x923   : > { %v6615_v18 = vmax.f32 %v6583_v33, 0.0  ;;  %v6713_v60 = vadd.f32 %v6712_v45, %v6711_v31  ;;  %v6714_v26 = vsel %vm6706_vm0, %v6678_v52, 0.0  ;;  %v6654_v52 = vld [vmem:[%s10856_s10 + $0x60] sm:$0xff] }
 0x924   : > { %v6586_v21 = vadd.f32 %v10646_v55, %v6547_v43  ;;  %v6585_v61 = vadd.f32 %v10646_v55, %v6546_v7  ;;  %v6680_v19 = vmul.f32 %v6648_v11, %v6616_v42  ;;  %v6655_v42 = vld [vmem:[%s10856_s10 + $0x68] sm:$0xff] }
 0x925   : > { %v6679_v56 = vmul.f32 %v6647_v6, %v6615_v18  ;;  %v6468_v3 = vpop.xlane.xlu1 %6467  ;;  %v6465_v46 = vpop.xlane.xlu0 %6464  ;;  %v6715_v49 = vadd.f32 %v6714_v26, %v6713_v60 }
 0x926   : > { %v6618_v34 = vmax.f32 %v6586_v21, 0.0  ;;  %v6617_v53 = vmax.f32 %v6585_v61, 0.0  ;;  %v6549_v14 = vmul.f32 %v10644_v28, %v6468_v3  ;;  %v6548_v59 = vmul.f32 %v10644_v28, %v6465_v46 }
 0x927   : > { %v6716_v57 = vsel %vm6706_vm0, %v6679_v56, 0.0  ;;  %v6718_v58 = vsel %vm6706_vm0, %v6680_v19, 0.0 }
 0x928   : > { %v6717_v5 = vadd.f32 %v6716_v57, %v6715_v49  ;;  %v6681_v51 = vmul.f32 %v6649_v4, %v6617_v53  ;;  %v6682_v25 = vmul.f32 %v6650_v47, %v6618_v34  ;;  %v6588_v30 = vadd.f32 %v10646_v55, %v6549_v14  ;;  %v6656_v4 = vld [vmem:[%s10856_s10 + $0x70] sm:$0xff]  ;;  %v6657_v34 = vld [vmem:[%s10856_s10 + $0x78] sm:$0xff] }
 0x929   : > { %v6587_v10 = vadd.f32 %v10646_v55, %v6548_v59  ;;  %v6474_v37 = vpop.xlane.xlu1 %6473  ;;  %v6471_v15 = vpop.xlane.xlu0 %6470 }
 0x92a   : > { %v6719_v29 = vadd.f32 %v6718_v58, %v6717_v5  ;;  %v6720_v16 = vsel %vm6706_vm0, %v6681_v51, 0.0  ;;  %v6551_v63 = vmul.f32 %v10644_v28, %v6474_v37  ;;  %v6620_v48 = vmax.f32 %v6588_v30, 0.0  ;;  %v6658_v37 = vld [vmem:[%s10856_s10 + $0x80] sm:$0xff] }
 0x92b   : > { %v6619_v36 = vmax.f32 %v6587_v10, 0.0  ;;  %v6550_v9 = vmul.f32 %v10644_v28, %v6471_v15  ;;  %v6722_v27 = vsel %vm6706_vm0, %v6682_v25, 0.0 }
 0x92c   : > { %v6721_v13 = vadd.f32 %v6720_v16, %v6719_v29  ;;  %v6590_v12 = vadd.f32 %v10646_v55, %v6551_v63  ;;  %v6684_v38 = vmul.f32 %v6652_v24, %v6620_v48 }
 0x92d   : > { %v6683_v8 = vmul.f32 %v6651_v50, %v6619_v36  ;;  %v6589_v0 = vadd.f32 %v10646_v55, %v6550_v9  ;;  %v6480_v41 = vpop.xlane.xlu1 %6479  ;;  %v6477_v39 = vpop.xlane.xlu0 %6476  ;;  %v6659_v50 = vld [vmem:[%s10856_s10 + $0x88] sm:$0xff] }
 0x92e   : > { %v6723_v62 = vadd.f32 %v6722_v27, %v6721_v13  ;;  %v6552_v22 = vmul.f32 %v10644_v28, %v6477_v39  ;;  %v6622_v35 = vmax.f32 %v6590_v12, 0.0  ;;  %v6553_v1 = vmul.f32 %v10644_v28, %v6480_v41  ;;  %v6660_v41 = vld [vmem:[%s10856_s10 + $0x90] sm:$0xff] }
 0x92f   : > { %v6724_v23 = vsel %vm6706_vm0, %v6683_v8, 0.0  ;;  %v6621_v40 = vmax.f32 %v6589_v0, 0.0  ;;  %v6726_v31 = vsel %vm6706_vm0, %v6684_v38, 0.0 }
 0x930   : > { %v6725_v44 = vadd.f32 %v6724_v23, %v6723_v62  ;;  %v6591_v54 = vadd.f32 %v10646_v55, %v6552_v22  ;;  %v6686_v43 = vmul.f32 %v6654_v52, %v6622_v35  ;;  %v6592_v7 = vadd.f32 %v10646_v55, %v6553_v1  ;;  %v6661_v23 = vld [vmem:[%s10856_s10 + $0x98] sm:$0xff] }
 0x931   : > { %v6685_v2 = vmul.f32 %v6653_v32, %v6621_v40  ;;  %v6483_v33 = vpop.xlane.xlu0 %6482  ;;  %v6486_v18 = vpop.xlane.xlu1 %6485 }
 0x932   : > { %v6727_v20 = vadd.f32 %v6726_v31, %v6725_v44  ;;  %v6623_v17 = vmax.f32 %v6591_v54, 0.0  ;;  %v6554_v6 = vmul.f32 %v10644_v28, %v6483_v33  ;;  %v6730_v26 = vsel %vm6706_vm0, %v6686_v43, 0.0 }
 0x933   : > { %v6728_v11 = vsel %vm6706_vm0, %v6685_v2, 0.0  ;;  %v6624_v19 = vmax.f32 %v6592_v7, 0.0  ;;  %v6555_v56 = vmul.f32 %v10644_v28, %v6486_v18  ;;  %v6663_v18 = vld [vmem:[%s10856_s10 + $0xa8] sm:$0xff] }
 0x934   : > { %v6729_v45 = vadd.f32 %v6728_v11, %v6727_v20  ;;  %v6687_v60 = vmul.f32 %v6655_v42, %v6623_v17  ;;  %v6593_v21 = vadd.f32 %v10646_v55, %v6554_v6  ;;  %v6662_v11 = vld [vmem:[%s10856_s10 + $0xa0] sm:$0xff] }
 0x935   : > { %v6489_v61 = vpop.xlane.xlu0 %6488  ;;  %v6688_v53 = vmul.f32 %v6656_v4, %v6624_v19  ;;  %v6594_v57 = vadd.f32 %v10646_v55, %v6555_v56  ;;  %v6492_v59 = vpop.xlane.xlu1 %6491 }
 0x936   : > { %v6731_v3 = vadd.f32 %v6730_v26, %v6729_v45  ;;  %v6732_v46 = vsel %vm6706_vm0, %v6687_v60, 0.0  ;;  %v6625_v49 = vmax.f32 %v6593_v21, 0.0  ;;  %v6556_v47 = vmul.f32 %v10644_v28, %v6489_v61 }
 0x937   : > { %v6734_v25 = vsel %vm6706_vm0, %v6688_v53, 0.0  ;;  %v6626_v30 = vmax.f32 %v6594_v57, 0.0  ;;  %v6557_v10 = vmul.f32 %v10644_v28, %v6492_v59 }
 0x938   : > { %v6733_v14 = vadd.f32 %v6732_v46, %v6731_v3  ;;  %v6689_v5 = vmul.f32 %v6657_v34, %v6625_v49  ;;  %v6595_v51 = vadd.f32 %v10646_v55, %v6556_v47  ;;  %v6664_v47 = vld [vmem:[%s10856_s10 + $0xb0] sm:$0xff] }
 0x939   : > { %v6495_v58 = vpop.xlane.xlu0 %6494  ;;  %v6690_v63 = vmul.f32 %v6658_v37, %v6626_v30  ;;  %v6596_v48 = vadd.f32 %v10646_v55, %v6557_v10  ;;  %v6498_v9 = vpop.xlane.xlu1 %6497 }
 0x93a   : > { %v6735_v15 = vadd.f32 %v6734_v25, %v6733_v14  ;;  %v6736_v29 = vsel %vm6706_vm0, %v6689_v5, 0.0  ;;  %v6627_v16 = vmax.f32 %v6595_v51, 0.0  ;;  %v6558_v24 = vmul.f32 %v10644_v28, %v6495_v58  ;;  %v6665_v14 = vld [vmem:[%s10856_s10 + $0xb8] sm:$0xff] }
 0x93b   : > { %v6738_v38 = vsel %vm6706_vm0, %v6690_v63, 0.0  ;;  %v6628_v8 = vmax.f32 %v6596_v48, 0.0  ;;  %v6559_v0 = vmul.f32 %v10644_v28, %v6498_v9  ;;  %v6667_v63 = vld [vmem:[%s10856_s10 + $0xc8] sm:$0xff] }
 0x93c   : > { %v6737_v36 = vadd.f32 %v6736_v29, %v6735_v15  ;;  %v6691_v13 = vmul.f32 %v6659_v50, %v6627_v16  ;;  %v6597_v12 = vadd.f32 %v10646_v55, %v6558_v24  ;;  %v6666_v15 = vld [vmem:[%s10856_s10 + $0xc0] sm:$0xff] }
 0x93d   : > { %v6501_v27 = vpop.xlane.xlu0 %6500  ;;  %v6692_v40 = vmul.f32 %v6660_v41, %v6628_v8  ;;  %v6598_v44 = vadd.f32 %v10646_v55, %v6559_v0  ;;  %v6504_v35 = vpop.xlane.xlu1 %6503  ;;  %v6668_v41 = vld [vmem:[%s10856_s10 + $0xd0] sm:$0xff] }
 0x93e   : > { %v6739_v39 = vadd.f32 %v6738_v38, %v6737_v36  ;;  %v6740_v62 = vsel %vm6706_vm0, %v6691_v13, 0.0  ;;  %v6629_v32 = vmax.f32 %v6597_v12, 0.0  ;;  %v6560_v22 = vmul.f32 %v10644_v28, %v6501_v27 }
 0x93f   : > { %v6561_v2 = vmul.f32 %v10644_v28, %v6504_v35  ;;  %v6742_v33 = vsel %vm6706_vm0, %v6692_v40, 0.0  ;;  %v6630_v20 = vmax.f32 %v6598_v44, 0.0 }
 0x940   : > { %v6741_v1 = vadd.f32 %v6740_v62, %v6739_v39  ;;  %v6693_v31 = vmul.f32 %v6661_v23, %v6629_v32  ;;  %v6599_v52 = vadd.f32 %v10646_v55, %v6560_v22  ;;  %v6669_v22 = vld [vmem:[%s10856_s10 + $0xd8] sm:$0xff] }
 0x941   : > { %v6600_v45 = vadd.f32 %v10646_v55, %v6561_v2  ;;  %v6694_v21 = vmul.f32 %v6662_v11, %v6630_v20 }
 0x942   : > { %v6743_v42 = vadd.f32 %v6742_v33, %v6741_v1  ;;  %v6744_v43 = vsel %vm6706_vm0, %v6693_v31, 0.0  ;;  %v6631_v7 = vmax.f32 %v6599_v52, 0.0  ;;  %v6670_v52 = vld [vmem:[%s10856_s10 + $0xe0] sm:$0xff] }
 0x943   : > { %v6632_v3 = vmax.f32 %v6600_v45, 0.0  ;;  %v6746_v49 = vsel %vm6706_vm0, %v6694_v21, 0.0 }
 0x944   : > { %v6507_v54 = vpop.xlane.xlu0 %6506  ;;  %v6745_v19 = vadd.f32 %v6744_v43, %v6743_v42  ;;  %v6695_v56 = vmul.f32 %v6663_v18, %v6631_v7 }
 0x945   : > { %v6562_v17 = vmul.f32 %v10644_v28, %v6507_v54  ;;  %v6696_v58 = vmul.f32 %v6664_v47, %v6632_v3 }
 0x946   : > { %v6747_v57 = vadd.f32 %v6746_v49, %v6745_v19  ;;  %v6748_v59 = vsel %vm6706_vm0, %v6695_v56, 0.0 }
 0x947   : > { %v6510_v6 = vpop.xlane.xlu1 %6509  ;;  %v6601_v61 = vadd.f32 %v10646_v55, %v6562_v17  ;;  %v6750_v50 = vsel %vm6706_vm0, %v6696_v58, 0.0 }
 0x948   : > { %v6563_v26 = vmul.f32 %v10644_v28, %v6510_v6  ;;  %v6749_v37 = vadd.f32 %v6748_v59, %v6747_v57  ;;  %v6671_v6 = vld [vmem:[%s10856_s10 + $0xe8] sm:$0xff] }
 0x949   : > { %v6633_v34 = vmax.f32 %v6601_v61, 0.0  ;;  %v6672_v61 = vld [vmem:[%s10856_s10 + $0xf0] sm:$0xff] }
 0x94a   : > { %v6602_v53 = vadd.f32 %v10646_v55, %v6563_v26  ;;  %v6751_v27 = vadd.f32 %v6750_v50, %v6749_v37 }
 0x94b   : > { %v6697_v25 = vmul.f32 %v6665_v14, %v6633_v34 }
 0x94c   : > { %v6634_v30 = vmax.f32 %v6602_v53, 0.0  ;;  %v6673_v53 = vld [vmem:[%s10856_s10 + $0xf8] sm:$0xff] }
 0x94d   : > { %v6752_v36 = vsel %vm6706_vm0, %v6697_v25, 0.0 }
 0x94e   : > { %v6698_v9 = vmul.f32 %v6666_v15, %v6634_v30  ;;  %v6753_v0 = vadd.f32 %v6752_v36, %v6751_v27 }
 0x950   : > { %v6513_v60 = vpop.xlane.xlu0 %6512  ;;  %v6754_v39 = vsel %vm6706_vm0, %v6698_v9, 0.0 }
 0x951   : > { %v6564_v4 = vmul.f32 %v10644_v28, %v6513_v60  ;;  %v6755_v44 = vadd.f32 %v6754_v39, %v6753_v0 }
 0x953   : > { %v6516_v46 = vpop.xlane.xlu1 %6515  ;;  %v6603_v5 = vadd.f32 %v10646_v55, %v6564_v4 }
 0x954   : > { %v6565_v51 = vmul.f32 %v10644_v28, %v6516_v46 }
 0x955   : > { %v6635_v16 = vmax.f32 %v6603_v5, 0.0 }
 0x956   : > { %v6604_v24 = vadd.f32 %v10646_v55, %v6565_v51 }
 0x957   : > { %v6699_v38 = vmul.f32 %v6667_v63, %v6635_v16 }
 0x958   : > { %v6636_v8 = vmax.f32 %v6604_v24, 0.0 }
 0x959   : > { %v6756_v23 = vsel %vm6706_vm0, %v6699_v38, 0.0 }
 0x95a   : > { %v6700_v40 = vmul.f32 %v6668_v41, %v6636_v8  ;;  %v6757_v31 = vadd.f32 %v6756_v23, %v6755_v44 }
 0x95c   : > { %v6519_v10 = vpop.xlane.xlu0 %6518  ;;  %v6758_v33 = vsel %vm6706_vm0, %v6700_v40, 0.0 }
 0x95d   : > { %v6566_v29 = vmul.f32 %v10644_v28, %v6519_v10  ;;  %v6759_v7 = vadd.f32 %v6758_v33, %v6757_v31 }
 0x95f   : > { %v6522_v48 = vpop.xlane.xlu1 %6521  ;;  %v6605_v13 = vadd.f32 %v10646_v55, %v6566_v29 }
 0x960   : > { %v6567_v12 = vmul.f32 %v10644_v28, %v6522_v48 }
 0x961   : > { %v6637_v62 = vmax.f32 %v6605_v13, 0.0 }
 0x962   : > { %v6606_v32 = vadd.f32 %v10646_v55, %v6567_v12 }
 0x963   : > { %v6701_v35 = vmul.f32 %v6669_v22, %v6637_v62 }
 0x964   : > { %v6638_v1 = vmax.f32 %v6606_v32, 0.0 }
 0x965   : > { %v6760_v11 = vsel %vm6706_vm0, %v6701_v35, 0.0 }
 0x966   : > { %v6702_v42 = vmul.f32 %v6670_v52, %v6638_v1  ;;  %v6761_v60 = vadd.f32 %v6760_v11, %v6759_v7 }
 0x968   : > { %v6525_v54 = vpop.xlane.xlu0 %6524  ;;  %v6762_v26 = vsel %vm6706_vm0, %v6702_v42, 0.0 }
 0x969   : > { %v6568_v2 = vmul.f32 %v10644_v28, %v6525_v54  ;;  %v6763_v49 = vadd.f32 %v6762_v26, %v6761_v60 }
 0x96b   : > { %v6607_v20 = vadd.f32 %v10646_v55, %v6568_v2  ;;  %v6528_v17 = vpop.xlane.xlu1 %6527 }
 0x96c   : > { %v6569_v43 = vmul.f32 %v10644_v28, %v6528_v17 }
 0x96d   : > { %v6639_v45 = vmax.f32 %v6607_v20, 0.0 }
 0x96e   : > { %v6608_v18 = vadd.f32 %v10646_v55, %v6569_v43 }
 0x96f   : > { %v6703_v21 = vmul.f32 %v6671_v6, %v6639_v45 }
 0x970   : > { %v6640_v19 = vmax.f32 %v6608_v18, 0.0 }
 0x971   : > { %v6531_v56 = vpop.xlane.xlu0 %6530  ;;  %v6764_v4 = vsel %vm6706_vm0, %v6703_v21, 0.0 }
 0x972   : > { %v6704_v3 = vmul.f32 %v6672_v61, %v6640_v19  ;;  %v6570_v46 = vmul.f32 %v10644_v28, %v6531_v56  ;;  %v6765_v34 = vadd.f32 %v6764_v4, %v6763_v49 }
 0x974   : > { %v6609_v47 = vadd.f32 %v10646_v55, %v6570_v46  ;;  %v6766_v57 = vsel %vm6706_vm0, %v6704_v3, 0.0  ;;  %v6776_v55 = vld [vmem:[#allocation6] sm:$0x1] }
 0x975   : > { %v6767_v5 = vadd.f32 %v6766_v57, %v6765_v34 }
 0x976   : > { %v6641_v14 = vmax.f32 %v6609_v47, 0.0 }
 0x978   : > { %v6705_v59 = vmul.f32 %v6673_v53, %v6641_v14 }
 0x97a   : > { %v6768_v51 = vsel %vm6706_vm0, %v6705_v59, 0.0 }
 0x97b   : > { %v6769_v58 = vadd.f32 %v6768_v51, %v6767_v5 }
 0x97d   : > { %v6770_v25 = vrot.slane %v6769_v58, 4 }
 0x97f   : > { %v6771_v30 = vadd.f32 %v6770_v25, %v6769_v58 }
 0x981   : > { %v6772_v28 = vrot.slane %v6771_v30, 2 }
 0x983   : > { %v6773_v10 = vadd.f32 %v6772_v28, %v6771_v30 }
 0x985   : > { %v6774_v37 = vrot.slane %v6773_v10, 1 }
 0x987   : > { %v6775_v15 = vadd.f32 %v6774_v37, %v6773_v10 }
 0x989   : > { %v6777_v29 = vadd.f32 %v6776_v55, %v6775_v15 }
 0x98b   : > { %v6778_v16 = vsub.f32 0.0, %v6777_v29 }
 0x98d   : > { %v6779_v24 = vmul.f32 1.442695, %v6778_v16 }
 0x98f   : > { %7172 = vpow2.f32 %v6779_v24 }
 0x999   : > { %v7173_v50 = vpop.eup %7172 }
 0x99a   : > { %v6781_v63 = vadd.f32 1.0, %v7173_v50 }
 0x99c   : > { %7174 = vrcp.f32 %v6781_v63 }
 0x9a6   : > { %v7175_v48 = vpop.eup %7174 }
 0x9a7   : > { %6785 = vst.msk [vmem:[%s415_s24] sm:$0x1] %vm6784_vm7, %v7175_v48 }
 0x9a8 PF: > { %s28_s27 = sadd.s32 1, %s7182_s27  }
 0x9a9   : > { %p25_p4 = scmp.ge.s32.totalorder %s28_s27, 4  }
 0x9ab   :  { %27 = sbr.rel (!%p25_p4) target bundleno = 4 (0x4), region = 100 }

</bundles_post_ra>
